<compile_context>
chip_gen: v5e
topology: v5e:2x2
jax: 0.10.0
libtpu: 0.0.40
codegen_flags: <defaults>
</compile_context>

<pallas_src>
import jax
import jax.numpy as jnp
import numpy as np
from jax.experimental import pallas as pl
from jax.experimental.pallas import tpu as pltpu

_VMEM_LIMIT = 32 * 1024 * 1024  # safe scoped-VMEM cap on v5e / v6e / v7x


# ----------------------------------------------------------------------------
# Tile selection helpers
# ----------------------------------------------------------------------------
def _conv_batch_tile(b, n, cap):
    """Largest divisor t of b with t <= cap and (t*n) % 128 == 0 (lane-dense
    blocks), preferring b // t >= 2 so the grid splits across v7x's two
    TensorCores.  Falls back to the whole batch (block == full array dim is
    always legal) for awkward / prime b."""
    cands = [t for t in range(1, min(b, cap) + 1)
             if b % t == 0 and (t * n) % 128 == 0]
    multi = [t for t in cands if b // t >= 2]
    if multi:
        return max(multi)
    if cands:
        return max(cands)
    return b


def _mlp_batch_tile(b, cap):
    if b <= cap:
        return b
    for t in range(cap, 15, -1):          # bf16 sublane tile = 16
        if b % t == 0 and t % 16 == 0:
            return t
    return b                               # whole batch (always legal)


# ----------------------------------------------------------------------------
# Fused conv3x3(pad=1) + maxpool(2,2) + bias + ReLU kernel.
# Per grid step: 4 matmuls (cout, 9*cin) @ (9*cin, tb*ho*wo), max over the
# 4 pooling parities, then bias + ReLU (both commute with the max).
# ----------------------------------------------------------------------------
def _conv_pool_kernel(m_ref, w_ref, b_ref, o_ref):
    # m_ref: (4, 9*cin, tb*ho*wo) bf16 parity-split im2col, cols = (image,y,x)
    # w_ref: (cout, 9*cin)        bf16 flattened taps (dy, dx, cin)
    # b_ref: (cout, 1)            f32
    # o_ref: (cout, tb*ho*wo)     bf16 pooled activations, channel-major
    w = w_ref[...]
    acc = jnp.dot(w, m_ref[0], preferred_element_type=jnp.float32)
    for p in range(1, 4):                                   # 2x2 max-pool
        acc = jnp.maximum(
            acc, jnp.dot(w, m_ref[p], preferred_element_type=jnp.float32))
    # bias once after the max; ReLU after the max; single broadcast per step
    o_ref[...] = jnp.maximum(acc + b_ref[...], 0.0).astype(o_ref.dtype)


def _im2col_pool(x_cbhw):
    """(C, B, H, W) -> (4, 9*C, B*(H//2)*(W//2)) bf16 parity-split im2col.

    Rows ordered (dy, dx, cin) to match the flattened conv weights; columns
    ordered (image, out_y, out_x) so contiguous column blocks are batch tiles
    and the conv output is channel-major per image.
    """
    C, B, H, W = x_cbhw.shape
    ho, wo = H // 2, W // 2
    xp = jnp.pad(x_cbhw.astype(jnp.bfloat16), ((0, 0), (0, 0), (1, 1), (1, 1)))
    pars = []
    for a in range(2):
        for b in range(2):
            taps = [xp[:, :, a + dy:a + dy + 2 * ho:2, b + dx:b + dx + 2 * wo:2]
                    for dy in range(3) for dx in range(3)]   # 9 x (C,B,ho,wo)
            pars.append(jnp.stack(taps, axis=0).reshape(9 * C, B * ho * wo))
    return jnp.stack(pars, axis=0)                           # (4, 9C, B*n) bf16


def conv3x3_relu_pool(x_cbhw, w_flat, bias, *, batch_tile=32):
    """x: (Cin, B, H, W) -> (Cout, B*(H//2)*(W//2)) pooled ReLU activations."""
    C, B, H, W = x_cbhw.shape
    cout, kdim = w_flat.shape
    assert kdim == 9 * C and H % 2 == 0 and W % 2 == 0
    n = (H // 2) * (W // 2)

    m = _im2col_pool(x_cbhw)                                 # (4, 9C, B*n) bf16
    tb = _conv_batch_tile(B, n, batch_tile)
    tn = tb * n
    return pl.pallas_call(
        _conv_pool_kernel,
        out_shape=jax.ShapeDtypeStruct((cout, B * n), jnp.bfloat16),
        grid=(B // tb,),
        in_specs=[
            pl.BlockSpec((4, kdim, tn), lambda i: (0, 0, i)),
            pl.BlockSpec((cout, kdim), lambda i: (0, 0)),    # resident weights
            pl.BlockSpec((cout, 1), lambda i: (0, 0)),       # resident bias
        ],
        out_specs=pl.BlockSpec((cout, tn), lambda i: (0, i)),
        compiler_params=pltpu.CompilerParams(
            dimension_semantics=("parallel",),
            vmem_limit_bytes=_VMEM_LIMIT),
    )(m, w_flat.astype(jnp.bfloat16), bias.reshape(cout, 1).astype(jnp.float32))


# ----------------------------------------------------------------------------
# Fused fc1 + ReLU + fc2 kernel, batch-tiled with resident weights.
# ----------------------------------------------------------------------------
def _mlp_kernel(x_ref, w1_ref, b1_ref, w2_ref, b2_ref, o_ref):
    h = jnp.dot(x_ref[...], w1_ref[...], preferred_element_type=jnp.float32)
    h = jnp.maximum(h + b1_ref[...], 0.0).astype(x_ref.dtype)   # bf16 for MXU
    o = jnp.dot(h, w2_ref[...], preferred_element_type=jnp.float32) + b2_ref[...]
    o_ref[...] = o.astype(o_ref.dtype)


def mlp(x, w1, b1, w2, b2, *, batch_tile=256):
    B, D = x.shape
    H = w1.shape[1]
    O = w2.shape[1]
    Opad = ((O + 127) // 128) * 128                 # lane-align fc2 (100 -> 128)
    w2p = jnp.pad(w2, ((0, 0), (0, Opad - O))).astype(jnp.bfloat16)
    b2p = jnp.pad(b2, (0, Opad - O)).reshape(1, Opad).astype(jnp.float32)
    tb = _mlp_batch_tile(B, batch_tile)
    out = pl.pallas_call(
        _mlp_kernel,
        out_shape=jax.ShapeDtypeStruct((B, Opad), jnp.float32),
        grid=(B // tb,),
        in_specs=[
            pl.BlockSpec((tb, D), lambda i: (i, 0)),
            pl.BlockSpec((D, H), lambda i: (0, 0)),      # resident fc1 weight
            pl.BlockSpec((1, H), lambda i: (0, 0)),
            pl.BlockSpec((H, Opad), lambda i: (0, 0)),   # resident fc2 weight
            pl.BlockSpec((1, Opad), lambda i: (0, 0)),
        ],
        out_specs=pl.BlockSpec((tb, Opad), lambda i: (i, 0)),
        compiler_params=pltpu.CompilerParams(
            dimension_semantics=("parallel",),
            vmem_limit_bytes=_VMEM_LIMIT),
    )(x.astype(jnp.bfloat16), w1.astype(jnp.bfloat16),
      b1.reshape(1, H).astype(jnp.float32), w2p, b2p)
    return out[:, :O]


# ----------------------------------------------------------------------------
# Parameters (deterministic; shapes implied by SimpleCNN.__init__)
# Conv weights stored as (Cout, 9*Cin), K ordered (dy, dx, cin) row-major,
# i.e. torch (Cout,Cin,3,3).permute(0,2,3,1).reshape(Cout, 9*Cin).
# FC weights stored transposed (in_features, out_features) so x @ W.
# ----------------------------------------------------------------------------
def init_params(key):
    ks = jax.random.split(key, 8)

    def norm(k, shape, fan_in):
        return jax.random.normal(k, shape, jnp.float32) / np.sqrt(fan_in)

    return dict(
        conv1_w=norm(ks[0], (32, 27), 27),
        conv1_b=norm(ks[1], (32,), 27),
        conv2_w=norm(ks[2], (64, 288), 288),
        conv2_b=norm(ks[3], (64,), 288),
        fc1_w=norm(ks[4], (64 * 8 * 8, 256), 64 * 8 * 8),
        fc1_b=norm(ks[5], (256,), 64 * 8 * 8),
        fc2_w=norm(ks[6], (256, 100), 256),
        fc2_b=norm(ks[7], (100,), 256),
    )


def simple_cnn_forward(params, x_nchw):
    B = x_nchw.shape[0]
    x = jnp.transpose(x_nchw, (1, 0, 2, 3))                           # (3,B,32,32)
    y1 = conv3x3_relu_pool(x, params["conv1_w"], params["conv1_b"])   # (32, B*256)
    y2 = conv3x3_relu_pool(y1.reshape(32, B, 16, 16),
                           params["conv2_w"], params["conv2_b"])      # (64, B*64)
    # torch x.view(B, -1): per-image channel-major flatten (index = c*64 + s)
    xf = y2.reshape(64, B, 64).transpose(1, 0, 2).reshape(B, 64 * 8 * 8)
    return mlp(xf, params["fc1_w"], params["fc1_b"],
               params["fc2_w"], params["fc2_b"])                      # (B, 100)


# ----------------------------------------------------------------------------
# Pure-JAX f32 reference for the correctness check
# ----------------------------------------------------------------------------
def reference_forward(params, x_nchw):
    hi = jax.lax.Precision.HIGHEST

    def conv_block(x_nhwc, w_flat, b):
        cout, k9 = w_flat.shape
        cin = k9 // 9
        w = w_flat.reshape(cout, 3, 3, cin).transpose(1, 2, 3, 0)   # HWIO
        y = jax.lax.conv_general_dilated(
            x_nhwc, w, window_strides=(1, 1), padding="SAME",
            dimension_numbers=("NHWC", "HWIO", "NHWC"), precision=hi)
        y = jax.nn.relu(y + b)
        return jax.lax.reduce_window(y, -jnp.inf, jax.lax.max,
                                     (1, 2, 2, 1), (1, 2, 2, 1), "VALID")

    x = jnp.transpose(x_nchw, (0, 2, 3, 1))
    x = conv_block(x, params["conv1_w"], params["conv1_b"])
    x = conv_block(x, params["conv2_w"], params["conv2_b"])
    x = jnp.transpose(x, (0, 3, 1, 2)).reshape(x.shape[0], -1)
    h = jax.nn.relu(jnp.dot(x, params["fc1_w"], precision=hi) + params["fc1_b"])
    return jnp.dot(h, params["fc2_w"], precision=hi) + params["fc2_b"]


if __name__ == "__main__":
    key = jax.random.PRNGKey(0)
    pkey, xkey = jax.random.split(key)
    params = init_params(pkey)
    # B=8 keeps shapes small while giving both conv grids >= 2 steps and
    # lane-dense (>=128) conv2 blocks.
    x = jax.random.normal(xkey, (8, 3, 32, 32), jnp.float32)   # NCHW like torch

    out = jax.jit(simple_cnn_forward)(params, x)
    out = jax.block_until_ready(out)
    assert out.shape == (8, 100) and out.dtype == jnp.float32

    ref = reference_forward(params, x)
    # bf16 matmul operands (f32 accumulate) vs. an f32 HIGHEST reference.
    np.testing.assert_allclose(np.asarray(out), np.asarray(ref),
                               rtol=5e-2, atol=5e-2)
    print("KERNEL_OK")
</pallas_src>

<mosaic_0001>
module attributes {stable_mosaic.version = 11 : i64} {
  func.func @_conv_pool_kernel(%arg0: i32, %arg1: memref<4x27x1024xbf16, #tpu.memory_space<vmem>>, %arg2: memref<32x27xbf16, #tpu.memory_space<vmem>>, %arg3: memref<32x1xf32, #tpu.memory_space<vmem>>, %arg4: memref<32x1024xbf16, #tpu.memory_space<vmem>>) attributes {dimension_semantics = [#tpu.dimension_semantics<parallel>], iteration_bounds = array<i64: 2>, scalar_prefetch = 0 : i64, scratch_operands = 0 : i64, tpu.core_type = #tpu.core_type<tc>, window_params = [{transform_indices = @transform_0, window_bounds = array<i64: 4, 27, 1024>}, {pipeline_mode = #tpu.pipeline_mode<synchronous>, transform_indices = @transform_1, window_bounds = array<i64: 32, 27>}, {pipeline_mode = #tpu.pipeline_mode<synchronous>, transform_indices = @transform_2, window_bounds = array<i64: 32, 1>}, {transform_indices = @transform_3, window_bounds = array<i64: 32, 1024>}]} {
    %c0 = arith.constant 0 : index
    %c0_0 = arith.constant 0 : index
    %0 = vector.load %arg2[%c0, %c0_0] : memref<32x27xbf16, #tpu.memory_space<vmem>>, vector<32x27xbf16>
    %c0_1 = arith.constant 0 : index
    %c0_2 = arith.constant 0 : index
    %c0_3 = arith.constant 0 : index
    %1 = vector.load %arg1[%c0_1, %c0_2, %c0_3] : memref<4x27x1024xbf16, #tpu.memory_space<vmem>>, vector<1x27x1024xbf16>
    %2 = vector.shape_cast %1 : vector<1x27x1024xbf16> to vector<27x1024xbf16>
    %cst = arith.constant dense<0.000000e+00> : vector<32x1024xf32>
    %3 = tpu.matmul %0, %2, %cst {dimension_numbers = #tpu.dot_dimension_numbers<[1], [0], [0], [1], [0, 0, 1, 1], [], []>} : vector<32x27xbf16>, vector<27x1024xbf16>, vector<32x1024xf32> -> vector<32x1024xf32>
    %c1 = arith.constant 1 : index
    %c0_4 = arith.constant 0 : index
    %c0_5 = arith.constant 0 : index
    %4 = vector.load %arg1[%c1, %c0_4, %c0_5] : memref<4x27x1024xbf16, #tpu.memory_space<vmem>>, vector<1x27x1024xbf16>
    %5 = vector.shape_cast %4 : vector<1x27x1024xbf16> to vector<27x1024xbf16>
    %cst_6 = arith.constant dense<0.000000e+00> : vector<32x1024xf32>
    %6 = tpu.matmul %0, %5, %cst_6 {dimension_numbers = #tpu.dot_dimension_numbers<[1], [0], [0], [1], [0, 0, 1, 1], [], []>} : vector<32x27xbf16>, vector<27x1024xbf16>, vector<32x1024xf32> -> vector<32x1024xf32>
    %7 = arith.maximumf %3, %6 : vector<32x1024xf32>
    %c2 = arith.constant 2 : index
    %c0_7 = arith.constant 0 : index
    %c0_8 = arith.constant 0 : index
    %8 = vector.load %arg1[%c2, %c0_7, %c0_8] : memref<4x27x1024xbf16, #tpu.memory_space<vmem>>, vector<1x27x1024xbf16>
    %9 = vector.shape_cast %8 : vector<1x27x1024xbf16> to vector<27x1024xbf16>
    %cst_9 = arith.constant dense<0.000000e+00> : vector<32x1024xf32>
    %10 = tpu.matmul %0, %9, %cst_9 {dimension_numbers = #tpu.dot_dimension_numbers<[1], [0], [0], [1], [0, 0, 1, 1], [], []>} : vector<32x27xbf16>, vector<27x1024xbf16>, vector<32x1024xf32> -> vector<32x1024xf32>
    %11 = arith.maximumf %7, %10 : vector<32x1024xf32>
    %c3 = arith.constant 3 : index
    %c0_10 = arith.constant 0 : index
    %c0_11 = arith.constant 0 : index
    %12 = vector.load %arg1[%c3, %c0_10, %c0_11] : memref<4x27x1024xbf16, #tpu.memory_space<vmem>>, vector<1x27x1024xbf16>
    %13 = vector.shape_cast %12 : vector<1x27x1024xbf16> to vector<27x1024xbf16>
    %cst_12 = arith.constant dense<0.000000e+00> : vector<32x1024xf32>
    %14 = tpu.matmul %0, %13, %cst_12 {dimension_numbers = #tpu.dot_dimension_numbers<[1], [0], [0], [1], [0, 0, 1, 1], [], []>} : vector<32x27xbf16>, vector<27x1024xbf16>, vector<32x1024xf32> -> vector<32x1024xf32>
    %15 = arith.maximumf %11, %14 : vector<32x1024xf32>
    %c0_13 = arith.constant 0 : index
    %c0_14 = arith.constant 0 : index
    %16 = vector.load %arg3[%c0_13, %c0_14] : memref<32x1xf32, #tpu.memory_space<vmem>>, vector<32x1xf32>
    %17 = vector.broadcast %16 : vector<32x1xf32> to vector<32x1024xf32>
    %18 = arith.addf %15, %17 : vector<32x1024xf32>
    %cst_15 = arith.constant 0.000000e+00 : f32
    %19 = vector.broadcast %cst_15 : f32 to vector<32x1024xf32>
    %20 = arith.maximumf %18, %19 : vector<32x1024xf32>
    %21 = arith.truncf %20 : vector<32x1024xf32> to vector<32x1024xbf16>
    %c0_16 = arith.constant 0 : index
    %c0_17 = arith.constant 0 : index
    %22 = vector.load %arg4[%c0_16, %c0_17] : memref<32x1024xbf16, #tpu.memory_space<vmem>>, vector<32x1024xbf16>
    tpu.vector_store %arg4[%c0_16, %c0_17], %21 {strides = array<i32>} : memref<32x1024xbf16, #tpu.memory_space<vmem>>, vector<32x1024xbf16>,
    return
  }
  func.func @transform_0(%arg0: i32) -> (i32, i32, i32) {
    %c0_i32 = arith.constant 0 : i32
    %c0_i32_0 = arith.constant 0 : i32
    %c0_i32_1 = arith.constant 0 : i32
    return %c0_i32, %c0_i32_0, %arg0 : i32, i32, i32
  }
  func.func @transform_1(%arg0: i32) -> (i32, i32) {
    %c0_i32 = arith.constant 0 : i32
    %c0_i32_0 = arith.constant 0 : i32
    %c0_i32_1 = arith.constant 0 : i32
    return %c0_i32, %c0_i32_0 : i32, i32
  }
  func.func @transform_2(%arg0: i32) -> (i32, i32) {
    %c0_i32 = arith.constant 0 : i32
    %c0_i32_0 = arith.constant 0 : i32
    %c0_i32_1 = arith.constant 0 : i32
    return %c0_i32, %c0_i32_0 : i32, i32
  }
  func.func @transform_3(%arg0: i32) -> (i32, i32) {
    %c0_i32 = arith.constant 0 : i32
    %c0_i32_0 = arith.constant 0 : i32
    return %c0_i32, %arg0 : i32, i32
  }
}

module attributes {stable_mosaic.version = 11 : i64} {
  func.func @_conv_pool_kernel(%arg0: i32, %arg1: memref<4x288x256xbf16, #tpu.memory_space<vmem>>, %arg2: memref<64x288xbf16, #tpu.memory_space<vmem>>, %arg3: memref<64x1xf32, #tpu.memory_space<vmem>>, %arg4: memref<64x256xbf16, #tpu.memory_space<vmem>>) attributes {dimension_semantics = [#tpu.dimension_semantics<parallel>], iteration_bounds = array<i64: 2>, scalar_prefetch = 0 : i64, scratch_operands = 0 : i64, tpu.core_type = #tpu.core_type<tc>, window_params = [{transform_indices = @transform_0, window_bounds = array<i64: 4, 288, 256>}, {pipeline_mode = #tpu.pipeline_mode<synchronous>, transform_indices = @transform_1, window_bounds = array<i64: 64, 288>}, {pipeline_mode = #tpu.pipeline_mode<synchronous>, transform_indices = @transform_2, window_bounds = array<i64: 64, 1>}, {transform_indices = @transform_3, window_bounds = array<i64: 64, 256>}]} {
    %c0 = arith.constant 0 : index
    %c0_0 = arith.constant 0 : index
    %0 = vector.load %arg2[%c0, %c0_0] : memref<64x288xbf16, #tpu.memory_space<vmem>>, vector<64x288xbf16>
    %c0_1 = arith.constant 0 : index
    %c0_2 = arith.constant 0 : index
    %c0_3 = arith.constant 0 : index
    %1 = vector.load %arg1[%c0_1, %c0_2, %c0_3] : memref<4x288x256xbf16, #tpu.memory_space<vmem>>, vector<1x288x256xbf16>
    %2 = vector.shape_cast %1 : vector<1x288x256xbf16> to vector<288x256xbf16>
    %cst = arith.constant dense<0.000000e+00> : vector<64x256xf32>
    %3 = tpu.matmul %0, %2, %cst {dimension_numbers = #tpu.dot_dimension_numbers<[1], [0], [0], [1], [0, 0, 1, 1], [], []>} : vector<64x288xbf16>, vector<288x256xbf16>, vector<64x256xf32> -> vector<64x256xf32>
    %c1 = arith.constant 1 : index
    %c0_4 = arith.constant 0 : index
    %c0_5 = arith.constant 0 : index
    %4 = vector.load %arg1[%c1, %c0_4, %c0_5] : memref<4x288x256xbf16, #tpu.memory_space<vmem>>, vector<1x288x256xbf16>
    %5 = vector.shape_cast %4 : vector<1x288x256xbf16> to vector<288x256xbf16>
    %cst_6 = arith.constant dense<0.000000e+00> : vector<64x256xf32>
    %6 = tpu.matmul %0, %5, %cst_6 {dimension_numbers = #tpu.dot_dimension_numbers<[1], [0], [0], [1], [0, 0, 1, 1], [], []>} : vector<64x288xbf16>, vector<288x256xbf16>, vector<64x256xf32> -> vector<64x256xf32>
    %7 = arith.maximumf %3, %6 : vector<64x256xf32>
    %c2 = arith.constant 2 : index
    %c0_7 = arith.constant 0 : index
    %c0_8 = arith.constant 0 : index
    %8 = vector.load %arg1[%c2, %c0_7, %c0_8] : memref<4x288x256xbf16, #tpu.memory_space<vmem>>, vector<1x288x256xbf16>
    %9 = vector.shape_cast %8 : vector<1x288x256xbf16> to vector<288x256xbf16>
    %cst_9 = arith.constant dense<0.000000e+00> : vector<64x256xf32>
    %10 = tpu.matmul %0, %9, %cst_9 {dimension_numbers = #tpu.dot_dimension_numbers<[1], [0], [0], [1], [0, 0, 1, 1], [], []>} : vector<64x288xbf16>, vector<288x256xbf16>, vector<64x256xf32> -> vector<64x256xf32>
    %11 = arith.maximumf %7, %10 : vector<64x256xf32>
    %c3 = arith.constant 3 : index
    %c0_10 = arith.constant 0 : index
    %c0_11 = arith.constant 0 : index
    %12 = vector.load %arg1[%c3, %c0_10, %c0_11] : memref<4x288x256xbf16, #tpu.memory_space<vmem>>, vector<1x288x256xbf16>
    %13 = vector.shape_cast %12 : vector<1x288x256xbf16> to vector<288x256xbf16>
    %cst_12 = arith.constant dense<0.000000e+00> : vector<64x256xf32>
    %14 = tpu.matmul %0, %13, %cst_12 {dimension_numbers = #tpu.dot_dimension_numbers<[1], [0], [0], [1], [0, 0, 1, 1], [], []>} : vector<64x288xbf16>, vector<288x256xbf16>, vector<64x256xf32> -> vector<64x256xf32>
    %15 = arith.maximumf %11, %14 : vector<64x256xf32>
    %c0_13 = arith.constant 0 : index
    %c0_14 = arith.constant 0 : index
    %16 = vector.load %arg3[%c0_13, %c0_14] : memref<64x1xf32, #tpu.memory_space<vmem>>, vector<64x1xf32>
    %17 = vector.broadcast %16 : vector<64x1xf32> to vector<64x256xf32>
    %18 = arith.addf %15, %17 : vector<64x256xf32>
    %cst_15 = arith.constant 0.000000e+00 : f32
    %19 = vector.broadcast %cst_15 : f32 to vector<64x256xf32>
    %20 = arith.maximumf %18, %19 : vector<64x256xf32>
    %21 = arith.truncf %20 : vector<64x256xf32> to vector<64x256xbf16>
    %c0_16 = arith.constant 0 : index
    %c0_17 = arith.constant 0 : index
    %22 = vector.load %arg4[%c0_16, %c0_17] : memref<64x256xbf16, #tpu.memory_space<vmem>>, vector<64x256xbf16>
    tpu.vector_store %arg4[%c0_16, %c0_17], %21 {strides = array<i32>} : memref<64x256xbf16, #tpu.memory_space<vmem>>, vector<64x256xbf16>,
    return
  }
  func.func @transform_0(%arg0: i32) -> (i32, i32, i32) {
    %c0_i32 = arith.constant 0 : i32
    %c0_i32_0 = arith.constant 0 : i32
    %c0_i32_1 = arith.constant 0 : i32
    return %c0_i32, %c0_i32_0, %arg0 : i32, i32, i32
  }
  func.func @transform_1(%arg0: i32) -> (i32, i32) {
    %c0_i32 = arith.constant 0 : i32
    %c0_i32_0 = arith.constant 0 : i32
    %c0_i32_1 = arith.constant 0 : i32
    return %c0_i32, %c0_i32_0 : i32, i32
  }
  func.func @transform_2(%arg0: i32) -> (i32, i32) {
    %c0_i32 = arith.constant 0 : i32
    %c0_i32_0 = arith.constant 0 : i32
    %c0_i32_1 = arith.constant 0 : i32
    return %c0_i32, %c0_i32_0 : i32, i32
  }
  func.func @transform_3(%arg0: i32) -> (i32, i32) {
    %c0_i32 = arith.constant 0 : i32
    %c0_i32_0 = arith.constant 0 : i32
    return %c0_i32, %arg0 : i32, i32
  }
}

module attributes {stable_mosaic.version = 11 : i64} {
  func.func @_mlp_kernel(%arg0: i32, %arg1: memref<8x4096xbf16, #tpu.memory_space<vmem>>, %arg2: memref<4096x256xbf16, #tpu.memory_space<vmem>>, %arg3: memref<1x256xf32, #tpu.memory_space<vmem>>, %arg4: memref<256x128xbf16, #tpu.memory_space<vmem>>, %arg5: memref<1x128xf32, #tpu.memory_space<vmem>>, %arg6: memref<8x128xf32, #tpu.memory_space<vmem>>) attributes {dimension_semantics = [#tpu.dimension_semantics<parallel>], iteration_bounds = array<i64: 1>, scalar_prefetch = 0 : i64, scratch_operands = 0 : i64, tpu.core_type = #tpu.core_type<tc>, window_params = [{transform_indices = @transform_0, window_bounds = array<i64: 8, 4096>}, {pipeline_mode = #tpu.pipeline_mode<synchronous>, transform_indices = @transform_1, window_bounds = array<i64: 4096, 256>}, {pipeline_mode = #tpu.pipeline_mode<synchronous>, transform_indices = @transform_2, window_bounds = array<i64: 1, 256>}, {pipeline_mode = #tpu.pipeline_mode<synchronous>, transform_indices = @transform_3, window_bounds = array<i64: 256, 128>}, {pipeline_mode = #tpu.pipeline_mode<synchronous>, transform_indices = @transform_4, window_bounds = array<i64: 1, 128>}, {transform_indices = @transform_5, window_bounds = array<i64: 8, 128>}]} {
    %c0 = arith.constant 0 : index
    %c0_0 = arith.constant 0 : index
    %0 = vector.load %arg1[%c0, %c0_0] : memref<8x4096xbf16, #tpu.memory_space<vmem>>, vector<8x4096xbf16>
    %c0_1 = arith.constant 0 : index
    %c0_2 = arith.constant 0 : index
    %1 = vector.load %arg2[%c0_1, %c0_2] : memref<4096x256xbf16, #tpu.memory_space<vmem>>, vector<4096x256xbf16>
    %cst = arith.constant dense<0.000000e+00> : vector<8x256xf32>
    %2 = tpu.matmul %0, %1, %cst {dimension_numbers = #tpu.dot_dimension_numbers<[1], [0], [0], [1], [0, 0, 1, 1], [], []>} : vector<8x4096xbf16>, vector<4096x256xbf16>, vector<8x256xf32> -> vector<8x256xf32>
    %c0_3 = arith.constant 0 : index
    %c0_4 = arith.constant 0 : index
    %3 = vector.load %arg3[%c0_3, %c0_4] : memref<1x256xf32, #tpu.memory_space<vmem>>, vector<1x256xf32>
    %4 = vector.broadcast %3 : vector<1x256xf32> to vector<8x256xf32>
    %5 = arith.addf %2, %4 : vector<8x256xf32>
    %cst_5 = arith.constant 0.000000e+00 : f32
    %6 = vector.broadcast %cst_5 : f32 to vector<8x256xf32>
    %7 = arith.maximumf %5, %6 : vector<8x256xf32>
    %8 = arith.truncf %7 : vector<8x256xf32> to vector<8x256xbf16>
    %c0_6 = arith.constant 0 : index
    %c0_7 = arith.constant 0 : index
    %9 = vector.load %arg4[%c0_6, %c0_7] : memref<256x128xbf16, #tpu.memory_space<vmem>>, vector<256x128xbf16>
    %cst_8 = arith.constant dense<0.000000e+00> : vector<8x128xf32>
    %10 = tpu.matmul %8, %9, %cst_8 {dimension_numbers = #tpu.dot_dimension_numbers<[1], [0], [0], [1], [0, 0, 1, 1], [], []>} : vector<8x256xbf16>, vector<256x128xbf16>, vector<8x128xf32> -> vector<8x128xf32>
    %c0_9 = arith.constant 0 : index
    %c0_10 = arith.constant 0 : index
    %11 = vector.load %arg5[%c0_9, %c0_10] : memref<1x128xf32, #tpu.memory_space<vmem>>, vector<1x128xf32>
    %12 = vector.broadcast %11 : vector<1x128xf32> to vector<8x128xf32>
    %13 = arith.addf %10, %12 : vector<8x128xf32>
    %c0_11 = arith.constant 0 : index
    %c0_12 = arith.constant 0 : index
    %14 = vector.load %arg6[%c0_11, %c0_12] : memref<8x128xf32, #tpu.memory_space<vmem>>, vector<8x128xf32>
    tpu.vector_store %arg6[%c0_11, %c0_12], %13 {strides = array<i32>} : memref<8x128xf32, #tpu.memory_space<vmem>>, vector<8x128xf32>,
    return
  }
  func.func @transform_0(%arg0: i32) -> (i32, i32) {
    %c0_i32 = arith.constant 0 : i32
    %c0_i32_0 = arith.constant 0 : i32
    return %arg0, %c0_i32 : i32, i32
  }
  func.func @transform_1(%arg0: i32) -> (i32, i32) {
    %c0_i32 = arith.constant 0 : i32
    %c0_i32_0 = arith.constant 0 : i32
    %c0_i32_1 = arith.constant 0 : i32
    return %c0_i32, %c0_i32_0 : i32, i32
  }
  func.func @transform_2(%arg0: i32) -> (i32, i32) {
    %c0_i32 = arith.constant 0 : i32
    %c0_i32_0 = arith.constant 0 : i32
    %c0_i32_1 = arith.constant 0 : i32
    return %c0_i32, %c0_i32_0 : i32, i32
  }
  func.func @transform_3(%arg0: i32) -> (i32, i32) {
    %c0_i32 = arith.constant 0 : i32
    %c0_i32_0 = arith.constant 0 : i32
    %c0_i32_1 = arith.constant 0 : i32
    return %c0_i32, %c0_i32_0 : i32, i32
  }
  func.func @transform_4(%arg0: i32) -> (i32, i32) {
    %c0_i32 = arith.constant 0 : i32
    %c0_i32_0 = arith.constant 0 : i32
    %c0_i32_1 = arith.constant 0 : i32
    return %c0_i32, %c0_i32_0 : i32, i32
  }
  func.func @transform_5(%arg0: i32) -> (i32, i32) {
    %c0_i32 = arith.constant 0 : i32
    %c0_i32_0 = arith.constant 0 : i32
    return %arg0, %c0_i32 : i32, i32
  }
}

</mosaic_0001>

<bundles_post_ra>
// kernel: simple_cnn_forward.3
= control target key start
LH: loop header
LB: loop body
LE: loop exit
PB: predicated region body
PF: predicated region fallthrough
CT: control target
= control target key end

     0   :  { %s2260_s12 = smov 0   ;;  %s2262_s13 = smov 0   ;;  %s3207_s0 = inlined_call_operand.vmem [shape: bf16[4,27,2048], index: 0, kind: input, shape index: {}]   ;;  %s3208_s1 = inlined_call_operand.vmem [shape: bf16[32,27], index: 1, kind: input, shape index: {}]   ;;  %s3209_s2 = inlined_call_operand.vmem [shape: f32[32,1], index: 2, kind: input, shape index: {}]   ;;  %s3210_s3 = inlined_call_operand.vmem [shape: bf16[32,2048], index: 3, kind: output, shape index: {}]  }
   0x1   :  { %s2264_s14 = smov 0  }
   0x2 LB: > { %s1727_s15 = sadd.s32 4294967295, %s2236_s14   ;;  %s2277_s16 = sadd.s32 1, %s2236_s14   ;;  %s2236_s14 = sphi %s2264_s14, %s3362_s14   ;;  %s2232_s13 = sphi %s2262_s13, %s3361_s13   ;;  %s2228_s12 = sphi %s2260_s12, %s3360_s12  }
   0x3   : > { %s17_s17 = ssub.s32 %s2236_s14, %s2277_s16  ;;  %s20_s18 = sadd.s32 1, %s2232_s13 }
   0x4   : > { %p18_p0 = scmp.eq.s32.totalorder %s17_s17, 0  ;;  %p27_p1 = scmp.ne.s32.totalorder %s2232_s13, %s2228_s12 }
   0x5   : > { %p28_p2 = scmp.eq.s32.totalorder %s2236_s14, 0  ;;  %p99_p3 = scmp.eq.s32.totalorder %s1727_s15, 1 }
   0x6   : > { %s2288_s19 = scalar_select %p18_p0, %s2232_s13, %s20_s18  }
   0x7   : > { %p29_p4 = por %p28_p2, %p27_p1  ;;  %p2290_p5 = por %p99_p3, %p27_p1 }
   0x8   : > { %p1730_p6 = scmp.ge.s32.totalorder %s2236_s14, 2 }
   0xa   : > { %127 = sbr.rel (%p1730_p6) target bundleno = 83 (0x53), region = 24 }
   0xf   : > { %130 = sbr.rel (!%p29_p4) target bundleno = 83 (0x53), region = 28  ;;  %s132_s21 = sand.u32 (%p29_p4), 1, %s2232_s13  }
  0x10   : > { %s2118_s22 = sshll.u32 (%p29_p4), %s2236_s14, 5  ;;  %s1731_s23 = sshll.u32 (%p29_p4), %s132_s21, 9 }
  0x11   : > { %s2300_s26 = scalar_lea.vmem (%p29_p4), %s3207_s0, %s2118_s22  ;;  %s2305_s27 = scalar_lea.vmem (%p29_p4), [#allocation2], %s1731_s23 }
  0x12   : > { %v150_v0 = vld [vmem:[%s2300_s26] sm:$0xff] (%p29_p4)  ;;  %v152_v1 = vld [vmem:[%s2300_s26 + $0x8] sm:$0xff] (%p29_p4)  ;;  %v154_v2 = vld [vmem:[%s2300_s26 + $0x10] sm:$0xff] (%p29_p4) }
  0x13   : > { %151 = vst [vmem:[%s2305_s27] sm:$0xff] (%p29_p4), %v150_v0  ;;  %v156_v3 = vld [vmem:[%s2300_s26 + $0x18] sm:$0xff] (%p29_p4)  ;;  %v158_v4 = vld [vmem:[%s2300_s26 + $0x40] sm:$0xff] (%p29_p4)  ;;  %v160_v5 = vld [vmem:[%s2300_s26 + $0x48] sm:$0xff] (%p29_p4) }
  0x14   : > { %153 = vst [vmem:[%s2305_s27 + $0x8] sm:$0xff] %v152_v1  ;;  %v162_v6 = vld [vmem:[%s2300_s26 + $0x50] sm:$0xff]  ;;  %v164_v7 = vld [vmem:[%s2300_s26 + $0x58] sm:$0xff]  ;;  %v166_v8 = vld [vmem:[%s2300_s26 + $0x80] sm:$0xff] }
  0x15   : > { %155 = vst [vmem:[%s2305_s27 + $0x10] sm:$0xff] %v154_v2  ;;  %v168_v9 = vld [vmem:[%s2300_s26 + $0x88] sm:$0xff]  ;;  %v170_v10 = vld [vmem:[%s2300_s26 + $0x90] sm:$0xff]  ;;  %v172_v11 = vld [vmem:[%s2300_s26 + $0x98] sm:$0xff] }
  0x16   : > { %157 = vst [vmem:[%s2305_s27 + $0x18] sm:$0xff] %v156_v3  ;;  %v174_v12 = vld [vmem:[%s2300_s26 + $0xc0] sm:$0xff]  ;;  %v176_v13 = vld [vmem:[%s2300_s26 + $0xc8] sm:$0xff]  ;;  %v178_v14 = vld [vmem:[%s2300_s26 + $0xd0] sm:$0xff] }
  0x17   : > { %159 = vst [vmem:[%s2305_s27 + $0x20] sm:$0xff] %v158_v4  ;;  %v180_v15 = vld [vmem:[%s2300_s26 + $0xd8] sm:$0xff]  ;;  %v182_v16 = vld [vmem:[%s2300_s26 + $0x100] sm:$0xff]  ;;  %v184_v17 = vld [vmem:[%s2300_s26 + $0x108] sm:$0xff] }
  0x18   : > { %161 = vst [vmem:[%s2305_s27 + $0x28] sm:$0xff] %v160_v5  ;;  %v186_v18 = vld [vmem:[%s2300_s26 + $0x110] sm:$0xff]  ;;  %v188_v19 = vld [vmem:[%s2300_s26 + $0x118] sm:$0xff]  ;;  %v190_v20 = vld [vmem:[%s2300_s26 + $0x140] sm:$0xff] }
  0x19   : > { %163 = vst [vmem:[%s2305_s27 + $0x30] sm:$0xff] %v162_v6  ;;  %v192_v21 = vld [vmem:[%s2300_s26 + $0x148] sm:$0xff]  ;;  %v194_v22 = vld [vmem:[%s2300_s26 + $0x150] sm:$0xff]  ;;  %v196_v23 = vld [vmem:[%s2300_s26 + $0x158] sm:$0xff] }
  0x1a   : > { %165 = vst [vmem:[%s2305_s27 + $0x38] sm:$0xff] %v164_v7  ;;  %v198_v24 = vld [vmem:[%s2300_s26 + $0x180] sm:$0xff]  ;;  %v200_v25 = vld [vmem:[%s2300_s26 + $0x188] sm:$0xff]  ;;  %v202_v26 = vld [vmem:[%s2300_s26 + $0x190] sm:$0xff] }
  0x1b   : > { %167 = vst [vmem:[%s2305_s27 + $0x40] sm:$0xff] %v166_v8  ;;  %v204_v27 = vld [vmem:[%s2300_s26 + $0x198] sm:$0xff]  ;;  %v206_v28 = vld [vmem:[%s2300_s26 + $0x1c0] sm:$0xff]  ;;  %v208_v29 = vld [vmem:[%s2300_s26 + $0x1c8] sm:$0xff] }
  0x1c   : > { %169 = vst [vmem:[%s2305_s27 + $0x48] sm:$0xff] %v168_v9  ;;  %v210_v30 = vld [vmem:[%s2300_s26 + $0x1d0] sm:$0xff]  ;;  %v212_v31 = vld [vmem:[%s2300_s26 + $0x1d8] sm:$0xff]  ;;  %v214_v32 = vld [vmem:[%s2300_s26 + $0x200] sm:$0xff] }
  0x1d   : > { %171 = vst [vmem:[%s2305_s27 + $0x50] sm:$0xff] %v170_v10  ;;  %v216_v33 = vld [vmem:[%s2300_s26 + $0x208] sm:$0xff]  ;;  %v218_v34 = vld [vmem:[%s2300_s26 + $0x210] sm:$0xff]  ;;  %v220_v35 = vld [vmem:[%s2300_s26 + $0x218] sm:$0xff] }
  0x1e   : > { %173 = vst [vmem:[%s2305_s27 + $0x58] sm:$0xff] %v172_v11  ;;  %v222_v36 = vld [vmem:[%s2300_s26 + $0x240] sm:$0xff]  ;;  %v224_v37 = vld [vmem:[%s2300_s26 + $0x248] sm:$0xff]  ;;  %v226_v38 = vld [vmem:[%s2300_s26 + $0x250] sm:$0xff] }
  0x1f   : > { %175 = vst [vmem:[%s2305_s27 + $0x60] sm:$0xff] %v174_v12  ;;  %v228_v39 = vld [vmem:[%s2300_s26 + $0x258] sm:$0xff]  ;;  %v230_v40 = vld [vmem:[%s2300_s26 + $0x280] sm:$0xff]  ;;  %v232_v41 = vld [vmem:[%s2300_s26 + $0x288] sm:$0xff] }
  0x20   : > { %177 = vst [vmem:[%s2305_s27 + $0x68] sm:$0xff] %v176_v13  ;;  %v234_v42 = vld [vmem:[%s2300_s26 + $0x290] sm:$0xff]  ;;  %v236_v43 = vld [vmem:[%s2300_s26 + $0x298] sm:$0xff]  ;;  %v238_v44 = vld [vmem:[%s2300_s26 + $0x2c0] sm:$0xff] }
  0x21   : > { %179 = vst [vmem:[%s2305_s27 + $0x70] sm:$0xff] %v178_v14  ;;  %v240_v45 = vld [vmem:[%s2300_s26 + $0x2c8] sm:$0xff]  ;;  %v242_v46 = vld [vmem:[%s2300_s26 + $0x2d0] sm:$0xff]  ;;  %v244_v47 = vld [vmem:[%s2300_s26 + $0x2d8] sm:$0xff] }
  0x22   : > { %181 = vst [vmem:[%s2305_s27 + $0x78] sm:$0xff] %v180_v15  ;;  %v246_v48 = vld [vmem:[%s2300_s26 + $0x300] sm:$0xff]  ;;  %v248_v49 = vld [vmem:[%s2300_s26 + $0x308] sm:$0xff]  ;;  %v250_v50 = vld [vmem:[%s2300_s26 + $0x310] sm:$0xff] }
  0x23   : > { %183 = vst [vmem:[%s2305_s27 + $0x80] sm:$0xff] %v182_v16  ;;  %v252_v51 = vld [vmem:[%s2300_s26 + $0x318] sm:$0xff]  ;;  %v254_v52 = vld [vmem:[%s2300_s26 + $0x340] sm:$0xff]  ;;  %v256_v53 = vld [vmem:[%s2300_s26 + $0x348] sm:$0xff] }
  0x24   : > { %185 = vst [vmem:[%s2305_s27 + $0x88] sm:$0xff] %v184_v17  ;;  %v258_v54 = vld [vmem:[%s2300_s26 + $0x350] sm:$0xff]  ;;  %v260_v55 = vld [vmem:[%s2300_s26 + $0x358] sm:$0xff]  ;;  %v262_v56 = vld [vmem:[%s2300_s26 + $0x380] sm:$0xff] }
  0x25   : > { %187 = vst [vmem:[%s2305_s27 + $0x90] sm:$0xff] %v186_v18  ;;  %v264_v57 = vld [vmem:[%s2300_s26 + $0x388] sm:$0xff]  ;;  %v266_v58 = vld [vmem:[%s2300_s26 + $0x390] sm:$0xff]  ;;  %v268_v59 = vld [vmem:[%s2300_s26 + $0x398] sm:$0xff] }
  0x26   : > { %189 = vst [vmem:[%s2305_s27 + $0x98] sm:$0xff] %v188_v19  ;;  %v270_v60 = vld [vmem:[%s2300_s26 + $0x3c0] sm:$0xff]  ;;  %v272_v61 = vld [vmem:[%s2300_s26 + $0x3c8] sm:$0xff]  ;;  %v274_v62 = vld [vmem:[%s2300_s26 + $0x3d0] sm:$0xff] }
  0x27   : > { %191 = vst [vmem:[%s2305_s27 + $0xa0] sm:$0xff] %v190_v20  ;;  %v276_v63 = vld [vmem:[%s2300_s26 + $0x3d8] sm:$0xff] }
  0x28   : > { %193 = vst [vmem:[%s2305_s27 + $0xa8] sm:$0xff] %v192_v21 }
  0x29   : > { %195 = vst [vmem:[%s2305_s27 + $0xb0] sm:$0xff] %v194_v22 }
  0x2a   : > { %197 = vst [vmem:[%s2305_s27 + $0xb8] sm:$0xff] %v196_v23 }
  0x2b   : > { %199 = vst [vmem:[%s2305_s27 + $0xc0] sm:$0xff] %v198_v24 }
  0x2c   : > { %201 = vst [vmem:[%s2305_s27 + $0xc8] sm:$0xff] %v200_v25 }
  0x2d   : > { %203 = vst [vmem:[%s2305_s27 + $0xd0] sm:$0xff] %v202_v26 }
  0x2e   : > { %205 = vst [vmem:[%s2305_s27 + $0xd8] sm:$0xff] %v204_v27 }
  0x2f   : > { %207 = vst [vmem:[%s2305_s27 + $0xe0] sm:$0xff] %v206_v28 }
  0x30   : > { %209 = vst [vmem:[%s2305_s27 + $0xe8] sm:$0xff] %v208_v29 }
  0x31   : > { %211 = vst [vmem:[%s2305_s27 + $0xf0] sm:$0xff] %v210_v30 }
  0x32   : > { %213 = vst [vmem:[%s2305_s27 + $0xf8] sm:$0xff] %v212_v31 }
  0x33   : > { %215 = vst [vmem:[%s2305_s27 + $0x100] sm:$0xff] %v214_v32 }
  0x34   : > { %217 = vst [vmem:[%s2305_s27 + $0x108] sm:$0xff] %v216_v33 }
  0x35   : > { %219 = vst [vmem:[%s2305_s27 + $0x110] sm:$0xff] %v218_v34 }
  0x36   : > { %221 = vst [vmem:[%s2305_s27 + $0x118] sm:$0xff] %v220_v35 }
  0x37   : > { %223 = vst [vmem:[%s2305_s27 + $0x120] sm:$0xff] %v222_v36 }
  0x38   : > { %225 = vst [vmem:[%s2305_s27 + $0x128] sm:$0xff] %v224_v37 }
  0x39   : > { %227 = vst [vmem:[%s2305_s27 + $0x130] sm:$0xff] %v226_v38 }
  0x3a   : > { %229 = vst [vmem:[%s2305_s27 + $0x138] sm:$0xff] %v228_v39 }
  0x3b   : > { %231 = vst [vmem:[%s2305_s27 + $0x140] sm:$0xff] %v230_v40 }
  0x3c   : > { %233 = vst [vmem:[%s2305_s27 + $0x148] sm:$0xff] %v232_v41 }
  0x3d   : > { %235 = vst [vmem:[%s2305_s27 + $0x150] sm:$0xff] %v234_v42 }
  0x3e   : > { %237 = vst [vmem:[%s2305_s27 + $0x158] sm:$0xff] %v236_v43 }
  0x3f   : > { %239 = vst [vmem:[%s2305_s27 + $0x160] sm:$0xff] %v238_v44 }
  0x40   : > { %241 = vst [vmem:[%s2305_s27 + $0x168] sm:$0xff] %v240_v45 }
  0x41   : > { %243 = vst [vmem:[%s2305_s27 + $0x170] sm:$0xff] %v242_v46 }
  0x42   : > { %245 = vst [vmem:[%s2305_s27 + $0x178] sm:$0xff] %v244_v47 }
  0x43   : > { %247 = vst [vmem:[%s2305_s27 + $0x180] sm:$0xff] %v246_v48 }
  0x44   : > { %249 = vst [vmem:[%s2305_s27 + $0x188] sm:$0xff] %v248_v49 }
  0x45   : > { %251 = vst [vmem:[%s2305_s27 + $0x190] sm:$0xff] %v250_v50 }
  0x46   : > { %253 = vst [vmem:[%s2305_s27 + $0x198] sm:$0xff] %v252_v51 }
  0x47   : > { %255 = vst [vmem:[%s2305_s27 + $0x1a0] sm:$0xff] %v254_v52 }
  0x48   : > { %257 = vst [vmem:[%s2305_s27 + $0x1a8] sm:$0xff] %v256_v53 }
  0x49   : > { %259 = vst [vmem:[%s2305_s27 + $0x1b0] sm:$0xff] %v258_v54 }
  0x4a   : > { %261 = vst [vmem:[%s2305_s27 + $0x1b8] sm:$0xff] %v260_v55 }
  0x4b   : > { %263 = vst [vmem:[%s2305_s27 + $0x1c0] sm:$0xff] %v262_v56 }
  0x4c   : > { %265 = vst [vmem:[%s2305_s27 + $0x1c8] sm:$0xff] %v264_v57 }
  0x4d   : > { %267 = vst [vmem:[%s2305_s27 + $0x1d0] sm:$0xff] %v266_v58 }
  0x4e   : > { %269 = vst [vmem:[%s2305_s27 + $0x1d8] sm:$0xff] %v268_v59 }
  0x4f   : > { %271 = vst [vmem:[%s2305_s27 + $0x1e0] sm:$0xff] %v270_v60 }
  0x50   : > { %273 = vst [vmem:[%s2305_s27 + $0x1e8] sm:$0xff] %v272_v61 }
  0x51   : > { %275 = vst [vmem:[%s2305_s27 + $0x1f0] sm:$0xff] %v274_v62 }
  0x52   : > { %277 = vst [vmem:[%s2305_s27 + $0x1f8] sm:$0xff] %v276_v63 }
  0x53 PF: > { %p1734_p7 = scmp.ge.s32.totalorder %s2236_s14, 1  ;;  %p282_p8 = scmp.lt.s32.totalorder %s2236_s14, 3 }
  0x55   : > { %p283_p9 = pnand %p1734_p7, %p282_p8 }
  0x57   : > { %286 = sbr.rel (%p283_p9) target bundleno = 507 (0x1fb), region = 51 }
  0x5c   : > { %s289_s28 = sand.u32 1, %s2228_s12   ;;  %vm423_vm0 = vcmask 1044480   ;;  %vm424_vm1 = vcmask 1045504   ;;  %v2238_v0 = vmov 65535   ;;  %v2472_v41 = vld [vmem:[%s3208_s1] sm:$0xff]  ;;  %vm416_vm2 = vcmask 220160  }
  0x5d   : > { %s1735_s29 = sshll.u32 %s289_s28, 9  ;;  %v425_v1 = vsel %vm423_vm0, 4294967295, %v2238_v0  ;;  %s1736_s23 = sshll.u32 %s289_s28, 7 }
  0x5e   : > { %v2437_v2 = vsel %vm424_vm1, %v425_v1, 0  ;;  %s2439_s30 = scalar_lea.vmem [#allocation2], %s1735_s29  ;;  %s3019_s12 = scalar_lea.vmem [#allocation3], %s1736_s23 }
  0x5f   : > { %v1779_v3 = vld [vmem:[%s2439_s30 + $0x40] sm:$0xf]  ;;  %v2129_v5 = vld [vmem:[%s2439_s30 + $0x44] sm:$0xf]  ;;  %v1787_v8 = vld [vmem:[%s2439_s30 + $0x48] sm:$0xf] }
  0x60   : > { %v2133_v4 = vld [vmem:[%s2439_s30 + $0x5c] sm:$0x30]  ;;  %v1781_v7 = vld [vmem:[%s2439_s30 + $0x60] sm:$0x30]  ;;  %v2134_v9 = vld [vmem:[%s2439_s30 + $0x64] sm:$0x30] }
  0x61   : > { %v1780_v6 = vor.u32 %v2133_v4, %v1779_v3  ;;  %v1784_v10 = vor.u32 %v2129_v5, %v1781_v7  ;;  %v1788_v11 = vor.u32 %v2134_v9, %v1787_v8  ;;  %v2130_v12 = vld [vmem:[%s2439_s30 + $0x4c] sm:$0xf]  ;;  %v1747_v14 = vld [vmem:[%s2439_s30] sm:$0xf]  ;;  %v2121_v18 = vld [vmem:[%s2439_s30 + $0x4] sm:$0xf] }
  0x62   : > { %v1789_v13 = vld [vmem:[%s2439_s30 + $0x68] sm:$0x30]  ;;  %v2125_v17 = vld [vmem:[%s2439_s30 + $0x1c] sm:$0xf0]  ;;  %v1749_v19 = vld [vmem:[%s2439_s30 + $0x20] sm:$0xf0] }
  0x63   : > { %v428_v15 = vand.u32 %v1780_v6, %v2437_v2  ;;  %v1792_v16 = vor.u32 %v2130_v12, %v1789_v13  ;;  %v431_v20 = vand.u32 %v1784_v10, %v2437_v2  ;;  %v434_v21 = vand.u32 %v1788_v11, %v2437_v2  ;;  %v1755_v22 = vld [vmem:[%s2439_s30 + $0x8] sm:$0xf]  ;;  %v2122_v24 = vld [vmem:[%s2439_s30 + $0xc] sm:$0xf]  ;;  %v1803_v28 = vld [vmem:[%s2439_s30 + $0x58] sm:$0xf] }
  0x64   : > { %v2126_v23 = vld [vmem:[%s2439_s30 + $0x24] sm:$0xf0]  ;;  %v1748_v26 = vor.u32 %v2125_v17, %v1747_v14  ;;  %v1757_v27 = vld [vmem:[%s2439_s30 + $0x28] sm:$0xf0]  ;;  %v2136_v29 = vld [vmem:[%s2439_s30 + $0x74] sm:$0x30]  ;;  %v1752_v30 = vor.u32 %v2121_v18, %v1749_v19 }
  0x65   : > { %457 = vmatpush.bf16.msra.mxu0 %v428_v15  ;;  %v437_v25 = vand.u32 %v1792_v16, %v2437_v2  ;;  %476 = vmatpush.bf16.msra.mxu1 %v431_v20  ;;  %v1756_v31 = vor.u32 %v2126_v23, %v1755_v22  ;;  %v1804_v32 = vor.u32 %v2136_v29, %v1803_v28  ;;  %v2132_v33 = vld [vmem:[%s2439_s30 + $0x5c] sm:$0xf]  ;;  %v1795_v35 = vld [vmem:[%s2439_s30 + $0x50] sm:$0xf]  ;;  %v2131_v39 = vld [vmem:[%s2439_s30 + $0x54] sm:$0xf] }
  0x66   : > { %495 = vmatpush.bf16.msra.mxu2 %v434_v21  ;;  %v1805_v34 = vld [vmem:[%s2439_s30 + $0x78] sm:$0x30]  ;;  %v1760_v36 = vor.u32 %v2122_v24, %v1757_v27  ;;  %v2135_v38 = vld [vmem:[%s2439_s30 + $0x6c] sm:$0x30]  ;;  %v1797_v40 = vld [vmem:[%s2439_s30 + $0x70] sm:$0x30] }
  0x67   : > { %514 = vmatpush.bf16.msra.mxu3 %v437_v25  ;;  %v1808_v37 = vor.u32 %v2132_v33, %v1805_v34  ;;  %v446_v42 = vand.u32 %v1804_v32, %v2437_v2  ;;  %v1796_v43 = vor.u32 %v2135_v38, %v1795_v35  ;;  %v1800_v44 = vor.u32 %v2131_v39, %v1797_v40  ;;  %v1771_v45 = vld [vmem:[%s2439_s30 + $0x18] sm:$0xf]  ;;  %v2124_v48 = vld [vmem:[%s2439_s30 + $0x1c] sm:$0xf]  ;;  %v1763_v53 = vld [vmem:[%s2439_s30 + $0x10] sm:$0xf] }
  0x68   : > { %v2128_v46 = vld [vmem:[%s2439_s30 + $0x34] sm:$0xf0]  ;;  %v1773_v49 = vld [vmem:[%s2439_s30 + $0x38] sm:$0xf0]  ;;  %v2127_v54 = vld [vmem:[%s2439_s30 + $0x2c] sm:$0xf0] }
  0x69   : > { %458 = vmatpush.bf16.msra.mxu0 %v1748_v26  ;;  %v449_v47 = vand.u32 %v1808_v37, %v2437_v2  ;;  %477 = vmatpush.bf16.msra.mxu1 %v1752_v30  ;;  %v440_v50 = vand.u32 %v1796_v43, %v2437_v2  ;;  %v443_v51 = vand.u32 %v1800_v44, %v2437_v2  ;;  %v2123_v56 = vld [vmem:[%s2439_s30 + $0x14] sm:$0xf]  ;;  %v1883_v59 = vld [vmem:[%s2439_s30 + $0xc8] sm:$0xf]  ;;  %v2146_v61 = vld [vmem:[%s2439_s30 + $0xcc] sm:$0xf] }
  0x6a   : > { %496 = vmatpush.bf16.msra.mxu2 %v1756_v31  ;;  %v1772_v52 = vor.u32 %v2128_v46, %v1771_v45  ;;  %v1776_v55 = vor.u32 %v2124_v48, %v1773_v49  ;;  %v1765_v57 = vld [vmem:[%s2439_s30 + $0x30] sm:$0xf0]  ;;  %v1764_v58 = vor.u32 %v2127_v54, %v1763_v53  ;;  %v2150_v60 = vld [vmem:[%s2439_s30 + $0xe4] sm:$0x30]  ;;  %v1885_v0 = vld [vmem:[%s2439_s30 + $0xe8] sm:$0x30] }
  0x6b   : > { %515 = vmatpush.bf16.msra.mxu3 %v1760_v36  ;;  %v1768_v62 = vor.u32 %v2123_v56, %v1765_v57  ;;  %v1884_v63 = vor.u32 %v2150_v60, %v1883_v59  ;;  %v1875_v1 = vld [vmem:[%s2439_s30 + $0xc0] sm:$0xf]  ;;  %v1888_v4 = vor.u32 %v2146_v61, %v1885_v0  ;;  %v2145_v6 = vld [vmem:[%s2439_s30 + $0xc4] sm:$0xf]  ;;  %v2509_v13 = vld [vmem:[%s3208_s1 + $0x8] sm:$0xff]  ;;  %s2185_s24 = sshll.u32 (%p2290_p5), %s1727_s15, 5 }
  0x6c   : > { %1809 = vmatmul.msk.bf16.vlgmr.msra.gmra.mxu0 %vm416_vm2, %v2472_v41  ;;  %1811 = vmatmul.msk.bf16.vlgmr.msra.gmra.mxu1 %vm416_vm2, %v2472_v41  ;;  %v2149_v3 = vld [vmem:[%s2439_s30 + $0xdc] sm:$0x30]  ;;  %v1877_v7 = vld [vmem:[%s2439_s30 + $0xe0] sm:$0x30]  ;;  %v1851_v14 = vld [vmem:[%s2439_s30 + $0x88] sm:$0xf]  ;;  %s1623_s20 = scalar_lea.vmem (%p2290_p5), %s3210_s3, %s2185_s24 }
  0x6d   : > { %1813 = vmatmul.msk.bf16.vlgmr.msra.gmra.mxu2 %vm416_vm2, %v2472_v41  ;;  %533 = vmatpush.bf16.msrb.mxu0 %v440_v50  ;;  %v1876_v5 = vor.u32 %v2149_v3, %v1875_v1  ;;  %v699_v8 = vand.u32 %v1884_v63, %v2437_v2  ;;  %v1880_v9 = vor.u32 %v2145_v6, %v1877_v7  ;;  %v2142_v15 = vld [vmem:[%s2439_s30 + $0xa4] sm:$0xf0]  ;;  %v2138_v16 = vld [vmem:[%s2439_s30 + $0x8c] sm:$0xf]  ;;  %v1843_v19 = vld [vmem:[%s2439_s30 + $0x80] sm:$0xf] }
  0x6e   : > { %571 = vmatpush.bf16.msrb.mxu2 %v446_v42  ;;  %1815 = vmatmul.msk.bf16.vlgmr.msra.gmra.mxu3 %vm416_vm2, %v2472_v41  ;;  %v702_v10 = vand.u32 %v1888_v4, %v2437_v2  ;;  %v1852_v17 = vor.u32 %v2142_v15, %v1851_v14  ;;  %v1853_v18 = vld [vmem:[%s2439_s30 + $0xa8] sm:$0xf0]  ;;  %v2141_v20 = vld [vmem:[%s2439_s30 + $0x9c] sm:$0xf0]  ;;  %v2137_v23 = vld [vmem:[%s2439_s30 + $0x84] sm:$0xf] }
  0x6f   : > { %590 = vmatpush.bf16.msrb.mxu3 %v449_v47  ;;  %552 = vmatpush.bf16.msrb.mxu1 %v443_v51  ;;  %v693_v11 = vand.u32 %v1876_v5, %v2437_v2  ;;  %v696_v12 = vand.u32 %v1880_v9, %v2437_v2  ;;  %v1856_v21 = vor.u32 %v2138_v16, %v1853_v18  ;;  %v1845_v24 = vld [vmem:[%s2439_s30 + $0xa0] sm:$0xf0]  ;;  %v1899_v26 = vld [vmem:[%s2439_s30 + $0xd8] sm:$0xf]  ;;  %v2148_v28 = vld [vmem:[%s2439_s30 + $0xdc] sm:$0xf] }
  0x70   : > { %v1844_v22 = vor.u32 %v2141_v20, %v1843_v19  ;;  %v1848_v25 = vor.u32 %v2137_v23, %v1845_v24  ;;  %v2152_v27 = vld [vmem:[%s2439_s30 + $0xf4] sm:$0x30]  ;;  %v1901_v30 = vld [vmem:[%s2439_s30 + $0xf8] sm:$0x30]  ;;  %v1891_v31 = vld [vmem:[%s2439_s30 + $0xd0] sm:$0xf] }
  0x71   : > { %534 = vmatpush.bf16.msrb.mxu0 %v1764_v58  ;;  %v1900_v29 = vor.u32 %v2152_v27, %v1899_v26  ;;  %v2151_v32 = vld [vmem:[%s2439_s30 + $0xec] sm:$0x30]  ;;  %v1904_v33 = vor.u32 %v2148_v28, %v1901_v30  ;;  %v2147_v35 = vld [vmem:[%s2439_s30 + $0xd4] sm:$0xf]  ;;  %v1867_v43 = vld [vmem:[%s2439_s30 + $0x98] sm:$0xf] }
  0x72   : > { %572 = vmatpush.bf16.msrb.mxu2 %v1772_v52  ;;  %v1892_v34 = vor.u32 %v2151_v32, %v1891_v31  ;;  %v1893_v36 = vld [vmem:[%s2439_s30 + $0xf0] sm:$0x30]  ;;  %v2144_v44 = vld [vmem:[%s2439_s30 + $0xb4] sm:$0xf0]  ;;  %v2140_v45 = vld [vmem:[%s2439_s30 + $0x9c] sm:$0xf] }
  0x73   : > { %591 = vmatpush.bf16.msrb.mxu3 %v1776_v55  ;;  %553 = vmatpush.bf16.msrb.mxu1 %v1768_v62  ;;  %v711_v37 = vand.u32 %v1900_v29, %v2437_v2  ;;  %v1896_v38 = vor.u32 %v2147_v35, %v1893_v36  ;;  %v714_v39 = vand.u32 %v1904_v33, %v2437_v2  ;;  %v1869_v47 = vld [vmem:[%s2439_s30 + $0xb8] sm:$0xf0]  ;;  %v1859_v48 = vld [vmem:[%s2439_s30 + $0x90] sm:$0xf]  ;;  %v2139_v52 = vld [vmem:[%s2439_s30 + $0x94] sm:$0xf] }
  0x74   : > { %v705_v40 = vand.u32 %v1892_v34, %v2437_v2  ;;  %v1868_v46 = vor.u32 %v2144_v44, %v1867_v43  ;;  %v2143_v49 = vld [vmem:[%s2439_s30 + $0xac] sm:$0xf0]  ;;  %v1872_v50 = vor.u32 %v2140_v45, %v1869_v47  ;;  %v1861_v53 = vld [vmem:[%s2439_s30 + $0xb0] sm:$0xf0]  ;;  %v1979_v55 = vld [vmem:[%s2439_s30 + $0x148] sm:$0xf] }
  0x75   : > { %722 = vmatpush.bf16.msra.mxu0 %v693_v11  ;;  %v708_v42 = vand.u32 %v1896_v38, %v2437_v2  ;;  %v1860_v51 = vor.u32 %v2143_v49, %v1859_v48  ;;  %v1864_v54 = vor.u32 %v2139_v52, %v1861_v53  ;;  %v2166_v56 = vld [vmem:[%s2439_s30 + $0x164] sm:$0x30]  ;;  %v2162_v57 = vld [vmem:[%s2439_s30 + $0x14c] sm:$0xf]  ;;  %v1971_v60 = vld [vmem:[%s2439_s30 + $0x140] sm:$0xf] }
  0x76   : > { %760 = vmatpush.bf16.msra.mxu2 %v699_v8  ;;  %v1980_v58 = vor.u32 %v2166_v56, %v1979_v55  ;;  %v1981_v59 = vld [vmem:[%s2439_s30 + $0x168] sm:$0x30]  ;;  %v2165_v61 = vld [vmem:[%s2439_s30 + $0x15c] sm:$0x30]  ;;  %v2161_v0 = vld [vmem:[%s2439_s30 + $0x144] sm:$0xf] }
  0x77   : > { %779 = vmatpush.bf16.msra.mxu3 %v702_v10  ;;  %741 = vmatpush.bf16.msra.mxu1 %v696_v12  ;;  %v1984_v62 = vor.u32 %v2162_v57, %v1981_v59  ;;  %v1972_v63 = vor.u32 %v2165_v61, %v1971_v60  ;;  %v1973_v1 = vld [vmem:[%s2439_s30 + $0x160] sm:$0x30]  ;;  %v1947_v8 = vld [vmem:[%s2439_s30 + $0x108] sm:$0xf]  ;;  %v2154_v10 = vld [vmem:[%s2439_s30 + $0x10c] sm:$0xf] }
  0x78   : > { %v996_v3 = vand.u32 %v1980_v58, %v2437_v2  ;;  %v1976_v4 = vor.u32 %v2161_v0, %v1973_v1  ;;  %v2158_v9 = vld [vmem:[%s2439_s30 + $0x124] sm:$0xf0]  ;;  %v1949_v12 = vld [vmem:[%s2439_s30 + $0x128] sm:$0xf0]  ;;  %v1939_v14 = vld [vmem:[%s2439_s30 + $0x100] sm:$0xf] }
  0x79   : > { %723 = vmatpush.bf16.msra.mxu0 %v1844_v22  ;;  %v999_v5 = vand.u32 %v1984_v62, %v2437_v2  ;;  %v990_v6 = vand.u32 %v1972_v63, %v2437_v2  ;;  %v1948_v11 = vor.u32 %v2158_v9, %v1947_v8  ;;  %v2157_v15 = vld [vmem:[%s2439_s30 + $0x11c] sm:$0xf0]  ;;  %v1952_v16 = vor.u32 %v2154_v10, %v1949_v12  ;;  %v2153_v18 = vld [vmem:[%s2439_s30 + $0x104] sm:$0xf]  ;;  %v2168_v22 = vld [vmem:[%s2439_s30 + $0x174] sm:$0x30] }
  0x7a   : > { %761 = vmatpush.bf16.msra.mxu2 %v1852_v17  ;;  %v993_v7 = vand.u32 %v1976_v4, %v2437_v2  ;;  %v1940_v17 = vor.u32 %v2157_v15, %v1939_v14  ;;  %v1941_v19 = vld [vmem:[%s2439_s30 + $0x120] sm:$0xf0]  ;;  %v2164_v23 = vld [vmem:[%s2439_s30 + $0x15c] sm:$0xf]  ;;  %v1987_v29 = vld [vmem:[%s2439_s30 + $0x150] sm:$0xf] }
  0x7b   : > { %780 = vmatpush.bf16.msra.mxu3 %v1856_v21  ;;  %742 = vmatpush.bf16.msra.mxu1 %v1848_v25  ;;  %v1944_v20 = vor.u32 %v2153_v18, %v1941_v19  ;;  %v1995_v21 = vld [vmem:[%s2439_s30 + $0x158] sm:$0xf]  ;;  %v1997_v25 = vld [vmem:[%s2439_s30 + $0x178] sm:$0x30]  ;;  %v2167_v30 = vld [vmem:[%s2439_s30 + $0x16c] sm:$0x30] }
  0x7c   : > { %1810 = vmatmul.msk.bf16.gmra.mxu0 %vm416_vm2, %v2509_v13  ;;  %1812 = vmatmul.msk.bf16.gmra.mxu1 %vm416_vm2, %v2509_v13  ;;  %v1996_v24 = vor.u32 %v2168_v22, %v1995_v21  ;;  %v2000_v26 = vor.u32 %v2164_v23, %v1997_v25  ;;  %v2163_v31 = vld [vmem:[%s2439_s30 + $0x154] sm:$0xf]  ;;  %v1988_v32 = vor.u32 %v2167_v30, %v1987_v29  ;;  %v2160_v38 = vld [vmem:[%s2439_s30 + $0x134] sm:$0xf0]  ;;  %v1955_v44 = vld [vmem:[%s2439_s30 + $0x110] sm:$0xf] }
  0x7d   : > { %1814 = vmatmul.msk.bf16.gmra.mxu2 %vm416_vm2, %v2509_v13  ;;  %v1989_v33 = vld [vmem:[%s2439_s30 + $0x170] sm:$0x30]  ;;  %v2159_v45 = vld [vmem:[%s2439_s30 + $0x12c] sm:$0xf0]  ;;  %v2075_v52 = vld [vmem:[%s2439_s30 + $0x1c8] sm:$0xf] }
  0x7e   : > { %1816 = vmatmul.msk.bf16.gmra.mxu3 %vm416_vm2, %v2509_v13  ;;  %v1008_v27 = vand.u32 %v1996_v24, %v2437_v2  ;;  %v1011_v28 = vand.u32 %v2000_v26, %v2437_v2  ;;  %v1992_v34 = vor.u32 %v2163_v31, %v1989_v33  ;;  %v1002_v35 = vand.u32 %v1988_v32, %v2437_v2  ;;  %v1957_v48 = vld [vmem:[%s2439_s30 + $0x130] sm:$0xf0]  ;;  %v2182_v53 = vld [vmem:[%s2439_s30 + $0x1e4] sm:$0x30]  ;;  %v2077_v56 = vld [vmem:[%s2439_s30 + $0x1e8] sm:$0x30] }
  0x7f   : > { %v1956_v47 = vor.u32 %v2159_v45, %v1955_v44  ;;  %v2076_v55 = vor.u32 %v2182_v53, %v2075_v52  ;;  %v2067_v0 = vld [vmem:[%s2439_s30 + $0x1c0] sm:$0xf]  ;;  %v2043_v14 = vld [vmem:[%s2439_s30 + $0x188] sm:$0xf]  ;;  %v2045_v18 = vld [vmem:[%s2439_s30 + $0x1a8] sm:$0xf0] }
  0x80   : > { %v1005_v36 = vand.u32 %v1992_v34, %v2437_v2  ;;  %v2181_v1 = vld [vmem:[%s2439_s30 + $0x1dc] sm:$0x30]  ;;  %v2174_v15 = vld [vmem:[%s2439_s30 + $0x1a4] sm:$0xf0]  ;;  %v2169_v26 = vld [vmem:[%s2439_s30 + $0x184] sm:$0xf] }
  0x81   : > { %v1293_v61 = vand.u32 %v2076_v55, %v2437_v2  ;;  %v2068_v4 = vor.u32 %v2181_v1, %v2067_v0  ;;  %v2035_v24 = vld [vmem:[%s2439_s30 + $0x180] sm:$0xf]  ;;  %v2091_v34 = vld [vmem:[%s2439_s30 + $0x1d8] sm:$0xf]  ;;  %v2085_v53 = vld [vmem:[%s2439_s30 + $0x1f0] sm:$0x30] }
  0x82   : > { %v2173_v25 = vld [vmem:[%s2439_s30 + $0x19c] sm:$0xf0]  ;;  %v2239_v1 = vmov 0  }
  0x83   : > { %2212 = vset.pattern.permute.xlu0 %v2239_v1  ;;  %2213 = vset.pattern.permute.xlu1 %v2239_v1 }
  0x8c   : > { %1817 = vmatmul.msk.bf16.vlgmr.msrb.gmra.mxu0 %vm416_vm2, %v2472_v41  ;;  %1819 = vmatmul.msk.bf16.vlgmr.msrb.gmra.mxu1 %vm416_vm2, %v2472_v41 }
  0x8d   : > { %1821 = vmatmul.msk.bf16.vlgmr.msrb.gmra.mxu2 %vm416_vm2, %v2472_v41  ;;  %798 = vmatpush.bf16.msrb.mxu0 %v705_v40 }
  0x8e   : > { %1823 = vmatmul.msk.bf16.vlgmr.msrb.gmra.mxu3 %vm416_vm2, %v2472_v41  ;;  %836 = vmatpush.bf16.msrb.mxu2 %v711_v37  ;;  %v1963_v37 = vld [vmem:[%s2439_s30 + $0x118] sm:$0xf] }
  0x8f   : > { %855 = vmatpush.bf16.msrb.mxu3 %v714_v39  ;;  %817 = vmatpush.bf16.msrb.mxu1 %v708_v42  ;;  %v2156_v39 = vld [vmem:[%s2439_s30 + $0x11c] sm:$0xf]  ;;  %v1964_v40 = vor.u32 %v2160_v38, %v1963_v37 }
  0x90   : > { %v1965_v42 = vld [vmem:[%s2439_s30 + $0x138] sm:$0xf0] }
  0x91   : > { %799 = vmatpush.bf16.msrb.mxu0 %v1860_v51  ;;  %v1968_v43 = vor.u32 %v2156_v39, %v1965_v42  ;;  %v2093_v38 = vld [vmem:[%s2439_s30 + $0x1f8] sm:$0x30] }
  0x92   : > { %837 = vmatpush.bf16.msrb.mxu2 %v1868_v46  ;;  %v2155_v46 = vld [vmem:[%s2439_s30 + $0x114] sm:$0xf] }
  0x93   : > { %856 = vmatpush.bf16.msrb.mxu3 %v1872_v50  ;;  %818 = vmatpush.bf16.msrb.mxu1 %v1864_v54  ;;  %v1960_v49 = vor.u32 %v2155_v46, %v1957_v48  ;;  %v2178_v54 = vld [vmem:[%s2439_s30 + $0x1cc] sm:$0xf]  ;;  %v2183_v48 = vld [vmem:[%s2439_s30 + $0x1ec] sm:$0x30] }
  0x94   : > { %v2080_v58 = vor.u32 %v2178_v54, %v2077_v56 }
  0x96   : > { %v1296_v63 = vand.u32 %v2080_v58, %v2437_v2 }
  0x9c   : > { %1818 = vmatmul.msk.bf16.gmra.mxu0 %vm416_vm2, %v2509_v13  ;;  %1820 = vmatmul.msk.bf16.gmra.mxu1 %vm416_vm2, %v2509_v13 }
  0x9d   : > { %1822 = vmatmul.msk.bf16.gmra.mxu2 %vm416_vm2, %v2509_v13 }
  0x9e   : > { %1824 = vmatmul.msk.bf16.gmra.mxu3 %vm416_vm2, %v2509_v13 }
  0xac   : > { %1905 = vmatmul.msk.bf16.vlgmr.msra.gmra.mxu0 %vm416_vm2, %v2472_v41  ;;  %1907 = vmatmul.msk.bf16.vlgmr.msra.gmra.mxu1 %vm416_vm2, %v2472_v41 }
  0xad   : > { %1909 = vmatmul.msk.bf16.vlgmr.msra.gmra.mxu2 %vm416_vm2, %v2472_v41  ;;  %1019 = vmatpush.bf16.msra.mxu0 %v990_v6 }
  0xae   : > { %1911 = vmatmul.msk.bf16.vlgmr.msra.gmra.mxu3 %vm416_vm2, %v2472_v41  ;;  %1057 = vmatpush.bf16.msra.mxu2 %v996_v3  ;;  %v2177_v3 = vld [vmem:[%s2439_s30 + $0x1c4] sm:$0xf] }
  0xaf   : > { %1076 = vmatpush.bf16.msra.mxu3 %v999_v5  ;;  %1038 = vmatpush.bf16.msra.mxu1 %v993_v7  ;;  %v2069_v5 = vld [vmem:[%s2439_s30 + $0x1e0] sm:$0x30]  ;;  %v1287_v7 = vand.u32 %v2068_v4, %v2437_v2  ;;  %v2176_v4 = vld [vmem:[%s2439_s30 + $0x1b4] sm:$0xf0] }
  0xb0   : > { %v2072_v6 = vor.u32 %v2177_v3, %v2069_v5  ;;  %v2059_v3 = vld [vmem:[%s2439_s30 + $0x198] sm:$0xf]  ;;  %v2172_v5 = vld [vmem:[%s2439_s30 + $0x19c] sm:$0xf] }
  0xb1   : > { %1020 = vmatpush.bf16.msra.mxu0 %v1940_v17  ;;  %v2044_v17 = vor.u32 %v2174_v15, %v2043_v14 }
  0xb2   : > { %1058 = vmatpush.bf16.msra.mxu2 %v1948_v11  ;;  %v1290_v8 = vand.u32 %v2072_v6, %v2437_v2  ;;  %v2060_v6 = vor.u32 %v2176_v4, %v2059_v3 }
  0xb3   : > { %1077 = vmatpush.bf16.msra.mxu3 %v1952_v16  ;;  %1039 = vmatpush.bf16.msra.mxu1 %v1944_v20  ;;  %v2170_v16 = vld [vmem:[%s2439_s30 + $0x18c] sm:$0xf] }
  0xb4   : > { %v2048_v20 = vor.u32 %v2170_v16, %v2045_v18  ;;  %v1495_v18 = vld [vmem:[%s3209_s2 + $0x8] sm:$0xff] }
  0xbc   : > { %1906 = vmatmul.msk.bf16.gmra.mxu0 %vm416_vm2, %v2509_v13  ;;  %1908 = vmatmul.msk.bf16.gmra.mxu1 %vm416_vm2, %v2509_v13 }
  0xbd   : > { %1910 = vmatmul.msk.bf16.gmra.mxu2 %vm416_vm2, %v2509_v13 }
  0xbe   : > { %1912 = vmatmul.msk.bf16.gmra.mxu3 %vm416_vm2, %v2509_v13 }
  0xcc   : > { %1913 = vmatmul.msk.bf16.vlgmr.msrb.gmra.mxu0 %vm416_vm2, %v2472_v41  ;;  %1915 = vmatmul.msk.bf16.vlgmr.msrb.gmra.mxu1 %vm416_vm2, %v2472_v41 }
  0xcd   : > { %1917 = vmatmul.msk.bf16.vlgmr.msrb.gmra.mxu2 %vm416_vm2, %v2472_v41  ;;  %1095 = vmatpush.bf16.msrb.mxu0 %v1002_v35  ;;  %v2184_v35 = vld [vmem:[%s2439_s30 + $0x1f4] sm:$0x30] }
  0xce   : > { %1919 = vmatmul.msk.bf16.vlgmr.msrb.gmra.mxu3 %vm416_vm2, %v2472_v41  ;;  %1133 = vmatpush.bf16.msrb.mxu2 %v1008_v27  ;;  %v2036_v27 = vor.u32 %v2173_v25, %v2035_v24  ;;  %v2092_v37 = vor.u32 %v2184_v35, %v2091_v34  ;;  %v2175_v24 = vld [vmem:[%s2439_s30 + $0x1ac] sm:$0xf0]  ;;  %v2171_v25 = vld [vmem:[%s2439_s30 + $0x194] sm:$0xf] }
  0xcf   : > { %1152 = vmatpush.bf16.msrb.mxu3 %v1011_v28  ;;  %1114 = vmatpush.bf16.msrb.mxu1 %v1005_v36  ;;  %v2037_v28 = vld [vmem:[%s2439_s30 + $0x1a0] sm:$0xf0]  ;;  %v2180_v36 = vld [vmem:[%s2439_s30 + $0x1dc] sm:$0xf] }
  0xd0   : > { %v2040_v29 = vor.u32 %v2169_v26, %v2037_v28  ;;  %v1305_v44 = vand.u32 %v2092_v37, %v2437_v2 }
  0xd1   : > { %1096 = vmatpush.bf16.msrb.mxu0 %v1956_v47  ;;  %v2083_v47 = vld [vmem:[%s2439_s30 + $0x1d0] sm:$0xf] }
  0xd2   : > { %1134 = vmatpush.bf16.msrb.mxu2 %v1964_v40  ;;  %v2096_v40 = vor.u32 %v2180_v36, %v2093_v38  ;;  %v2084_v52 = vor.u32 %v2183_v48, %v2083_v47  ;;  %v1496_v38 = vld [vmem:[%s3209_s2 + $0x10] sm:$0xff] }
  0xd3   : > { %1153 = vmatpush.bf16.msrb.mxu3 %v1968_v43  ;;  %1115 = vmatpush.bf16.msrb.mxu1 %v1960_v49  ;;  %v2179_v49 = vld [vmem:[%s2439_s30 + $0x1d4] sm:$0xf] }
  0xd4   : > { %v1308_v46 = vand.u32 %v2096_v40, %v2437_v2  ;;  %v2088_v54 = vor.u32 %v2179_v49, %v2085_v53  ;;  %v1299_v55 = vand.u32 %v2084_v52, %v2437_v2  ;;  %1510 = vperm.xlu1 %2213, %v1496_v38  }
  0xd6   : > { %v1302_v56 = vand.u32 %v2088_v54, %v2437_v2  ;;  %v1494_v2 = vld [vmem:[%s3209_s2] sm:$0xff]  ;;  %v1497_v54 = vld [vmem:[%s3209_s2 + $0x18] sm:$0xff] }
  0xd7   : > { %1500 = vperm.xlu0 %2212, %v1494_v2  }
  0xdc   : > { %1914 = vmatmul.msk.bf16.gmra.mxu0 %vm416_vm2, %v2509_v13  ;;  %1916 = vmatmul.msk.bf16.gmra.mxu1 %vm416_vm2, %v2509_v13 }
  0xdd   : > { %1918 = vmatmul.msk.bf16.gmra.mxu2 %vm416_vm2, %v2509_v13  ;;  %1515 = vperm.xlu1 %2213, %v1497_v54  }
  0xde   : > { %1920 = vmatmul.msk.bf16.gmra.mxu3 %vm416_vm2, %v2509_v13 }
  0xdf   : > { %1505 = vperm.xlu0 %2212, %v1495_v18  }
  0xe9   : > { %v2635_v50 = vpop.f32.mrf.mxu0  ;;  %v2637_v51 = vpop.f32.mrf.mxu1 }
  0xec   : > { %2001 = vmatmul.msk.bf16.vlgmr.msra.gmra.mxu0 %vm416_vm2, %v2472_v41  ;;  %2003 = vmatmul.msk.bf16.vlgmr.msra.gmra.mxu1 %vm416_vm2, %v2472_v41 }
  0xed   : > { %2005 = vmatmul.msk.bf16.vlgmr.msra.gmra.mxu2 %vm416_vm2, %v2472_v41  ;;  %1316 = vmatpush.bf16.msra.mxu0 %v1287_v7  ;;  %v2061_v7 = vld [vmem:[%s2439_s30 + $0x1b8] sm:$0xf0] }
  0xee   : > { %2007 = vmatmul.msk.bf16.vlgmr.msra.gmra.mxu3 %vm416_vm2, %v2472_v41  ;;  %1354 = vmatpush.bf16.msra.mxu2 %v1293_v61  ;;  %v2064_v14 = vor.u32 %v2172_v5, %v2061_v7 }
  0xef   : > { %1373 = vmatpush.bf16.msra.mxu3 %v1296_v63  ;;  %1335 = vmatpush.bf16.msra.mxu1 %v1290_v8 }
  0xf0   : > { %v2651_v57 = vpop.f32.mrf.mxu2 }
  0xf1   : > { %v2653_v59 = vpop.f32.mrf.mxu3  ;;  %v2655_v60 = vpop.f32.mrf.mxu0  ;;  %1317 = vmatpush.bf16.msra.mxu0 %v2036_v27  ;;  %v2053_v27 = vld [vmem:[%s2439_s30 + $0x1b0] sm:$0xf0] }
  0xf2   : > { %v2658_v62 = vpop.f32.mrf.mxu1  ;;  %1355 = vmatpush.bf16.msra.mxu2 %v2044_v17  ;;  %v2056_v28 = vor.u32 %v2171_v25, %v2053_v27 }
  0xf3   : > { %1374 = vmatpush.bf16.msra.mxu3 %v2048_v20  ;;  %1336 = vmatpush.bf16.msra.mxu1 %v2040_v29  ;;  %v2051_v20 = vld [vmem:[%s2439_s30 + $0x190] sm:$0xf] }
  0xf4   : > { %v2052_v26 = vor.u32 %v2175_v24, %v2051_v20 }
  0xf8   : > { %v2667_v9 = vpop.f32.mrf.mxu2 }
  0xf9   : > { %v2669_v10 = vpop.f32.mrf.mxu3  ;;  %v2671_v11 = vpop.f32.mrf.mxu0 }
  0xfa   : > { %v2673_v12 = vpop.f32.mrf.mxu1 }
  0xfc   : > { %2002 = vmatmul.msk.bf16.gmra.mxu0 %vm416_vm2, %v2509_v13  ;;  %2004 = vmatmul.msk.bf16.gmra.mxu1 %vm416_vm2, %v2509_v13 }
  0xfd   : > { %2006 = vmatmul.msk.bf16.gmra.mxu2 %vm416_vm2, %v2509_v13 }
  0xfe   : > { %2008 = vmatmul.msk.bf16.gmra.mxu3 %vm416_vm2, %v2509_v13 }
 0x100   : > { %v2687_v19 = vpop.f32.mrf.mxu2 }
 0x101   : > { %v2689_v21 = vpop.f32.mrf.mxu3  ;;  %v2691_v22 = vpop.f32.mrf.mxu0 }
 0x102   : > { %v2693_v23 = vpop.f32.mrf.mxu1 }
 0x108   : > { %v2699_v30 = vpop.f32.mrf.mxu2 }
 0x109   : > { %v2701_v31 = vpop.f32.mrf.mxu3  ;;  %v2703_v32 = vpop.f32.mrf.mxu0 }
 0x10a   : > { %v2705_v33 = vpop.f32.mrf.mxu1 }
 0x10b   : > { %3242 = vst [vmem:[#allocation4_spill] sm:$0xff] %v2705_v33 }
 0x10c   : > { %2009 = vmatmul.msk.bf16.vlgmr.msrb.gmra.mxu0 %vm416_vm2, %v2472_v41  ;;  %2011 = vmatmul.msk.bf16.vlgmr.msrb.gmra.mxu1 %vm416_vm2, %v2472_v41 }
 0x10d   : > { %2013 = vmatmul.msk.bf16.vlgmr.msrb.gmra.mxu2 %vm416_vm2, %v2472_v41  ;;  %1392 = vmatpush.bf16.msrb.mxu0 %v1299_v55 }
 0x10e   : > { %2015 = vmatmul.msk.bf16.vlgmr.msrb.gmra.mxu3 %vm416_vm2, %v2472_v41  ;;  %1430 = vmatpush.bf16.msrb.mxu2 %v1305_v44 }
 0x10f   : > { %1449 = vmatpush.bf16.msrb.mxu3 %v1308_v46  ;;  %1411 = vmatpush.bf16.msrb.mxu1 %v1302_v56 }
 0x110   : > { %v2719_v39 = vpop.f32.mrf.mxu2 }
 0x111   : > { %3243 = vst [vmem:[#allocation5_spill] sm:$0xff] %v2719_v39  ;;  %v2721_v42 = vpop.f32.mrf.mxu3  ;;  %v2723_v43 = vpop.f32.mrf.mxu0  ;;  %1393 = vmatpush.bf16.msrb.mxu0 %v2052_v26 }
 0x112   : > { %3244 = vst [vmem:[#allocation6_spill] sm:$0xff] %v2721_v42  ;;  %v2726_v45 = vpop.f32.mrf.mxu1  ;;  %1431 = vmatpush.bf16.msrb.mxu2 %v2060_v6 }
 0x113   : > { %3245 = vst [vmem:[#allocation7_spill] sm:$0xff] %v2723_v43  ;;  %1450 = vmatpush.bf16.msrb.mxu3 %v2064_v14  ;;  %1412 = vmatpush.bf16.msrb.mxu1 %v2056_v28 }
 0x114   : > { %3246 = vst [vmem:[#allocation8_spill] sm:$0xff] %v2726_v45 }
 0x118   : > { %v2735_v58 = vpop.f32.mrf.mxu2 }
 0x119   : > { %3247 = vst [vmem:[#allocation9_spill] sm:$0xff] %v2735_v58  ;;  %v2737_v61 = vpop.f32.mrf.mxu3  ;;  %v2739_v63 = vpop.f32.mrf.mxu0 }
 0x11a   : > { %3248 = vst [vmem:[#allocation10_spill] sm:$0xff] %v2737_v61  ;;  %v2741_v0 = vpop.f32.mrf.mxu1 }
 0x11b   : > { %3249 = vst [vmem:[#allocation11_spill] sm:$0xff] %v2739_v63 }
 0x11c   : > { %3250 = vst [vmem:[#allocation12_spill] sm:$0xff] %v2741_v0  ;;  %2010 = vmatmul.msk.bf16.gmra.mxu0 %vm416_vm2, %v2509_v13  ;;  %2012 = vmatmul.msk.bf16.gmra.mxu1 %vm416_vm2, %v2509_v13 }
 0x11d   : > { %2014 = vmatmul.msk.bf16.gmra.mxu2 %vm416_vm2, %v2509_v13 }
 0x11e   : > { %2016 = vmatmul.msk.bf16.gmra.mxu3 %vm416_vm2, %v2509_v13 }
 0x120   : > { %v2758_v8 = vpop.f32.mrf.mxu2 }
 0x121   : > { %3251 = vst [vmem:[#allocation13_spill] sm:$0xff] %v2758_v8  ;;  %v2760_v15 = vpop.f32.mrf.mxu3  ;;  %v2762_v16 = vpop.f32.mrf.mxu0 }
 0x122   : > { %3252 = vst [vmem:[#allocation14_spill] sm:$0xff] %v2760_v15  ;;  %v2764_v17 = vpop.f32.mrf.mxu1 }
 0x123   : > { %3253 = vst [vmem:[#allocation15_spill] sm:$0xff] %v2762_v16 }
 0x124   : > { %3254 = vst [vmem:[#allocation16_spill] sm:$0xff] %v2764_v17 }
 0x128   : > { %v2773_v29 = vpop.f32.mrf.mxu2 }
 0x129   : > { %3255 = vst [vmem:[#allocation17_spill] sm:$0xff] %v2773_v29  ;;  %v2775_v34 = vpop.f32.mrf.mxu3  ;;  %v2777_v35 = vpop.f32.mrf.mxu0 }
 0x12a   : > { %3256 = vst [vmem:[#allocation18_spill] sm:$0xff] %v2775_v34  ;;  %v2781_v37 = vpop.f32.mrf.mxu1 }
 0x12c   : > { %2097 = vmatmul.msk.bf16.vlgmr.msra.gmra.mxu0 %vm416_vm2, %v2472_v41  ;;  %2099 = vmatmul.msk.bf16.vlgmr.msra.gmra.mxu1 %vm416_vm2, %v2472_v41 }
 0x12d   : > { %2101 = vmatmul.msk.bf16.vlgmr.msra.gmra.mxu2 %vm416_vm2, %v2472_v41 }
 0x12e   : > { %2103 = vmatmul.msk.bf16.vlgmr.msra.gmra.mxu3 %vm416_vm2, %v2472_v41 }
 0x130   : > { %v2796_v44 = vpop.f32.mrf.mxu2 }
 0x131   : > { %v2800_v47 = vpop.f32.mrf.mxu3  ;;  %v2802_v48 = vpop.f32.mrf.mxu0 }
 0x132   : > { %v2808_v53 = vpop.f32.mrf.mxu1 }
 0x138   : > { %v2815_v56 = vpop.f32.mrf.mxu2 }
 0x139   : > { %v2819_v2 = vpop.f32.mrf.mxu3  ;;  %v2821_v3 = vpop.f32.mrf.mxu0 }
 0x13a   : > { %v2827_v6 = vpop.f32.mrf.mxu1 }
 0x13c   : > { %2098 = vmatmul.msk.bf16.gmra.mxu0 %vm416_vm2, %v2509_v13  ;;  %2100 = vmatmul.msk.bf16.gmra.mxu1 %vm416_vm2, %v2509_v13 }
 0x13d   : > { %2102 = vmatmul.msk.bf16.gmra.mxu2 %vm416_vm2, %v2509_v13 }
 0x13e   : > { %2104 = vmatmul.msk.bf16.gmra.mxu3 %vm416_vm2, %v2509_v13 }
 0x140   : > { %v2839_v14 = vpop.f32.mrf.mxu2 }
 0x141   : > { %v2843_v20 = vpop.f32.mrf.mxu3  ;;  %v2845_v24 = vpop.f32.mrf.mxu0 }
 0x142   : > { %v2851_v27 = vpop.f32.mrf.mxu1 }
 0x148   : > { %v2855_v38 = vpop.f32.mrf.mxu2 }
 0x149   : > { %v2859_v18 = vpop.f32.mrf.mxu3  ;;  %v2861_v7 = vpop.f32.mrf.mxu0 }
 0x14a   : > { %v2867_v5 = vpop.f32.mrf.mxu1 }
 0x14b   : > { %3257 = vst [vmem:[#allocation19_spill] sm:$0xff] %v2867_v5 }
 0x14c   : > { %2105 = vmatmul.msk.bf16.vlgmr.msrb.gmra.mxu0 %vm416_vm2, %v2472_v41  ;;  %2107 = vmatmul.msk.bf16.vlgmr.msrb.gmra.mxu1 %vm416_vm2, %v2472_v41 }
 0x14d   : > { %2109 = vmatmul.msk.bf16.vlgmr.msrb.gmra.mxu2 %vm416_vm2, %v2472_v41 }
 0x14e   : > { %2111 = vmatmul.msk.bf16.vlgmr.msrb.gmra.mxu3 %vm416_vm2, %v2472_v41 }
 0x150   : > { %v2879_v25 = vpop.f32.mrf.mxu2 }
 0x151   : > { %3258 = vst [vmem:[#allocation20_spill] sm:$0xff] %v2879_v25  ;;  %v2883_v54 = vpop.f32.mrf.mxu3  ;;  %v2885_v28 = vpop.f32.mrf.mxu0 }
 0x152   : > { %3259 = vst [vmem:[#allocation21_spill] sm:$0xff] %v2883_v54  ;;  %v2891_v55 = vpop.f32.mrf.mxu1 }
 0x153   : > { %3260 = vst [vmem:[#allocation22_spill] sm:$0xff] %v2885_v28 }
 0x154   : > { %3261 = vst [vmem:[#allocation23_spill] sm:$0xff] %v2891_v55 }
 0x158   : > { %v2895_v52 = vpop.f32.mrf.mxu2 }
 0x159   : > { %3262 = vst [vmem:[#allocation24_spill] sm:$0xff] %v2895_v52  ;;  %v2899_v49 = vpop.f32.mrf.mxu3  ;;  %v2901_v46 = vpop.f32.mrf.mxu0 }
 0x15a   : > { %3263 = vst [vmem:[#allocation25_spill] sm:$0xff] %v2899_v49  ;;  %v2907_v40 = vpop.f32.mrf.mxu1 }
 0x15b   : > { %3264 = vst [vmem:[#allocation26_spill] sm:$0xff] %v2901_v46 }
 0x15c   : > { %3265 = vst [vmem:[#allocation27_spill] sm:$0xff] %v2907_v40  ;;  %2106 = vmatmul.msk.bf16.gmra.mxu0 %vm416_vm2, %v2509_v13  ;;  %2108 = vmatmul.msk.bf16.gmra.mxu1 %vm416_vm2, %v2509_v13 }
 0x15d   : > { %2110 = vmatmul.msk.bf16.gmra.mxu2 %vm416_vm2, %v2509_v13 }
 0x15e   : > { %2112 = vmatmul.msk.bf16.gmra.mxu3 %vm416_vm2, %v2509_v13 }
 0x160   : > { %v2919_v4 = vpop.f32.mrf.mxu2 }
 0x161   : > { %3266 = vst [vmem:[#allocation28_spill] sm:$0xff] %v2919_v4  ;;  %v2923_v26 = vpop.f32.mrf.mxu3  ;;  %v2925_v41 = vpop.f32.mrf.mxu0 }
 0x162   : > { %3267 = vst [vmem:[#allocation29_spill] sm:$0xff] %v2923_v26  ;;  %v2931_v0 = vpop.f32.mrf.mxu1 }
 0x163   : > { %3268 = vst [vmem:[#allocation30_spill] sm:$0xff] %v2925_v41 }
 0x164   : > { %3269 = vst [vmem:[#allocation31_spill] sm:$0xff] %v2931_v0 }
 0x168   : > { %v2935_v46 = vpop.f32.mrf.mxu2 }
 0x169   : > { %3270 = vst [vmem:[#allocation32_spill] sm:$0xff] %v2935_v46  ;;  %v2939_v4 = vpop.f32.mrf.mxu3  ;;  %v1022_v8 = vpop.f32.mrf.mxu0 }
 0x16a   : > { %3271 = vst [vmem:[#allocation33_spill] sm:$0xff] %v2939_v4  ;;  %v1041_v36 = vpop.f32.mrf.mxu1 }
 0x170   : > { %v1060_v26 = vpop.f32.mrf.mxu2 }
 0x171   : > { %v1079_v15 = vpop.f32.mrf.mxu3  ;;  %v1024_v40 = vpop.f32.mrf.mxu0 }
 0x172   : > { %v1043_v41 = vpop.f32.mrf.mxu1 }
 0x178   : > { %v1062_v16 = vpop.f32.mrf.mxu2 }
 0x179   : > { %v2943_v49 = vpop.f32.mrf.mxu3  ;;  %v2945_v13 = vpop.f32.mrf.mxu0 }
 0x17a   : > { %v2947_v0 = vpop.f32.mrf.mxu1 }
 0x180   : > { %v2949_v17 = vpop.f32.mrf.mxu2 }
 0x181   : > { %v2951_v1 = vpop.f32.mrf.mxu3  ;;  %v2953_v46 = vpop.f32.mrf.mxu0 }
 0x182   : > { %v2955_v29 = vpop.f32.mrf.mxu1 }
 0x188   : > { %v2957_v63 = vpop.f32.mrf.mxu2 }
 0x189   : > { %v2959_v4 = vpop.f32.mrf.mxu3  ;;  %v2961_v34 = vpop.f32.mrf.mxu0 }
 0x18a   : > { %v2963_v61 = vpop.f32.mrf.mxu1 }
 0x18b   : > { %3272 = vst [vmem:[#allocation34_spill] sm:$0xff] %v2963_v61 }
 0x190   : > { %v2965_v52 = vpop.f32.mrf.mxu2 }
 0x191   : > { %3273 = vst [vmem:[#allocation35_spill] sm:$0xff] %v2965_v52  ;;  %v2967_v58 = vpop.f32.mrf.mxu3  ;;  %v2969_v55 = vpop.f32.mrf.mxu0 }
 0x192   : > { %3274 = vst [vmem:[#allocation36_spill] sm:$0xff] %v2967_v58  ;;  %v2971_v45 = vpop.f32.mrf.mxu1 }
 0x193   : > { %3275 = vst [vmem:[#allocation37_spill] sm:$0xff] %v2969_v55  ;;  %v2989_v55 = vpop.permute.xlu0 %1500 }
 0x194   : > { %3276 = vst [vmem:[#allocation38_spill] sm:$0xff] %v2971_v45 }
 0x198   : > { %v2973_v28 = vpop.f32.mrf.mxu2 }
 0x199   : > { %3277 = vst [vmem:[#allocation39_spill] sm:$0xff] %v2973_v28  ;;  %v2975_v43 = vpop.f32.mrf.mxu3  ;;  %v2977_v54 = vpop.f32.mrf.mxu0  ;;  %v3285_v28 = vmax.f32 %v2635_v50, %v2777_v35 }
 0x19a   : > { %3278 = vst [vmem:[#allocation40_spill] sm:$0xff] %v2975_v43  ;;  %v2979_v42 = vpop.f32.mrf.mxu1 }
 0x19b   : > { %3279 = vst [vmem:[#allocation41_spill] sm:$0xff] %v2977_v54  ;;  %v1165_v45 = vmax.f32 %v3285_v28, %v1022_v8  ;;  %v3286_v54 = vmax.f32 %v2637_v51, %v2781_v37  ;;  %v3287_v8 = vmax.f32 %v2651_v57, %v2796_v44  ;;  %v3288_v51 = vmax.f32 %v2653_v59, %v2800_v47 }
 0x19c   : > { %3280 = vst [vmem:[#allocation42_spill] sm:$0xff] %v2979_v42  ;;  %v3290_v37 = vmax.f32 %v2658_v62, %v2808_v53 }
 0x19d   : > { %v1166_v42 = vmax.f32 %v3286_v54, %v1041_v36  ;;  %v1167_v35 = vmax.f32 %v3287_v8, %v1060_v26  ;;  %v1168_v36 = vmax.f32 %v3288_v51, %v1079_v15 }
 0x1a0   : > { %v2981_v25 = vpop.f32.mrf.mxu2 }
 0x1a1   : > { %3281 = vst [vmem:[#allocation43_spill] sm:$0xff] %v2981_v25  ;;  %v2983_v39 = vpop.f32.mrf.mxu3  ;;  %v2985_v52 = vpop.f32.mrf.mxu0 }
 0x1a2   : > { %3282 = vst [vmem:[#allocation44_spill] sm:$0xff] %v2983_v39  ;;  %v2987_v58 = vpop.f32.mrf.mxu1 }
 0x1a3   : > { %3283 = vst [vmem:[#allocation45_spill] sm:$0xff] %v2985_v52 }
 0x1a4   : > { %3284 = vst [vmem:[#allocation46_spill] sm:$0xff] %v2987_v58 }
 0x1a8   : > { %v2994_v43 = vpop.f32.mrf.mxu2 }
 0x1a9   : > { %v2999_v5 = vpop.f32.mrf.mxu3  ;;  %v1319_v25 = vpop.f32.mrf.mxu0 }
 0x1aa   : > { %v1462_v39 = vmax.f32 %v1165_v45, %v1319_v25  ;;  %v1338_v33 = vpop.f32.mrf.mxu1  ;;  %v3289_v45 = vmax.f32 %v2655_v60, %v2802_v48 }
 0x1ab   : > { %v1463_v52 = vmax.f32 %v1166_v42, %v1338_v33 }
 0x1ac   : > { %v1518_v58 = vadd.f32 %v2989_v55, %v1462_v39  ;;  %v1173_v33 = vmax.f32 %v3289_v45, %v1024_v40  ;;  %v3014_v39 = vpop.permute.xlu0 %1505 }
 0x1ad   : > { %v1519_v61 = vadd.f32 %v2989_v55, %v1463_v52 }
 0x1ae   : > { %v1550_v50 = vmax.f32 %v1518_v58, 0.0  ;;  %v1174_v58 = vmax.f32 %v3290_v37, %v1043_v41  ;;  %v3026_v41 = vpop.permute.xlu1 %1510  ;;  %v3294_v37 = vmax.f32 %v2673_v12, %v2827_v6 }
 0x1af   : > { %v1551_v28 = vmax.f32 %v1519_v61, 0.0 }
 0x1b0   : > { %v1357_v42 = vpop.f32.mrf.mxu2 }
 0x1b1   : > { %v1582_v52 = vpack.c.bf16 %v1551_v28, %v1550_v50  ;;  %v1464_v25 = vmax.f32 %v1167_v35, %v1357_v42  ;;  %v1376_v57 = vpop.f32.mrf.mxu3  ;;  %v1321_v44 = vpop.f32.mrf.mxu0  ;;  %v3291_v50 = vmax.f32 %v2667_v9, %v2815_v56  ;;  %v3292_v28 = vmax.f32 %v2669_v10, %v2819_v2 }
 0x1b2   : > { %v1465_v61 = vmax.f32 %v1168_v36, %v1376_v57  ;;  %v1470_v26 = vmax.f32 %v1173_v33, %v1321_v44  ;;  %v1340_v54 = vpop.f32.mrf.mxu1  ;;  %v3293_v36 = vmax.f32 %v2671_v11, %v2821_v3  ;;  %v1182_v9 = vmax.f32 %v3294_v37, %v2947_v0 }
 0x1b3   : > { %1598 = vst [vmem:[%s3019_s12] sm:$0xff] %v1582_v52  ;;  %v1520_v59 = vadd.f32 %v2989_v55, %v1464_v25  ;;  %v1471_v60 = vmax.f32 %v1174_v58, %v1340_v54  ;;  %v1175_v8 = vmax.f32 %v3291_v50, %v1062_v16  ;;  %v1176_v51 = vmax.f32 %v3292_v28, %v2943_v49 }
 0x1b4   : > { %v1521_v15 = vadd.f32 %v2989_v55, %v1465_v61  ;;  %v1526_v40 = vadd.f32 %v3014_v39, %v1470_v26  ;;  %v1181_v45 = vmax.f32 %v3293_v36, %v2945_v13  ;;  %v3295_v44 = vmax.f32 %v2687_v19, %v2839_v14 }
 0x1b5   : > { %v1552_v62 = vmax.f32 %v1520_v59, 0.0  ;;  %v1527_v47 = vadd.f32 %v3014_v39, %v1471_v60  ;;  %v3296_v54 = vmax.f32 %v2689_v21, %v2843_v20  ;;  %v3297_v60 = vmax.f32 %v2691_v22, %v2845_v24 }
 0x1b6   : > { %v1553_v48 = vmax.f32 %v1521_v15, 0.0  ;;  %v1558_v53 = vmax.f32 %v1526_v40, 0.0  ;;  %v1183_v61 = vmax.f32 %v3295_v44, %v2949_v17  ;;  %v3298_v19 = vmax.f32 %v2693_v23, %v2851_v27 }
 0x1b7   : > { %v1559_v35 = vmax.f32 %v1527_v47, 0.0  ;;  %v1184_v59 = vmax.f32 %v3296_v54, %v2951_v1  ;;  %v1189_v15 = vmax.f32 %v3297_v60, %v2953_v46  ;;  %v3061_v47 = vpop.permute.xlu1 %1515  ;;  %v3299_v28 = vmax.f32 %v2699_v30, %v2855_v38  ;;  %v3310_v54 = vld [vmem:[#allocation36_spill] sm:$0xff]  ;;  %v3312_v60 = vld [vmem:[#allocation21_spill] sm:$0xff] }
 0x1b8   : > { %v1583_v33 = vpack.c.bf16 %v1553_v48, %v1552_v62  ;;  %v1359_v42 = vpop.f32.mrf.mxu2  ;;  %v1190_v17 = vmax.f32 %v3298_v19, %v2955_v29  ;;  %v3315_v19 = vld [vmem:[#allocation7_spill] sm:$0xff] }
 0x1b9   : > { %v1586_v56 = vpack.c.bf16 %v1559_v35, %v1558_v53  ;;  %v1472_v16 = vmax.f32 %v1175_v8, %v1359_v42  ;;  %v1378_v58 = vpop.f32.mrf.mxu3  ;;  %v1324_v52 = vpop.f32.mrf.mxu0  ;;  %v3301_v42 = vmax.f32 %v2703_v32, %v2861_v7 }
 0x1ba   : > { %1599 = vst [vmem:[%s3019_s12 + $0x8] sm:$0xff] %v1583_v33  ;;  %v1473_v25 = vmax.f32 %v1176_v51, %v1378_v58  ;;  %v1478_v10 = vmax.f32 %v1181_v45, %v1324_v52  ;;  %v1343_v49 = vpop.f32.mrf.mxu1  ;;  %v1191_v51 = vmax.f32 %v3299_v28, %v2957_v63  ;;  %v3300_v45 = vmax.f32 %v2701_v31, %v2859_v18  ;;  %v3303_v58 = vld [vmem:[#allocation4_spill] sm:$0xff]  ;;  %v3304_v52 = vld [vmem:[#allocation19_spill] sm:$0xff] }
 0x1bb   : > { %1602 = vst [vmem:[%s3019_s12 + $0x20] sm:$0xff] %v1586_v56  ;;  %v1528_v2 = vadd.f32 %v3014_v39, %v1472_v16  ;;  %v1479_v11 = vmax.f32 %v1182_v9, %v1343_v49  ;;  %v1169_v37 = vmax.f32 %v3301_v42, %v2961_v34  ;;  %v3302_v16 = vld [vmem:[#allocation34_spill] sm:$0xff] }
 0x1bc   : > { %v1529_v3 = vadd.f32 %v3014_v39, %v1473_v25  ;;  %v1534_v13 = vadd.f32 %v3026_v41, %v1478_v10  ;;  %v1192_v33 = vmax.f32 %v3300_v45, %v2959_v4  ;;  %v3305_v25 = vmax.f32 %v3303_v58, %v3304_v52  ;;  %v3323_v58 = vld [vmem:[#allocation9_spill] sm:$0xff]  ;;  %v3324_v52 = vld [vmem:[#allocation24_spill] sm:$0xff] }
 0x1bd   : > { %v1560_v57 = vmax.f32 %v1528_v2, 0.0  ;;  %v1535_v12 = vadd.f32 %v3026_v41, %v1479_v11 }
 0x1be   : > { %v1561_v0 = vmax.f32 %v1529_v3, 0.0  ;;  %v1566_v6 = vmax.f32 %v1534_v13, 0.0  ;;  %v1170_v30 = vmax.f32 %v3305_v25, %v3302_v16  ;;  %v3322_v16 = vld [vmem:[#allocation39_spill] sm:$0xff]  ;;  %v3325_v25 = vmax.f32 %v3323_v58, %v3324_v52 }
 0x1bf   : > { %v1567_v26 = vmax.f32 %v1535_v12, 0.0  ;;  %v3306_v12 = vld [vmem:[#allocation35_spill] sm:$0xff] }
 0x1c0   : > { %v1587_v40 = vpack.c.bf16 %v1561_v0, %v1560_v57  ;;  %v1362_v62 = vpop.f32.mrf.mxu2  ;;  %v3307_v0 = vld [vmem:[#allocation5_spill] sm:$0xff] }
 0x1c1   : > { %v1590_v14 = vpack.c.bf16 %v1567_v26, %v1566_v6  ;;  %v1480_v48 = vmax.f32 %v1183_v61, %v1362_v62  ;;  %v1381_v53 = vpop.f32.mrf.mxu3  ;;  %v1326_v50 = vpop.f32.mrf.mxu0  ;;  %v3308_v6 = vld [vmem:[#allocation20_spill] sm:$0xff]  ;;  %v3314_v62 = vld [vmem:[#allocation37_spill] sm:$0xff] }
 0x1c2   : > { %1603 = vst [vmem:[%s3019_s12 + $0x28] sm:$0xff] %v1587_v40  ;;  %v1481_v21 = vmax.f32 %v1184_v59, %v1381_v53  ;;  %v1486_v1 = vmax.f32 %v1189_v15, %v1326_v50  ;;  %v1345_v20 = vpop.f32.mrf.mxu1  ;;  %v3309_v44 = vmax.f32 %v3307_v0, %v3308_v6  ;;  %v3311_v59 = vld [vmem:[#allocation6_spill] sm:$0xff] }
 0x1c3   : > { %1606 = vst [vmem:[%s3019_s12 + $0x40] sm:$0xff] %v1590_v14  ;;  %v1536_v22 = vadd.f32 %v3026_v41, %v1480_v48  ;;  %v1487_v46 = vmax.f32 %v1190_v17, %v1345_v20  ;;  %v3313_v15 = vmax.f32 %v3311_v59, %v3312_v60  ;;  %v3316_v17 = vld [vmem:[#allocation22_spill] sm:$0xff]  ;;  %v3320_v20 = vld [vmem:[#allocation23_spill] sm:$0xff] }
 0x1c4   : > { %v1537_v24 = vadd.f32 %v3026_v41, %v1481_v21  ;;  %v1542_v8 = vadd.f32 %v3061_v47, %v1486_v1  ;;  %v1171_v61 = vmax.f32 %v3309_v44, %v3306_v12  ;;  %v3317_v14 = vmax.f32 %v3315_v19, %v3316_v17  ;;  %v3318_v21 = vld [vmem:[#allocation38_spill] sm:$0xff]  ;;  %v3319_v1 = vld [vmem:[#allocation8_spill] sm:$0xff] }
 0x1c5   : > { %v1568_v35 = vmax.f32 %v1536_v22, 0.0  ;;  %v1543_v23 = vadd.f32 %v3061_v47, %v1487_v46  ;;  %v1172_v40 = vmax.f32 %v3313_v15, %v3310_v54  ;;  %v3321_v22 = vmax.f32 %v3319_v1, %v3320_v20  ;;  %v3340_v1 = vld [vmem:[#allocation28_spill] sm:$0xff] }
 0x1c6   : > { %v1569_v29 = vmax.f32 %v1537_v24, 0.0  ;;  %v1574_v27 = vmax.f32 %v1542_v8, 0.0  ;;  %v1177_v48 = vmax.f32 %v3317_v14, %v3314_v62 }
 0x1c7   : > { %v1575_v36 = vmax.f32 %v1543_v23, 0.0  ;;  %v1178_v46 = vmax.f32 %v3321_v22, %v3318_v21  ;;  %v3339_v21 = vld [vmem:[#allocation13_spill] sm:$0xff] }
 0x1c8   : > { %v1591_v9 = vpack.c.bf16 %v1569_v29, %v1568_v35  ;;  %v1364_v56 = vpop.f32.mrf.mxu2  ;;  %v3341_v20 = vmax.f32 %v3339_v21, %v3340_v1 }
 0x1c9   : > { %v1594_v38 = vpack.c.bf16 %v1575_v36, %v1574_v27  ;;  %v1488_v63 = vmax.f32 %v1191_v51, %v1364_v56  ;;  %v1383_v10 = vpop.f32.mrf.mxu3  ;;  %v1395_v49 = vpop.f32.mrf.mxu0 }
 0x1ca   : > { %1607 = vst [vmem:[%s3019_s12 + $0x48] sm:$0xff] %v1591_v9  ;;  %v1489_v2 = vmax.f32 %v1192_v33, %v1383_v10  ;;  %v1466_v31 = vmax.f32 %v1169_v37, %v1395_v49  ;;  %v1414_v4 = vpop.f32.mrf.mxu1  ;;  %v3327_v10 = vld [vmem:[#allocation10_spill] sm:$0xff]  ;;  %v3328_v49 = vld [vmem:[#allocation25_spill] sm:$0xff]  ;;  %v1652_v1 = vld [vmem:[%s3019_s12 + $0x40] sm:$0xff] (%p2290_p5) }
 0x1cb   : > { %1610 = vst [vmem:[%s3019_s12 + $0x60] sm:$0xff] %v1594_v38  ;;  %v1544_v18 = vadd.f32 %v3061_v47, %v1488_v63  ;;  %v1467_v32 = vmax.f32 %v1170_v30, %v1414_v4  ;;  %v1179_v30 = vmax.f32 %v3325_v25, %v3322_v16  ;;  %v3326_v63 = vld [vmem:[#allocation40_spill] sm:$0xff]  ;;  %v3331_v4 = vld [vmem:[#allocation11_spill] sm:$0xff] }
 0x1cc   : > { %v1545_v34 = vadd.f32 %v3061_v47, %v1489_v2  ;;  %v1522_v7 = vadd.f32 %v2989_v55, %v1466_v31  ;;  %v3329_v2 = vmax.f32 %v3327_v10, %v3328_v49  ;;  %v3330_v31 = vld [vmem:[#allocation41_spill] sm:$0xff]  ;;  %1653 = vst [vmem:[%s1623_s20 + $0x80] sm:$0xff] (%p2290_p5), %v1652_v1 }
 0x1cd   : > { %v1576_v11 = vmax.f32 %v1544_v18, 0.0  ;;  %v1523_v3 = vadd.f32 %v2989_v55, %v1467_v32  ;;  %v3332_v18 = vld [vmem:[#allocation26_spill] sm:$0xff] }
 0x1ce   : > { %v1577_v13 = vmax.f32 %v1545_v34, 0.0  ;;  %v1554_v57 = vmax.f32 %v1522_v7, 0.0  ;;  %v3333_v32 = vmax.f32 %v3331_v4, %v3332_v18 }
 0x1cf   : > { %v1555_v26 = vmax.f32 %v1523_v3, 0.0  ;;  %v3334_v3 = vld [vmem:[#allocation42_spill] sm:$0xff] }
 0x1d0   : > { %v1595_v53 = vpack.c.bf16 %v1577_v13, %v1576_v11  ;;  %v1433_v50 = vpop.f32.mrf.mxu2  ;;  %v1185_v34 = vmax.f32 %v3333_v32, %v3330_v31  ;;  %v3335_v13 = vld [vmem:[#allocation12_spill] sm:$0xff] }
 0x1d1   : > { %v1584_v24 = vpack.c.bf16 %v1555_v26, %v1554_v57  ;;  %v1468_v8 = vmax.f32 %v1171_v61, %v1433_v50  ;;  %v1452_v35 = vpop.f32.mrf.mxu3  ;;  %v1397_v23 = vpop.f32.mrf.mxu0  ;;  %v3336_v57 = vld [vmem:[#allocation27_spill] sm:$0xff] }
 0x1d2   : > { %1611 = vst [vmem:[%s3019_s12 + $0x68] sm:$0xff] %v1595_v53  ;;  %v1469_v29 = vmax.f32 %v1172_v40, %v1452_v35  ;;  %v1474_v27 = vmax.f32 %v1177_v48, %v1397_v23  ;;  %v1416_v28 = vpop.f32.mrf.mxu1  ;;  %v3337_v12 = vmax.f32 %v3335_v13, %v3336_v57  ;;  %v3338_v50 = vld [vmem:[#allocation43_spill] sm:$0xff]  ;;  %v3344_v35 = vld [vmem:[#allocation29_spill] sm:$0xff] }
 0x1d3   : > { %1600 = vst [vmem:[%s3019_s12 + $0x10] sm:$0xff] %v1584_v24  ;;  %v1524_v51 = vadd.f32 %v2989_v55, %v1468_v8  ;;  %v1475_v36 = vmax.f32 %v1178_v46, %v1416_v28  ;;  %v1187_v22 = vmax.f32 %v3341_v20, %v3338_v50  ;;  %v3342_v24 = vld [vmem:[#allocation44_spill] sm:$0xff]  ;;  %v3343_v8 = vld [vmem:[#allocation14_spill] sm:$0xff]  ;;  %v1654_v20 = vld [vmem:[%s3019_s12 + $0x48] sm:$0xff] (%p2290_p5) }
 0x1d4   : > { %v1525_v45 = vadd.f32 %v2989_v55, %v1469_v29  ;;  %v1530_v33 = vadd.f32 %v3014_v39, %v1474_v27  ;;  %v1180_v55 = vmax.f32 %v3329_v2, %v3326_v63  ;;  %v1186_v0 = vmax.f32 %v3337_v12, %v3334_v3  ;;  %v3346_v29 = vld [vmem:[#allocation45_spill] sm:$0xff]  ;;  %v3347_v27 = vld [vmem:[#allocation15_spill] sm:$0xff]  ;;  %v3348_v28 = vld [vmem:[#allocation30_spill] sm:$0xff]  ;;  %1655 = vst [vmem:[%s1623_s20 + $0x88] sm:$0xff] (%p2290_p5), %v1654_v20 }
 0x1d5   : > { %v1556_v42 = vmax.f32 %v1524_v51, 0.0  ;;  %v1531_v37 = vadd.f32 %v3014_v39, %v1475_v36  ;;  %v3345_v23 = vmax.f32 %v3343_v8, %v3344_v35  ;;  %v3349_v51 = vmax.f32 %v3347_v27, %v3348_v28  ;;  %v3357_v12 = vld [vmem:[#allocation18_spill] sm:$0xff] }
 0x1d6   : > { %v1557_v9 = vmax.f32 %v1525_v45, 0.0  ;;  %v1562_v56 = vmax.f32 %v1530_v33, 0.0 }
 0x1d7   : > { %v1563_v38 = vmax.f32 %v1531_v37, 0.0  ;;  %v1193_v36 = vmax.f32 %v3349_v51, %v3346_v29  ;;  %v3351_v37 = vld [vmem:[#allocation16_spill] sm:$0xff] }
 0x1d8   : > { %v1585_v7 = vpack.c.bf16 %v1557_v9, %v1556_v42  ;;  %v1435_v11 = vpop.f32.mrf.mxu2  ;;  %v3350_v42 = vld [vmem:[#allocation46_spill] sm:$0xff]  ;;  %v3352_v9 = vld [vmem:[#allocation31_spill] sm:$0xff] }
 0x1d9   : > { %v1588_v6 = vpack.c.bf16 %v1563_v38, %v1562_v56  ;;  %v1476_v44 = vmax.f32 %v1179_v30, %v1435_v11  ;;  %v1454_v61 = vpop.f32.mrf.mxu3  ;;  %v1400_v26 = vpop.f32.mrf.mxu0  ;;  %v3353_v56 = vmax.f32 %v3351_v37, %v3352_v9  ;;  %v3355_v11 = vld [vmem:[#allocation32_spill] sm:$0xff]  ;;  %v1662_v8 = vld [vmem:[%s3019_s12 + $0x68] sm:$0xff] (%p2290_p5) }
 0x1da   : > { %1601 = vst [vmem:[%s3019_s12 + $0x18] sm:$0xff] %v1585_v7  ;;  %v1477_v54 = vmax.f32 %v1180_v55, %v1454_v61  ;;  %v1482_v59 = vmax.f32 %v1185_v34, %v1400_v26  ;;  %v1419_v60 = vpop.f32.mrf.mxu1  ;;  %v3354_v7 = vld [vmem:[#allocation17_spill] sm:$0xff] }
 0x1db   : > { %1604 = vst [vmem:[%s3019_s12 + $0x30] sm:$0xff] %v1588_v6  ;;  %v1532_v15 = vadd.f32 %v3014_v39, %v1476_v44  ;;  %v1483_v40 = vmax.f32 %v1186_v0, %v1419_v60  ;;  %v1194_v16 = vmax.f32 %v3353_v56, %v3350_v42  ;;  %v3356_v3 = vmax.f32 %v3354_v7, %v3355_v11  ;;  %v3358_v0 = vld [vmem:[#allocation33_spill] sm:$0xff] }
 0x1dc   : > { %v1533_v62 = vadd.f32 %v3014_v39, %v1477_v54  ;;  %v1538_v19 = vadd.f32 %v3026_v41, %v1482_v59  ;;  %v1188_v39 = vmax.f32 %v3345_v23, %v3342_v24  ;;  %v3359_v6 = vmax.f32 %v3357_v12, %v3358_v0  ;;  %v1660_v24 = vld [vmem:[%s3019_s12 + $0x60] sm:$0xff] (%p2290_p5)  ;;  %1663 = vst [vmem:[%s1623_s20 + $0xc8] sm:$0xff] (%p2290_p5), %v1662_v8 }
 0x1dd   : > { %v1564_v17 = vmax.f32 %v1532_v15, 0.0  ;;  %v1539_v14 = vadd.f32 %v3026_v41, %v1483_v40  ;;  %v1195_v13 = vmax.f32 %v3356_v3, %v2994_v43  ;;  %1661 = vst [vmem:[%s1623_s20 + $0xc0] sm:$0xff] (%p2290_p5), %v1660_v24 }
 0x1de   : > { %v1565_v48 = vmax.f32 %v1533_v62, 0.0  ;;  %v1570_v53 = vmax.f32 %v1538_v19, 0.0 }
 0x1df   : > { %v1571_v46 = vmax.f32 %v1539_v14, 0.0 }
 0x1e0   : > { %v1589_v45 = vpack.c.bf16 %v1565_v48, %v1564_v17  ;;  %v1438_v33 = vpop.f32.mrf.mxu2  ;;  %v1640_v17 = vld [vmem:[%s3019_s12 + $0x10] sm:$0xff] (%p2290_p5)  ;;  %v1644_v48 = vld [vmem:[%s3019_s12 + $0x20] sm:$0xff] (%p2290_p5) }
 0x1e1   : > { %v1592_v58 = vpack.c.bf16 %v1571_v46, %v1570_v53  ;;  %v1484_v52 = vmax.f32 %v1187_v22, %v1438_v33  ;;  %v1457_v25 = vpop.f32.mrf.mxu3  ;;  %v1402_v30 = vpop.f32.mrf.mxu0  ;;  %v1642_v14 = vld [vmem:[%s3019_s12 + $0x18] sm:$0xff] (%p2290_p5)  ;;  %1641 = vst [vmem:[%s1623_s20 + $0x10] sm:$0xff] (%p2290_p5), %v1640_v17  ;;  %v1646_v53 = vld [vmem:[%s3019_s12 + $0x28] sm:$0xff] (%p2290_p5) }
 0x1e2   : > { %1605 = vst [vmem:[%s3019_s12 + $0x38] sm:$0xff] %v1589_v45  ;;  %v1485_v38 = vmax.f32 %v1188_v39, %v1457_v25  ;;  %v1490_v63 = vmax.f32 %v1193_v36, %v1402_v30  ;;  %v1421_v10 = vpop.f32.mrf.mxu1  ;;  %v1648_v50 = vld [vmem:[%s3019_s12 + $0x30] sm:$0xff] (%p2290_p5) }
 0x1e3   : > { %1608 = vst [vmem:[%s3019_s12 + $0x50] sm:$0xff] %v1592_v58  ;;  %v1540_v49 = vadd.f32 %v3026_v41, %v1484_v52  ;;  %v1491_v2 = vmax.f32 %v1194_v16, %v1421_v10 }
 0x1e4   : > { %v1541_v55 = vadd.f32 %v3026_v41, %v1485_v38  ;;  %v1546_v31 = vadd.f32 %v3061_v47, %v1490_v63  ;;  %v1196_v41 = vmax.f32 %v3359_v6, %v2999_v5  ;;  %v1636_v5 = vld [vmem:[%s3019_s12] sm:$0xff] (%p2290_p5)  ;;  %1643 = vst [vmem:[%s1623_s20 + $0x18] sm:$0xff] (%p2290_p5), %v1642_v14 }
 0x1e5   : > { %v1572_v4 = vmax.f32 %v1540_v49, 0.0  ;;  %v1547_v18 = vadd.f32 %v3061_v47, %v1491_v2  ;;  %1637 = vst [vmem:[%s1623_s20] sm:$0xff] (%p2290_p5), %v1636_v5 }
 0x1e6   : > { %v1573_v32 = vmax.f32 %v1541_v55, 0.0  ;;  %v1578_v34 = vmax.f32 %v1546_v31, 0.0  ;;  %1645 = vst [vmem:[%s1623_s20 + $0x40] sm:$0xff] (%p2290_p5), %v1644_v48 }
 0x1e7   : > { %v1579_v57 = vmax.f32 %v1547_v18, 0.0  ;;  %1647 = vst [vmem:[%s1623_s20 + $0x48] sm:$0xff] (%p2290_p5), %v1646_v53 }
 0x1e8   : > { %v1593_v44 = vpack.c.bf16 %v1573_v32, %v1572_v4  ;;  %v1440_v61 = vpop.f32.mrf.mxu2  ;;  %1649 = vst [vmem:[%s1623_s20 + $0x50] sm:$0xff] (%p2290_p5), %v1648_v50 }
 0x1e9   : > { %v1596_v26 = vpack.c.bf16 %v1579_v57, %v1578_v34  ;;  %v1492_v54 = vmax.f32 %v1195_v13, %v1440_v61  ;;  %v1459_v59 = vpop.f32.mrf.mxu3  ;;  %v1650_v21 = vld [vmem:[%s3019_s12 + $0x38] sm:$0xff] (%p2290_p5) }
 0x1ea   : > { %1609 = vst [vmem:[%s3019_s12 + $0x58] sm:$0xff] %v1593_v44  ;;  %v1493_v60 = vmax.f32 %v1196_v41, %v1459_v59  ;;  %v1656_v22 = vld [vmem:[%s3019_s12 + $0x50] sm:$0xff] (%p2290_p5) }
 0x1eb   : > { %1612 = vst [vmem:[%s3019_s12 + $0x70] sm:$0xff] %v1596_v26  ;;  %v1548_v15 = vadd.f32 %v3061_v47, %v1492_v54 }
 0x1ec   : > { %v1549_v40 = vadd.f32 %v3061_v47, %v1493_v60  ;;  %v1638_v47 = vld [vmem:[%s3019_s12 + $0x8] sm:$0xff] (%p2290_p5)  ;;  %1651 = vst [vmem:[%s1623_s20 + $0x58] sm:$0xff] (%p2290_p5), %v1650_v21 }
 0x1ed   : > { %v1580_v43 = vmax.f32 %v1548_v15, 0.0  ;;  %1639 = vst [vmem:[%s1623_s20 + $0x8] sm:$0xff] (%p2290_p5), %v1638_v47 }
 0x1ee   : > { %v1581_v62 = vmax.f32 %v1549_v40, 0.0  ;;  %1620 = sbr.rel (!%p2290_p5) target bundleno = 507 (0x1fb), region = 59  ;;  %1657 = vst [vmem:[%s1623_s20 + $0x90] sm:$0xff] (%p2290_p5), %v1656_v22 }
 0x1f0   : > { %v1597_v19 = vpack.c.bf16 %v1581_v62, %v1580_v43 }
 0x1f1   : > { %v1658_v46 = vld [vmem:[%s3019_s12 + $0x58] sm:$0xff] (%p2290_p5) }
 0x1f2   : > { %1613 = vst [vmem:[%s3019_s12 + $0x78] sm:$0xff] %v1597_v19  ;;  %v1664_v35 = vld [vmem:[%s3019_s12 + $0x70] sm:$0xff] (%p2290_p5) }
 0x1f3   : > { %1659 = vst [vmem:[%s1623_s20 + $0x98] sm:$0xff] %v1658_v46 }
 0x1f4   : > { %1665 = vst [vmem:[%s1623_s20 + $0xd0] sm:$0xff] %v1664_v35 }
 0x1f9   : > { %v1666_v23 = vld [vmem:[%s3019_s12 + $0x78] sm:$0xff] }
 0x1fa   : > { %1667 = vst [vmem:[%s1623_s20 + $0xd8] sm:$0xff] %v1666_v23 }
 0x1fb PF: > { %p10_p10 = scmp.ge.s32.totalorder %s2277_s16, 4   ;;  %s3360_s12 = smov %s2232_s13 }
 0x1fc   : > { %s3361_s13 = smov %s2288_s19  ;;  %s3362_s14 = smov %s2277_s16 }
 0x1fd   :  { %12 = sbr.rel (!%p10_p10) target bundleno = 2 (0x2), region = 116 }

// kernel: simple_cnn_forward.4
= control target key start
LH: loop header
LB: loop body
LE: loop exit
PB: predicated region body
PF: predicated region fallthrough
CT: control target
= control target key end

     0   :  { %s3709_s12 = smov 0   ;;  %s3711_s13 = smov 0   ;;  %s4885_s0 = inlined_call_operand.vmem [shape: bf16[4,288,512], index: 0, kind: input, shape index: {}]   ;;  %s4886_s1 = inlined_call_operand.vmem [shape: bf16[64,288], index: 1, kind: input, shape index: {}]   ;;  %s4887_s2 = inlined_call_operand.vmem [shape: f32[64,1], index: 2, kind: input, shape index: {}]   ;;  %s4888_s3 = inlined_call_operand.vmem [shape: bf16[64,512], index: 3, kind: output, shape index: {}]  }
   0x1   :  { %s3713_s14 = smov 0  }
   0x2 LB: > { %s2699_s15 = sadd.s32 4294967295, %s3686_s14   ;;  %s3726_s16 = sadd.s32 1, %s3686_s14   ;;  %s3686_s14 = sphi %s3713_s14, %s4900_s14   ;;  %s3682_s13 = sphi %s3711_s13, %s4899_s13   ;;  %s3678_s12 = sphi %s3709_s12, %s4898_s12  }
   0x3   : > { %s17_s17 = ssub.s32 %s3686_s14, %s3726_s16  ;;  %s20_s18 = sadd.s32 1, %s3682_s13 }
   0x4   : > { %p18_p0 = scmp.eq.s32.totalorder %s17_s17, 0  ;;  %p27_p1 = scmp.ne.s32.totalorder %s3682_s13, %s3678_s12 }
   0x5   : > { %p28_p2 = scmp.eq.s32.totalorder %s3686_s14, 0  ;;  %p99_p3 = scmp.eq.s32.totalorder %s2699_s15, 1 }
   0x6   : > { %s3737_s19 = scalar_select %p18_p0, %s3682_s13, %s20_s18  }
   0x7   : > { %p29_p4 = por %p28_p2, %p27_p1  ;;  %p3739_p5 = por %p99_p3, %p27_p1 }
   0x8   : > { %p2702_p6 = scmp.ge.s32.totalorder %s3686_s14, 2 }
   0xa   : > { %127 = sbr.rel (%p2702_p6) target bundleno = 163 (0xa3), region = 24 }
   0xf   : > { %130 = sbr.rel (!%p29_p4) target bundleno = 163 (0xa3), region = 28  ;;  %s132_s21 = sand.u32 (%p29_p4), 1, %s3682_s13  }
  0x10   : > { %s3476_s22 = sshll.u32 (%p29_p4), %s3686_s14, 3  ;;  %s3634_s23 = smul.u32 (%p29_p4), 1152, %s132_s21 }
  0x11   : > { %s3749_s26 = scalar_lea.vmem (%p29_p4), %s4885_s0, %s3476_s22 }
  0x12   : > { %v452_v0 = vld [vmem:[%s3749_s26] sm:$0xff] (%p29_p4)  ;;  %v454_v1 = vld [vmem:[%s3749_s26 + $0x10] sm:$0xff] (%p29_p4)  ;;  %s3754_s27 = scalar_lea.vmem (%p29_p4), [#allocation2], %s3634_s23 }
  0x13   : > { %v456_v2 = vld [vmem:[%s3749_s26 + $0x20] sm:$0xff] (%p29_p4)  ;;  %453 = vst [vmem:[%s3754_s27] sm:$0xff] (%p29_p4), %v452_v0  ;;  %v458_v3 = vld [vmem:[%s3749_s26 + $0x30] sm:$0xff] (%p29_p4) }
  0x14   : > { %455 = vst [vmem:[%s3754_s27 + $0x8] sm:$0xff] %v454_v1  ;;  %v460_v4 = vld [vmem:[%s3749_s26 + $0x40] sm:$0xff]  ;;  %v462_v5 = vld [vmem:[%s3749_s26 + $0x50] sm:$0xff] }
  0x15   : > { %457 = vst [vmem:[%s3754_s27 + $0x10] sm:$0xff] %v456_v2  ;;  %v464_v6 = vld [vmem:[%s3749_s26 + $0x60] sm:$0xff]  ;;  %v466_v7 = vld [vmem:[%s3749_s26 + $0x70] sm:$0xff] }
  0x16   : > { %459 = vst [vmem:[%s3754_s27 + $0x18] sm:$0xff] %v458_v3  ;;  %v468_v8 = vld [vmem:[%s3749_s26 + $0x80] sm:$0xff]  ;;  %v470_v9 = vld [vmem:[%s3749_s26 + $0x90] sm:$0xff] }
  0x17   : > { %461 = vst [vmem:[%s3754_s27 + $0x20] sm:$0xff] %v460_v4  ;;  %v472_v10 = vld [vmem:[%s3749_s26 + $0xa0] sm:$0xff]  ;;  %v474_v11 = vld [vmem:[%s3749_s26 + $0xb0] sm:$0xff] }
  0x18   : > { %463 = vst [vmem:[%s3754_s27 + $0x28] sm:$0xff] %v462_v5  ;;  %v476_v12 = vld [vmem:[%s3749_s26 + $0xc0] sm:$0xff]  ;;  %v478_v13 = vld [vmem:[%s3749_s26 + $0xd0] sm:$0xff] }
  0x19   : > { %465 = vst [vmem:[%s3754_s27 + $0x30] sm:$0xff] %v464_v6  ;;  %v480_v14 = vld [vmem:[%s3749_s26 + $0xe0] sm:$0xff]  ;;  %v482_v15 = vld [vmem:[%s3749_s26 + $0xf0] sm:$0xff] }
  0x1a   : > { %467 = vst [vmem:[%s3754_s27 + $0x38] sm:$0xff] %v466_v7  ;;  %v484_v16 = vld [vmem:[%s3749_s26 + $0x100] sm:$0xff]  ;;  %v486_v17 = vld [vmem:[%s3749_s26 + $0x110] sm:$0xff] }
  0x1b   : > { %469 = vst [vmem:[%s3754_s27 + $0x40] sm:$0xff] %v468_v8  ;;  %v488_v18 = vld [vmem:[%s3749_s26 + $0x120] sm:$0xff]  ;;  %v490_v19 = vld [vmem:[%s3749_s26 + $0x130] sm:$0xff] }
  0x1c   : > { %471 = vst [vmem:[%s3754_s27 + $0x48] sm:$0xff] %v470_v9  ;;  %v492_v20 = vld [vmem:[%s3749_s26 + $0x140] sm:$0xff]  ;;  %v494_v21 = vld [vmem:[%s3749_s26 + $0x150] sm:$0xff] }
  0x1d   : > { %473 = vst [vmem:[%s3754_s27 + $0x50] sm:$0xff] %v472_v10  ;;  %v496_v22 = vld [vmem:[%s3749_s26 + $0x160] sm:$0xff]  ;;  %v498_v23 = vld [vmem:[%s3749_s26 + $0x170] sm:$0xff] }
  0x1e   : > { %475 = vst [vmem:[%s3754_s27 + $0x58] sm:$0xff] %v474_v11  ;;  %v500_v24 = vld [vmem:[%s3749_s26 + $0x180] sm:$0xff]  ;;  %v502_v25 = vld [vmem:[%s3749_s26 + $0x190] sm:$0xff] }
  0x1f   : > { %477 = vst [vmem:[%s3754_s27 + $0x60] sm:$0xff] %v476_v12  ;;  %v504_v26 = vld [vmem:[%s3749_s26 + $0x1a0] sm:$0xff]  ;;  %v506_v27 = vld [vmem:[%s3749_s26 + $0x1b0] sm:$0xff] }
  0x20   : > { %479 = vst [vmem:[%s3754_s27 + $0x68] sm:$0xff] %v478_v13  ;;  %v508_v28 = vld [vmem:[%s3749_s26 + $0x1c0] sm:$0xff]  ;;  %v510_v29 = vld [vmem:[%s3749_s26 + $0x1d0] sm:$0xff] }
  0x21   : > { %481 = vst [vmem:[%s3754_s27 + $0x70] sm:$0xff] %v480_v14  ;;  %v512_v30 = vld [vmem:[%s3749_s26 + $0x1e0] sm:$0xff]  ;;  %v514_v31 = vld [vmem:[%s3749_s26 + $0x1f0] sm:$0xff] }
  0x22   : > { %483 = vst [vmem:[%s3754_s27 + $0x78] sm:$0xff] %v482_v15  ;;  %v516_v32 = vld [vmem:[%s3749_s26 + $0x200] sm:$0xff]  ;;  %v518_v33 = vld [vmem:[%s3749_s26 + $0x210] sm:$0xff] }
  0x23   : > { %485 = vst [vmem:[%s3754_s27 + $0x80] sm:$0xff] %v484_v16  ;;  %v520_v34 = vld [vmem:[%s3749_s26 + $0x220] sm:$0xff]  ;;  %v522_v35 = vld [vmem:[%s3749_s26 + $0x230] sm:$0xff] }
  0x24   : > { %487 = vst [vmem:[%s3754_s27 + $0x88] sm:$0xff] %v486_v17  ;;  %v524_v36 = vld [vmem:[%s3749_s26 + $0x240] sm:$0xff]  ;;  %v526_v37 = vld [vmem:[%s3749_s26 + $0x250] sm:$0xff] }
  0x25   : > { %489 = vst [vmem:[%s3754_s27 + $0x90] sm:$0xff] %v488_v18  ;;  %v528_v38 = vld [vmem:[%s3749_s26 + $0x260] sm:$0xff]  ;;  %v530_v39 = vld [vmem:[%s3749_s26 + $0x270] sm:$0xff] }
  0x26   : > { %491 = vst [vmem:[%s3754_s27 + $0x98] sm:$0xff] %v490_v19  ;;  %v532_v40 = vld [vmem:[%s3749_s26 + $0x280] sm:$0xff]  ;;  %v534_v41 = vld [vmem:[%s3749_s26 + $0x290] sm:$0xff] }
  0x27   : > { %493 = vst [vmem:[%s3754_s27 + $0xa0] sm:$0xff] %v492_v20  ;;  %v536_v42 = vld [vmem:[%s3749_s26 + $0x2a0] sm:$0xff]  ;;  %v538_v43 = vld [vmem:[%s3749_s26 + $0x2b0] sm:$0xff] }
  0x28   : > { %495 = vst [vmem:[%s3754_s27 + $0xa8] sm:$0xff] %v494_v21  ;;  %v540_v44 = vld [vmem:[%s3749_s26 + $0x2c0] sm:$0xff]  ;;  %v542_v45 = vld [vmem:[%s3749_s26 + $0x2d0] sm:$0xff] }
  0x29   : > { %497 = vst [vmem:[%s3754_s27 + $0xb0] sm:$0xff] %v496_v22  ;;  %v544_v46 = vld [vmem:[%s3749_s26 + $0x2e0] sm:$0xff]  ;;  %v546_v47 = vld [vmem:[%s3749_s26 + $0x2f0] sm:$0xff] }
  0x2a   : > { %499 = vst [vmem:[%s3754_s27 + $0xb8] sm:$0xff] %v498_v23  ;;  %v548_v48 = vld [vmem:[%s3749_s26 + $0x300] sm:$0xff]  ;;  %v550_v49 = vld [vmem:[%s3749_s26 + $0x310] sm:$0xff] }
  0x2b   : > { %501 = vst [vmem:[%s3754_s27 + $0xc0] sm:$0xff] %v500_v24  ;;  %v552_v50 = vld [vmem:[%s3749_s26 + $0x320] sm:$0xff]  ;;  %v554_v51 = vld [vmem:[%s3749_s26 + $0x330] sm:$0xff] }
  0x2c   : > { %503 = vst [vmem:[%s3754_s27 + $0xc8] sm:$0xff] %v502_v25  ;;  %v556_v52 = vld [vmem:[%s3749_s26 + $0x340] sm:$0xff]  ;;  %v558_v53 = vld [vmem:[%s3749_s26 + $0x350] sm:$0xff] }
  0x2d   : > { %505 = vst [vmem:[%s3754_s27 + $0xd0] sm:$0xff] %v504_v26  ;;  %v560_v54 = vld [vmem:[%s3749_s26 + $0x360] sm:$0xff]  ;;  %v562_v55 = vld [vmem:[%s3749_s26 + $0x370] sm:$0xff] }
  0x2e   : > { %507 = vst [vmem:[%s3754_s27 + $0xd8] sm:$0xff] %v506_v27  ;;  %v564_v56 = vld [vmem:[%s3749_s26 + $0x380] sm:$0xff]  ;;  %v566_v57 = vld [vmem:[%s3749_s26 + $0x390] sm:$0xff] }
  0x2f   : > { %509 = vst [vmem:[%s3754_s27 + $0xe0] sm:$0xff] %v508_v28  ;;  %v568_v58 = vld [vmem:[%s3749_s26 + $0x3a0] sm:$0xff]  ;;  %v570_v59 = vld [vmem:[%s3749_s26 + $0x3b0] sm:$0xff] }
  0x30   : > { %511 = vst [vmem:[%s3754_s27 + $0xe8] sm:$0xff] %v510_v29  ;;  %v572_v60 = vld [vmem:[%s3749_s26 + $0x3c0] sm:$0xff]  ;;  %v574_v61 = vld [vmem:[%s3749_s26 + $0x3d0] sm:$0xff] }
  0x31   : > { %513 = vst [vmem:[%s3754_s27 + $0xf0] sm:$0xff] %v512_v30  ;;  %v576_v62 = vld [vmem:[%s3749_s26 + $0x3e0] sm:$0xff]  ;;  %v578_v63 = vld [vmem:[%s3749_s26 + $0x3f0] sm:$0xff] }
  0x32   : > { %515 = vst [vmem:[%s3754_s27 + $0xf8] sm:$0xff] %v514_v31  ;;  %v580_v0 = vld [vmem:[%s3749_s26 + $0x400] sm:$0xff]  ;;  %v582_v1 = vld [vmem:[%s3749_s26 + $0x410] sm:$0xff] }
  0x33   : > { %517 = vst [vmem:[%s3754_s27 + $0x100] sm:$0xff] %v516_v32  ;;  %v584_v2 = vld [vmem:[%s3749_s26 + $0x420] sm:$0xff]  ;;  %v586_v3 = vld [vmem:[%s3749_s26 + $0x430] sm:$0xff] }
  0x34   : > { %519 = vst [vmem:[%s3754_s27 + $0x108] sm:$0xff] %v518_v33  ;;  %v588_v4 = vld [vmem:[%s3749_s26 + $0x440] sm:$0xff]  ;;  %v590_v5 = vld [vmem:[%s3749_s26 + $0x450] sm:$0xff] }
  0x35   : > { %521 = vst [vmem:[%s3754_s27 + $0x110] sm:$0xff] %v520_v34  ;;  %v592_v6 = vld [vmem:[%s3749_s26 + $0x460] sm:$0xff]  ;;  %v594_v7 = vld [vmem:[%s3749_s26 + $0x470] sm:$0xff] }
  0x36   : > { %523 = vst [vmem:[%s3754_s27 + $0x118] sm:$0xff] %v522_v35  ;;  %v596_v8 = vld [vmem:[%s3749_s26 + $0x480] sm:$0xff]  ;;  %v598_v9 = vld [vmem:[%s3749_s26 + $0x490] sm:$0xff] }
  0x37   : > { %525 = vst [vmem:[%s3754_s27 + $0x120] sm:$0xff] %v524_v36  ;;  %v600_v10 = vld [vmem:[%s3749_s26 + $0x4a0] sm:$0xff]  ;;  %v602_v11 = vld [vmem:[%s3749_s26 + $0x4b0] sm:$0xff] }
  0x38   : > { %527 = vst [vmem:[%s3754_s27 + $0x128] sm:$0xff] %v526_v37  ;;  %v604_v12 = vld [vmem:[%s3749_s26 + $0x4c0] sm:$0xff]  ;;  %v606_v13 = vld [vmem:[%s3749_s26 + $0x4d0] sm:$0xff] }
  0x39   : > { %529 = vst [vmem:[%s3754_s27 + $0x130] sm:$0xff] %v528_v38  ;;  %v608_v14 = vld [vmem:[%s3749_s26 + $0x4e0] sm:$0xff]  ;;  %v610_v15 = vld [vmem:[%s3749_s26 + $0x4f0] sm:$0xff] }
  0x3a   : > { %531 = vst [vmem:[%s3754_s27 + $0x138] sm:$0xff] %v530_v39  ;;  %v612_v16 = vld [vmem:[%s3749_s26 + $0x500] sm:$0xff]  ;;  %v614_v17 = vld [vmem:[%s3749_s26 + $0x510] sm:$0xff] }
  0x3b   : > { %533 = vst [vmem:[%s3754_s27 + $0x140] sm:$0xff] %v532_v40  ;;  %v616_v18 = vld [vmem:[%s3749_s26 + $0x520] sm:$0xff]  ;;  %v618_v19 = vld [vmem:[%s3749_s26 + $0x530] sm:$0xff] }
  0x3c   : > { %535 = vst [vmem:[%s3754_s27 + $0x148] sm:$0xff] %v534_v41  ;;  %v620_v20 = vld [vmem:[%s3749_s26 + $0x540] sm:$0xff]  ;;  %v622_v21 = vld [vmem:[%s3749_s26 + $0x550] sm:$0xff] }
  0x3d   : > { %537 = vst [vmem:[%s3754_s27 + $0x150] sm:$0xff] %v536_v42  ;;  %v624_v22 = vld [vmem:[%s3749_s26 + $0x560] sm:$0xff]  ;;  %v626_v23 = vld [vmem:[%s3749_s26 + $0x570] sm:$0xff] }
  0x3e   : > { %539 = vst [vmem:[%s3754_s27 + $0x158] sm:$0xff] %v538_v43  ;;  %v628_v24 = vld [vmem:[%s3749_s26 + $0x580] sm:$0xff]  ;;  %v630_v25 = vld [vmem:[%s3749_s26 + $0x590] sm:$0xff] }
  0x3f   : > { %541 = vst [vmem:[%s3754_s27 + $0x160] sm:$0xff] %v540_v44  ;;  %v632_v26 = vld [vmem:[%s3749_s26 + $0x5a0] sm:$0xff]  ;;  %v634_v27 = vld [vmem:[%s3749_s26 + $0x5b0] sm:$0xff] }
  0x40   : > { %543 = vst [vmem:[%s3754_s27 + $0x168] sm:$0xff] %v542_v45  ;;  %v636_v28 = vld [vmem:[%s3749_s26 + $0x5c0] sm:$0xff]  ;;  %v638_v29 = vld [vmem:[%s3749_s26 + $0x5d0] sm:$0xff] }
  0x41   : > { %545 = vst [vmem:[%s3754_s27 + $0x170] sm:$0xff] %v544_v46  ;;  %v640_v30 = vld [vmem:[%s3749_s26 + $0x5e0] sm:$0xff]  ;;  %v642_v31 = vld [vmem:[%s3749_s26 + $0x5f0] sm:$0xff] }
  0x42   : > { %547 = vst [vmem:[%s3754_s27 + $0x178] sm:$0xff] %v546_v47  ;;  %v644_v32 = vld [vmem:[%s3749_s26 + $0x600] sm:$0xff]  ;;  %v646_v33 = vld [vmem:[%s3749_s26 + $0x610] sm:$0xff] }
  0x43   : > { %549 = vst [vmem:[%s3754_s27 + $0x180] sm:$0xff] %v548_v48  ;;  %v648_v34 = vld [vmem:[%s3749_s26 + $0x620] sm:$0xff]  ;;  %v650_v35 = vld [vmem:[%s3749_s26 + $0x630] sm:$0xff] }
  0x44   : > { %551 = vst [vmem:[%s3754_s27 + $0x188] sm:$0xff] %v550_v49  ;;  %v652_v36 = vld [vmem:[%s3749_s26 + $0x640] sm:$0xff]  ;;  %v654_v37 = vld [vmem:[%s3749_s26 + $0x650] sm:$0xff] }
  0x45   : > { %553 = vst [vmem:[%s3754_s27 + $0x190] sm:$0xff] %v552_v50  ;;  %v656_v38 = vld [vmem:[%s3749_s26 + $0x660] sm:$0xff]  ;;  %v658_v39 = vld [vmem:[%s3749_s26 + $0x670] sm:$0xff] }
  0x46   : > { %555 = vst [vmem:[%s3754_s27 + $0x198] sm:$0xff] %v554_v51  ;;  %v660_v40 = vld [vmem:[%s3749_s26 + $0x680] sm:$0xff]  ;;  %v662_v41 = vld [vmem:[%s3749_s26 + $0x690] sm:$0xff] }
  0x47   : > { %557 = vst [vmem:[%s3754_s27 + $0x1a0] sm:$0xff] %v556_v52  ;;  %v664_v42 = vld [vmem:[%s3749_s26 + $0x6a0] sm:$0xff]  ;;  %v666_v43 = vld [vmem:[%s3749_s26 + $0x6b0] sm:$0xff] }
  0x48   : > { %559 = vst [vmem:[%s3754_s27 + $0x1a8] sm:$0xff] %v558_v53  ;;  %v668_v44 = vld [vmem:[%s3749_s26 + $0x6c0] sm:$0xff]  ;;  %v670_v45 = vld [vmem:[%s3749_s26 + $0x6d0] sm:$0xff] }
  0x49   : > { %561 = vst [vmem:[%s3754_s27 + $0x1b0] sm:$0xff] %v560_v54  ;;  %v672_v46 = vld [vmem:[%s3749_s26 + $0x6e0] sm:$0xff]  ;;  %v674_v47 = vld [vmem:[%s3749_s26 + $0x6f0] sm:$0xff] }
  0x4a   : > { %563 = vst [vmem:[%s3754_s27 + $0x1b8] sm:$0xff] %v562_v55  ;;  %v676_v48 = vld [vmem:[%s3749_s26 + $0x700] sm:$0xff]  ;;  %v678_v49 = vld [vmem:[%s3749_s26 + $0x710] sm:$0xff] }
  0x4b   : > { %565 = vst [vmem:[%s3754_s27 + $0x1c0] sm:$0xff] %v564_v56  ;;  %v680_v50 = vld [vmem:[%s3749_s26 + $0x720] sm:$0xff]  ;;  %v682_v51 = vld [vmem:[%s3749_s26 + $0x730] sm:$0xff] }
  0x4c   : > { %567 = vst [vmem:[%s3754_s27 + $0x1c8] sm:$0xff] %v566_v57  ;;  %v684_v52 = vld [vmem:[%s3749_s26 + $0x740] sm:$0xff]  ;;  %v686_v53 = vld [vmem:[%s3749_s26 + $0x750] sm:$0xff] }
  0x4d   : > { %569 = vst [vmem:[%s3754_s27 + $0x1d0] sm:$0xff] %v568_v58  ;;  %v688_v54 = vld [vmem:[%s3749_s26 + $0x760] sm:$0xff]  ;;  %v690_v55 = vld [vmem:[%s3749_s26 + $0x770] sm:$0xff] }
  0x4e   : > { %571 = vst [vmem:[%s3754_s27 + $0x1d8] sm:$0xff] %v570_v59  ;;  %v692_v56 = vld [vmem:[%s3749_s26 + $0x780] sm:$0xff]  ;;  %v694_v57 = vld [vmem:[%s3749_s26 + $0x790] sm:$0xff] }
  0x4f   : > { %573 = vst [vmem:[%s3754_s27 + $0x1e0] sm:$0xff] %v572_v60  ;;  %v696_v58 = vld [vmem:[%s3749_s26 + $0x7a0] sm:$0xff]  ;;  %v698_v59 = vld [vmem:[%s3749_s26 + $0x7b0] sm:$0xff] }
  0x50   : > { %575 = vst [vmem:[%s3754_s27 + $0x1e8] sm:$0xff] %v574_v61  ;;  %v700_v60 = vld [vmem:[%s3749_s26 + $0x7c0] sm:$0xff]  ;;  %v702_v61 = vld [vmem:[%s3749_s26 + $0x7d0] sm:$0xff] }
  0x51   : > { %577 = vst [vmem:[%s3754_s27 + $0x1f0] sm:$0xff] %v576_v62  ;;  %v704_v62 = vld [vmem:[%s3749_s26 + $0x7e0] sm:$0xff] }
  0x52   : > { %579 = vst [vmem:[%s3754_s27 + $0x1f8] sm:$0xff] %v578_v63  ;;  %v706_v63 = vld [vmem:[%s3749_s26 + $0x7f0] sm:$0xff] }
  0x53   : > { %581 = vst [vmem:[%s3754_s27 + $0x200] sm:$0xff] %v580_v0  ;;  %v708_v0 = vld [vmem:[%s3749_s26 + $0x800] sm:$0xff] }
  0x54   : > { %583 = vst [vmem:[%s3754_s27 + $0x208] sm:$0xff] %v582_v1  ;;  %v710_v1 = vld [vmem:[%s3749_s26 + $0x810] sm:$0xff] }
  0x55   : > { %585 = vst [vmem:[%s3754_s27 + $0x210] sm:$0xff] %v584_v2  ;;  %v712_v2 = vld [vmem:[%s3749_s26 + $0x820] sm:$0xff] }
  0x56   : > { %587 = vst [vmem:[%s3754_s27 + $0x218] sm:$0xff] %v586_v3  ;;  %v714_v3 = vld [vmem:[%s3749_s26 + $0x830] sm:$0xff] }
  0x57   : > { %589 = vst [vmem:[%s3754_s27 + $0x220] sm:$0xff] %v588_v4  ;;  %v716_v4 = vld [vmem:[%s3749_s26 + $0x840] sm:$0xff] }
  0x58   : > { %591 = vst [vmem:[%s3754_s27 + $0x228] sm:$0xff] %v590_v5  ;;  %v718_v5 = vld [vmem:[%s3749_s26 + $0x850] sm:$0xff] }
  0x59   : > { %593 = vst [vmem:[%s3754_s27 + $0x230] sm:$0xff] %v592_v6  ;;  %v720_v6 = vld [vmem:[%s3749_s26 + $0x860] sm:$0xff] }
  0x5a   : > { %595 = vst [vmem:[%s3754_s27 + $0x238] sm:$0xff] %v594_v7  ;;  %v722_v7 = vld [vmem:[%s3749_s26 + $0x870] sm:$0xff] }
  0x5b   : > { %597 = vst [vmem:[%s3754_s27 + $0x240] sm:$0xff] %v596_v8  ;;  %v724_v8 = vld [vmem:[%s3749_s26 + $0x880] sm:$0xff] }
  0x5c   : > { %599 = vst [vmem:[%s3754_s27 + $0x248] sm:$0xff] %v598_v9  ;;  %v726_v9 = vld [vmem:[%s3749_s26 + $0x890] sm:$0xff] }
  0x5d   : > { %601 = vst [vmem:[%s3754_s27 + $0x250] sm:$0xff] %v600_v10  ;;  %v728_v10 = vld [vmem:[%s3749_s26 + $0x8a0] sm:$0xff] }
  0x5e   : > { %603 = vst [vmem:[%s3754_s27 + $0x258] sm:$0xff] %v602_v11  ;;  %v730_v11 = vld [vmem:[%s3749_s26 + $0x8b0] sm:$0xff] }
  0x5f   : > { %605 = vst [vmem:[%s3754_s27 + $0x260] sm:$0xff] %v604_v12  ;;  %v732_v12 = vld [vmem:[%s3749_s26 + $0x8c0] sm:$0xff] }
  0x60   : > { %607 = vst [vmem:[%s3754_s27 + $0x268] sm:$0xff] %v606_v13  ;;  %v734_v13 = vld [vmem:[%s3749_s26 + $0x8d0] sm:$0xff] }
  0x61   : > { %609 = vst [vmem:[%s3754_s27 + $0x270] sm:$0xff] %v608_v14  ;;  %v736_v14 = vld [vmem:[%s3749_s26 + $0x8e0] sm:$0xff] }
  0x62   : > { %611 = vst [vmem:[%s3754_s27 + $0x278] sm:$0xff] %v610_v15  ;;  %v738_v15 = vld [vmem:[%s3749_s26 + $0x8f0] sm:$0xff] }
  0x63   : > { %613 = vst [vmem:[%s3754_s27 + $0x280] sm:$0xff] %v612_v16 }
  0x64   : > { %615 = vst [vmem:[%s3754_s27 + $0x288] sm:$0xff] %v614_v17 }
  0x65   : > { %617 = vst [vmem:[%s3754_s27 + $0x290] sm:$0xff] %v616_v18 }
  0x66   : > { %619 = vst [vmem:[%s3754_s27 + $0x298] sm:$0xff] %v618_v19 }
  0x67   : > { %621 = vst [vmem:[%s3754_s27 + $0x2a0] sm:$0xff] %v620_v20 }
  0x68   : > { %623 = vst [vmem:[%s3754_s27 + $0x2a8] sm:$0xff] %v622_v21 }
  0x69   : > { %625 = vst [vmem:[%s3754_s27 + $0x2b0] sm:$0xff] %v624_v22 }
  0x6a   : > { %627 = vst [vmem:[%s3754_s27 + $0x2b8] sm:$0xff] %v626_v23 }
  0x6b   : > { %629 = vst [vmem:[%s3754_s27 + $0x2c0] sm:$0xff] %v628_v24 }
  0x6c   : > { %631 = vst [vmem:[%s3754_s27 + $0x2c8] sm:$0xff] %v630_v25 }
  0x6d   : > { %633 = vst [vmem:[%s3754_s27 + $0x2d0] sm:$0xff] %v632_v26 }
  0x6e   : > { %635 = vst [vmem:[%s3754_s27 + $0x2d8] sm:$0xff] %v634_v27 }
  0x6f   : > { %637 = vst [vmem:[%s3754_s27 + $0x2e0] sm:$0xff] %v636_v28 }
  0x70   : > { %639 = vst [vmem:[%s3754_s27 + $0x2e8] sm:$0xff] %v638_v29 }
  0x71   : > { %641 = vst [vmem:[%s3754_s27 + $0x2f0] sm:$0xff] %v640_v30 }
  0x72   : > { %643 = vst [vmem:[%s3754_s27 + $0x2f8] sm:$0xff] %v642_v31 }
  0x73   : > { %645 = vst [vmem:[%s3754_s27 + $0x300] sm:$0xff] %v644_v32 }
  0x74   : > { %647 = vst [vmem:[%s3754_s27 + $0x308] sm:$0xff] %v646_v33 }
  0x75   : > { %649 = vst [vmem:[%s3754_s27 + $0x310] sm:$0xff] %v648_v34 }
  0x76   : > { %651 = vst [vmem:[%s3754_s27 + $0x318] sm:$0xff] %v650_v35 }
  0x77   : > { %653 = vst [vmem:[%s3754_s27 + $0x320] sm:$0xff] %v652_v36 }
  0x78   : > { %655 = vst [vmem:[%s3754_s27 + $0x328] sm:$0xff] %v654_v37 }
  0x79   : > { %657 = vst [vmem:[%s3754_s27 + $0x330] sm:$0xff] %v656_v38 }
  0x7a   : > { %659 = vst [vmem:[%s3754_s27 + $0x338] sm:$0xff] %v658_v39 }
  0x7b   : > { %661 = vst [vmem:[%s3754_s27 + $0x340] sm:$0xff] %v660_v40 }
  0x7c   : > { %663 = vst [vmem:[%s3754_s27 + $0x348] sm:$0xff] %v662_v41 }
  0x7d   : > { %665 = vst [vmem:[%s3754_s27 + $0x350] sm:$0xff] %v664_v42 }
  0x7e   : > { %667 = vst [vmem:[%s3754_s27 + $0x358] sm:$0xff] %v666_v43 }
  0x7f   : > { %669 = vst [vmem:[%s3754_s27 + $0x360] sm:$0xff] %v668_v44 }
  0x80   : > { %671 = vst [vmem:[%s3754_s27 + $0x368] sm:$0xff] %v670_v45 }
  0x81   : > { %673 = vst [vmem:[%s3754_s27 + $0x370] sm:$0xff] %v672_v46 }
  0x82   : > { %675 = vst [vmem:[%s3754_s27 + $0x378] sm:$0xff] %v674_v47 }
  0x83   : > { %677 = vst [vmem:[%s3754_s27 + $0x380] sm:$0xff] %v676_v48 }
  0x84   : > { %679 = vst [vmem:[%s3754_s27 + $0x388] sm:$0xff] %v678_v49 }
  0x85   : > { %681 = vst [vmem:[%s3754_s27 + $0x390] sm:$0xff] %v680_v50 }
  0x86   : > { %683 = vst [vmem:[%s3754_s27 + $0x398] sm:$0xff] %v682_v51 }
  0x87   : > { %685 = vst [vmem:[%s3754_s27 + $0x3a0] sm:$0xff] %v684_v52 }
  0x88   : > { %687 = vst [vmem:[%s3754_s27 + $0x3a8] sm:$0xff] %v686_v53 }
  0x89   : > { %689 = vst [vmem:[%s3754_s27 + $0x3b0] sm:$0xff] %v688_v54 }
  0x8a   : > { %691 = vst [vmem:[%s3754_s27 + $0x3b8] sm:$0xff] %v690_v55 }
  0x8b   : > { %693 = vst [vmem:[%s3754_s27 + $0x3c0] sm:$0xff] %v692_v56 }
  0x8c   : > { %695 = vst [vmem:[%s3754_s27 + $0x3c8] sm:$0xff] %v694_v57 }
  0x8d   : > { %697 = vst [vmem:[%s3754_s27 + $0x3d0] sm:$0xff] %v696_v58 }
  0x8e   : > { %699 = vst [vmem:[%s3754_s27 + $0x3d8] sm:$0xff] %v698_v59 }
  0x8f   : > { %701 = vst [vmem:[%s3754_s27 + $0x3e0] sm:$0xff] %v700_v60 }
  0x90   : > { %703 = vst [vmem:[%s3754_s27 + $0x3e8] sm:$0xff] %v702_v61 }
  0x91   : > { %705 = vst [vmem:[%s3754_s27 + $0x3f0] sm:$0xff] %v704_v62 }
  0x92   : > { %707 = vst [vmem:[%s3754_s27 + $0x3f8] sm:$0xff] %v706_v63 }
  0x93   : > { %709 = vst [vmem:[%s3754_s27 + $0x400] sm:$0xff] %v708_v0 }
  0x94   : > { %711 = vst [vmem:[%s3754_s27 + $0x408] sm:$0xff] %v710_v1 }
  0x95   : > { %713 = vst [vmem:[%s3754_s27 + $0x410] sm:$0xff] %v712_v2 }
  0x96   : > { %715 = vst [vmem:[%s3754_s27 + $0x418] sm:$0xff] %v714_v3 }
  0x97   : > { %717 = vst [vmem:[%s3754_s27 + $0x420] sm:$0xff] %v716_v4 }
  0x98   : > { %719 = vst [vmem:[%s3754_s27 + $0x428] sm:$0xff] %v718_v5 }
  0x99   : > { %721 = vst [vmem:[%s3754_s27 + $0x430] sm:$0xff] %v720_v6 }
  0x9a   : > { %723 = vst [vmem:[%s3754_s27 + $0x438] sm:$0xff] %v722_v7 }
  0x9b   : > { %725 = vst [vmem:[%s3754_s27 + $0x440] sm:$0xff] %v724_v8 }
  0x9c   : > { %727 = vst [vmem:[%s3754_s27 + $0x448] sm:$0xff] %v726_v9 }
  0x9d   : > { %729 = vst [vmem:[%s3754_s27 + $0x450] sm:$0xff] %v728_v10 }
  0x9e   : > { %731 = vst [vmem:[%s3754_s27 + $0x458] sm:$0xff] %v730_v11 }
  0x9f   : > { %733 = vst [vmem:[%s3754_s27 + $0x460] sm:$0xff] %v732_v12 }
  0xa0   : > { %735 = vst [vmem:[%s3754_s27 + $0x468] sm:$0xff] %v734_v13 }
  0xa1   : > { %737 = vst [vmem:[%s3754_s27 + $0x470] sm:$0xff] %v736_v14 }
  0xa2   : > { %739 = vst [vmem:[%s3754_s27 + $0x478] sm:$0xff] %v738_v15 }
  0xa3 PF: > { %p2705_p7 = scmp.ge.s32.totalorder %s3686_s14, 1  ;;  %p744_p8 = scmp.lt.s32.totalorder %s3686_s14, 3 }
  0xa5   : > { %p745_p9 = pnand %p2705_p7, %p744_p8 }
  0xa6   : > { %s751_s28 = sand.u32 (!%p745_p9), 1, %s3678_s12  }
  0xa7   : > { %748 = sbr.rel (%p745_p9) target bundleno = 735 (0x2df), region = 66  ;;  %s2706_s18 = sshll.u32 (!%p745_p9), %s751_s28, 6 }
  0xa8   : > { %s3635_s29 = smul.u32 (!%p745_p9), 1152, %s751_s28  ;;  %s4835_s21 = scalar_lea.vmem (!%p745_p9), [#allocation3], %s2706_s18 }
  0xaa   : > { %s4046_s30 = scalar_lea.vmem (!%p745_p9), [#allocation2], %s3635_s29 }
  0xac   : > { %v2813_v16 = vld [vmem:[%s4046_s30 + $0x70] sm:$0xf]  ;;  %v3504_v17 = vld [vmem:[%s4046_s30 + $0x74] sm:$0xf0]  ;;  %v3503_v25 = vld [vmem:[%s4046_s30 + $0x74] sm:$0xf] }
  0xad   : > { %v2877_v18 = vld [vmem:[%s4046_s30 + $0xf0] sm:$0xf]  ;;  %v2814_v19 = vor.u32 %v3504_v17, %v2813_v16  ;;  %v3520_v20 = vld [vmem:[%s4046_s30 + $0xf4] sm:$0xf0]  ;;  %v2815_v26 = vld [vmem:[%s4046_s30 + $0x78] sm:$0xf0] }
  0xae   : > { %v2893_v21 = vld [vmem:[%s4046_s30 + $0x110] sm:$0xf]  ;;  %v3524_v22 = vld [vmem:[%s4046_s30 + $0x114] sm:$0xf0]  ;;  %v2878_v23 = vor.u32 %v3520_v20, %v2877_v18  ;;  %v2805_v27 = vld [vmem:[%s4046_s30 + $0x60] sm:$0xf]  ;;  %v2818_v30 = vor.u32 %v3503_v25, %v2815_v26 }
  0xaf   : > { %v2894_v24 = vor.u32 %v3524_v22, %v2893_v21  ;;  %v2717_v28 = vld [vmem:[%s4886_s1 + $0x8] sm:$0xf]  ;;  %v3479_v29 = vld [vmem:[%s4886_s1 + $0x10] sm:$0xf0]  ;;  %1081 = vmatpush.bf16.msra.mxu0 %v2814_v19  ;;  %v2869_v32 = vld [vmem:[%s4046_s30 + $0xe0] sm:$0xf] }
  0xb0   : > { %v3502_v31 = vld [vmem:[%s4046_s30 + $0x64] sm:$0xf0]  ;;  %1110 = vmatpush.bf16.msra.mxu1 %v2878_v23  ;;  %v2885_v36 = vld [vmem:[%s4046_s30 + $0x100] sm:$0xf]  ;;  %v3501_v38 = vld [vmem:[%s4046_s30 + $0x64] sm:$0xf]  ;;  %1168 = vmatpush.bf16.msra.mxu3 %v2818_v30  ;;  %v4075_v47 = vor.u32 %v3479_v29, %v2717_v28 }
  0xb1   : > { %v3518_v33 = vld [vmem:[%s4046_s30 + $0xe4] sm:$0xf0]  ;;  %1145 = vmatpush.bf16.msra.mxu2 %v2894_v24  ;;  %v2806_v34 = vor.u32 %v3502_v31, %v2805_v27  ;;  %v2807_v40 = vld [vmem:[%s4046_s30 + $0x68] sm:$0xf0]  ;;  %v2797_v41 = vld [vmem:[%s4046_s30 + $0x50] sm:$0xf] }
  0xb2   : > { %v2870_v35 = vor.u32 %v3518_v33, %v2869_v32  ;;  %v3522_v37 = vld [vmem:[%s4046_s30 + $0x104] sm:$0xf0]  ;;  %v3500_v42 = vld [vmem:[%s4046_s30 + $0x54] sm:$0xf0]  ;;  %v2810_v43 = vor.u32 %v3501_v38, %v2807_v40  ;;  %v2861_v44 = vld [vmem:[%s4046_s30 + $0xd0] sm:$0xf] }
  0xb3   : > { %v2886_v39 = vor.u32 %v3522_v37, %v2885_v36  ;;  %v3516_v45 = vld [vmem:[%s4046_s30 + $0xd4] sm:$0xf0]  ;;  %v3499_v46 = vld [vmem:[%s4046_s30 + $0x54] sm:$0xf]  ;;  %1082 = vmatpush.bf16.msra.mxu0 %v2806_v34  ;;  %v2798_v48 = vor.u32 %v3500_v42, %v2797_v41  ;;  %v2799_v49 = vld [vmem:[%s4046_s30 + $0x58] sm:$0xf0] }
  0xb4   : > { %1111 = vmatpush.bf16.msra.mxu1 %v2870_v35  ;;  %vm1068_vm0 = vcmask 261120   ;;  %v2862_v50 = vor.u32 %v3516_v45, %v2861_v44  ;;  %v2789_v51 = vld [vmem:[%s4046_s30 + $0x40] sm:$0xf]  ;;  %v3498_v52 = vld [vmem:[%s4046_s30 + $0x44] sm:$0xf0]  ;;  %1169 = vmatpush.bf16.msra.mxu3 %v2810_v43  ;;  %v2802_v53 = vor.u32 %v3499_v46, %v2799_v49  ;;  %s3633_s12 = sshll.u32 (%p3739_p5), %s2699_s15, 3 }
  0xb5   : > { %1146 = vmatpush.bf16.msra.mxu2 %v2886_v39  ;;  %v2853_v54 = vld [vmem:[%s4046_s30 + $0xc0] sm:$0xf]  ;;  %v3514_v55 = vld [vmem:[%s4046_s30 + $0xc4] sm:$0xf0]  ;;  %v3497_v56 = vld [vmem:[%s4046_s30 + $0x44] sm:$0xf]  ;;  %v2790_v58 = vor.u32 %v3498_v52, %v2789_v51  ;;  %s2581_s23 = scalar_lea.vmem (%p3739_p5), %s4888_s3, %s3633_s12 }
  0xb6   : > { %v2791_v57 = vld [vmem:[%s4046_s30 + $0x48] sm:$0xf0]  ;;  %v2854_v59 = vor.u32 %v3514_v55, %v2853_v54  ;;  %v2781_v60 = vld [vmem:[%s4046_s30 + $0x30] sm:$0xf]  ;;  %v3496_v61 = vld [vmem:[%s4046_s30 + $0x34] sm:$0xf0] }
  0xb7   : > { %1083 = vmatpush.bf16.msra.mxu0 %v2798_v48  ;;  %v2794_v62 = vor.u32 %v3497_v56, %v2791_v57  ;;  %v2845_v63 = vld [vmem:[%s4046_s30 + $0xb0] sm:$0xf]  ;;  %v3512_v0 = vld [vmem:[%s4046_s30 + $0xb4] sm:$0xf0]  ;;  %v3495_v1 = vld [vmem:[%s4046_s30 + $0x34] sm:$0xf]  ;;  %v2782_v3 = vor.u32 %v3496_v61, %v2781_v60 }
  0xb8   : > { %2899 = vmatmul.msk.bf16.vlgmr.msra.gmra.mxu2 %vm1068_vm0, %v4075_v47  ;;  %1112 = vmatpush.bf16.msra.mxu1 %v2862_v50  ;;  %v2783_v2 = vld [vmem:[%s4046_s30 + $0x38] sm:$0xf0]  ;;  %v2846_v4 = vor.u32 %v3512_v0, %v2845_v63  ;;  %v2773_v5 = vld [vmem:[%s4046_s30 + $0x20] sm:$0xf]  ;;  %v3494_v6 = vld [vmem:[%s4046_s30 + $0x24] sm:$0xf0] }
  0xb9   : > { %1170 = vmatpush.bf16.msra.mxu3 %v2802_v53  ;;  %v2786_v7 = vor.u32 %v3495_v1, %v2783_v2  ;;  %v2837_v8 = vld [vmem:[%s4046_s30 + $0xa0] sm:$0xf]  ;;  %v3510_v9 = vld [vmem:[%s4046_s30 + $0xa4] sm:$0xf0]  ;;  %v3493_v10 = vld [vmem:[%s4046_s30 + $0x24] sm:$0xf]  ;;  %v2774_v13 = vor.u32 %v3494_v6, %v2773_v5 }
  0xba   : > { %v2775_v11 = vld [vmem:[%s4046_s30 + $0x28] sm:$0xf0]  ;;  %v3519_v12 = vld [vmem:[%s4046_s30 + $0xf4] sm:$0xf]  ;;  %v2729_v14 = vld [vmem:[%s4886_s1 + $0x20] sm:$0xf]  ;;  %v2838_v17 = vor.u32 %v3510_v9, %v2837_v8 }
  0xbb   : > { %1084 = vmatpush.bf16.msra.mxu0 %v2790_v58  ;;  %v3482_v15 = vld [vmem:[%s4886_s1 + $0x28] sm:$0xf0]  ;;  %v2879_v16 = vld [vmem:[%s4046_s30 + $0xf8] sm:$0xf0]  ;;  %v2765_v18 = vld [vmem:[%s4046_s30 + $0x10] sm:$0xf]  ;;  %v2778_v22 = vor.u32 %v3493_v10, %v2775_v11 }
  0xbc   : > { %1113 = vmatpush.bf16.msra.mxu1 %v2854_v59  ;;  %v3492_v19 = vld [vmem:[%s4046_s30 + $0x14] sm:$0xf0]  ;;  %v2829_v20 = vld [vmem:[%s4046_s30 + $0x90] sm:$0xf]  ;;  %v2882_v21 = vor.u32 %v3519_v12, %v2879_v16  ;;  %v3491_v24 = vld [vmem:[%s4046_s30 + $0x14] sm:$0xf]  ;;  %v4115_v29 = vor.u32 %v3482_v15, %v2729_v14 }
  0xbd   : > { %1171 = vmatpush.bf16.msra.mxu3 %v2794_v62  ;;  %v3508_v23 = vld [vmem:[%s4046_s30 + $0x94] sm:$0xf0]  ;;  %v2767_v25 = vld [vmem:[%s4046_s30 + $0x18] sm:$0xf0]  ;;  %v2757_v26 = vld [vmem:[%s4046_s30] sm:$0xf]  ;;  %v2766_v30 = vor.u32 %v3492_v19, %v2765_v18 }
  0xbe   : > { %1197 = vmatpush.bf16.msrb.mxu2 %v2882_v21  ;;  %v3517_v27 = vld [vmem:[%s4046_s30 + $0xe4] sm:$0xf]  ;;  %v2871_v28 = vld [vmem:[%s4046_s30 + $0xe8] sm:$0xf0]  ;;  %v3490_v31 = vld [vmem:[%s4046_s30 + $0x4] sm:$0xf0]  ;;  %v2830_v35 = vor.u32 %v3508_v23, %v2829_v20  ;;  %v2770_v39 = vor.u32 %v3491_v24, %v2767_v25 }
  0xbf   : > { %1085 = vmatpush.bf16.msra.mxu0 %v2782_v3  ;;  %v2821_v32 = vld [vmem:[%s4046_s30 + $0x80] sm:$0xf]  ;;  %v3506_v33 = vld [vmem:[%s4046_s30 + $0x84] sm:$0xf0]  ;;  %v2874_v34 = vor.u32 %v3517_v27, %v2871_v28  ;;  %v3489_v36 = vld [vmem:[%s4046_s30 + $0x4] sm:$0xf]  ;;  %v2758_v49 = vor.u32 %v3490_v31, %v2757_v26 }
  0xc0   : > { %1114 = vmatpush.bf16.msra.mxu1 %v2846_v4  ;;  %v2759_v37 = vld [vmem:[%s4046_s30 + $0x8] sm:$0xf0]  ;;  %v3523_v38 = vld [vmem:[%s4046_s30 + $0x114] sm:$0xf]  ;;  %v2709_v40 = vld [vmem:[%s4886_s1] sm:$0xf]  ;;  %v2822_v53 = vor.u32 %v3506_v33, %v2821_v32 }
  0xc1   : > { %1172 = vmatpush.bf16.msra.mxu3 %v2786_v7  ;;  %v2895_v41 = vld [vmem:[%s4046_s30 + $0x118] sm:$0xf0]  ;;  %v3515_v42 = vld [vmem:[%s4046_s30 + $0xd4] sm:$0xf]  ;;  %v3478_v44 = vld [vmem:[%s4886_s1 + $0x8] sm:$0xf0]  ;;  %v2762_v58 = vor.u32 %v3489_v36, %v2759_v37 }
  0xc2   : > { %v2863_v43 = vld [vmem:[%s4046_s30 + $0xd8] sm:$0xf0]  ;;  %v3001_v45 = vld [vmem:[%s4046_s30 + $0x190] sm:$0xf]  ;;  %v3540_v46 = vld [vmem:[%s4046_s30 + $0x194] sm:$0xf0]  ;;  %1198 = vmatpush.bf16.msrb.mxu2 %v2874_v34  ;;  %v2898_v55 = vor.u32 %v3523_v38, %v2895_v41  ;;  %v4146_v60 = vor.u32 %v3478_v44, %v2709_v40 }
  0xc3   : > { %1086 = vmatpush.bf16.msra.mxu0 %v2774_v13  ;;  %v2866_v48 = vor.u32 %v3515_v42, %v2863_v43  ;;  %v3477_v50 = vld [vmem:[%s4886_s1 + $0x4] sm:$0xf]  ;;  %v3065_v51 = vld [vmem:[%s4046_s30 + $0x210] sm:$0xf]  ;;  %v3556_v52 = vld [vmem:[%s4046_s30 + $0x214] sm:$0xf0]  ;;  %v3002_v59 = vor.u32 %v3540_v46, %v3001_v45 }
  0xc4   : > { %1115 = vmatpush.bf16.msra.mxu1 %v2838_v17  ;;  %v2711_v54 = vld [vmem:[%s4886_s1 + $0xc] sm:$0xf0]  ;;  %v3513_v56 = vld [vmem:[%s4046_s30 + $0xc4] sm:$0xf]  ;;  %v2855_v57 = vld [vmem:[%s4046_s30 + $0xc8] sm:$0xf0]  ;;  %v3066_v61 = vor.u32 %v3556_v52, %v3065_v51 }
  0xc5   : > { %1173 = vmatpush.bf16.msra.mxu3 %v2778_v22  ;;  %v2993_v62 = vld [vmem:[%s4046_s30 + $0x180] sm:$0xf]  ;;  %v3538_v63 = vld [vmem:[%s4046_s30 + $0x184] sm:$0xf0]  ;;  %v4150_v0 = vor.u32 %v3477_v50, %v2711_v54  ;;  %v2858_v3 = vor.u32 %v3513_v56, %v2855_v57  ;;  %v3511_v4 = vld [vmem:[%s4046_s30 + $0xb4] sm:$0xf] }
  0xc6   : > { %1199 = vmatpush.bf16.msrb.mxu2 %v2866_v48  ;;  %v3057_v1 = vld [vmem:[%s4046_s30 + $0x200] sm:$0xf]  ;;  %v3554_v2 = vld [vmem:[%s4046_s30 + $0x204] sm:$0xf0]  ;;  %v2847_v5 = vld [vmem:[%s4046_s30 + $0xb8] sm:$0xf0]  ;;  %v2994_v6 = vor.u32 %v3538_v63, %v2993_v62 }
  0xc7   : > { %1087 = vmatpush.bf16.msra.mxu0 %v2766_v30  ;;  %v3058_v7 = vor.u32 %v3554_v2, %v3057_v1  ;;  %v2985_v8 = vld [vmem:[%s4046_s30 + $0x170] sm:$0xf]  ;;  %v3536_v9 = vld [vmem:[%s4046_s30 + $0x174] sm:$0xf0]  ;;  %v2850_v12 = vor.u32 %v3511_v4, %v2847_v5  ;;  %v3485_v14 = vld [vmem:[%s4886_s1 + $0x40] sm:$0xf0] }
  0xc8   : > { %2900 = vmatmul.msk.bf16.gmra.mxu2 %vm1068_vm0, %v4115_v29  ;;  %1116 = vmatpush.bf16.msra.mxu1 %v2830_v35  ;;  %v3049_v10 = vld [vmem:[%s4046_s30 + $0x1f0] sm:$0xf]  ;;  %v3552_v11 = vld [vmem:[%s4046_s30 + $0x1f4] sm:$0xf0]  ;;  %v3521_v15 = vld [vmem:[%s4046_s30 + $0x104] sm:$0xf]  ;;  %v2986_v16 = vor.u32 %v3536_v9, %v2985_v8 }
  0xc9   : > { %1174 = vmatpush.bf16.msra.mxu3 %v2770_v39  ;;  %v2741_v13 = vld [vmem:[%s4886_s1 + $0x38] sm:$0xf]  ;;  %v3509_v17 = vld [vmem:[%s4046_s30 + $0xa4] sm:$0xf]  ;;  %v2839_v18 = vld [vmem:[%s4046_s30 + $0xa8] sm:$0xf0]  ;;  %v3050_v20 = vor.u32 %v3552_v11, %v3049_v10 }
  0xca   : > { %1200 = vmatpush.bf16.msrb.mxu2 %v2858_v3  ;;  %v2887_v19 = vld [vmem:[%s4046_s30 + $0x108] sm:$0xf0]  ;;  %v2977_v21 = vld [vmem:[%s4046_s30 + $0x160] sm:$0xf]  ;;  %v3534_v22 = vld [vmem:[%s4046_s30 + $0x164] sm:$0xf0]  ;;  %v4175_v24 = vor.u32 %v3485_v14, %v2741_v13  ;;  %v2842_v27 = vor.u32 %v3509_v17, %v2839_v18 }
  0xcb   : > { %1088 = vmatpush.bf16.msra.mxu0 %v2758_v49  ;;  %v2890_v23 = vor.u32 %v3521_v15, %v2887_v19  ;;  %v3041_v25 = vld [vmem:[%s4046_s30 + $0x1e0] sm:$0xf]  ;;  %v3550_v26 = vld [vmem:[%s4046_s30 + $0x1e4] sm:$0xf0]  ;;  %v2978_v28 = vor.u32 %v3534_v22, %v2977_v21  ;;  %v3507_v30 = vld [vmem:[%s4046_s30 + $0x94] sm:$0xf] }
  0xcc   : > { %1117 = vmatpush.bf16.msra.mxu1 %v2822_v53  ;;  %v2831_v31 = vld [vmem:[%s4046_s30 + $0x98] sm:$0xf0]  ;;  %v2721_v32 = vld [vmem:[%s4886_s1 + $0x18] sm:$0xf]  ;;  %v3042_v33 = vor.u32 %v3550_v26, %v3041_v25  ;;  %v2969_v34 = vld [vmem:[%s4046_s30 + $0x150] sm:$0xf] }
  0xcd   : > { %1175 = vmatpush.bf16.msra.mxu3 %v2762_v58  ;;  %v3532_v35 = vld [vmem:[%s4046_s30 + $0x154] sm:$0xf0]  ;;  %v3481_v36 = vld [vmem:[%s4886_s1 + $0x20] sm:$0xf0]  ;;  %v3033_v37 = vld [vmem:[%s4046_s30 + $0x1d0] sm:$0xf]  ;;  %v2834_v41 = vor.u32 %v3507_v30, %v2831_v31 }
  0xce   : > { %1089 = vmatmul.bf16.vlgmr.msra.gmra.mxu0 %v4146_v60  ;;  %1201 = vmatpush.bf16.msrb.mxu2 %v2850_v12  ;;  %v3548_v38 = vld [vmem:[%s4046_s30 + $0x1d4] sm:$0xf0]  ;;  %v3480_v39 = vld [vmem:[%s4886_s1 + $0x1c] sm:$0xf]  ;;  %v2723_v40 = vld [vmem:[%s4886_s1 + $0x24] sm:$0xf0]  ;;  %v2970_v42 = vor.u32 %v3532_v35, %v2969_v34  ;;  %v4201_v45 = vor.u32 %v3481_v36, %v2721_v32 }
  0xcf   : > { %1232 = vmatpush.bf16.msrb.mxu0 %v2898_v55  ;;  %1118 = vmatmul.bf16.vlgmr.msra.gmra.mxu1 %v4150_v0  ;;  %v3505_v43 = vld [vmem:[%s4046_s30 + $0x84] sm:$0xf]  ;;  %v2823_v44 = vld [vmem:[%s4046_s30 + $0x88] sm:$0xf0]  ;;  %v3034_v46 = vor.u32 %v3548_v38, %v3033_v37  ;;  %v2961_v48 = vld [vmem:[%s4046_s30 + $0x140] sm:$0xf]  ;;  %v4205_v50 = vor.u32 %v3480_v39, %v2723_v40 }
  0xd0   : > { %1472 = vmatpush.bf16.msrb.mxu1 %v3002_v59  ;;  %1176 = vmatmul.bf16.vlgmr.msra.gmra.mxu3 %v4146_v60  ;;  %v3530_v49 = vld [vmem:[%s4046_s30 + $0x144] sm:$0xf0]  ;;  %v3025_v51 = vld [vmem:[%s4046_s30 + $0x1c0] sm:$0xf]  ;;  %v2826_v53 = vor.u32 %v3505_v43, %v2823_v44  ;;  %v2753_v56 = vld [vmem:[%s4886_s1 + $0x50] sm:$0xf] }
  0xd1   : > { %1501 = vmatpush.bf16.msrb.mxu3 %v3066_v61  ;;  %v3546_v52 = vld [vmem:[%s4046_s30 + $0x1c4] sm:$0xf0]  ;;  %v2962_v54 = vor.u32 %v3530_v49, %v2961_v48  ;;  %v3488_v57 = vld [vmem:[%s4886_s1 + $0x58] sm:$0xf0]  ;;  %v3017_v58 = vld [vmem:[%s4046_s30 + $0x1b0] sm:$0xf] }
  0xd2   : > { %1202 = vmatpush.bf16.msrb.mxu2 %v2842_v27  ;;  %v3026_v55 = vor.u32 %v3546_v52, %v3025_v51  ;;  %v3544_v59 = vld [vmem:[%s4046_s30 + $0x1b4] sm:$0xf0]  ;;  %v2953_v61 = vld [vmem:[%s4046_s30 + $0x130] sm:$0xf]  ;;  %v4222_v2 = vor.u32 %v3488_v57, %v2753_v56  ;;  %v3484_v4 = vld [vmem:[%s4886_s1 + $0x38] sm:$0xf0] }
  0xd3   : > { %1233 = vmatpush.bf16.msrb.mxu0 %v2890_v23  ;;  %v3528_v62 = vld [vmem:[%s4046_s30 + $0x134] sm:$0xf0]  ;;  %v3018_v63 = vor.u32 %v3544_v59, %v3017_v58  ;;  %v2733_v3 = vld [vmem:[%s4886_s1 + $0x30] sm:$0xf]  ;;  %v3009_v5 = vld [vmem:[%s4046_s30 + $0x1a0] sm:$0xf] }
  0xd4   : > { %1473 = vmatpush.bf16.msrb.mxu1 %v2994_v6  ;;  %v2954_v1 = vor.u32 %v3528_v62, %v2953_v61  ;;  %v3542_v6 = vld [vmem:[%s4046_s30 + $0x1a4] sm:$0xf0]  ;;  %v3483_v8 = vld [vmem:[%s4886_s1 + $0x34] sm:$0xf]  ;;  %v2735_v9 = vld [vmem:[%s4886_s1 + $0x3c] sm:$0xf0]  ;;  %v4242_v13 = vor.u32 %v3484_v4, %v2733_v3 }
  0xd5   : > { %1502 = vmatpush.bf16.msrb.mxu3 %v3058_v7  ;;  %v2945_v7 = vld [vmem:[%s4046_s30 + $0x120] sm:$0xf]  ;;  %v3010_v10 = vor.u32 %v3542_v6, %v3009_v5  ;;  %v3526_v11 = vld [vmem:[%s4046_s30 + $0x124] sm:$0xf0]  ;;  %v4244_v14 = vor.u32 %v3483_v8, %v2735_v9  ;;  %v3081_v15 = vld [vmem:[%s4046_s30 + $0x230] sm:$0xf] }
  0xd6   : > { %1203 = vmatpush.bf16.msrb.mxu2 %v2834_v41  ;;  %v2946_v12 = vor.u32 %v3526_v11, %v2945_v7  ;;  %v3559_v17 = vld [vmem:[%s4046_s30 + $0x234] sm:$0xf]  ;;  %v3083_v19 = vld [vmem:[%s4046_s30 + $0x238] sm:$0xf0]  ;;  %v3537_v31 = vld [vmem:[%s4046_s30 + $0x184] sm:$0xf] }
  0xd7   : > { %v3003_v21 = vld [vmem:[%s4046_s30 + $0x198] sm:$0xf0]  ;;  %v3086_v22 = vor.u32 %v3559_v17, %v3083_v19  ;;  %v3555_v25 = vld [vmem:[%s4046_s30 + $0x214] sm:$0xf]  ;;  %v2995_v32 = vld [vmem:[%s4046_s30 + $0x188] sm:$0xf0] }
  0xd8   : > { %1474 = vmatpush.bf16.msrb.mxu1 %v2986_v16  ;;  %2901 = vmatmul.msk.bf16.gmra.mxu2 %vm1068_vm0, %v4175_v24  ;;  %v3560_v16 = vld [vmem:[%s4046_s30 + $0x234] sm:$0xf0]  ;;  %v3067_v26 = vld [vmem:[%s4046_s30 + $0x218] sm:$0xf0]  ;;  %v3487_v30 = vld [vmem:[%s4886_s1 + $0x50] sm:$0xf0]  ;;  %v2998_v36 = vor.u32 %v3537_v31, %v2995_v32 }
  0xd9   : > { %1503 = vmatpush.bf16.msrb.mxu3 %v3050_v20  ;;  %v3082_v18 = vor.u32 %v3560_v16, %v3081_v15  ;;  %v3539_v20 = vld [vmem:[%s4046_s30 + $0x194] sm:$0xf]  ;;  %v3070_v27 = vor.u32 %v3555_v25, %v3067_v26  ;;  %v3486_v34 = vld [vmem:[%s4886_s1 + $0x4c] sm:$0xf]  ;;  %v2747_v35 = vld [vmem:[%s4886_s1 + $0x54] sm:$0xf0] }
  0xda   : > { %1204 = vmatpush.bf16.msrb.mxu2 %v2826_v53  ;;  %v3006_v23 = vor.u32 %v3539_v20, %v3003_v21  ;;  %v3059_v37 = vld [vmem:[%s4046_s30 + $0x208] sm:$0xf0]  ;;  %v4276_v40 = vor.u32 %v3486_v34, %v2747_v35  ;;  %v3535_v41 = vld [vmem:[%s4046_s30 + $0x174] sm:$0xf]  ;;  %v3533_v49 = vld [vmem:[%s4046_s30 + $0x164] sm:$0xf] }
  0xdb   : > { %v3551_v43 = vld [vmem:[%s4046_s30 + $0x1f4] sm:$0xf]  ;;  %v2979_v51 = vld [vmem:[%s4046_s30 + $0x168] sm:$0xf0]  ;;  %v3549_v52 = vld [vmem:[%s4046_s30 + $0x1e4] sm:$0xf] }
  0xdc   : > { %1475 = vmatpush.bf16.msrb.mxu1 %v2978_v28  ;;  %1559 = vmatpush.bf16.msra.mxu0 %v3006_v23  ;;  %v2745_v28 = vld [vmem:[%s4886_s1 + $0x48] sm:$0xf]  ;;  %v2982_v53 = vor.u32 %v3533_v49, %v2979_v51  ;;  %v3073_v56 = vld [vmem:[%s4046_s30 + $0x220] sm:$0xf]  ;;  %v3557_v58 = vld [vmem:[%s4046_s30 + $0x224] sm:$0xf] }
  0xdd   : > { %1504 = vmatpush.bf16.msrb.mxu3 %v3042_v33  ;;  %v3553_v33 = vld [vmem:[%s4046_s30 + $0x204] sm:$0xf]  ;;  %v4274_v39 = vor.u32 %v3487_v30, %v2745_v28  ;;  %v3558_v57 = vld [vmem:[%s4046_s30 + $0x224] sm:$0xf0]  ;;  %v3075_v61 = vld [vmem:[%s4046_s30 + $0x228] sm:$0xf0] }
  0xde   : > { %1094 = vmatmul.bf16.gmra.mxu0 %v4201_v45  ;;  %1536 = vmatpush.bf16.msra.mxu2 %v3082_v18  ;;  %v3062_v38 = vor.u32 %v3553_v33, %v3059_v37  ;;  %v3074_v59 = vor.u32 %v3558_v57, %v3073_v56  ;;  %v3531_v62 = vld [vmem:[%s4046_s30 + $0x154] sm:$0xf]  ;;  %v3035_v5 = vld [vmem:[%s4046_s30 + $0x1d8] sm:$0xf0]  ;;  %v3529_v7 = vld [vmem:[%s4046_s30 + $0x144] sm:$0xf] }
  0xdf   : > { %1123 = vmatmul.bf16.gmra.mxu1 %v4205_v50  ;;  %v3547_v4 = vld [vmem:[%s4046_s30 + $0x1d4] sm:$0xf]  ;;  %v2963_v8 = vld [vmem:[%s4046_s30 + $0x148] sm:$0xf0]  ;;  %v3545_v9 = vld [vmem:[%s4046_s30 + $0x1c4] sm:$0xf] }
  0xe0   : > { %1476 = vmatpush.bf16.msrb.mxu1 %v2970_v42  ;;  %1181 = vmatmul.bf16.gmra.mxu3 %v4201_v45  ;;  %v2987_v42 = vld [vmem:[%s4046_s30 + $0x178] sm:$0xf0]  ;;  %v3038_v6 = vor.u32 %v3547_v4, %v3035_v5  ;;  %v3027_v11 = vld [vmem:[%s4046_s30 + $0x1c8] sm:$0xf0]  ;;  %v3527_v15 = vld [vmem:[%s4046_s30 + $0x134] sm:$0xf] }
  0xe1   : > { %1505 = vmatpush.bf16.msrb.mxu3 %v3034_v46  ;;  %1560 = vmatpush.bf16.msra.mxu0 %v2998_v36  ;;  %v2990_v44 = vor.u32 %v3535_v41, %v2987_v42  ;;  %v3051_v46 = vld [vmem:[%s4046_s30 + $0x1f8] sm:$0xf0]  ;;  %v3543_v17 = vld [vmem:[%s4046_s30 + $0x1b4] sm:$0xf]  ;;  %v3525_v21 = vld [vmem:[%s4046_s30 + $0x124] sm:$0xf] }
  0xe2   : > { %v3054_v48 = vor.u32 %v3551_v43, %v3051_v46  ;;  %1537 = vmatpush.bf16.msra.mxu2 %v3074_v59  ;;  %v2955_v16 = vld [vmem:[%s4046_s30 + $0x138] sm:$0xf0]  ;;  %v3541_v23 = vld [vmem:[%s4046_s30 + $0x1a4] sm:$0xf]  ;;  %v3011_v26 = vld [vmem:[%s4046_s30 + $0x1a8] sm:$0xf0] }
  0xe3   : > { %v2958_v18 = vor.u32 %v3527_v15, %v2955_v16  ;;  %v3019_v19 = vld [vmem:[%s4046_s30 + $0x1b8] sm:$0xf0]  ;;  %v3189_v28 = vld [vmem:[%s4046_s30 + $0x2b0] sm:$0xf]  ;;  %v3576_v30 = vld [vmem:[%s4046_s30 + $0x2b4] sm:$0xf0] }
  0xe4   : > { %1477 = vmatpush.bf16.msrb.mxu1 %v2962_v54  ;;  %v3043_v54 = vld [vmem:[%s4046_s30 + $0x1e8] sm:$0xf0]  ;;  %v3022_v20 = vor.u32 %v3543_v17, %v3019_v19  ;;  %v3575_v31 = vld [vmem:[%s4046_s30 + $0x2b4] sm:$0xf]  ;;  %v3190_v32 = vor.u32 %v3576_v30, %v3189_v28  ;;  %v3191_v33 = vld [vmem:[%s4046_s30 + $0x2b8] sm:$0xf0] }
  0xe5   : > { %1506 = vmatpush.bf16.msrb.mxu3 %v3026_v55  ;;  %1561 = vmatpush.bf16.msra.mxu0 %v2990_v44  ;;  %v3046_v55 = vor.u32 %v3549_v52, %v3043_v54  ;;  %v3194_v34 = vor.u32 %v3575_v31, %v3191_v33  ;;  %v3253_v35 = vld [vmem:[%s4046_s30 + $0x330] sm:$0xf]  ;;  %v3592_v36 = vld [vmem:[%s4046_s30 + $0x334] sm:$0xf0]  ;;  %v3181_v43 = vld [vmem:[%s4046_s30 + $0x2a0] sm:$0xf] }
  0xe6   : > { %v3269_v37 = vld [vmem:[%s4046_s30 + $0x350] sm:$0xf]  ;;  %v3596_v41 = vld [vmem:[%s4046_s30 + $0x354] sm:$0xf0]  ;;  %v3574_v44 = vld [vmem:[%s4046_s30 + $0x2a4] sm:$0xf0] }
  0xe7   : > { %v3270_v42 = vor.u32 %v3596_v41, %v3269_v37  ;;  %v3573_v46 = vld [vmem:[%s4046_s30 + $0x2a4] sm:$0xf]  ;;  %v3183_v49 = vld [vmem:[%s4046_s30 + $0x2a8] sm:$0xf0]  ;;  %v3590_v54 = vld [vmem:[%s4046_s30 + $0x324] sm:$0xf0] }
  0xe8   : > { %1478 = vmatpush.bf16.msrb.mxu1 %v2954_v1  ;;  %2902 = vmatmul.msk.bf16.gmra.mxu2 %vm1068_vm0, %v4222_v2  ;;  %v3078_v1 = vor.u32 %v3557_v58, %v3075_v61  ;;  %v3186_v51 = vor.u32 %v3573_v46, %v3183_v49  ;;  %v3173_v56 = vld [vmem:[%s4046_s30 + $0x290] sm:$0xf]  ;;  %v3572_v57 = vld [vmem:[%s4046_s30 + $0x294] sm:$0xf0]  ;;  %v3571_v59 = vld [vmem:[%s4046_s30 + $0x294] sm:$0xf] }
  0xe9   : > { %1507 = vmatpush.bf16.msrb.mxu3 %v3018_v63  ;;  %1562 = vmatpush.bf16.msra.mxu0 %v2982_v53  ;;  %v2971_v63 = vld [vmem:[%s4046_s30 + $0x158] sm:$0xf0]  ;;  %v3245_v53 = vld [vmem:[%s4046_s30 + $0x320] sm:$0xf]  ;;  %v3174_v58 = vor.u32 %v3572_v57, %v3173_v56  ;;  %v3237_v4 = vld [vmem:[%s4046_s30 + $0x310] sm:$0xf] }
  0xea   : > { %v2974_v3 = vor.u32 %v3531_v62, %v2971_v63  ;;  %v3175_v61 = vld [vmem:[%s4046_s30 + $0x298] sm:$0xf0]  ;;  %v3588_v5 = vld [vmem:[%s4046_s30 + $0x314] sm:$0xf0]  ;;  %v3149_v17 = vld [vmem:[%s4046_s30 + $0x260] sm:$0xf] }
  0xeb   : > { %v3178_v62 = vor.u32 %v3571_v59, %v3175_v61  ;;  %v3564_v28 = vld [vmem:[%s4046_s30 + $0x254] sm:$0xf0]  ;;  %v3159_v33 = vld [vmem:[%s4046_s30 + $0x278] sm:$0xf0]  ;;  %v3562_v37 = vld [vmem:[%s4046_s30 + $0x244] sm:$0xf0] }
  0xec   : > { %1479 = vmatpush.bf16.msrb.mxu1 %v2946_v12  ;;  %v3030_v12 = vor.u32 %v3545_v9, %v3027_v11  ;;  %v3568_v9 = vld [vmem:[%s4046_s30 + $0x274] sm:$0xf0]  ;;  %v3167_v11 = vld [vmem:[%s4046_s30 + $0x288] sm:$0xf0] }
  0xed   : > { %1508 = vmatpush.bf16.msrb.mxu3 %v3010_v10  ;;  %1563 = vmatpush.bf16.msra.mxu0 %v2974_v3  ;;  %v2966_v10 = vor.u32 %v3529_v7, %v2963_v8  ;;  %v3570_v3 = vld [vmem:[%s4046_s30 + $0x284] sm:$0xf0]  ;;  %v3238_v7 = vor.u32 %v3588_v5, %v3237_v4  ;;  %v3157_v8 = vld [vmem:[%s4046_s30 + $0x270] sm:$0xf]  ;;  %v3151_v56 = vld [vmem:[%s4046_s30 + $0x268] sm:$0xf0] }
  0xee   : > { %1099 = vmatmul.bf16.gmra.mxu0 %v4242_v13 }
  0xef   : > { %1128 = vmatmul.bf16.gmra.mxu1 %v4244_v14 }
  0xf0   : > { %1186 = vmatmul.bf16.gmra.mxu3 %v4242_v13  ;;  %1588 = vmatpush.bf16.msra.mxu1 %v3070_v27  ;;  %v3014_v27 = vor.u32 %v3541_v23, %v3011_v26 }
  0xf1   : > { %1623 = vmatpush.bf16.msra.mxu3 %v3086_v22  ;;  %1564 = vmatpush.bf16.msra.mxu0 %v2966_v10  ;;  %v2947_v22 = vld [vmem:[%s4046_s30 + $0x128] sm:$0xf0]  ;;  %v3569_v10 = vld [vmem:[%s4046_s30 + $0x284] sm:$0xf] }
  0xf2   : > { %v2950_v25 = vor.u32 %v3525_v21, %v2947_v22  ;;  %v3170_v15 = vor.u32 %v3569_v10, %v3167_v11  ;;  %v3586_v21 = vld [vmem:[%s4046_s30 + $0x304] sm:$0xf0] }
  0xf4   : > { %1589 = vmatpush.bf16.msra.mxu1 %v3062_v38  ;;  %v3254_v38 = vor.u32 %v3592_v36, %v3253_v35  ;;  %v3133_v36 = vld [vmem:[%s4046_s30 + $0x240] sm:$0xf] }
  0xf5   : > { %1624 = vmatpush.bf16.msra.mxu3 %v3078_v1  ;;  %1565 = vmatpush.bf16.msra.mxu0 %v2958_v18  ;;  %v3165_v1 = vld [vmem:[%s4046_s30 + $0x280] sm:$0xf]  ;;  %v3566_v18 = vld [vmem:[%s4046_s30 + $0x264] sm:$0xf0]  ;;  %v3134_v46 = vor.u32 %v3562_v37, %v3133_v36  ;;  %v3255_v36 = vld [vmem:[%s4046_s30 + $0x338] sm:$0xf0] }
  0xf6   : > { %v3150_v22 = vor.u32 %v3566_v18, %v3149_v17  ;;  %v3441_v37 = vld [vmem:[%s4046_s30 + $0x450] sm:$0xf] }
  0xf8   : > { %1205 = vmatmul.bf16.vlgmr.msrb.gmra.mxu2 %v4150_v0  ;;  %1590 = vmatpush.bf16.msra.mxu1 %v3054_v48  ;;  %v3182_v48 = vor.u32 %v3574_v44, %v3181_v43  ;;  %v3584_v43 = vld [vmem:[%s4046_s30 + $0x2f4] sm:$0xf0]  ;;  %v3261_v44 = vld [vmem:[%s4046_s30 + $0x340] sm:$0xf] }
  0xf9   : > { %1566 = vmatpush.bf16.msra.mxu0 %v2950_v25  ;;  %1879 = vmatpush.bf16.msrb.mxu2 %v3190_v32  ;;  %v3567_v32 = vld [vmem:[%s4046_s30 + $0x274] sm:$0xf] }
  0xfc   : > { %1591 = vmatpush.bf16.msra.mxu1 %v3046_v55  ;;  %v3246_v55 = vor.u32 %v3590_v54, %v3245_v53 }
  0xfd   : > { %1880 = vmatpush.bf16.msrb.mxu2 %v3182_v48 }
  0xfe   : > { %1104 = vmatmul.bf16.gmra.mxu0 %v4274_v39 }
  0xff   : > { %1133 = vmatmul.bf16.gmra.mxu1 %v4276_v40 }
 0x100   : > { %1191 = vmatmul.bf16.gmra.mxu3 %v4274_v39  ;;  %1592 = vmatpush.bf16.msra.mxu1 %v3038_v6  ;;  %v3166_v6 = vor.u32 %v3570_v3, %v3165_v1  ;;  %v3582_v1 = vld [vmem:[%s4046_s30 + $0x2e4] sm:$0xf0] }
 0x101   : > { %1881 = vmatpush.bf16.msrb.mxu2 %v3174_v58 }
 0x104   : > { %1593 = vmatpush.bf16.msra.mxu1 %v3030_v12  ;;  %v3158_v12 = vor.u32 %v3568_v9, %v3157_v8 }
 0x105   : > { %1882 = vmatpush.bf16.msrb.mxu2 %v3166_v6  ;;  %v3563_v6 = vld [vmem:[%s4046_s30 + $0x254] sm:$0xf] }
 0x108   : > { %1210 = vmatmul.bf16.gmra.mxu2 %v4205_v50  ;;  %1594 = vmatpush.bf16.msra.mxu1 %v3022_v20  ;;  %v3229_v20 = vld [vmem:[%s4046_s30 + $0x300] sm:$0xf] }
 0x109   : > { %1883 = vmatpush.bf16.msrb.mxu2 %v3158_v12  ;;  %v3230_v25 = vor.u32 %v3586_v21, %v3229_v20  ;;  %v3205_v12 = vld [vmem:[%s4046_s30 + $0x2d0] sm:$0xf]  ;;  %v3561_v20 = vld [vmem:[%s4046_s30 + $0x244] sm:$0xf]  ;;  %v3135_v21 = vld [vmem:[%s4046_s30 + $0x248] sm:$0xf0] }
 0x10c   : > { %1595 = vmatpush.bf16.msra.mxu1 %v3014_v27  ;;  %v3141_v27 = vld [vmem:[%s4046_s30 + $0x250] sm:$0xf] }
 0x10d   : > { %1884 = vmatpush.bf16.msrb.mxu2 %v3150_v22  ;;  %v3142_v31 = vor.u32 %v3564_v28, %v3141_v27  ;;  %v3138_v22 = vor.u32 %v3561_v20, %v3135_v21  ;;  %v3587_v20 = vld [vmem:[%s4046_s30 + $0x314] sm:$0xf]  ;;  %v3239_v21 = vld [vmem:[%s4046_s30 + $0x318] sm:$0xf0] }
 0x10e   : > { %2903 = vmatmul.msk.bf16.vlgmr.msrb.gmra.mxu0 %vm1068_vm0, %v4075_v47 }
 0x10f   : > { %1480 = vmatmul.bf16.vlgmr.msrb.gmra.mxu1 %v4146_v60  ;;  %1908 = vmatpush.bf16.msrb.mxu0 %v3254_v38 }
 0x110   : > { %1509 = vmatmul.bf16.vlgmr.msrb.gmra.mxu3 %v4150_v0  ;;  %1943 = vmatpush.bf16.msrb.mxu1 %v3270_v42  ;;  %v3221_v42 = vld [vmem:[%s4046_s30 + $0x2f0] sm:$0xf] }
 0x111   : > { %1966 = vmatpush.bf16.msrb.mxu3 %v3194_v34  ;;  %v3162_v34 = vor.u32 %v3567_v32, %v3159_v33  ;;  %1885 = vmatpush.bf16.msrb.mxu2 %v3142_v31  ;;  %v3222_v49 = vor.u32 %v3584_v43, %v3221_v42  ;;  %v3628_v42 = vld [vmem:[%s4046_s30 + $0x454] sm:$0xf0] }
 0x113   : > { %1909 = vmatpush.bf16.msrb.mxu0 %v3246_v55  ;;  %v3565_v55 = vld [vmem:[%s4046_s30 + $0x264] sm:$0xf] }
 0x114   : > { %v3154_v57 = vor.u32 %v3565_v55, %v3151_v56 }
 0x115   : > { %1967 = vmatpush.bf16.msrb.mxu3 %v3186_v51  ;;  %v3594_v51 = vld [vmem:[%s4046_s30 + $0x344] sm:$0xf0]  ;;  %1886 = vmatpush.bf16.msrb.mxu2 %v3134_v46 }
 0x116   : > { %v3262_v53 = vor.u32 %v3594_v51, %v3261_v44  ;;  %v3442_v44 = vor.u32 %v3628_v42, %v3441_v37  ;;  %v3595_v51 = vld [vmem:[%s4046_s30 + $0x354] sm:$0xf]  ;;  %v3361_v42 = vld [vmem:[%s4046_s30 + $0x3b0] sm:$0xf] }
 0x117   : > { %1910 = vmatpush.bf16.msrb.mxu0 %v3238_v7  ;;  %v3143_v7 = vld [vmem:[%s4046_s30 + $0x258] sm:$0xf0] }
 0x118   : > { %1215 = vmatmul.bf16.gmra.mxu2 %v4244_v14  ;;  %1944 = vmatpush.bf16.msrb.mxu1 %v3262_v53  ;;  %v3146_v8 = vor.u32 %v3563_v6, %v3143_v7  ;;  %v3377_v53 = vld [vmem:[%s4046_s30 + $0x3d0] sm:$0xf] }
 0x119   : > { %1968 = vmatpush.bf16.msrb.mxu3 %v3178_v62  ;;  %v3213_v62 = vld [vmem:[%s4046_s30 + $0x2e0] sm:$0xf] }
 0x11b   : > { %1911 = vmatpush.bf16.msrb.mxu0 %v3230_v25  ;;  %v3197_v25 = vld [vmem:[%s4046_s30 + $0x2c0] sm:$0xf] }
 0x11d   : > { %1969 = vmatpush.bf16.msrb.mxu3 %v3170_v15  ;;  %v3580_v15 = vld [vmem:[%s4046_s30 + $0x2d4] sm:$0xf0] }
 0x11e   : > { %2904 = vmatmul.msk.bf16.gmra.mxu0 %vm1068_vm0, %v4115_v29  ;;  %v3206_v17 = vor.u32 %v3580_v15, %v3205_v12  ;;  %v3369_v15 = vld [vmem:[%s4046_s30 + $0x3c0] sm:$0xf] }
 0x11f   : > { %1485 = vmatmul.bf16.gmra.mxu1 %v4201_v45  ;;  %1912 = vmatpush.bf16.msrb.mxu0 %v3222_v49 }
 0x120   : > { %1514 = vmatmul.bf16.gmra.mxu3 %v4205_v50 }
 0x121   : > { %1970 = vmatpush.bf16.msrb.mxu3 %v3162_v34 }
 0x125   : > { %1971 = vmatpush.bf16.msrb.mxu3 %v3154_v57  ;;  %v3612_v57 = vld [vmem:[%s4046_s30 + $0x3d4] sm:$0xf0] }
 0x128   : > { %1220 = vmatmul.bf16.gmra.mxu2 %v4276_v40 }
 0x129   : > { %1972 = vmatpush.bf16.msrb.mxu3 %v3146_v8 }
 0x12d   : > { %1973 = vmatpush.bf16.msrb.mxu3 %v3138_v22 }
 0x12e   : > { %2905 = vmatmul.msk.bf16.gmra.mxu0 %vm1068_vm0, %v4175_v24 }
 0x12f   : > { %1490 = vmatmul.bf16.gmra.mxu1 %v4242_v13 }
 0x130   : > { %1519 = vmatmul.bf16.gmra.mxu3 %v4244_v14 }
 0x138   : > { %3087 = vmatmul.msk.bf16.vlgmr.msra.gmra.mxu2 %vm1068_vm0, %v4075_v47 }
 0x13b   : > { %v1148_v52 = vpop.f32.mrf.mxu2 }
 0x13e   : > { %2906 = vmatmul.msk.bf16.gmra.mxu0 %vm1068_vm0, %v4222_v2 }
 0x13f   : > { %1495 = vmatmul.bf16.gmra.mxu1 %v4274_v39 }
 0x140   : > { %1524 = vmatmul.bf16.gmra.mxu3 %v4276_v40 }
 0x143   : > { %v1150_v63 = vpop.f32.mrf.mxu2 }
 0x148   : > { %3088 = vmatmul.msk.bf16.gmra.mxu2 %vm1068_vm0, %v4115_v29 }
 0x14b   : > { %v1153_v16 = vpop.f32.mrf.mxu2  ;;  %v1090_v19 = vpop.f32.mrf.mxu0 }
 0x14c   : > { %v1119_v23 = vpop.f32.mrf.mxu1 }
 0x14d   : > { %v1120_v26 = vadd.f32 %v1119_v23, %v1090_v19 }
 0x14e   : > { %1567 = vmatmul.bf16.vlgmr.msra.gmra.mxu0 %v4146_v60 }
 0x14f   : > { %v4365_v30 = vadd.f32 %v1148_v52, %v1120_v26  ;;  %1596 = vmatmul.bf16.vlgmr.msra.gmra.mxu1 %v4150_v0  ;;  %v3578_v26 = vld [vmem:[%s4046_s30 + $0x2c4] sm:$0xf0] }
 0x150   : > { %3091 = vmatmul.msk.bf16.vlgmr.msra.gmra.mxu3 %vm1068_vm0, %v4075_v47  ;;  %v3198_v31 = vor.u32 %v3578_v26, %v3197_v25  ;;  %v3425_v25 = vld [vmem:[%s4046_s30 + $0x430] sm:$0xf]  ;;  %v3624_v26 = vld [vmem:[%s4046_s30 + $0x434] sm:$0xf0] }
 0x151   : > { %2315 = vmatpush.bf16.msra.mxu3 %v3442_v44  ;;  %v3608_v44 = vld [vmem:[%s4046_s30 + $0x3b4] sm:$0xf0] }
 0x153   : > { %v1155_v35 = vpop.f32.mrf.mxu2  ;;  %v4374_v38 = vpop.f32.mrf.mxu3 }
 0x154   : > { %v1092_v41 = vpop.f32.mrf.mxu0  ;;  %v1121_v48 = vpop.f32.mrf.mxu1 }
 0x155   : > { %v1122_v52 = vadd.f32 %v1121_v48, %v1092_v41 }
 0x157   : > { %v4380_v54 = vadd.f32 %v1150_v63, %v1122_v52  ;;  %v3214_v63 = vor.u32 %v3582_v1, %v3213_v62  ;;  %v3271_v52 = vld [vmem:[%s4046_s30 + $0x358] sm:$0xf0]  ;;  %v3589_v62 = vld [vmem:[%s4046_s30 + $0x324] sm:$0xf]  ;;  %v3247_v1 = vld [vmem:[%s4046_s30 + $0x328] sm:$0xf0] }
 0x158   : > { %3089 = vmatmul.msk.bf16.gmra.mxu2 %vm1068_vm0, %v4175_v24  ;;  %v3274_v56 = vor.u32 %v3595_v51, %v3271_v52  ;;  %v3583_v51 = vld [vmem:[%s4046_s30 + $0x2f4] sm:$0xf]  ;;  %v3223_v52 = vld [vmem:[%s4046_s30 + $0x2f8] sm:$0xf0] }
 0x159   : > { %1913 = vmatpush.bf16.msrb.mxu0 %v3214_v63  ;;  %v3250_v63 = vor.u32 %v3589_v62, %v3247_v1  ;;  %v3581_v62 = vld [vmem:[%s4046_s30 + $0x2e4] sm:$0xf]  ;;  %v3215_v1 = vld [vmem:[%s4046_s30 + $0x2e8] sm:$0xf0] }
 0x15b   : > { %v1158_v58 = vpop.f32.mrf.mxu2  ;;  %v4386_v59 = vpop.f32.mrf.mxu3 }
 0x15c   : > { %v1095_v61 = vpop.f32.mrf.mxu0  ;;  %v1124_v3 = vpop.f32.mrf.mxu1 }
 0x15d   : > { %v1125_v4 = vadd.f32 %v1124_v3, %v1095_v61  ;;  %1914 = vmatpush.bf16.msrb.mxu0 %v3206_v17  ;;  %v3433_v3 = vld [vmem:[%s4046_s30 + $0x440] sm:$0xf] }
 0x15e   : > { %1572 = vmatmul.bf16.gmra.mxu0 %v4201_v45 }
 0x15f   : > { %v4391_v5 = vadd.f32 %v1153_v16, %v1125_v4  ;;  %1601 = vmatmul.bf16.gmra.mxu1 %v4205_v50  ;;  %v3626_v4 = vld [vmem:[%s4046_s30 + $0x444] sm:$0xf0] }
 0x160   : > { %3092 = vmatmul.msk.bf16.gmra.mxu3 %vm1068_vm0, %v4115_v29  ;;  %v3434_v6 = vor.u32 %v3626_v4, %v3433_v3  ;;  %v3218_v4 = vor.u32 %v3581_v62, %v3215_v1 }
 0x161   : > { %1915 = vmatpush.bf16.msrb.mxu0 %v3198_v31 }
 0x162   : > { %2316 = vmatpush.bf16.msra.mxu3 %v3434_v6 }
 0x163   : > { %v1160_v9 = vpop.f32.mrf.mxu2  ;;  %v4398_v10 = vpop.f32.mrf.mxu3 }
 0x164   : > { %v1097_v11 = vpop.f32.mrf.mxu0  ;;  %v1126_v16 = vpop.f32.mrf.mxu1 }
 0x165   : > { %v1127_v18 = vadd.f32 %v1126_v16, %v1097_v11  ;;  %2030 = vmatpush.bf16.msra.mxu0 %v3274_v56  ;;  %v3610_v16 = vld [vmem:[%s4046_s30 + $0x3c4] sm:$0xf0]  ;;  %v3226_v56 = vor.u32 %v3583_v51, %v3223_v52 }
 0x166   : > { %v3618_v52 = vld [vmem:[%s4046_s30 + $0x404] sm:$0xf0] }
 0x167   : > { %v4402_v19 = vadd.f32 %v1155_v35, %v1127_v18  ;;  %v3591_v35 = vld [vmem:[%s4046_s30 + $0x334] sm:$0xf]  ;;  %v3370_v18 = vor.u32 %v3610_v16, %v3369_v15 }
 0x168   : > { %3090 = vmatmul.msk.bf16.gmra.mxu2 %vm1068_vm0, %v4222_v2  ;;  %v3258_v41 = vor.u32 %v3591_v35, %v3255_v36  ;;  %v3579_v16 = vld [vmem:[%s4046_s30 + $0x2d4] sm:$0xf] }
 0x16a   : > { %1995 = vmatpush.bf16.msra.mxu2 %v3258_v41 }
 0x16b   : > { %v1163_v23 = vpop.f32.mrf.mxu2  ;;  %v4410_v27 = vpop.f32.mrf.mxu3 }
 0x16c   : > { %v1100_v28 = vpop.f32.mrf.mxu0  ;;  %v1129_v32 = vpop.f32.mrf.mxu1 }
 0x16d   : > { %v1130_v33 = vadd.f32 %v1129_v32, %v1100_v28  ;;  %v3426_v28 = vor.u32 %v3624_v26, %v3425_v25  ;;  %v3585_v32 = vld [vmem:[%s4046_s30 + $0x304] sm:$0xf]  ;;  %v3199_v25 = vld [vmem:[%s4046_s30 + $0x2c8] sm:$0xf0] }
 0x16e   : > { %1577 = vmatmul.bf16.gmra.mxu0 %v4242_v13  ;;  %1996 = vmatpush.bf16.msra.mxu2 %v3250_v63 }
 0x16f   : > { %v4413_v34 = vadd.f32 %v1158_v58, %v1130_v33  ;;  %1606 = vmatmul.bf16.gmra.mxu1 %v4244_v14  ;;  %v3378_v58 = vor.u32 %v3612_v57, %v3377_v53  ;;  %v3231_v33 = vld [vmem:[%s4046_s30 + $0x308] sm:$0xf0]  ;;  %2317 = vmatpush.bf16.msra.mxu3 %v3426_v28 }
 0x170   : > { %3093 = vmatmul.msk.bf16.gmra.mxu3 %vm1068_vm0, %v4175_v24  ;;  %v3234_v37 = vor.u32 %v3585_v32, %v3231_v33 }
 0x171   : > { %2286 = vmatpush.bf16.msra.mxu1 %v3378_v58 }
 0x173   : > { %v4422_v43 = vpop.f32.mrf.mxu2  ;;  %v4424_v46 = vpop.f32.mrf.mxu3 }
 0x174   : > { %v1102_v48 = vpop.f32.mrf.mxu0  ;;  %v1131_v49 = vpop.f32.mrf.mxu1 }
 0x175   : > { %v1132_v55 = vadd.f32 %v1131_v49, %v1102_v48  ;;  %2287 = vmatpush.bf16.msra.mxu1 %v3370_v18  ;;  %v3362_v49 = vor.u32 %v3608_v44, %v3361_v42  ;;  %v3620_v18 = vld [vmem:[%s4046_s30 + $0x414] sm:$0xf0]  ;;  %v3263_v42 = vld [vmem:[%s4046_s30 + $0x348] sm:$0xf0]  ;;  %v3345_v44 = vld [vmem:[%s4046_s30 + $0x390] sm:$0xf] }
 0x177   : > { %v4430_v61 = vadd.f32 %v1160_v9, %v1132_v55  ;;  %v3622_v55 = vld [vmem:[%s4046_s30 + $0x424] sm:$0xf0] }
 0x178   : > { %1887 = vmatmul.bf16.vlgmr.msrb.gmra.mxu2 %v4146_v60 }
 0x179   : > { %2288 = vmatpush.bf16.msra.mxu1 %v3362_v49  ;;  %v3604_v49 = vld [vmem:[%s4046_s30 + $0x394] sm:$0xf0] }
 0x17a   : > { %v3346_v51 = vor.u32 %v3604_v49, %v3345_v44 }
 0x17b   : > { %v1206_v7 = vpop.f32.mrf.mxu2  ;;  %v4437_v8 = vpop.f32.mrf.mxu3 }
 0x17c   : > { %v1207_v9 = vadd.f32 %v1206_v7, %v4374_v38  ;;  %v1105_v11 = vpop.f32.mrf.mxu0  ;;  %v1134_v12 = vpop.f32.mrf.mxu1  ;;  %v3242_v38 = vor.u32 %v3587_v20, %v3239_v21 }
 0x17d   : > { %v1135_v17 = vadd.f32 %v1134_v12, %v1105_v11  ;;  %v3353_v11 = vld [vmem:[%s4046_s30 + $0x3a0] sm:$0xf]  ;;  %v3606_v12 = vld [vmem:[%s4046_s30 + $0x3a4] sm:$0xf0] }
 0x17e   : > { %1582 = vmatmul.bf16.gmra.mxu0 %v4274_v39  ;;  %1997 = vmatpush.bf16.msra.mxu2 %v3242_v38  ;;  %v3354_v15 = vor.u32 %v3606_v12, %v3353_v11  ;;  %v3577_v38 = vld [vmem:[%s4046_s30 + $0x2c4] sm:$0xf]  ;;  %v3616_v11 = vld [vmem:[%s4046_s30 + $0x3f4] sm:$0xf0] }
 0x17f   : > { %v4445_v22 = vadd.f32 %v1163_v23, %v1135_v17  ;;  %1611 = vmatmul.bf16.gmra.mxu1 %v4276_v40  ;;  %v3207_v17 = vld [vmem:[%s4046_s30 + $0x2d8] sm:$0xf0]  ;;  %v3202_v32 = vor.u32 %v3577_v38, %v3199_v25  ;;  %v3385_v25 = vld [vmem:[%s4046_s30 + $0x3e0] sm:$0xf] }
 0x180   : > { %3094 = vmatmul.msk.bf16.gmra.mxu3 %vm1068_vm0, %v4222_v2  ;;  %2289 = vmatpush.bf16.msra.mxu1 %v3354_v15 }
 0x182   : > { %1998 = vmatpush.bf16.msra.mxu2 %v3234_v37 }
 0x183   : > { %v1208_v31 = vpop.f32.mrf.mxu2  ;;  %v4454_v23 = vpop.f32.mrf.mxu3 }
 0x184   : > { %v1209_v35 = vadd.f32 %v1208_v31, %v4386_v59  ;;  %v1107_v36 = vpop.f32.mrf.mxu0  ;;  %v1136_v41 = vpop.f32.mrf.mxu1  ;;  %v3417_v59 = vld [vmem:[%s4046_s30 + $0x420] sm:$0xf]  ;;  %2290 = vmatpush.bf16.msra.mxu1 %v3346_v51 }
 0x185   : > { %v1137_v48 = vadd.f32 %v1136_v41, %v1107_v36  ;;  %v3418_v57 = vor.u32 %v3622_v55, %v3417_v59  ;;  %v3593_v41 = vld [vmem:[%s4046_s30 + $0x344] sm:$0xf] }
 0x186   : > { %1999 = vmatpush.bf16.msra.mxu2 %v3226_v56 }
 0x187   : > { %v4462_v53 = vadd.f32 %v4422_v43, %v1137_v48  ;;  %2318 = vmatpush.bf16.msra.mxu3 %v3418_v57  ;;  %v3266_v48 = vor.u32 %v3593_v41, %v3263_v42 }
 0x188   : > { %1892 = vmatmul.bf16.gmra.mxu2 %v4201_v45 }
 0x189   : > { %2031 = vmatpush.bf16.msra.mxu0 %v3266_v48 }
 0x18a   : > { %2000 = vmatpush.bf16.msra.mxu2 %v3218_v4  ;;  %v3602_v4 = vld [vmem:[%s4046_s30 + $0x384] sm:$0xf0] }
 0x18b   : > { %v1211_v58 = vpop.f32.mrf.mxu2  ;;  %v4469_v3 = vpop.f32.mrf.mxu3 }
 0x18c   : > { %v1212_v43 = vadd.f32 %v1211_v58, %v4398_v10  ;;  %v1235_v63 = vpop.f32.mrf.mxu0  ;;  %v1481_v7 = vpop.f32.mrf.mxu1  ;;  %v3210_v10 = vor.u32 %v3579_v16, %v3207_v17 }
 0x18d   : > { %v4472_v6 = vadd.f32 %v1235_v63, %v1207_v9  ;;  %v3409_v9 = vld [vmem:[%s4046_s30 + $0x410] sm:$0xf]  ;;  %v3337_v63 = vld [vmem:[%s4046_s30 + $0x380] sm:$0xf] }
 0x18e   : > { %1916 = vmatmul.bf16.vlgmr.msrb.gmra.mxu0 %v4150_v0  ;;  %v3410_v20 = vor.u32 %v3620_v18, %v3409_v9  ;;  %2001 = vmatpush.bf16.msra.mxu2 %v3210_v10 }
 0x18f   : > { %3275 = vmatmul.msk.bf16.vlgmr.msrb.gmra.mxu1 %vm1068_vm0, %v4075_v47 }
 0x190   : > { %1974 = vmatmul.bf16.vlgmr.msrb.gmra.mxu3 %v4146_v60 }
 0x191   : > { %2319 = vmatpush.bf16.msra.mxu3 %v3410_v20  ;;  %v3329_v20 = vld [vmem:[%s4046_s30 + $0x370] sm:$0xf] }
 0x192   : > { %2002 = vmatpush.bf16.msra.mxu2 %v3202_v32  ;;  %v3321_v32 = vld [vmem:[%s4046_s30 + $0x360] sm:$0xf] }
 0x193   : > { %v1213_v21 = vpop.f32.mrf.mxu2  ;;  %v1510_v28 = vpop.f32.mrf.mxu3 }
 0x194   : > { %v1214_v26 = vadd.f32 %v1213_v21, %v4410_v27  ;;  %v1237_v31 = vpop.f32.mrf.mxu0  ;;  %v4487_v33 = vadd.f32 %v1510_v28, %v1481_v7  ;;  %v1483_v37 = vpop.f32.mrf.mxu1  ;;  %v3401_v27 = vld [vmem:[%s4046_s30 + $0x400] sm:$0xf]  ;;  %v3338_v7 = vor.u32 %v3602_v4, %v3337_v63  ;;  %v3600_v21 = vld [vmem:[%s4046_s30 + $0x374] sm:$0xf0]  ;;  %v3614_v28 = vld [vmem:[%s4046_s30 + $0x3e4] sm:$0xf0] }
 0x195   : > { %v4489_v36 = vadd.f32 %v1237_v31, %v1209_v35  ;;  %v3402_v59 = vor.u32 %v3618_v52, %v3401_v27  ;;  %v3330_v38 = vor.u32 %v3600_v21, %v3329_v20  ;;  %v3386_v31 = vor.u32 %v3614_v28, %v3385_v25  ;;  %v3457_v27 = vld [vmem:[%s4046_s30 + $0x470] sm:$0xf]  ;;  %v3631_v52 = vld [vmem:[%s4046_s30 + $0x474] sm:$0xf] }
 0x196   : > { %2291 = vmatpush.bf16.msra.mxu1 %v3338_v7 }
 0x197   : > { %2320 = vmatpush.bf16.msra.mxu3 %v3402_v59 }
 0x198   : > { %1897 = vmatmul.bf16.gmra.mxu2 %v4242_v13 }
 0x19a   : > { %2292 = vmatpush.bf16.msra.mxu1 %v3330_v38 }
 0x19b   : > { %v1216_v35 = vpop.f32.mrf.mxu2  ;;  %v1512_v56 = vpop.f32.mrf.mxu3 }
 0x19c   : > { %v1217_v55 = vadd.f32 %v1216_v35, %v4424_v46  ;;  %v1240_v57 = vpop.f32.mrf.mxu0  ;;  %v4499_v58 = vadd.f32 %v1512_v56, %v1483_v37  ;;  %v1486_v1 = vpop.f32.mrf.mxu1  ;;  %v3393_v46 = vld [vmem:[%s4046_s30 + $0x3f0] sm:$0xf]  ;;  %v3598_v37 = vld [vmem:[%s4046_s30 + $0x364] sm:$0xf0]  ;;  %v3459_v35 = vld [vmem:[%s4046_s30 + $0x478] sm:$0xf0] }
 0x19d   : > { %v4501_v62 = vadd.f32 %v1240_v57, %v1212_v43  ;;  %v3394_v43 = vor.u32 %v3616_v11, %v3393_v46  ;;  %v3322_v44 = vor.u32 %v3598_v37, %v3321_v32  ;;  %v3462_v56 = vor.u32 %v3631_v52, %v3459_v35  ;;  %v3611_v11 = vld [vmem:[%s4046_s30 + $0x3d4] sm:$0xf]  ;;  %v3371_v32 = vld [vmem:[%s4046_s30 + $0x3c8] sm:$0xf0]  ;;  %v3625_v37 = vld [vmem:[%s4046_s30 + $0x444] sm:$0xf] }
 0x19e   : > { %1921 = vmatmul.bf16.gmra.mxu0 %v4205_v50 }
 0x19f   : > { %3276 = vmatmul.msk.bf16.gmra.mxu1 %vm1068_vm0, %v4115_v29  ;;  %2321 = vmatpush.bf16.msra.mxu3 %v3394_v43  ;;  %v3379_v43 = vld [vmem:[%s4046_s30 + $0x3d8] sm:$0xf0] }
 0x1a0   : > { %1979 = vmatmul.bf16.gmra.mxu3 %v4201_v45  ;;  %2293 = vmatpush.bf16.msra.mxu1 %v3322_v44 }
 0x1a3   : > { %v1218_v12 = vpop.f32.mrf.mxu2  ;;  %v1515_v16 = vpop.f32.mrf.mxu3  ;;  %2322 = vmatpush.bf16.msra.mxu3 %v3386_v31 }
 0x1a4   : > { %v1219_v15 = vadd.f32 %v1218_v12, %v4437_v8  ;;  %v1242_v17 = vpop.f32.mrf.mxu0  ;;  %v4512_v10 = vadd.f32 %v1515_v16, %v1486_v1  ;;  %v1488_v18 = vpop.f32.mrf.mxu1  ;;  %v3627_v12 = vld [vmem:[%s4046_s30 + $0x454] sm:$0xf]  ;;  %v3382_v16 = vor.u32 %v3611_v11, %v3379_v43 }
 0x1a5   : > { %v4514_v9 = vadd.f32 %v1242_v17, %v1214_v26  ;;  %v3443_v17 = vld [vmem:[%s4046_s30 + $0x458] sm:$0xf0] }
 0x1a6   : > { %2373 = vmatpush.bf16.msrb.mxu0 %v3382_v16 }
 0x1a7   : > { %2437 = vmatpush.bf16.msrb.mxu3 %v3462_v56  ;;  %v3363_v56 = vld [vmem:[%s4046_s30 + $0x3b8] sm:$0xf0] }
 0x1a8   : > { %1902 = vmatmul.bf16.gmra.mxu2 %v4274_v39 }
 0x1ab   : > { %v1221_v8 = vpop.f32.mrf.mxu2  ;;  %v1517_v41 = vpop.f32.mrf.mxu3 }
 0x1ac   : > { %v1222_v26 = vadd.f32 %v1221_v8, %v4454_v23  ;;  %v1245_v42 = vpop.f32.mrf.mxu0  ;;  %v4524_v48 = vadd.f32 %v1517_v41, %v1488_v18  ;;  %v1491_v51 = vpop.f32.mrf.mxu1  ;;  %v3632_v23 = vld [vmem:[%s4046_s30 + $0x474] sm:$0xf0]  ;;  %v3609_v8 = vld [vmem:[%s4046_s30 + $0x3c4] sm:$0xf]  ;;  %v3435_v41 = vld [vmem:[%s4046_s30 + $0x448] sm:$0xf0] }
 0x1ad   : > { %v4526_v49 = vadd.f32 %v1245_v42, %v1217_v55  ;;  %v3458_v59 = vor.u32 %v3632_v23, %v3457_v27 }
 0x1ae   : > { %1926 = vmatmul.bf16.gmra.mxu0 %v4244_v14 }
 0x1af   : > { %3277 = vmatmul.msk.bf16.gmra.mxu1 %vm1068_vm0, %v4175_v24  ;;  %2350 = vmatpush.bf16.msrb.mxu2 %v3458_v59 }
 0x1b0   : > { %1984 = vmatmul.bf16.gmra.mxu3 %v4242_v13 }
 0x1b3   : > { %v1223_v55 = vpop.f32.mrf.mxu2  ;;  %v1520_v1 = vpop.f32.mrf.mxu3 }
 0x1b4   : > { %v1224_v57 = vadd.f32 %v1223_v55, %v4469_v3  ;;  %v1247_v63 = vpop.f32.mrf.mxu0  ;;  %v4537_v4 = vadd.f32 %v1520_v1, %v1491_v51  ;;  %v1493_v46 = vpop.f32.mrf.mxu1  ;;  %v3446_v3 = vor.u32 %v3627_v12, %v3443_v17  ;;  %v3607_v55 = vld [vmem:[%s4046_s30 + $0x3b4] sm:$0xf] }
 0x1b5   : > { %v4539_v7 = vadd.f32 %v1247_v63, %v1219_v15  ;;  %v3623_v1 = vld [vmem:[%s4046_s30 + $0x434] sm:$0xf]  ;;  %v3366_v63 = vor.u32 %v3607_v55, %v3363_v56 }
 0x1b6   : > { %2402 = vmatpush.bf16.msrb.mxu1 %v3446_v3 }
 0x1b8   : > { %2003 = vmatmul.bf16.vlgmr.msra.gmra.mxu2 %v4150_v0 }
 0x1bb   : > { %v1539_v18 = vpop.f32.mrf.mxu2  ;;  %v1522_v20 = vpop.f32.mrf.mxu3 }
 0x1bc   : > { %v4547_v15 = vadd.f32 %v1539_v18, %v4487_v33  ;;  %v1250_v21 = vpop.f32.mrf.mxu0  ;;  %v4549_v38 = vadd.f32 %v1522_v20, %v1493_v46  ;;  %v1496_v28 = vpop.f32.mrf.mxu1  ;;  %v3374_v33 = vor.u32 %v3609_v8, %v3371_v32  ;;  %v3605_v20 = vld [vmem:[%s4046_s30 + $0x3a4] sm:$0xf]  ;;  %v3419_v8 = vld [vmem:[%s4046_s30 + $0x428] sm:$0xf0] }
 0x1bd   : > { %v4551_v25 = vadd.f32 %v1250_v21, %v1222_v26  ;;  %v3438_v26 = vor.u32 %v3625_v37, %v3435_v41  ;;  %v3355_v21 = vld [vmem:[%s4046_s30 + $0x3a8] sm:$0xf0]  ;;  %v3449_v37 = vld [vmem:[%s4046_s30 + $0x460] sm:$0xf]  ;;  %v3629_v41 = vld [vmem:[%s4046_s30 + $0x464] sm:$0xf] }
 0x1be   : > { %v1646_v31 = vmax.f32 %v4365_v30, %v4547_v15  ;;  %1931 = vmatmul.bf16.gmra.mxu0 %v4276_v40 }
 0x1bf   : > { %3278 = vmatmul.msk.bf16.gmra.mxu1 %vm1068_vm0, %v4222_v2  ;;  %2374 = vmatpush.bf16.msrb.mxu0 %v3374_v33  ;;  %v3630_v33 = vld [vmem:[%s4046_s30 + $0x464] sm:$0xf0] }
 0x1c0   : > { %1989 = vmatmul.bf16.gmra.mxu3 %v4274_v39  ;;  %2403 = vmatpush.bf16.msrb.mxu1 %v3438_v26  ;;  %v3450_v26 = vor.u32 %v3630_v33, %v3449_v37 }
 0x1c2   : > { %2351 = vmatpush.bf16.msrb.mxu2 %v3450_v26 }
 0x1c3   : > { %v1541_v42 = vpop.f32.mrf.mxu2  ;;  %v1525_v44 = vpop.f32.mrf.mxu3  ;;  %2375 = vmatpush.bf16.msrb.mxu0 %v3366_v63 }
 0x1c4   : > { %v4564_v51 = vadd.f32 %v1541_v42, %v4499_v58  ;;  %v1252_v27 = vpop.f32.mrf.mxu0  ;;  %v4566_v23 = vadd.f32 %v1525_v44, %v1496_v28  ;;  %v1498_v59 = vpop.f32.mrf.mxu1  ;;  %v3427_v58 = vld [vmem:[%s4046_s30 + $0x438] sm:$0xf0]  ;;  %v3621_v28 = vld [vmem:[%s4046_s30 + $0x424] sm:$0xf]  ;;  %v3451_v42 = vld [vmem:[%s4046_s30 + $0x468] sm:$0xf0] }
 0x1c5   : > { %v4568_v52 = vadd.f32 %v1252_v27, %v1224_v57  ;;  %v3430_v46 = vor.u32 %v3623_v1, %v3427_v58  ;;  %v3422_v32 = vor.u32 %v3621_v28, %v3419_v8  ;;  %v3454_v27 = vor.u32 %v3629_v41, %v3451_v42  ;;  %v3601_v42 = vld [vmem:[%s4046_s30 + $0x384] sm:$0xf] }
 0x1c6   : > { %v1648_v35 = vmax.f32 %v4380_v54, %v4564_v51 }
 0x1c7   : > { %2404 = vmatpush.bf16.msrb.mxu1 %v3430_v46  ;;  %2438 = vmatpush.bf16.msrb.mxu3 %v3454_v27  ;;  %v3617_v27 = vld [vmem:[%s4046_s30 + $0x404] sm:$0xf] }
 0x1c8   : > { %2008 = vmatmul.bf16.gmra.mxu2 %v4205_v50 }
 0x1cb   : > { %v1544_v11 = vpop.f32.mrf.mxu2  ;;  %v1527_v57 = vpop.f32.mrf.mxu3  ;;  %2405 = vmatpush.bf16.msrb.mxu1 %v3422_v32 }
 0x1cc   : > { %v4578_v43 = vadd.f32 %v1544_v11, %v4512_v10  ;;  %v1568_v12 = vpop.f32.mrf.mxu0  ;;  %v4580_v16 = vadd.f32 %v1527_v57, %v1498_v59  ;;  %v1597_v17 = vpop.f32.mrf.mxu1  ;;  %v3358_v10 = vor.u32 %v3605_v20, %v3355_v21  ;;  %v3603_v57 = vld [vmem:[%s4046_s30 + $0x394] sm:$0xf]  ;;  %v3411_v20 = vld [vmem:[%s4046_s30 + $0x418] sm:$0xf0]  ;;  %v3688_v11 = vmov 0  }
 0x1cd   : > { %v1598_v18 = vadd.f32 %v1597_v17, %v1568_v12  ;;  %v3347_v12 = vld [vmem:[%s4046_s30 + $0x398] sm:$0xf0]  ;;  %v3619_v17 = vld [vmem:[%s4046_s30 + $0x414] sm:$0xf]  ;;  %3661 = vset.pattern.permute.xlu0 %v3688_v11  ;;  %3662 = vset.pattern.permute.xlu1 %v3688_v11 }
 0x1ce   : > { %v1650_v3 = vmax.f32 %v4391_v5, %v4578_v43  ;;  %3279 = vmatmul.msk.bf16.vlgmr.msra.gmra.mxu0 %vm1068_vm0, %v4075_v47  ;;  %3663 = vset.pattern.permute.xlu2 %v3688_v11 }
 0x1cf   : > { %2294 = vmatmul.bf16.vlgmr.msra.gmra.mxu1 %v4146_v60  ;;  %2376 = vmatpush.bf16.msrb.mxu0 %v3358_v10 }
 0x1d0   : > { %2323 = vmatmul.bf16.vlgmr.msra.gmra.mxu3 %v4150_v0 }
 0x1d3   : > { %v1546_v44 = vpop.f32.mrf.mxu2  ;;  %v1626_v55 = vpop.f32.mrf.mxu3 }
 0x1d4   : > { %v4597_v59 = vadd.f32 %v1546_v44, %v4524_v48  ;;  %v1570_v56 = vpop.f32.mrf.mxu0  ;;  %v4599_v1 = vadd.f32 %v1626_v55, %v1598_v18  ;;  %v1599_v63 = vpop.f32.mrf.mxu1  ;;  %v3350_v48 = vor.u32 %v3603_v57, %v3347_v12  ;;  %v3414_v18 = vor.u32 %v3619_v17, %v3411_v20  ;;  %v3339_v44 = vld [vmem:[%s4046_s30 + $0x388] sm:$0xf0] }
 0x1d5   : > { %v1600_v46 = vadd.f32 %v1599_v63, %v1570_v56  ;;  %v3403_v55 = vld [vmem:[%s4046_s30 + $0x408] sm:$0xf0] }
 0x1d6   : > { %v1652_v58 = vmax.f32 %v4402_v19, %v4597_v59  ;;  %2377 = vmatpush.bf16.msrb.mxu0 %v3350_v48  ;;  %2406 = vmatpush.bf16.msrb.mxu1 %v3414_v18  ;;  %v3406_v56 = vor.u32 %v3617_v27, %v3403_v55  ;;  %v3597_v27 = vld [vmem:[%s4046_s30 + $0x364] sm:$0xf] }
 0x1d7   : > { %v3613_v55 = vld [vmem:[%s4046_s30 + $0x3e4] sm:$0xf] }
 0x1d8   : > { %2013 = vmatmul.bf16.gmra.mxu2 %v4244_v14 }
 0x1da   : > { %2407 = vmatpush.bf16.msrb.mxu1 %v3406_v56 }
 0x1db   : > { %v1549_v21 = vpop.f32.mrf.mxu2  ;;  %v1628_v10 = vpop.f32.mrf.mxu3 }
 0x1dc   : > { %v4611_v28 = vadd.f32 %v1549_v21, %v4537_v4  ;;  %v1573_v8 = vpop.f32.mrf.mxu0  ;;  %v4613_v32 = vadd.f32 %v1628_v10, %v1600_v46  ;;  %v1602_v37 = vpop.f32.mrf.mxu1  ;;  %v3342_v4 = vor.u32 %v3601_v42, %v3339_v44  ;;  %v3599_v10 = vld [vmem:[%s4046_s30 + $0x374] sm:$0xf]  ;;  %v3395_v42 = vld [vmem:[%s4046_s30 + $0x3f8] sm:$0xf0] }
 0x1dd   : > { %v1603_v41 = vadd.f32 %v1602_v37, %v1573_v8  ;;  %v3331_v8 = vld [vmem:[%s4046_s30 + $0x378] sm:$0xf0] }
 0x1de   : > { %v1654_v33 = vmax.f32 %v4413_v34, %v4611_v28  ;;  %3280 = vmatmul.msk.bf16.gmra.mxu0 %vm1068_vm0, %v4115_v29  ;;  %v3334_v37 = vor.u32 %v3599_v10, %v3331_v8  ;;  %v2476_v8 = vld [vmem:[%s4887_s2] sm:$0xff] }
 0x1df   : > { %2299 = vmatmul.bf16.gmra.mxu1 %v4201_v45  ;;  %2378 = vmatpush.bf16.msrb.mxu0 %v3342_v4  ;;  %v3323_v4 = vld [vmem:[%s4046_s30 + $0x368] sm:$0xf0] }
 0x1e0   : > { %2328 = vmatmul.bf16.gmra.mxu3 %v4205_v50  ;;  %2486 = vperm.xlu0 %3661, %v2476_v8  }
 0x1e3   : > { %v1551_v63 = vpop.f32.mrf.mxu2  ;;  %v1631_v57 = vpop.f32.mrf.mxu3  ;;  %2379 = vmatpush.bf16.msrb.mxu0 %v3334_v37 }
 0x1e4   : > { %v4628_v46 = vadd.f32 %v1551_v63, %v4549_v38  ;;  %v1575_v12 = vpop.f32.mrf.mxu0  ;;  %v4630_v17 = vadd.f32 %v1631_v57, %v1603_v41  ;;  %v1604_v48 = vpop.f32.mrf.mxu1  ;;  %v3615_v38 = vld [vmem:[%s4046_s30 + $0x3f4] sm:$0xf] }
 0x1e5   : > { %v1605_v18 = vadd.f32 %v1604_v48, %v1575_v12  ;;  %v3398_v41 = vor.u32 %v3615_v38, %v3395_v42  ;;  %v3326_v12 = vor.u32 %v3597_v27, %v3323_v4  ;;  %v3387_v48 = vld [vmem:[%s4046_s30 + $0x3e8] sm:$0xf0] }
 0x1e6   : > { %v1656_v20 = vmax.f32 %v4430_v61, %v4628_v46  ;;  %v3390_v10 = vor.u32 %v3613_v55, %v3387_v48  ;;  %v2478_v48 = vld [vmem:[%s4887_s2 + $0x10] sm:$0xff] }
 0x1e7   : > { %2408 = vmatpush.bf16.msrb.mxu1 %v3398_v41  ;;  %2380 = vmatpush.bf16.msrb.mxu0 %v3326_v12 }
 0x1e8   : > { %2018 = vmatmul.bf16.gmra.mxu2 %v4276_v40  ;;  %2496 = vperm.xlu1 %3662, %v2478_v48  }
 0x1eb   : > { %v1554_v44 = vpop.f32.mrf.mxu2  ;;  %v1633_v63 = vpop.f32.mrf.mxu3  ;;  %2409 = vmatpush.bf16.msrb.mxu1 %v3390_v10 }
 0x1ec   : > { %v4645_v56 = vadd.f32 %v1554_v44, %v4566_v23  ;;  %v1578_v57 = vpop.f32.mrf.mxu0  ;;  %v4648_v21 = vadd.f32 %v1633_v63, %v1605_v18  ;;  %v1607_v26 = vpop.f32.mrf.mxu1  ;;  %v2477_v44 = vld [vmem:[%s4887_s2 + $0x8] sm:$0xff] }
 0x1ed   : > { %v1608_v23 = vadd.f32 %v1607_v26, %v1578_v57  ;;  %2491 = vperm.xlu0 %3661, %v2477_v44  }
 0x1ee   : > { %3281 = vmatmul.msk.bf16.gmra.mxu0 %vm1068_vm0, %v4175_v24 }
 0x1ef   : > { %2304 = vmatmul.bf16.gmra.mxu1 %v4242_v13 }
 0x1f0   : > { %2333 = vmatmul.bf16.gmra.mxu3 %v4244_v14 }
 0x1f3   : > { %v1556_v18 = vpop.f32.mrf.mxu2  ;;  %v1636_v41 = vpop.f32.mrf.mxu3 }
 0x1f4   : > { %v4662_v42 = vadd.f32 %v1556_v18, %v4580_v16  ;;  %v1580_v26 = vpop.f32.mrf.mxu0  ;;  %v4667_v27 = vadd.f32 %v1636_v41, %v1608_v23  ;;  %v1609_v4 = vpop.f32.mrf.mxu1 }
 0x1f5   : > { %v1610_v63 = vadd.f32 %v1609_v4, %v1580_v26  ;;  %v2479_v4 = vld [vmem:[%s4887_s2 + $0x18] sm:$0xff] }
 0x1f6   : > { %2501 = vperm.xlu1 %3662, %v2479_v4  }
 0x1f8   : > { %3463 = vmatmul.msk.bf16.vlgmr.msrb.gmra.mxu2 %vm1068_vm0, %v4075_v47 }
 0x1fb   : > { %v1888_v16 = vpop.f32.mrf.mxu2  ;;  %v1638_v57 = vpop.f32.mrf.mxu3 }
 0x1fc   : > { %v1583_v12 = vpop.f32.mrf.mxu0  ;;  %v4678_v10 = vadd.f32 %v1638_v57, %v1610_v63  ;;  %v1612_v8 = vpop.f32.mrf.mxu1 }
 0x1fd   : > { %v1613_v23 = vadd.f32 %v1612_v8, %v1583_v12 }
 0x1fe   : > { %3282 = vmatmul.msk.bf16.gmra.mxu0 %vm1068_vm0, %v4222_v2 }
 0x1ff   : > { %2309 = vmatmul.bf16.gmra.mxu1 %v4274_v39 }
 0x200   : > { %2338 = vmatmul.bf16.gmra.mxu3 %v4276_v40 }
 0x203   : > { %v1890_v41 = vpop.f32.mrf.mxu2  ;;  %v1641_v26 = vpop.f32.mrf.mxu3 }
 0x204   : > { %v1585_v44 = vpop.f32.mrf.mxu0  ;;  %v4689_v63 = vadd.f32 %v1641_v26, %v1613_v23  ;;  %v1614_v57 = vpop.f32.mrf.mxu1 }
 0x205   : > { %v1615_v12 = vadd.f32 %v1614_v57, %v1585_v44 }
 0x206   : > { %v1659_v48 = vmax.f32 %v4551_v25, %v4689_v63 }
 0x208   : > { %3464 = vmatmul.msk.bf16.gmra.mxu2 %vm1068_vm0, %v4115_v29 }
 0x20b   : > { %v1893_v8 = vpop.f32.mrf.mxu2  ;;  %v1643_v18 = vpop.f32.mrf.mxu3 }
 0x20c   : > { %v1917_v11 = vpop.f32.mrf.mxu0  ;;  %v4695_v37 = vadd.f32 %v1643_v18, %v1615_v12  ;;  %v1946_v38 = vpop.f32.mrf.mxu1 }
 0x20d   : > { %v1918_v55 = vadd.f32 %v1917_v11, %v1888_v16 }
 0x20e   : > { %v1661_v23 = vmax.f32 %v4568_v52, %v4695_v37  ;;  %2381 = vmatmul.bf16.vlgmr.msrb.gmra.mxu0 %v4146_v60 }
 0x20f   : > { %v1947_v26 = vadd.f32 %v1946_v38, %v1918_v55  ;;  %2410 = vmatmul.bf16.vlgmr.msrb.gmra.mxu1 %v4150_v0 }
 0x210   : > { %3467 = vmatmul.msk.bf16.vlgmr.msrb.gmra.mxu3 %vm1068_vm0, %v4075_v47  ;;  %v2482_v47 = vld [vmem:[%s4887_s2 + $0x30] sm:$0xff] }
 0x211   : > { %v4704_v44 = vmax.f32 %v1646_v31, %v1947_v26  ;;  %2516 = vperm.xlu0 %3661, %v2482_v47  }
 0x213   : > { %v1895_v18 = vpop.f32.mrf.mxu2  ;;  %v4708_v4 = vpop.f32.mrf.mxu3 }
 0x214   : > { %v1919_v11 = vpop.f32.mrf.mxu0  ;;  %v1948_v57 = vpop.f32.mrf.mxu1 }
 0x215   : > { %v1920_v16 = vadd.f32 %v1919_v11, %v1890_v41 }
 0x217   : > { %v1949_v12 = vadd.f32 %v1948_v57, %v1920_v16  ;;  %v2481_v16 = vld [vmem:[%s4887_s2 + $0x28] sm:$0xff] }
 0x218   : > { %3465 = vmatmul.msk.bf16.gmra.mxu2 %vm1068_vm0, %v4175_v24 }
 0x219   : > { %v4715_v60 = vmax.f32 %v1648_v35, %v1949_v12 }
 0x21b   : > { %v1898_v0 = vpop.f32.mrf.mxu2  ;;  %v4717_v30 = vpop.f32.mrf.mxu3 }
 0x21c   : > { %v1922_v15 = vpop.f32.mrf.mxu0  ;;  %v1951_v38 = vpop.f32.mrf.mxu1 }
 0x21d   : > { %v1923_v31 = vadd.f32 %v1922_v15, %v1893_v8  ;;  %v2480_v8 = vld [vmem:[%s4887_s2 + $0x20] sm:$0xff] }
 0x21e   : > { %2386 = vmatmul.bf16.gmra.mxu0 %v4201_v45  ;;  %v2483_v45 = vld [vmem:[%s4887_s2 + $0x38] sm:$0xff]  ;;  %2506 = vperm.xlu2 %3663, %v2480_v8  }
 0x21f   : > { %v1952_v55 = vadd.f32 %v1951_v38, %v1923_v31  ;;  %2415 = vmatmul.bf16.gmra.mxu1 %v4205_v50  ;;  %2521 = vperm.xlu1 %3662, %v2483_v45  }
 0x220   : > { %3468 = vmatmul.msk.bf16.gmra.mxu3 %vm1068_vm0, %v4115_v29 }
 0x221   : > { %v4727_v54 = vmax.f32 %v1650_v3, %v1952_v55 }
 0x223   : > { %v1900_v51 = vpop.f32.mrf.mxu2  ;;  %v1980_v35 = vpop.f32.mrf.mxu3 }
 0x224   : > { %v1924_v41 = vpop.f32.mrf.mxu0  ;;  %v1953_v26 = vpop.f32.mrf.mxu1 }
 0x225   : > { %v1925_v50 = vadd.f32 %v1924_v41, %v1895_v18 }
 0x226   : > { %2511 = vperm.xlu2 %3663, %v2481_v16  }
 0x227   : > { %v1954_v5 = vadd.f32 %v1953_v26, %v1925_v50  ;;  %v4891_v50 = vmax.f32 %v4462_v53, %v4662_v42 }
 0x228   : > { %3466 = vmatmul.msk.bf16.gmra.mxu2 %vm1068_vm0, %v4222_v2 }
 0x229   : > { %v4742_v29 = vmax.f32 %v1652_v58, %v1954_v5 }
 0x22b   : > { %v1903_v43 = vpop.f32.mrf.mxu2  ;;  %v1982_v3 = vpop.f32.mrf.mxu3 }
 0x22c   : > { %v1927_v11 = vpop.f32.mrf.mxu0  ;;  %v1956_v57 = vpop.f32.mrf.mxu1 }
 0x22d   : > { %v1928_v18 = vadd.f32 %v1927_v11, %v1898_v0 }
 0x22e   : > { %2391 = vmatmul.bf16.gmra.mxu0 %v4242_v13 }
 0x22f   : > { %v1957_v12 = vadd.f32 %v1956_v57, %v1928_v18  ;;  %2420 = vmatmul.bf16.gmra.mxu1 %v4244_v14 }
 0x230   : > { %3469 = vmatmul.msk.bf16.gmra.mxu3 %vm1068_vm0, %v4175_v24  ;;  %v4890_v24 = vmax.f32 %v4445_v22, %v4645_v56 }
 0x231   : > { %v4752_v19 = vmax.f32 %v1654_v33, %v1957_v12 }
 0x233   : > { %v1905_v59 = vpop.f32.mrf.mxu2  ;;  %v1985_v58 = vpop.f32.mrf.mxu3 }
 0x234   : > { %v1929_v15 = vpop.f32.mrf.mxu0  ;;  %v1958_v0 = vpop.f32.mrf.mxu1 }
 0x235   : > { %v1930_v47 = vadd.f32 %v1929_v15, %v1900_v51 }
 0x237   : > { %v1959_v31 = vadd.f32 %v1958_v0, %v1930_v47 }
 0x239   : > { %v4759_v13 = vmax.f32 %v1656_v20, %v1959_v31 }
 0x23b   : > { %v2004_v14 = vpop.f32.mrf.mxu2  ;;  %v1987_v38 = vpop.f32.mrf.mxu3 }
 0x23c   : > { %v1932_v55 = vpop.f32.mrf.mxu0  ;;  %v1961_v28 = vpop.f32.mrf.mxu1 }
 0x23d   : > { %v1933_v34 = vadd.f32 %v1932_v55, %v1903_v43 }
 0x23e   : > { %2396 = vmatmul.bf16.gmra.mxu0 %v4274_v39 }
 0x23f   : > { %v1962_v33 = vadd.f32 %v1961_v28, %v1933_v34  ;;  %2425 = vmatmul.bf16.gmra.mxu1 %v4276_v40  ;;  %v2005_v40 = vadd.f32 %v2004_v14, %v4708_v4  ;;  %v4893_v4 = vmax.f32 %v4489_v36, %v4613_v32  ;;  %v4895_v36 = vmax.f32 %v4514_v9, %v4648_v21 }
 0x240   : > { %3470 = vmatmul.msk.bf16.gmra.mxu3 %vm1068_vm0, %v4222_v2  ;;  %v4892_v2 = vmax.f32 %v4472_v6, %v4599_v1  ;;  %v4894_v1 = vmax.f32 %v4501_v62, %v4630_v17  ;;  %v4896_v62 = vmax.f32 %v4526_v49, %v4667_v27  ;;  %v4897_v9 = vmax.f32 %v4539_v7, %v4678_v10 }
 0x241   : > { %v4766_v51 = vmax.f32 %v4890_v24, %v1962_v33 }
 0x243   : > { %v2006_v61 = vpop.f32.mrf.mxu2  ;;  %v1990_v46 = vpop.f32.mrf.mxu3 }
 0x244   : > { %v1934_v20 = vpop.f32.mrf.mxu0  ;;  %v1963_v8 = vpop.f32.mrf.mxu1  ;;  %v2007_v16 = vadd.f32 %v2006_v61, %v4717_v30 }
 0x245   : > { %v1935_v41 = vadd.f32 %v1934_v20, %v1905_v59 }
 0x247   : > { %v1964_v45 = vadd.f32 %v1963_v8, %v1935_v41 }
 0x249   : > { %v4773_v39 = vmax.f32 %v4891_v50, %v1964_v45 }
 0x24b   : > { %v2009_v26 = vpop.f32.mrf.mxu2  ;;  %v1992_v22 = vpop.f32.mrf.mxu3 }
 0x24c   : > { %v2033_v56 = vpop.f32.mrf.mxu0  ;;  %v2295_v43 = vpop.f32.mrf.mxu1  ;;  %v2010_v15 = vadd.f32 %v2009_v26, %v1980_v35 }
 0x24d   : > { %v2034_v5 = vadd.f32 %v2033_v56, %v2005_v40 }
 0x24f   : > { %v4779_v11 = vmax.f32 %v4892_v2, %v2034_v5 }
 0x253   : > { %v2011_v18 = vpop.f32.mrf.mxu2  ;;  %v2324_v57 = vpop.f32.mrf.mxu3 }
 0x254   : > { %v2035_v12 = vpop.f32.mrf.mxu0  ;;  %v2297_v42 = vpop.f32.mrf.mxu1  ;;  %v2012_v55 = vadd.f32 %v2011_v18, %v1982_v3 }
 0x255   : > { %v2036_v53 = vadd.f32 %v2035_v12, %v2007_v16 }
 0x257   : > { %v4785_v59 = vmax.f32 %v4893_v4, %v2036_v53 }
 0x25b   : > { %v2014_v47 = vpop.f32.mrf.mxu2  ;;  %v2326_v0 = vpop.f32.mrf.mxu3 }
 0x25c   : > { %v2038_v31 = vpop.f32.mrf.mxu0  ;;  %v2300_v6 = vpop.f32.mrf.mxu1  ;;  %v2015_v35 = vadd.f32 %v2014_v47, %v1985_v58  ;;  %v2325_v58 = vadd.f32 %v2324_v57, %v2295_v43  ;;  %v2327_v47 = vadd.f32 %v2326_v0, %v2297_v42 }
 0x25d   : > { %v2039_v14 = vadd.f32 %v2038_v31, %v2010_v15 }
 0x25f   : > { %v4790_v30 = vmax.f32 %v4894_v1, %v2039_v14 }
 0x263   : > { %v2016_v34 = vpop.f32.mrf.mxu2  ;;  %v2329_v28 = vpop.f32.mrf.mxu3 }
 0x264   : > { %v2040_v33 = vpop.f32.mrf.mxu0  ;;  %v2302_v61 = vpop.f32.mrf.mxu1  ;;  %v2017_v3 = vadd.f32 %v2016_v34, %v1987_v38  ;;  %v2330_v25 = vadd.f32 %v2329_v28, %v2300_v6 }
 0x265   : > { %v2041_v24 = vadd.f32 %v2040_v33, %v2012_v55  ;;  %v2487_v34 = vpop.permute.xlu0 %2486 }
 0x267   : > { %v4795_v32 = vmax.f32 %v4895_v36, %v2041_v24 }
 0x26b   : > { %v2019_v20 = vpop.f32.mrf.mxu2  ;;  %v2331_v41 = vpop.f32.mrf.mxu3 }
 0x26c   : > { %v2043_v8 = vpop.f32.mrf.mxu0  ;;  %v2305_v50 = vpop.f32.mrf.mxu1  ;;  %v2020_v16 = vadd.f32 %v2019_v20, %v1990_v46  ;;  %v2332_v24 = vadd.f32 %v2331_v41, %v2302_v61 }
 0x26d   : > { %v2044_v45 = vadd.f32 %v2043_v8, %v2015_v35 }
 0x26f   : > { %v4800_v17 = vmax.f32 %v4896_v62, %v2044_v45 }
 0x273   : > { %v2021_v40 = vpop.f32.mrf.mxu2  ;;  %v2334_v26 = vpop.f32.mrf.mxu3 }
 0x274   : > { %v2045_v56 = vpop.f32.mrf.mxu0  ;;  %v4802_v2 = vpop.f32.mrf.mxu1  ;;  %v2022_v7 = vadd.f32 %v2021_v40, %v1992_v22  ;;  %v2335_v45 = vadd.f32 %v2334_v26, %v2305_v50 }
 0x275   : > { %v2046_v5 = vadd.f32 %v2045_v56, %v2017_v3  ;;  %v2497_v50 = vpop.permute.xlu1 %2496 }
 0x277   : > { %v4807_v21 = vmax.f32 %v4897_v9, %v2046_v5 }
 0x27b   : > { %v2353_v18 = vpop.f32.mrf.mxu2  ;;  %v2336_v12 = vpop.f32.mrf.mxu3 }
 0x27c   : > { %v2354_v53 = vadd.f32 %v2353_v18, %v2325_v58  ;;  %v2048_v49 = vpop.f32.mrf.mxu0  ;;  %v4809_v4 = vpop.f32.mrf.mxu1 }
 0x27d   : > { %v2049_v27 = vadd.f32 %v2048_v49, %v2020_v16  ;;  %v2337_v49 = vadd.f32 %v2336_v12, %v4802_v2 }
 0x27e   : > { %v2460_v38 = vmax.f32 %v4704_v44, %v2354_v53 }
 0x27f   : > { %v4815_v15 = vmax.f32 %v1659_v48, %v2049_v27 }
 0x280   : > { %v2524_v6 = vadd.f32 %v2487_v34, %v2460_v38 }
 0x282   : > { %v2540_v62 = vmax.f32 %v2524_v6, 0.0 }
 0x283   : > { %v2355_v10 = vpop.f32.mrf.mxu2  ;;  %v4817_v31 = vpop.f32.mrf.mxu3 }
 0x284   : > { %v2356_v46 = vadd.f32 %v2355_v10, %v2327_v47  ;;  %v2050_v43 = vpop.f32.mrf.mxu0  ;;  %v4819_v14 = vpop.f32.mrf.mxu1  ;;  %v2340_v2 = vadd.f32 %v4817_v31, %v4809_v4 }
 0x285   : > { %v2051_v57 = vadd.f32 %v2050_v43, %v2022_v7 }
 0x286   : > { %v2462_v1 = vmax.f32 %v4715_v60, %v2356_v46 }
 0x287   : > { %v4825_v44 = vmax.f32 %v1661_v23, %v2051_v57 }
 0x28b   : > { %v2358_v63 = vpop.f32.mrf.mxu2  ;;  %v4827_v48 = vpop.f32.mrf.mxu3 }
 0x28c   : > { %v2359_v22 = vadd.f32 %v2358_v63, %v2330_v25  ;;  %v2382_v42 = vpop.f32.mrf.mxu0  ;;  %v2411_v0 = vpop.f32.mrf.mxu1  ;;  %v2342_v31 = vadd.f32 %v4827_v48, %v4819_v14 }
 0x28d   : > { %v2412_v33 = vadd.f32 %v2411_v0, %v2382_v42 }
 0x28e   : > { %v2464_v55 = vmax.f32 %v4727_v54, %v2359_v22  ;;  %v2492_v54 = vpop.permute.xlu0 %2491  ;;  %v2502_v22 = vpop.permute.xlu1 %2501 }
 0x28f   : > { %v2526_v18 = vadd.f32 %v2492_v54, %v2462_v1 }
 0x290   : > { %v2528_v25 = vadd.f32 %v2497_v50, %v2464_v55 }
 0x291   : > { %v2542_v27 = vmax.f32 %v2526_v18, 0.0 }
 0x292   : > { %v2544_v12 = vmax.f32 %v2528_v25, 0.0 }
 0x293   : > { %v2360_v36 = vpop.f32.mrf.mxu2  ;;  %v2440_v35 = vpop.f32.mrf.mxu3 }
 0x294   : > { %v2361_v60 = vadd.f32 %v2360_v36, %v2332_v24  ;;  %v2384_v20 = vpop.f32.mrf.mxu0  ;;  %v2441_v52 = vadd.f32 %v2440_v35, %v2412_v33  ;;  %v2413_v37 = vpop.f32.mrf.mxu1 }
 0x295   : > { %v2414_v40 = vadd.f32 %v2413_v37, %v2384_v20  ;;  %v2507_v37 = vpop.permute.xlu2 %2506 }
 0x296   : > { %v2466_v23 = vmax.f32 %v4742_v29, %v2361_v60  ;;  %v2461_v28 = vmax.f32 %v4779_v11, %v2441_v52  ;;  %v2522_v25 = vpop.permute.xlu1 %2521 }
 0x298   : > { %v2525_v8 = vadd.f32 %v2487_v34, %v2461_v28  ;;  %v2530_v20 = vadd.f32 %v2502_v22, %v2466_v23 }
 0x29a   : > { %v2541_v3 = vmax.f32 %v2525_v8, 0.0  ;;  %v2546_v6 = vmax.f32 %v2530_v20, 0.0 }
 0x29b   : > { %v2363_v61 = vpop.f32.mrf.mxu2  ;;  %v2442_v56 = vpop.f32.mrf.mxu3 }
 0x29c   : > { %v2364_v41 = vadd.f32 %v2363_v61, %v2335_v45  ;;  %v2387_v5 = vpop.f32.mrf.mxu0  ;;  %v2556_v9 = vpack.c.bf16 %v2541_v3, %v2540_v62  ;;  %v2443_v58 = vadd.f32 %v2442_v56, %v2414_v40  ;;  %v2416_v16 = vpop.f32.mrf.mxu1 }
 0x29d   : > { %v2417_v53 = vadd.f32 %v2416_v16, %v2387_v5  ;;  %v2512_v5 = vpop.permute.xlu2 %2511 }
 0x29e   : > { %v2468_v29 = vmax.f32 %v4752_v19, %v2364_v41  ;;  %2564 = vst [vmem:[%s4835_s21] sm:$0xff] %v2556_v9  ;;  %v2463_v11 = vmax.f32 %v4785_v59, %v2443_v58 }
 0x2a0   : > { %v2527_v26 = vadd.f32 %v2492_v54, %v2463_v11 }
 0x2a2   : > { %v2543_v38 = vmax.f32 %v2527_v26, 0.0 }
 0x2a3   : > { %v2365_v47 = vpop.f32.mrf.mxu2  ;;  %v2445_v10 = vpop.f32.mrf.mxu3 }
 0x2a4   : > { %v2366_v7 = vadd.f32 %v2365_v47, %v2337_v49  ;;  %v2389_v46 = vpop.f32.mrf.mxu0  ;;  %v2557_v19 = vpack.c.bf16 %v2543_v38, %v2542_v27  ;;  %v2446_v43 = vadd.f32 %v2445_v10, %v2417_v53  ;;  %v2418_v57 = vpop.f32.mrf.mxu1 }
 0x2a5   : > { %v2419_v0 = vadd.f32 %v2418_v57, %v2389_v46 }
 0x2a6   : > { %v2470_v1 = vmax.f32 %v4759_v13, %v2366_v7  ;;  %2565 = vst [vmem:[%s4835_s21 + $0x8] sm:$0xff] %v2557_v19  ;;  %v2465_v59 = vmax.f32 %v4790_v30, %v2446_v43 }
 0x2a8   : > { %v2529_v63 = vadd.f32 %v2497_v50, %v2465_v59  ;;  %v2534_v50 = vadd.f32 %v2512_v5, %v2470_v1 }
 0x2aa   : > { %v2545_v42 = vmax.f32 %v2529_v63, 0.0  ;;  %v2550_v53 = vmax.f32 %v2534_v50, 0.0 }
 0x2ab   : > { %v2368_v34 = vpop.f32.mrf.mxu2  ;;  %v2447_v24 = vpop.f32.mrf.mxu3 }
 0x2ac   : > { %v2369_v33 = vadd.f32 %v2368_v34, %v2340_v2  ;;  %v2392_v36 = vpop.f32.mrf.mxu0  ;;  %v2558_v60 = vpack.c.bf16 %v2545_v42, %v2544_v12  ;;  %v2448_v35 = vadd.f32 %v2447_v24, %v2419_v0  ;;  %v2421_v13 = vpop.f32.mrf.mxu1 }
 0x2ad   : > { %v2422_v4 = vadd.f32 %v2421_v13, %v2392_v36 }
 0x2ae   : > { %v2472_v55 = vmax.f32 %v4766_v51, %v2369_v33  ;;  %2566 = vst [vmem:[%s4835_s21 + $0x10] sm:$0xff] %v2558_v60  ;;  %v2467_v30 = vmax.f32 %v4795_v32, %v2448_v35  ;;  %v2532_v32 = vadd.f32 %v2507_v37, %v2468_v29 }
 0x2b0   : > { %v2531_v52 = vadd.f32 %v2502_v22, %v2467_v30  ;;  %v2548_v56 = vmax.f32 %v2532_v32, 0.0 }
 0x2b2   : > { %v2547_v28 = vmax.f32 %v2531_v52, 0.0 }
 0x2b3   : > { %v2370_v8 = vpop.f32.mrf.mxu2  ;;  %v2450_v62 = vpop.f32.mrf.mxu3 }
 0x2b4   : > { %v2371_v45 = vadd.f32 %v2370_v8, %v2342_v31  ;;  %v2394_v54 = vpop.f32.mrf.mxu0  ;;  %v2559_v3 = vpack.c.bf16 %v2547_v28, %v2546_v6  ;;  %v2451_v40 = vadd.f32 %v2450_v62, %v2422_v4  ;;  %v2423_v51 = vpop.f32.mrf.mxu1 }
 0x2b5   : > { %v2424_v48 = vadd.f32 %v2423_v51, %v2394_v54  ;;  %v2628_v24 = vld [vmem:[%s4835_s21 + $0x10] sm:$0xff] (%p3739_p5) }
 0x2b6   : > { %v2474_v23 = vmax.f32 %v4773_v39, %v2371_v45  ;;  %2567 = vst [vmem:[%s4835_s21 + $0x18] sm:$0xff] %v2559_v3  ;;  %v2469_v61 = vmax.f32 %v4800_v17, %v2451_v40  ;;  %v2517_v17 = vpop.permute.xlu0 %2516 }
 0x2b7   : > { %v2536_v7 = vadd.f32 %v2517_v17, %v2472_v55  ;;  %2629 = vst [vmem:[%s2581_s23 + $0x20] sm:$0xff] (%p3739_p5), %v2628_v24 }
 0x2b8   : > { %v2533_v41 = vadd.f32 %v2507_v37, %v2469_v61  ;;  %v2538_v12 = vadd.f32 %v2522_v25, %v2474_v23 }
 0x2b9   : > { %v2552_v57 = vmax.f32 %v2536_v7, 0.0 }
 0x2ba   : > { %v2549_v14 = vmax.f32 %v2533_v41, 0.0  ;;  %v2554_v0 = vmax.f32 %v2538_v12, 0.0 }
 0x2bb   : > { %v2452_v9 = vpop.f32.mrf.mxu3 }
 0x2bc   : > { %v2560_v58 = vpack.c.bf16 %v2549_v14, %v2548_v56  ;;  %v2453_v16 = vadd.f32 %v2452_v9, %v2424_v48  ;;  %v2397_v18 = vpop.f32.mrf.mxu0  ;;  %v2426_v11 = vpop.f32.mrf.mxu1 }
 0x2bd   : > { %v2427_v29 = vadd.f32 %v2426_v11, %v2397_v18  ;;  %v2630_v36 = vld [vmem:[%s4835_s21 + $0x18] sm:$0xff] (%p3739_p5) }
 0x2be   : > { %2568 = vst [vmem:[%s4835_s21 + $0x20] sm:$0xff] %v2560_v58  ;;  %v2471_v26 = vmax.f32 %v4807_v21, %v2453_v16 }
 0x2bf   : > { %2631 = vst [vmem:[%s2581_s23 + $0x30] sm:$0xff] (%p3739_p5), %v2630_v36 }
 0x2c0   : > { %v2535_v39 = vadd.f32 %v2512_v5, %v2471_v26 }
 0x2c2   : > { %v2551_v49 = vmax.f32 %v2535_v39, 0.0 }
 0x2c3   : > { %v2455_v27 = vpop.f32.mrf.mxu3 }
 0x2c4   : > { %v2561_v38 = vpack.c.bf16 %v2551_v49, %v2550_v53  ;;  %v2456_v47 = vadd.f32 %v2455_v27, %v2427_v29  ;;  %v2399_v46 = vpop.f32.mrf.mxu0  ;;  %v2428_v19 = vpop.f32.mrf.mxu1 }
 0x2c5   : > { %v2429_v21 = vadd.f32 %v2428_v19, %v2399_v46  ;;  %v2632_v60 = vld [vmem:[%s4835_s21 + $0x20] sm:$0xff] (%p3739_p5) }
 0x2c6   : > { %2569 = vst [vmem:[%s4835_s21 + $0x28] sm:$0xff] %v2561_v38  ;;  %v2473_v10 = vmax.f32 %v4815_v15, %v2456_v47  ;;  %v2624_v15 = vld [vmem:[%s4835_s21] sm:$0xff] (%p3739_p5) }
 0x2c7   : > { %2625 = vst [vmem:[%s2581_s23] sm:$0xff] (%p3739_p5), %v2624_v15 }
 0x2c8   : > { %v2537_v43 = vadd.f32 %v2517_v17, %v2473_v10  ;;  %2633 = vst [vmem:[%s2581_s23 + $0x40] sm:$0xff] (%p3739_p5), %v2632_v60 }
 0x2ca   : > { %v2553_v1 = vmax.f32 %v2537_v43, 0.0 }
 0x2cb   : > { %v2457_v59 = vpop.f32.mrf.mxu3 }
 0x2cc   : > { %v2562_v63 = vpack.c.bf16 %v2553_v1, %v2552_v57  ;;  %v2458_v2 = vadd.f32 %v2457_v59, %v2429_v21 }
 0x2cd   : > { %v2634_v35 = vld [vmem:[%s4835_s21 + $0x28] sm:$0xff] (%p3739_p5) }
 0x2ce   : > { %2570 = vst [vmem:[%s4835_s21 + $0x30] sm:$0xff] %v2562_v63  ;;  %v2475_v22 = vmax.f32 %v4825_v44, %v2458_v2  ;;  %v2626_v44 = vld [vmem:[%s4835_s21 + $0x8] sm:$0xff] (%p3739_p5) }
 0x2cf   : > { %2627 = vst [vmem:[%s2581_s23 + $0x10] sm:$0xff] (%p3739_p5), %v2626_v44 }
 0x2d0   : > { %v2539_v42 = vadd.f32 %v2522_v25, %v2475_v22  ;;  %2635 = vst [vmem:[%s2581_s23 + $0x50] sm:$0xff] (%p3739_p5), %v2634_v35 }
 0x2d2   : > { %v2555_v34 = vmax.f32 %v2539_v42, 0.0  ;;  %2578 = sbr.rel (!%p3739_p5) target bundleno = 735 (0x2df), region = 74 }
 0x2d4   : > { %v2563_v33 = vpack.c.bf16 %v2555_v34, %v2554_v0 }
 0x2d5   : > { %v2636_v13 = vld [vmem:[%s4835_s21 + $0x30] sm:$0xff] (%p3739_p5) }
 0x2d6   : > { %2571 = vst [vmem:[%s4835_s21 + $0x38] sm:$0xff] %v2563_v33 }
 0x2d7   : > { %2637 = vst [vmem:[%s2581_s23 + $0x60] sm:$0xff] %v2636_v13 }
 0x2dd   : > { %v2638_v55 = vld [vmem:[%s4835_s21 + $0x38] sm:$0xff] }
 0x2de   : > { %2639 = vst [vmem:[%s2581_s23 + $0x70] sm:$0xff] %v2638_v55 }
 0x2df PF: > { %p10_p10 = scmp.ge.s32.totalorder %s3726_s16, 4   ;;  %s4898_s12 = smov %s3682_s13 }
 0x2e0   : > { %s4899_s13 = smov %s3737_s19  ;;  %s4900_s14 = smov %s3726_s16 }
 0x2e1   :  { %12 = sbr.rel (!%p10_p10) target bundleno = 2 (0x2), region = 146 }

// kernel: simple_cnn_forward.5
= control target key start
LH: loop header
LB: loop body
LE: loop exit
PB: predicated region body
PF: predicated region fallthrough
CT: control target
= control target key end

     0   :  { %s10276_s0 = inlined_call_operand.vmem [shape: bf16[8,4096], index: 0, kind: input, shape index: {}]   ;;  %s10277_s1 = inlined_call_operand.vmem [shape: bf16[4096,256], index: 1, kind: input, shape index: {}]   ;;  %s10278_s2 = inlined_call_operand.vmem [shape: f32[1,256], index: 2, kind: input, shape index: {}]   ;;  %s10279_s3 = inlined_call_operand.vmem [shape: bf16[256,128], index: 3, kind: input, shape index: {}]   ;;  %s10280_s4 = inlined_call_operand.vmem [shape: f32[1,128], index: 4, kind: input, shape index: {}]   ;;  %s10281_s5 = inlined_call_operand.hbm [shape: f32[8,128], index: 5, kind: output, shape index: {}]  }
   0x1   :  { %v4296_v0 = vld [vmem:[%s10277_s1 + $0x70] sm:$0xf]  ;;  %v6365_v1 = vld [vmem:[%s10277_s1 + $0x74] sm:$0xf0]  ;;  %v4288_v11 = vld [vmem:[%s10277_s1 + $0x60] sm:$0xf] }
   0x2   :  { %v4360_v2 = vld [vmem:[%s10277_s1 + $0xf0] sm:$0xf]  ;;  %v4297_v3 = vor.u32 %v6365_v1, %v4296_v0  ;;  %v6381_v4 = vld [vmem:[%s10277_s1 + $0xf4] sm:$0xf0]  ;;  %v6363_v13 = vld [vmem:[%s10277_s1 + $0x64] sm:$0xf0] }
   0x3   :  { %v4424_v5 = vld [vmem:[%s10277_s1 + $0x170] sm:$0xf]  ;;  %v6397_v6 = vld [vmem:[%s10277_s1 + $0x174] sm:$0xf0]  ;;  %v4361_v7 = vor.u32 %v6381_v4, %v4360_v2  ;;  %v4352_v14 = vld [vmem:[%s10277_s1 + $0xe0] sm:$0xf]  ;;  %v4289_v16 = vor.u32 %v6363_v13, %v4288_v11 }
   0x4   :  { %v4425_v8 = vor.u32 %v6397_v6, %v4424_v5  ;;  %v4488_v9 = vld [vmem:[%s10277_s1 + $0x1f0] sm:$0xf]  ;;  %v6413_v10 = vld [vmem:[%s10277_s1 + $0x1f4] sm:$0xf0]  ;;  %3227 = vmatpush.bf16.msra.mxu0 %v4297_v3  ;;  %v6379_v15 = vld [vmem:[%s10277_s1 + $0xe4] sm:$0xf0] }
   0x5   :  { %v4489_v12 = vor.u32 %v6413_v10, %v4488_v9  ;;  %3240 = vmatpush.bf16.msra.mxu1 %v4361_v7  ;;  %v4353_v17 = vor.u32 %v6379_v15, %v4352_v14  ;;  %v4416_v18 = vld [vmem:[%s10277_s1 + $0x160] sm:$0xf]  ;;  %v6395_v19 = vld [vmem:[%s10277_s1 + $0x164] sm:$0xf0]  ;;  %v4280_v23 = vld [vmem:[%s10277_s1 + $0x50] sm:$0xf] }
   0x6   :  { %3253 = vmatpush.bf16.msra.mxu2 %v4425_v8  ;;  %v4480_v20 = vld [vmem:[%s10277_s1 + $0x1e0] sm:$0xf]  ;;  %v4417_v21 = vor.u32 %v6395_v19, %v4416_v18  ;;  %v6411_v22 = vld [vmem:[%s10277_s1 + $0x1e4] sm:$0xf0]  ;;  %v6361_v24 = vld [vmem:[%s10277_s1 + $0x54] sm:$0xf0] }
   0x7   :  { %3266 = vmatpush.bf16.msra.mxu3 %v4489_v12  ;;  %v4481_v25 = vor.u32 %v6411_v22, %v4480_v20  ;;  %v4344_v26 = vld [vmem:[%s10277_s1 + $0xd0] sm:$0xf]  ;;  %v6377_v27 = vld [vmem:[%s10277_s1 + $0xd4] sm:$0xf0]  ;;  %v4281_v29 = vor.u32 %v6361_v24, %v4280_v23  ;;  %v4272_v35 = vld [vmem:[%s10277_s1 + $0x40] sm:$0xf] }
   0x8   :  { %v4408_v28 = vld [vmem:[%s10277_s1 + $0x150] sm:$0xf]  ;;  %3228 = vmatpush.bf16.msra.mxu0 %v4289_v16  ;;  %v6393_v30 = vld [vmem:[%s10277_s1 + $0x154] sm:$0xf0]  ;;  %v4345_v33 = vor.u32 %v6377_v27, %v4344_v26  ;;  %v6359_v36 = vld [vmem:[%s10277_s1 + $0x44] sm:$0xf0] }
   0x9   :  { %v4472_v31 = vld [vmem:[%s10277_s1 + $0x1d0] sm:$0xf]  ;;  %v6409_v32 = vld [vmem:[%s10277_s1 + $0x1d4] sm:$0xf0]  ;;  %3241 = vmatpush.bf16.msra.mxu1 %v4353_v17  ;;  %v4409_v34 = vor.u32 %v6393_v30, %v4408_v28  ;;  %v4336_v37 = vld [vmem:[%s10277_s1 + $0xc0] sm:$0xf]  ;;  %v4273_v44 = vor.u32 %v6359_v36, %v4272_v35 }
   0xa   :  { %3254 = vmatpush.bf16.msra.mxu2 %v4417_v21  ;;  %v4473_v38 = vor.u32 %v6409_v32, %v4472_v31  ;;  %v6375_v39 = vld [vmem:[%s10277_s1 + $0xc4] sm:$0xf0]  ;;  %v4400_v40 = vld [vmem:[%s10277_s1 + $0x140] sm:$0xf]  ;;  %v4264_v47 = vld [vmem:[%s10277_s1 + $0x30] sm:$0xf] }
   0xb   :  { %3267 = vmatpush.bf16.msra.mxu3 %v4481_v25  ;;  %v6391_v41 = vld [vmem:[%s10277_s1 + $0x144] sm:$0xf0]  ;;  %v4464_v42 = vld [vmem:[%s10277_s1 + $0x1c0] sm:$0xf]  ;;  %v4337_v45 = vor.u32 %v6375_v39, %v4336_v37  ;;  %v6357_v48 = vld [vmem:[%s10277_s1 + $0x34] sm:$0xf0] }
   0xc   :  { %v6407_v43 = vld [vmem:[%s10277_s1 + $0x1c4] sm:$0xf0]  ;;  %3229 = vmatpush.bf16.msra.mxu0 %v4281_v29  ;;  %v4401_v46 = vor.u32 %v6391_v41, %v4400_v40  ;;  %v4328_v49 = vld [vmem:[%s10277_s1 + $0xb0] sm:$0xf]  ;;  %v6373_v51 = vld [vmem:[%s10277_s1 + $0xb4] sm:$0xf0]  ;;  %v4265_v56 = vor.u32 %v6357_v48, %v4264_v47 }
   0xd   :  { %3242 = vmatpush.bf16.msra.mxu1 %v4345_v33  ;;  %v4465_v50 = vor.u32 %v6407_v43, %v4464_v42  ;;  %v4392_v52 = vld [vmem:[%s10277_s1 + $0x130] sm:$0xf]  ;;  %v6389_v53 = vld [vmem:[%s10277_s1 + $0x134] sm:$0xf0]  ;;  %v4329_v57 = vor.u32 %v6373_v51, %v4328_v49  ;;  %v4256_v59 = vld [vmem:[%s10277_s1 + $0x20] sm:$0xf] }
   0xe   :  { %3255 = vmatpush.bf16.msra.mxu2 %v4409_v34  ;;  %v4456_v54 = vld [vmem:[%s10277_s1 + $0x1b0] sm:$0xf]  ;;  %v6405_v55 = vld [vmem:[%s10277_s1 + $0x1b4] sm:$0xf0]  ;;  %v4393_v58 = vor.u32 %v6389_v53, %v4392_v52  ;;  %v6355_v60 = vld [vmem:[%s10277_s1 + $0x24] sm:$0xf0] }
   0xf   :  { %3268 = vmatpush.bf16.msra.mxu3 %v4473_v38  ;;  %v4320_v61 = vld [vmem:[%s10277_s1 + $0xa0] sm:$0xf]  ;;  %v4457_v62 = vor.u32 %v6405_v55, %v4456_v54  ;;  %v6371_v63 = vld [vmem:[%s10277_s1 + $0xa4] sm:$0xf0]  ;;  %v4257_v4 = vor.u32 %v6355_v60, %v4256_v59  ;;  %v4248_v7 = vld [vmem:[%s10277_s1 + $0x10] sm:$0xf] }
  0x10   :  { %3230 = vmatpush.bf16.msra.mxu0 %v4273_v44  ;;  %v4384_v0 = vld [vmem:[%s10277_s1 + $0x120] sm:$0xf]  ;;  %v6387_v1 = vld [vmem:[%s10277_s1 + $0x124] sm:$0xf0]  ;;  %v4321_v5 = vor.u32 %v6371_v63, %v4320_v61  ;;  %v6353_v8 = vld [vmem:[%s10277_s1 + $0x14] sm:$0xf0] }
  0x11   :  { %3243 = vmatpush.bf16.msra.mxu1 %v4337_v45  ;;  %v4448_v2 = vld [vmem:[%s10277_s1 + $0x1a0] sm:$0xf]  ;;  %v6403_v3 = vld [vmem:[%s10277_s1 + $0x1a4] sm:$0xf0]  ;;  %v4385_v6 = vor.u32 %v6387_v1, %v4384_v0  ;;  %v4312_v9 = vld [vmem:[%s10277_s1 + $0x90] sm:$0xf]  ;;  %v4249_v16 = vor.u32 %v6353_v8, %v4248_v7 }
  0x12   :  { %3256 = vmatpush.bf16.msra.mxu2 %v4401_v46  ;;  %v4449_v10 = vor.u32 %v6403_v3, %v4448_v2  ;;  %v6369_v11 = vld [vmem:[%s10277_s1 + $0x94] sm:$0xf0]  ;;  %v4376_v12 = vld [vmem:[%s10277_s1 + $0x110] sm:$0xf]  ;;  %v4240_v17 = vld [vmem:[%s10277_s1] sm:$0xf] }
  0x13   :  { %3269 = vmatpush.bf16.msra.mxu3 %v4465_v50  ;;  %v6385_v13 = vld [vmem:[%s10277_s1 + $0x114] sm:$0xf0]  ;;  %v4440_v14 = vld [vmem:[%s10277_s1 + $0x190] sm:$0xf]  ;;  %v6351_v18 = vld [vmem:[%s10277_s1 + $0x4] sm:$0xf0]  ;;  %v4313_v19 = vor.u32 %v6369_v11, %v4312_v9 }
  0x14   :  { %3231 = vmatpush.bf16.msra.mxu0 %v4265_v56  ;;  %v6401_v15 = vld [vmem:[%s10277_s1 + $0x194] sm:$0xf0]  ;;  %v4377_v20 = vor.u32 %v6385_v13, %v4376_v12  ;;  %v4304_v21 = vld [vmem:[%s10277_s1 + $0x80] sm:$0xf]  ;;  %v6367_v22 = vld [vmem:[%s10277_s1 + $0x84] sm:$0xf0]  ;;  %v4241_v31 = vor.u32 %v6351_v18, %v4240_v17 }
  0x15   :  { %3244 = vmatpush.bf16.msra.mxu1 %v4329_v57  ;;  %v4368_v23 = vld [vmem:[%s10277_s1 + $0x100] sm:$0xf]  ;;  %v4441_v24 = vor.u32 %v6401_v15, %v4440_v14  ;;  %v6383_v25 = vld [vmem:[%s10277_s1 + $0x104] sm:$0xf0]  ;;  %v4552_v28 = vld [vmem:[%s10277_s1 + $0x270] sm:$0xf]  ;;  %v4305_v35 = vor.u32 %v6367_v22, %v4304_v21 }
  0x16   :  { %3257 = vmatpush.bf16.msra.mxu2 %v4393_v58  ;;  %v4432_v26 = vld [vmem:[%s10277_s1 + $0x180] sm:$0xf]  ;;  %v6399_v27 = vld [vmem:[%s10277_s1 + $0x184] sm:$0xf0]  ;;  %v6429_v29 = vld [vmem:[%s10277_s1 + $0x274] sm:$0xf0]  ;;  %v4369_v36 = vor.u32 %v6383_v25, %v4368_v23 }
  0x17   :  { %3270 = vmatpush.bf16.msra.mxu3 %v4457_v62  ;;  %v4616_v30 = vld [vmem:[%s10277_s1 + $0x2f0] sm:$0xf]  ;;  %v6445_v32 = vld [vmem:[%s10277_s1 + $0x2f4] sm:$0xf0]  ;;  %v4433_v39 = vor.u32 %v6399_v27, %v4432_v26  ;;  %v4553_v40 = vor.u32 %v6429_v29, %v4552_v28  ;;  %v4544_v43 = vld [vmem:[%s10277_s1 + $0x260] sm:$0xf] }
  0x18   :  { %3232 = vmatpush.bf16.msra.mxu0 %v4257_v4  ;;  %v4680_v33 = vld [vmem:[%s10277_s1 + $0x370] sm:$0xf]  ;;  %v6461_v34 = vld [vmem:[%s10277_s1 + $0x374] sm:$0xf0]  ;;  %v4617_v41 = vor.u32 %v6445_v32, %v4616_v30  ;;  %v6427_v44 = vld [vmem:[%s10277_s1 + $0x264] sm:$0xf0] }
  0x19   :  { %3245 = vmatpush.bf16.msra.mxu1 %v4321_v5  ;;  %v4744_v37 = vld [vmem:[%s10277_s1 + $0x3f0] sm:$0xf]  ;;  %v6477_v38 = vld [vmem:[%s10277_s1 + $0x3f4] sm:$0xf0]  ;;  %v4681_v42 = vor.u32 %v6461_v34, %v4680_v33  ;;  %v4608_v45 = vld [vmem:[%s10277_s1 + $0x2e0] sm:$0xf]  ;;  %v4545_v52 = vor.u32 %v6427_v44, %v4544_v43 }
  0x1a   :  { %3258 = vmatpush.bf16.msra.mxu2 %v4385_v6  ;;  %v4745_v46 = vor.u32 %v6477_v38, %v4744_v37  ;;  %v6443_v47 = vld [vmem:[%s10277_s1 + $0x2e4] sm:$0xf0]  ;;  %v4672_v48 = vld [vmem:[%s10277_s1 + $0x360] sm:$0xf]  ;;  %v4536_v53 = vld [vmem:[%s10277_s1 + $0x250] sm:$0xf] }
  0x1b   :  { %3271 = vmatpush.bf16.msra.mxu3 %v4449_v10  ;;  %v6459_v49 = vld [vmem:[%s10277_s1 + $0x364] sm:$0xf0]  ;;  %v4736_v50 = vld [vmem:[%s10277_s1 + $0x3e0] sm:$0xf]  ;;  %v4609_v54 = vor.u32 %v6443_v47, %v4608_v45  ;;  %v6425_v56 = vld [vmem:[%s10277_s1 + $0x254] sm:$0xf0] }
  0x1c   :  { %3233 = vmatpush.bf16.msra.mxu0 %v4249_v16  ;;  %v6475_v51 = vld [vmem:[%s10277_s1 + $0x3e4] sm:$0xf0]  ;;  %v4673_v55 = vor.u32 %v6459_v49, %v4672_v48  ;;  %v4600_v57 = vld [vmem:[%s10277_s1 + $0x2d0] sm:$0xf]  ;;  %v6441_v58 = vld [vmem:[%s10277_s1 + $0x2d4] sm:$0xf0]  ;;  %v4537_v0 = vor.u32 %v6425_v56, %v4536_v53 }
  0x1d   :  { %3246 = vmatpush.bf16.msra.mxu1 %v4313_v19  ;;  %v4737_v59 = vor.u32 %v6475_v51, %v4736_v50  ;;  %v4664_v60 = vld [vmem:[%s10277_s1 + $0x350] sm:$0xf]  ;;  %v6457_v61 = vld [vmem:[%s10277_s1 + $0x354] sm:$0xf0]  ;;  %v4601_v1 = vor.u32 %v6441_v58, %v4600_v57  ;;  %v22_v2 = vld [vmem:[%s10276_s0 + $0x8] sm:$0xff] }
  0x1e   :  { %3259 = vmatpush.bf16.msra.mxu2 %v4377_v20  ;;  %v4728_v62 = vld [vmem:[%s10277_s1 + $0x3d0] sm:$0xf]  ;;  %v6473_v63 = vld [vmem:[%s10277_s1 + $0x3d4] sm:$0xf0]  ;;  %v21_v3 = vld [vmem:[%s10276_s0] sm:$0xff]  ;;  %v4665_v4 = vor.u32 %v6457_v61, %v4664_v60  ;;  %v573_v8 = vunpack.c.l.b16 %v22_v2  ;;  %v574_v10 = vunpack.c.h.b16 %v22_v2 }
  0x1f   :  { %3272 = vmatpush.bf16.msra.mxu3 %v4441_v24  ;;  %v4528_v5 = vld [vmem:[%s10277_s1 + $0x240] sm:$0xf]  ;;  %v6423_v6 = vld [vmem:[%s10277_s1 + $0x244] sm:$0xf0]  ;;  %v571_v9 = vunpack.c.l.b16 %v21_v3  ;;  %v4729_v11 = vor.u32 %v6473_v63, %v4728_v62  ;;  %v572_v15 = vunpack.c.h.b16 %v21_v3  ;;  %v4520_v25 = vld [vmem:[%s10277_s1 + $0x230] sm:$0xf] }
  0x20   :  { %3234 = vmatpush.bf16.msra.mxu0 %v4241_v31  ;;  %v4592_v7 = vld [vmem:[%s10277_s1 + $0x2c0] sm:$0xf]  ;;  %v6439_v12 = vld [vmem:[%s10277_s1 + $0x2c4] sm:$0xf0]  ;;  %v7232_v18 = vpack.c.b16 %v573_v8, %v573_v8  ;;  %v7236_v20 = vpack.c.b16 %v574_v10, %v574_v10  ;;  %v4529_v21 = vor.u32 %v6423_v6, %v4528_v5  ;;  %v6421_v26 = vld [vmem:[%s10277_s1 + $0x234] sm:$0xf0] }
  0x21   :  { %3247 = vmatpush.bf16.msra.mxu1 %v4305_v35  ;;  %v4656_v13 = vld [vmem:[%s10277_s1 + $0x340] sm:$0xf]  ;;  %v6455_v14 = vld [vmem:[%s10277_s1 + $0x344] sm:$0xf0]  ;;  %v7234_v19 = vpack.c.b16 %v571_v9, %v571_v9  ;;  %v7238_v22 = vpack.c.b16 %v572_v15, %v572_v15  ;;  %v4593_v23 = vor.u32 %v6439_v12, %v4592_v7  ;;  %v4584_v27 = vld [vmem:[%s10277_s1 + $0x2b0] sm:$0xf]  ;;  %v4521_v34 = vor.u32 %v6421_v26, %v4520_v25 }
  0x22   :  { %3260 = vmatpush.bf16.msra.mxu2 %v4369_v36  ;;  %v4720_v16 = vld [vmem:[%s10277_s1 + $0x3c0] sm:$0xf]  ;;  %v6471_v17 = vld [vmem:[%s10277_s1 + $0x3c4] sm:$0xf0]  ;;  %v4657_v24 = vor.u32 %v6455_v14, %v4656_v13  ;;  %v6437_v29 = vld [vmem:[%s10277_s1 + $0x2b4] sm:$0xf0] }
  0x23   :  { %3273 = vmatpush.bf16.msra.mxu3 %v4433_v39  ;;  %v4721_v28 = vor.u32 %v6471_v17, %v4720_v16  ;;  %v4648_v30 = vld [vmem:[%s10277_s1 + $0x330] sm:$0xf]  ;;  %v6453_v31 = vld [vmem:[%s10277_s1 + $0x334] sm:$0xf0]  ;;  %3235 = vmatmul.bf16.vlgmr.msra.gmra.mxu0 %v7234_v19  ;;  %v4585_v35 = vor.u32 %v6437_v29, %v4584_v27  ;;  %v4512_v37 = vld [vmem:[%s10277_s1 + $0x220] sm:$0xf] }
  0x24   :  { %3279 = vmatpush.bf16.msrb.mxu0 %v4553_v40  ;;  %v4712_v32 = vld [vmem:[%s10277_s1 + $0x3b0] sm:$0xf]  ;;  %v6469_v33 = vld [vmem:[%s10277_s1 + $0x3b4] sm:$0xf0]  ;;  %3248 = vmatmul.bf16.vlgmr.msra.gmra.mxu1 %v7238_v22  ;;  %v4649_v36 = vor.u32 %v6453_v31, %v4648_v30  ;;  %v6419_v38 = vld [vmem:[%s10277_s1 + $0x224] sm:$0xf0] }
  0x25   :  { %3292 = vmatpush.bf16.msrb.mxu1 %v4617_v41  ;;  %3261 = vmatmul.bf16.vlgmr.msra.gmra.mxu2 %v7232_v18  ;;  %v4576_v39 = vld [vmem:[%s10277_s1 + $0x2a0] sm:$0xf]  ;;  %v4713_v40 = vor.u32 %v6469_v33, %v4712_v32  ;;  %v6435_v41 = vld [vmem:[%s10277_s1 + $0x2a4] sm:$0xf0]  ;;  %v4504_v49 = vld [vmem:[%s10277_s1 + $0x210] sm:$0xf] }
  0x26   :  { %3305 = vmatpush.bf16.msrb.mxu2 %v4681_v42  ;;  %3274 = vmatmul.bf16.vlgmr.msra.gmra.mxu3 %v7236_v20  ;;  %v4640_v42 = vld [vmem:[%s10277_s1 + $0x320] sm:$0xf]  ;;  %v6451_v43 = vld [vmem:[%s10277_s1 + $0x324] sm:$0xf0]  ;;  %v4577_v47 = vor.u32 %v6435_v41, %v4576_v39  ;;  %v6417_v50 = vld [vmem:[%s10277_s1 + $0x214] sm:$0xf0] }
  0x27   :  { %3318 = vmatpush.bf16.msrb.mxu3 %v4745_v46  ;;  %v4704_v44 = vld [vmem:[%s10277_s1 + $0x3a0] sm:$0xf]  ;;  %v6467_v45 = vld [vmem:[%s10277_s1 + $0x3a4] sm:$0xf0]  ;;  %v4513_v46 = vor.u32 %v6419_v38, %v4512_v37  ;;  %v4641_v48 = vor.u32 %v6451_v43, %v4640_v42  ;;  %v4568_v51 = vld [vmem:[%s10277_s1 + $0x290] sm:$0xf] }
  0x28   :  { %3280 = vmatpush.bf16.msrb.mxu0 %v4545_v52  ;;  %v4705_v52 = vor.u32 %v6467_v45, %v4704_v44  ;;  %v6433_v53 = vld [vmem:[%s10277_s1 + $0x294] sm:$0xf0]  ;;  %v4696_v56 = vld [vmem:[%s10277_s1 + $0x390] sm:$0xf]  ;;  %v4496_v58 = vld [vmem:[%s10277_s1 + $0x200] sm:$0xf] }
  0x29   :  { %3293 = vmatpush.bf16.msrb.mxu1 %v4609_v54  ;;  %v4632_v54 = vld [vmem:[%s10277_s1 + $0x310] sm:$0xf]  ;;  %v6465_v57 = vld [vmem:[%s10277_s1 + $0x394] sm:$0xf0]  ;;  %v6415_v60 = vld [vmem:[%s10277_s1 + $0x204] sm:$0xf0]  ;;  %v4569_v63 = vor.u32 %v6433_v53, %v4568_v51 }
  0x2a   :  { %3306 = vmatpush.bf16.msrb.mxu2 %v4673_v55  ;;  %v6449_v55 = vld [vmem:[%s10277_s1 + $0x314] sm:$0xf0]  ;;  %v4560_v61 = vld [vmem:[%s10277_s1 + $0x280] sm:$0xf]  ;;  %v6431_v62 = vld [vmem:[%s10277_s1 + $0x284] sm:$0xf0] }
  0x2b   :  { %3319 = vmatpush.bf16.msrb.mxu3 %v4737_v59  ;;  %v4505_v59 = vor.u32 %v6417_v50, %v4504_v49  ;;  %v6447_v2 = vld [vmem:[%s10277_s1 + $0x304] sm:$0xf0]  ;;  %v24_v3 = vld [vmem:[%s10276_s0 + $0x18] sm:$0xff]  ;;  %v4688_v5 = vld [vmem:[%s10277_s1 + $0x380] sm:$0xf]  ;;  %v4561_v16 = vor.u32 %v6431_v62, %v4560_v61 }
  0x2c   :  { %3281 = vmatpush.bf16.msrb.mxu0 %v4537_v0  ;;  %v4633_v0 = vor.u32 %v6449_v55, %v4632_v54  ;;  %v6463_v6 = vld [vmem:[%s10277_s1 + $0x384] sm:$0xf0]  ;;  %v23_v7 = vld [vmem:[%s10276_s0 + $0x10] sm:$0xff]  ;;  %v6493_v9 = vld [vmem:[%s10277_s1 + $0x474] sm:$0xf0]  ;;  %v577_v15 = vunpack.c.l.b16 %v24_v3  ;;  %v578_v25 = vunpack.c.h.b16 %v24_v3 }
  0x2d   :  { %3294 = vmatpush.bf16.msrb.mxu1 %v4601_v1  ;;  %v4624_v1 = vld [vmem:[%s10277_s1 + $0x300] sm:$0xf]  ;;  %v4808_v8 = vld [vmem:[%s10277_s1 + $0x470] sm:$0xf]  ;;  %v6509_v12 = vld [vmem:[%s10277_s1 + $0x4f4] sm:$0xf0]  ;;  %v4689_v26 = vor.u32 %v6463_v6, %v4688_v5 }
  0x2e   :  { %3307 = vmatpush.bf16.msrb.mxu2 %v4665_v4  ;;  %v4697_v4 = vor.u32 %v6465_v57, %v4696_v56  ;;  %v4872_v10 = vld [vmem:[%s10277_s1 + $0x4f0] sm:$0xf]  ;;  %v6525_v14 = vld [vmem:[%s10277_s1 + $0x574] sm:$0xf0]  ;;  %v4625_v17 = vor.u32 %v6447_v2, %v4624_v1  ;;  %v4809_v27 = vor.u32 %v6493_v9, %v4808_v8  ;;  %v4800_v31 = vld [vmem:[%s10277_s1 + $0x460] sm:$0xf]  ;;  %v7388_v38 = vpack.c.b16 %v577_v15, %v577_v15 }
  0x2f   :  { %3320 = vmatpush.bf16.msrb.mxu3 %v4729_v11  ;;  %v4497_v11 = vor.u32 %v6415_v60, %v4496_v58  ;;  %v4936_v13 = vld [vmem:[%s10277_s1 + $0x570] sm:$0xf]  ;;  %v4873_v29 = vor.u32 %v6509_v12, %v4872_v10  ;;  %v6491_v32 = vld [vmem:[%s10277_s1 + $0x464] sm:$0xf0]  ;;  %v4864_v33 = vld [vmem:[%s10277_s1 + $0x4e0] sm:$0xf]  ;;  %v7398_v42 = vpack.c.b16 %v578_v25, %v578_v25 }
  0x30   :  { %3282 = vmatpush.bf16.msrb.mxu0 %v4529_v21  ;;  %v5000_v21 = vld [vmem:[%s10277_s1 + $0x5f0] sm:$0xf]  ;;  %v4937_v30 = vor.u32 %v6525_v14, %v4936_v13  ;;  %v6523_v37 = vld [vmem:[%s10277_s1 + $0x564] sm:$0xf0]  ;;  %v4992_v39 = vld [vmem:[%s10277_s1 + $0x5e0] sm:$0xf]  ;;  %v4801_v43 = vor.u32 %v6491_v32, %v4800_v31 }
  0x31   :  { %3295 = vmatpush.bf16.msrb.mxu1 %v4593_v23  ;;  %v6541_v23 = vld [vmem:[%s10277_s1 + $0x5f4] sm:$0xf0]  ;;  %v4856_v49 = vld [vmem:[%s10277_s1 + $0x4d0] sm:$0xf]  ;;  %v6487_v60 = vld [vmem:[%s10277_s1 + $0x444] sm:$0xf0] }
  0x32   :  { %3308 = vmatpush.bf16.msrb.mxu2 %v4657_v24  ;;  %v575_v24 = vunpack.c.l.b16 %v23_v7  ;;  %v6505_v51 = vld [vmem:[%s10277_s1 + $0x4d4] sm:$0xf0]  ;;  %v4984_v54 = vld [vmem:[%s10277_s1 + $0x5d0] sm:$0xf]  ;;  %v4848_v61 = vld [vmem:[%s10277_s1 + $0x4c0] sm:$0xf] }
  0x33   :  { %3321 = vmatpush.bf16.msrb.mxu3 %v4721_v28  ;;  %v576_v28 = vunpack.c.h.b16 %v23_v7  ;;  %v6521_v53 = vld [vmem:[%s10277_s1 + $0x554] sm:$0xf0]  ;;  %v4857_v57 = vor.u32 %v6505_v51, %v4856_v49  ;;  %v6519_v1 = vld [vmem:[%s10277_s1 + $0x544] sm:$0xf0]  ;;  %v4976_v2 = vld [vmem:[%s10277_s1 + $0x5c0] sm:$0xf] }
  0x34   :  { %3283 = vmatpush.bf16.msrb.mxu0 %v4521_v34  ;;  %v5001_v34 = vor.u32 %v6541_v23, %v5000_v21  ;;  %v7396_v41 = vpack.c.b16 %v575_v24, %v575_v24  ;;  %v6537_v55 = vld [vmem:[%s10277_s1 + $0x5d4] sm:$0xf0]  ;;  %v6535_v3 = vld [vmem:[%s10277_s1 + $0x5c4] sm:$0xf0]  ;;  %v4776_v7 = vld [vmem:[%s10277_s1 + $0x430] sm:$0xf] }
  0x35   :  { %3296 = vmatpush.bf16.msrb.mxu1 %v4585_v35  ;;  %v6507_v35 = vld [vmem:[%s10277_s1 + $0x4e4] sm:$0xf0]  ;;  %v7400_v44 = vpack.c.b16 %v576_v28, %v576_v28  ;;  %v4985_v62 = vor.u32 %v6537_v55, %v4984_v54  ;;  %v6485_v8 = vld [vmem:[%s10277_s1 + $0x434] sm:$0xf0]  ;;  %v4840_v9 = vld [vmem:[%s10277_s1 + $0x4b0] sm:$0xf]  ;;  %v4977_v10 = vor.u32 %v6535_v3, %v4976_v2 }
  0x36   :  { %3309 = vmatpush.bf16.msrb.mxu2 %v4649_v36  ;;  %v4928_v36 = vld [vmem:[%s10277_s1 + $0x560] sm:$0xf]  ;;  %v4865_v45 = vor.u32 %v6507_v35, %v4864_v33  ;;  %v4904_v12 = vld [vmem:[%s10277_s1 + $0x530] sm:$0xf]  ;;  %v6517_v13 = vld [vmem:[%s10277_s1 + $0x534] sm:$0xf0] }
  0x37   :  { %3322 = vmatpush.bf16.msrb.mxu3 %v4713_v40  ;;  %v6539_v40 = vld [vmem:[%s10277_s1 + $0x5e4] sm:$0xf0]  ;;  %v4968_v14 = vld [vmem:[%s10277_s1 + $0x5b0] sm:$0xf]  ;;  %v6533_v15 = vld [vmem:[%s10277_s1 + $0x5b4] sm:$0xf0]  ;;  %v4905_v21 = vor.u32 %v6517_v13, %v4904_v12 }
  0x38   :  { %3284 = vmatpush.bf16.msrb.mxu0 %v4513_v46  ;;  %v4929_v46 = vor.u32 %v6523_v37, %v4928_v36  ;;  %v4993_v50 = vor.u32 %v6539_v40, %v4992_v39  ;;  %v4768_v23 = vld [vmem:[%s10277_s1 + $0x420] sm:$0xf]  ;;  %v6483_v24 = vld [vmem:[%s10277_s1 + $0x424] sm:$0xf0]  ;;  %v4760_v33 = vld [vmem:[%s10277_s1 + $0x410] sm:$0xf] }
  0x39   :  { %3297 = vmatpush.bf16.msrb.mxu1 %v4577_v47  ;;  %v4792_v47 = vld [vmem:[%s10277_s1 + $0x450] sm:$0xf]  ;;  %v4832_v25 = vld [vmem:[%s10277_s1 + $0x4a0] sm:$0xf]  ;;  %v6531_v31 = vld [vmem:[%s10277_s1 + $0x5a4] sm:$0xf0]  ;;  %v4769_v32 = vor.u32 %v6483_v24, %v4768_v23 }
  0x3a   :  { %3310 = vmatpush.bf16.msrb.mxu2 %v4641_v48  ;;  %v6489_v48 = vld [vmem:[%s10277_s1 + $0x454] sm:$0xf0]  ;;  %v4896_v28 = vld [vmem:[%s10277_s1 + $0x520] sm:$0xf]  ;;  %v4824_v37 = vld [vmem:[%s10277_s1 + $0x490] sm:$0xf] }
  0x3b   :  { %3323 = vmatpush.bf16.msrb.mxu3 %v4705_v52  ;;  %v4920_v52 = vld [vmem:[%s10277_s1 + $0x550] sm:$0xf]  ;;  %v4793_v56 = vor.u32 %v6489_v48, %v4792_v47  ;;  %v6497_v39 = vld [vmem:[%s10277_s1 + $0x494] sm:$0xf0]  ;;  %v4752_v48 = vld [vmem:[%s10277_s1 + $0x400] sm:$0xf] }
  0x3c   :  { %3285 = vmatpush.bf16.msrb.mxu0 %v4505_v59  ;;  %v4921_v58 = vor.u32 %v6521_v53, %v4920_v52  ;;  %v4784_v59 = vld [vmem:[%s10277_s1 + $0x440] sm:$0xf]  ;;  %v4888_v40 = vld [vmem:[%s10277_s1 + $0x510] sm:$0xf]  ;;  %v6529_v47 = vld [vmem:[%s10277_s1 + $0x594] sm:$0xf0] }
  0x3d   :  { %3298 = vmatpush.bf16.msrb.mxu1 %v4569_v63  ;;  %v6503_v63 = vld [vmem:[%s10277_s1 + $0x4c4] sm:$0xf0] }
  0x3e   :  { %3311 = vmatpush.bf16.msrb.mxu2 %v4633_v0  ;;  %v4912_v0 = vld [vmem:[%s10277_s1 + $0x540] sm:$0xf]  ;;  %v4849_v5 = vor.u32 %v6503_v63, %v4848_v61 }
  0x3f   :  { %3324 = vmatpush.bf16.msrb.mxu3 %v4697_v4  ;;  %v4785_v4 = vor.u32 %v6487_v60, %v4784_v59  ;;  %v4913_v6 = vor.u32 %v6519_v1, %v4912_v0 }
  0x40   :  { %3286 = vmatpush.bf16.msrb.mxu0 %v4497_v11  ;;  %v6501_v11 = vld [vmem:[%s10277_s1 + $0x4b4] sm:$0xf0] }
  0x41   :  { %3299 = vmatpush.bf16.msrb.mxu1 %v4561_v16  ;;  %v4777_v16 = vor.u32 %v6485_v8, %v4776_v7 }
  0x42   :  { %3312 = vmatpush.bf16.msrb.mxu2 %v4625_v17  ;;  %v4841_v17 = vor.u32 %v6501_v11, %v4840_v9 }
  0x43   :  { %3325 = vmatpush.bf16.msrb.mxu3 %v4689_v26  ;;  %3287 = vmatmul.bf16.vlgmr.msrb.gmra.mxu0 %v7396_v41  ;;  %v4969_v26 = vor.u32 %v6533_v15, %v4968_v14 }
  0x44   :  { %3331 = vmatpush.bf16.msra.mxu0 %v4809_v27  ;;  %3300 = vmatmul.bf16.vlgmr.msrb.gmra.mxu1 %v7400_v44  ;;  %v6499_v27 = vld [vmem:[%s10277_s1 + $0x4a4] sm:$0xf0] }
  0x45   :  { %3344 = vmatpush.bf16.msra.mxu1 %v4873_v29  ;;  %3313 = vmatmul.bf16.vlgmr.msrb.gmra.mxu2 %v7388_v38  ;;  %v6515_v29 = vld [vmem:[%s10277_s1 + $0x524] sm:$0xf0]  ;;  %v4833_v35 = vor.u32 %v6499_v27, %v4832_v25 }
  0x46   :  { %3357 = vmatpush.bf16.msra.mxu2 %v4937_v30  ;;  %3326 = vmatmul.bf16.vlgmr.msrb.gmra.mxu3 %v7398_v42  ;;  %v4960_v30 = vld [vmem:[%s10277_s1 + $0x5a0] sm:$0xf]  ;;  %v4897_v36 = vor.u32 %v6515_v29, %v4896_v28 }
  0x47   :  { %3370 = vmatpush.bf16.msra.mxu3 %v5001_v34  ;;  %v6481_v34 = vld [vmem:[%s10277_s1 + $0x414] sm:$0xf0] }
  0x48   :  { %3332 = vmatpush.bf16.msra.mxu0 %v4801_v43  ;;  %v4961_v43 = vor.u32 %v6531_v31, %v4960_v30 }
  0x49   :  { %3345 = vmatpush.bf16.msra.mxu1 %v4865_v45  ;;  %v6513_v45 = vld [vmem:[%s10277_s1 + $0x514] sm:$0xf0] }
  0x4a   :  { %3358 = vmatpush.bf16.msra.mxu2 %v4929_v46  ;;  %v4952_v46 = vld [vmem:[%s10277_s1 + $0x590] sm:$0xf] }
  0x4b   :  { %3371 = vmatpush.bf16.msra.mxu3 %v4993_v50 }
  0x4c   :  { %3333 = vmatpush.bf16.msra.mxu0 %v4793_v56 }
  0x4d   :  { %3346 = vmatpush.bf16.msra.mxu1 %v4857_v57 }
  0x4e   :  { %3359 = vmatpush.bf16.msra.mxu2 %v4921_v58 }
  0x4f   :  { %3372 = vmatpush.bf16.msra.mxu3 %v4985_v62 }
  0x50   :  { %3334 = vmatpush.bf16.msra.mxu0 %v4785_v4 }
  0x51   :  { %3347 = vmatpush.bf16.msra.mxu1 %v4849_v5 }
  0x52   :  { %3360 = vmatpush.bf16.msra.mxu2 %v4913_v6 }
  0x53   :  { %3373 = vmatpush.bf16.msra.mxu3 %v4977_v10 }
  0x54   :  { %3335 = vmatpush.bf16.msra.mxu0 %v4777_v16 }
  0x55   :  { %3348 = vmatpush.bf16.msra.mxu1 %v4841_v17 }
  0x56   :  { %3361 = vmatpush.bf16.msra.mxu2 %v4905_v21 }
  0x57   :  { %3374 = vmatpush.bf16.msra.mxu3 %v4969_v26 }
  0x58   :  { %10 = vsyncpa [#allocation3], 0  ;;  %3336 = vmatpush.bf16.msra.mxu0 %v4769_v32  ;;  %v4761_v49 = vor.u32 %v6481_v34, %v4760_v33  ;;  %v6479_v50 = vld [vmem:[%s10277_s1 + $0x404] sm:$0xf0]  ;;  %v4816_v51 = vld [vmem:[%s10277_s1 + $0x480] sm:$0xf]  ;;  %v4825_v53 = vor.u32 %v6497_v39, %v4824_v37  ;;  %v4889_v54 = vor.u32 %v6513_v45, %v4888_v40  ;;  %v4953_v58 = vor.u32 %v6529_v47, %v4952_v46 }
  0x59   :  { %v6495_v52 = vld [vmem:[%s10277_s1 + $0x484] sm:$0xf0]  ;;  %3349 = vmatpush.bf16.msra.mxu1 %v4833_v35  ;;  %v4880_v55 = vld [vmem:[%s10277_s1 + $0x500] sm:$0xf]  ;;  %v5064_v62 = vld [vmem:[%s10277_s1 + $0x670] sm:$0xf]  ;;  %v4753_v1 = vor.u32 %v6479_v50, %v4752_v48 }
  0x5a   :  { %3362 = vmatpush.bf16.msra.mxu2 %v4897_v36  ;;  %v6511_v56 = vld [vmem:[%s10277_s1 + $0x504] sm:$0xf0]  ;;  %v25_v57 = vld [vmem:[%s10276_s0 + $0x20] sm:$0xff]  ;;  %v6557_v63 = vld [vmem:[%s10277_s1 + $0x674] sm:$0xf0]  ;;  %v4817_v6 = vor.u32 %v6495_v52, %v4816_v51  ;;  %s6907_s29 = smov [#allocation2]  }
  0x5b   :  { %3375 = vmatpush.bf16.msra.mxu3 %v4961_v43  ;;  %v4944_v59 = vld [vmem:[%s10277_s1 + $0x580] sm:$0xf]  ;;  %v6527_v60 = vld [vmem:[%s10277_s1 + $0x584] sm:$0xf0]  ;;  %v5128_v0 = vld [vmem:[%s10277_s1 + $0x6f0] sm:$0xf]  ;;  %v579_v5 = vunpack.c.l.b16 %v25_v57  ;;  %v4881_v7 = vor.u32 %v6511_v56, %v4880_v55  ;;  %v580_v11 = vunpack.c.h.b16 %v25_v57  ;;  %v5065_v13 = vor.u32 %v6557_v63, %v5064_v62 }
  0x5c   :  { %v26_v61 = vld [vmem:[%s10276_s0 + $0x28] sm:$0xff]  ;;  %3337 = vmatpush.bf16.msra.mxu0 %v4761_v49  ;;  %v6573_v2 = vld [vmem:[%s10277_s1 + $0x6f4] sm:$0xf0]  ;;  %v5192_v3 = vld [vmem:[%s10277_s1 + $0x770] sm:$0xf]  ;;  %v4945_v12 = vor.u32 %v6527_v60, %v4944_v59  ;;  %s4227_s30 = sshll.u32 %s6907_s29, 4  ;;  %s4228_s30 = int_to_ptr.vmem [resolvable:$true] %s4227_s30 }
  0x5d   :  { %v6589_v4 = vld [vmem:[%s10277_s1 + $0x774] sm:$0xf0]  ;;  %3350 = vmatpush.bf16.msra.mxu1 %v4825_v53  ;;  %v5256_v8 = vld [vmem:[%s10277_s1 + $0x7f0] sm:$0xf]  ;;  %v581_v10 = vunpack.c.l.b16 %v26_v61  ;;  %v582_v14 = vunpack.c.h.b16 %v26_v61  ;;  %v5129_v15 = vor.u32 %v6573_v2, %v5128_v0  ;;  %v5056_v17 = vld [vmem:[%s10277_s1 + $0x660] sm:$0xf]  ;;  %v7589_v25 = vpack.c.b16 %v579_v5, %v579_v5 }
  0x5e   :  { %3363 = vmatpush.bf16.msra.mxu2 %v4889_v54  ;;  %v6605_v9 = vld [vmem:[%s10277_s1 + $0x7f4] sm:$0xf0]  ;;  %v5193_v16 = vor.u32 %v6589_v4, %v5192_v3  ;;  %v6555_v21 = vld [vmem:[%s10277_s1 + $0x664] sm:$0xf0]  ;;  %v5120_v23 = vld [vmem:[%s10277_s1 + $0x6e0] sm:$0xf]  ;;  %v7602_v30 = vpack.c.b16 %v580_v11, %v580_v11 }
  0x5f   :  { %3376 = vmatpush.bf16.msra.mxu3 %v4953_v58  ;;  %v5257_v24 = vor.u32 %v6605_v9, %v5256_v8  ;;  %v6571_v26 = vld [vmem:[%s10277_s1 + $0x6e4] sm:$0xf0]  ;;  %v5184_v27 = vld [vmem:[%s10277_s1 + $0x760] sm:$0xf]  ;;  %v7600_v29 = vpack.c.b16 %v581_v10, %v581_v10  ;;  %v7610_v33 = vpack.c.b16 %v582_v14, %v582_v14  ;;  %v5057_v34 = vor.u32 %v6555_v21, %v5056_v17  ;;  %v5048_v37 = vld [vmem:[%s10277_s1 + $0x650] sm:$0xf] }
  0x60   :  { %3338 = vmatpush.bf16.msra.mxu0 %v4753_v1  ;;  %v6587_v28 = vld [vmem:[%s10277_s1 + $0x764] sm:$0xf0]  ;;  %v5248_v31 = vld [vmem:[%s10277_s1 + $0x7e0] sm:$0xf]  ;;  %v5121_v35 = vor.u32 %v6571_v26, %v5120_v23  ;;  %v6553_v39 = vld [vmem:[%s10277_s1 + $0x654] sm:$0xf0] }
  0x61   :  { %3351 = vmatpush.bf16.msra.mxu1 %v4817_v6  ;;  %v6603_v32 = vld [vmem:[%s10277_s1 + $0x7e4] sm:$0xf0]  ;;  %v5185_v36 = vor.u32 %v6587_v28, %v5184_v27  ;;  %v5112_v40 = vld [vmem:[%s10277_s1 + $0x6d0] sm:$0xf]  ;;  %v6569_v45 = vld [vmem:[%s10277_s1 + $0x6d4] sm:$0xf0]  ;;  %v5049_v50 = vor.u32 %v6553_v39, %v5048_v37 }
  0x62   :  { %3364 = vmatpush.bf16.msra.mxu2 %v4881_v7  ;;  %v5249_v43 = vor.u32 %v6603_v32, %v5248_v31  ;;  %v5176_v46 = vld [vmem:[%s10277_s1 + $0x750] sm:$0xf]  ;;  %v6585_v47 = vld [vmem:[%s10277_s1 + $0x754] sm:$0xf0]  ;;  %v5113_v51 = vor.u32 %v6569_v45, %v5112_v40  ;;  %v5040_v53 = vld [vmem:[%s10277_s1 + $0x640] sm:$0xf] }
  0x63   :  { %3377 = vmatpush.bf16.msra.mxu3 %v4945_v12  ;;  %3339 = vmatmul.bf16.vlgmr.msra.gmra.mxu0 %v7589_v25  ;;  %v5240_v48 = vld [vmem:[%s10277_s1 + $0x7d0] sm:$0xf]  ;;  %v6601_v49 = vld [vmem:[%s10277_s1 + $0x7d4] sm:$0xf0]  ;;  %v5177_v52 = vor.u32 %v6585_v47, %v5176_v46  ;;  %v6551_v54 = vld [vmem:[%s10277_s1 + $0x644] sm:$0xf0] }
  0x64   :  { %3383 = vmatpush.bf16.msrb.mxu0 %v5065_v13  ;;  %3352 = vmatmul.bf16.vlgmr.msra.gmra.mxu1 %v7602_v30  ;;  %v5104_v55 = vld [vmem:[%s10277_s1 + $0x6c0] sm:$0xf]  ;;  %v5241_v56 = vor.u32 %v6601_v49, %v5240_v48  ;;  %v6567_v57 = vld [vmem:[%s10277_s1 + $0x6c4] sm:$0xf0]  ;;  %v5041_v62 = vor.u32 %v6551_v54, %v5040_v53  ;;  %v5032_v1 = vld [vmem:[%s10277_s1 + $0x630] sm:$0xf] }
  0x65   :  { %3396 = vmatpush.bf16.msrb.mxu1 %v5129_v15  ;;  %3365 = vmatmul.bf16.vlgmr.msra.gmra.mxu2 %v7600_v29  ;;  %v5168_v58 = vld [vmem:[%s10277_s1 + $0x740] sm:$0xf]  ;;  %v6583_v59 = vld [vmem:[%s10277_s1 + $0x744] sm:$0xf0]  ;;  %v5105_v63 = vor.u32 %v6567_v57, %v5104_v55  ;;  %v6549_v2 = vld [vmem:[%s10277_s1 + $0x634] sm:$0xf0] }
  0x66   :  { %3409 = vmatpush.bf16.msrb.mxu2 %v5193_v16  ;;  %3378 = vmatmul.bf16.vlgmr.msra.gmra.mxu3 %v7610_v33  ;;  %v5232_v60 = vld [vmem:[%s10277_s1 + $0x7c0] sm:$0xf]  ;;  %v6599_v61 = vld [vmem:[%s10277_s1 + $0x7c4] sm:$0xf0]  ;;  %v5169_v0 = vor.u32 %v6583_v59, %v5168_v58  ;;  %v5096_v3 = vld [vmem:[%s10277_s1 + $0x6b0] sm:$0xf]  ;;  %v5033_v10 = vor.u32 %v6549_v2, %v5032_v1 }
  0x67   :  { %3422 = vmatpush.bf16.msrb.mxu3 %v5257_v24  ;;  %v5233_v4 = vor.u32 %v6599_v61, %v5232_v60  ;;  %v6565_v5 = vld [vmem:[%s10277_s1 + $0x6b4] sm:$0xf0]  ;;  %v5160_v6 = vld [vmem:[%s10277_s1 + $0x730] sm:$0xf]  ;;  %v5024_v13 = vld [vmem:[%s10277_s1 + $0x620] sm:$0xf] }
  0x68   :  { %3384 = vmatpush.bf16.msrb.mxu0 %v5057_v34  ;;  %v6581_v7 = vld [vmem:[%s10277_s1 + $0x734] sm:$0xf0]  ;;  %v5224_v8 = vld [vmem:[%s10277_s1 + $0x7b0] sm:$0xf]  ;;  %v5097_v11 = vor.u32 %v6565_v5, %v5096_v3  ;;  %v6547_v14 = vld [vmem:[%s10277_s1 + $0x624] sm:$0xf0] }
  0x69   :  { %3397 = vmatpush.bf16.msrb.mxu1 %v5121_v35  ;;  %v6597_v9 = vld [vmem:[%s10277_s1 + $0x7b4] sm:$0xf0]  ;;  %v5161_v12 = vor.u32 %v6581_v7, %v5160_v6  ;;  %v5088_v15 = vld [vmem:[%s10277_s1 + $0x6a0] sm:$0xf]  ;;  %v6563_v17 = vld [vmem:[%s10277_s1 + $0x6a4] sm:$0xf0]  ;;  %v5025_v27 = vor.u32 %v6547_v14, %v5024_v13 }
  0x6a   :  { %3410 = vmatpush.bf16.msrb.mxu2 %v5185_v36  ;;  %v5225_v16 = vor.u32 %v6597_v9, %v5224_v8  ;;  %v5152_v21 = vld [vmem:[%s10277_s1 + $0x720] sm:$0xf]  ;;  %v6579_v23 = vld [vmem:[%s10277_s1 + $0x724] sm:$0xf0]  ;;  %v5089_v28 = vor.u32 %v6563_v17, %v5088_v15  ;;  %v5016_v32 = vld [vmem:[%s10277_s1 + $0x610] sm:$0xf] }
  0x6b   :  { %3423 = vmatpush.bf16.msrb.mxu3 %v5249_v43  ;;  %v5216_v24 = vld [vmem:[%s10277_s1 + $0x7a0] sm:$0xf]  ;;  %v6595_v26 = vld [vmem:[%s10277_s1 + $0x7a4] sm:$0xf0]  ;;  %v5153_v31 = vor.u32 %v6579_v23, %v5152_v21  ;;  %v6545_v34 = vld [vmem:[%s10277_s1 + $0x614] sm:$0xf0] }
  0x6c   :  { %3385 = vmatpush.bf16.msrb.mxu0 %v5049_v50  ;;  %v5080_v35 = vld [vmem:[%s10277_s1 + $0x690] sm:$0xf]  ;;  %v5217_v36 = vor.u32 %v6595_v26, %v5216_v24  ;;  %v6561_v37 = vld [vmem:[%s10277_s1 + $0x694] sm:$0xf0]  ;;  %v5008_v46 = vld [vmem:[%s10277_s1 + $0x600] sm:$0xf]  ;;  %v5017_v47 = vor.u32 %v6545_v34, %v5016_v32 }
  0x6d   :  { %3398 = vmatpush.bf16.msrb.mxu1 %v5113_v51  ;;  %v5144_v39 = vld [vmem:[%s10277_s1 + $0x710] sm:$0xf]  ;;  %v6577_v40 = vld [vmem:[%s10277_s1 + $0x714] sm:$0xf0]  ;;  %v6543_v48 = vld [vmem:[%s10277_s1 + $0x604] sm:$0xf0]  ;;  %v5081_v51 = vor.u32 %v6561_v37, %v5080_v35 }
  0x6e   :  { %3411 = vmatpush.bf16.msrb.mxu2 %v5177_v52  ;;  %v5208_v43 = vld [vmem:[%s10277_s1 + $0x790] sm:$0xf]  ;;  %v6593_v45 = vld [vmem:[%s10277_s1 + $0x794] sm:$0xf0]  ;;  %v5072_v49 = vld [vmem:[%s10277_s1 + $0x680] sm:$0xf]  ;;  %v5145_v52 = vor.u32 %v6577_v40, %v5144_v39 }
  0x6f   :  { %3424 = vmatpush.bf16.msrb.mxu3 %v5241_v56  ;;  %v6559_v50 = vld [vmem:[%s10277_s1 + $0x684] sm:$0xf0]  ;;  %v5136_v53 = vld [vmem:[%s10277_s1 + $0x700] sm:$0xf]  ;;  %v27_v55 = vld [vmem:[%s10276_s0 + $0x30] sm:$0xff]  ;;  %v5209_v56 = vor.u32 %v6593_v45, %v5208_v43  ;;  %s4229_s8 = sshll.u32 %s10281_s5, 4  ;;  %s4230_s8 = int_to_ptr.hbm [resolvable:$true] %s4229_s8 }
  0x70   :  { %3386 = vmatpush.bf16.msrb.mxu0 %v5041_v62  ;;  %v6575_v54 = vld [vmem:[%s10277_s1 + $0x704] sm:$0xf0]  ;;  %v5200_v57 = vld [vmem:[%s10277_s1 + $0x780] sm:$0xf]  ;;  %v28_v59 = vld [vmem:[%s10276_s0 + $0x38] sm:$0xff]  ;;  %v583_v3 = vunpack.c.l.b16 %v27_v55  ;;  %v584_v9 = vunpack.c.h.b16 %v27_v55 }
  0x71   :  { %3399 = vmatpush.bf16.msrb.mxu1 %v5105_v63  ;;  %v6591_v58 = vld [vmem:[%s10277_s1 + $0x784] sm:$0xf0]  ;;  %v5320_v60 = vld [vmem:[%s10277_s1 + $0x870] sm:$0xf]  ;;  %v6621_v61 = vld [vmem:[%s10277_s1 + $0x874] sm:$0xf0]  ;;  %v5009_v63 = vor.u32 %v6543_v48, %v5008_v46  ;;  %v5137_v5 = vor.u32 %v6575_v54, %v5136_v53  ;;  %v585_v8 = vunpack.c.l.b16 %v28_v59 }
  0x72   :  { %3412 = vmatpush.bf16.msrb.mxu2 %v5169_v0  ;;  %v5384_v62 = vld [vmem:[%s10277_s1 + $0x8f0] sm:$0xf]  ;;  %v6637_v0 = vld [vmem:[%s10277_s1 + $0x8f4] sm:$0xf0]  ;;  %v5312_v15 = vld [vmem:[%s10277_s1 + $0x860] sm:$0xf]  ;;  %v7799_v23 = vpack.c.b16 %v583_v3, %v583_v3 }
  0x73   :  { %3425 = vmatpush.bf16.msrb.mxu3 %v5233_v4  ;;  %v5448_v1 = vld [vmem:[%s10277_s1 + $0x970] sm:$0xf]  ;;  %v6653_v2 = vld [vmem:[%s10277_s1 + $0x974] sm:$0xf0]  ;;  %v5073_v4 = vor.u32 %v6559_v50, %v5072_v49  ;;  %v5385_v13 = vor.u32 %v6637_v0, %v5384_v62  ;;  %v5376_v17 = vld [vmem:[%s10277_s1 + $0x8e0] sm:$0xf] }
  0x74   :  { %3387 = vmatpush.bf16.msrb.mxu0 %v5033_v10  ;;  %v5512_v6 = vld [vmem:[%s10277_s1 + $0x9f0] sm:$0xf]  ;;  %v6669_v7 = vld [vmem:[%s10277_s1 + $0x9f4] sm:$0xf0]  ;;  %v5201_v10 = vor.u32 %v6591_v58, %v5200_v57  ;;  %v5449_v14 = vor.u32 %v6653_v2, %v5448_v1  ;;  %v6635_v24 = vld [vmem:[%s10277_s1 + $0x8e4] sm:$0xf0] }
  0x75   :  { %3400 = vmatpush.bf16.msrb.mxu1 %v5097_v11  ;;  %v5321_v11 = vor.u32 %v6621_v61, %v5320_v60  ;;  %v5513_v21 = vor.u32 %v6669_v7, %v5512_v6  ;;  %v5440_v26 = vld [vmem:[%s10277_s1 + $0x960] sm:$0xf]  ;;  %v6667_v34 = vld [vmem:[%s10277_s1 + $0x9e4] sm:$0xf0]  ;;  %v5377_v37 = vor.u32 %v6635_v24, %v5376_v17  ;;  %v5304_v40 = vld [vmem:[%s10277_s1 + $0x850] sm:$0xf] }
  0x76   :  { %3413 = vmatpush.bf16.msrb.mxu2 %v5161_v12  ;;  %v586_v12 = vunpack.c.h.b16 %v28_v59  ;;  %v5504_v32 = vld [vmem:[%s10277_s1 + $0x9e0] sm:$0xf]  ;;  %v6617_v43 = vld [vmem:[%s10277_s1 + $0x854] sm:$0xf0]  ;;  %v5368_v45 = vld [vmem:[%s10277_s1 + $0x8d0] sm:$0xf] }
  0x77   :  { %3426 = vmatpush.bf16.msrb.mxu3 %v5225_v16  ;;  %v6619_v16 = vld [vmem:[%s10277_s1 + $0x864] sm:$0xf0]  ;;  %v5505_v46 = vor.u32 %v6667_v34, %v5504_v32  ;;  %v5432_v48 = vld [vmem:[%s10277_s1 + $0x950] sm:$0xf]  ;;  %v6649_v49 = vld [vmem:[%s10277_s1 + $0x954] sm:$0xf0] }
  0x78   :  { %3388 = vmatpush.bf16.msrb.mxu0 %v5025_v27  ;;  %v6651_v27 = vld [vmem:[%s10277_s1 + $0x964] sm:$0xf0]  ;;  %v7820_v35 = vpack.c.b16 %v586_v12, %v586_v12  ;;  %v5496_v50 = vld [vmem:[%s10277_s1 + $0x9d0] sm:$0xf]  ;;  %v5433_v54 = vor.u32 %v6649_v49, %v5432_v48  ;;  %v5296_v55 = vld [vmem:[%s10277_s1 + $0x840] sm:$0xf] }
  0x79   :  { %3401 = vmatpush.bf16.msrb.mxu1 %v5089_v28  ;;  %v7810_v28 = vpack.c.b16 %v585_v8, %v585_v8  ;;  %v5441_v39 = vor.u32 %v6651_v27, %v5440_v26  ;;  %v5360_v57 = vld [vmem:[%s10277_s1 + $0x8c0] sm:$0xf]  ;;  %v6631_v59 = vld [vmem:[%s10277_s1 + $0x8c4] sm:$0xf0]  ;;  %v5288_v3 = vld [vmem:[%s10277_s1 + $0x830] sm:$0xf] }
  0x7a   :  { %3414 = vmatpush.bf16.msrb.mxu2 %v5153_v31  ;;  %v7812_v31 = vpack.c.b16 %v584_v9, %v584_v9  ;;  %v5424_v60 = vld [vmem:[%s10277_s1 + $0x940] sm:$0xf]  ;;  %v6647_v61 = vld [vmem:[%s10277_s1 + $0x944] sm:$0xf0]  ;;  %v5361_v1 = vor.u32 %v6631_v59, %v5360_v57  ;;  %v6629_v7 = vld [vmem:[%s10277_s1 + $0x8b4] sm:$0xf0] }
  0x7b   :  { %3427 = vmatpush.bf16.msrb.mxu3 %v5217_v36  ;;  %v5313_v36 = vor.u32 %v6619_v16, %v5312_v15  ;;  %v5488_v62 = vld [vmem:[%s10277_s1 + $0x9c0] sm:$0xf]  ;;  %v5425_v2 = vor.u32 %v6647_v61, %v5424_v60  ;;  %v5416_v8 = vld [vmem:[%s10277_s1 + $0x930] sm:$0xf]  ;;  %v6645_v9 = vld [vmem:[%s10277_s1 + $0x934] sm:$0xf0] }
  0x7c   :  { %3389 = vmatpush.bf16.msrb.mxu0 %v5017_v47  ;;  %v6633_v47 = vld [vmem:[%s10277_s1 + $0x8d4] sm:$0xf0]  ;;  %v5280_v15 = vld [vmem:[%s10277_s1 + $0x820] sm:$0xf]  ;;  %v6611_v16 = vld [vmem:[%s10277_s1 + $0x824] sm:$0xf0] }
  0x7d   :  { %3402 = vmatpush.bf16.msrb.mxu1 %v5081_v51  ;;  %v6665_v51 = vld [vmem:[%s10277_s1 + $0x9d4] sm:$0xf0]  ;;  %v5369_v53 = vor.u32 %v6633_v47, %v5368_v45  ;;  %v5344_v17 = vld [vmem:[%s10277_s1 + $0x8a0] sm:$0xf]  ;;  %v6627_v24 = vld [vmem:[%s10277_s1 + $0x8a4] sm:$0xf0] }
  0x7e   :  { %3415 = vmatpush.bf16.msrb.mxu2 %v5145_v52  ;;  %v5305_v52 = vor.u32 %v6617_v43, %v5304_v40  ;;  %v5497_v58 = vor.u32 %v6665_v51, %v5496_v50  ;;  %v5408_v26 = vld [vmem:[%s10277_s1 + $0x920] sm:$0xf]  ;;  %v6643_v27 = vld [vmem:[%s10277_s1 + $0x924] sm:$0xf0]  ;;  %v5272_v40 = vld [vmem:[%s10277_s1 + $0x810] sm:$0xf] }
  0x7f   :  { %3428 = vmatpush.bf16.msrb.mxu3 %v5209_v56  ;;  %v6615_v56 = vld [vmem:[%s10277_s1 + $0x844] sm:$0xf0]  ;;  %v5472_v32 = vld [vmem:[%s10277_s1 + $0x9a0] sm:$0xf]  ;;  %v6609_v43 = vld [vmem:[%s10277_s1 + $0x814] sm:$0xf0] }
  0x80   :  { %3390 = vmatpush.bf16.msrb.mxu0 %v5009_v63  ;;  %v6663_v63 = vld [vmem:[%s10277_s1 + $0x9c4] sm:$0xf0]  ;;  %v5297_v0 = vor.u32 %v6615_v56, %v5296_v55  ;;  %v5336_v45 = vld [vmem:[%s10277_s1 + $0x890] sm:$0xf]  ;;  %v6625_v47 = vld [vmem:[%s10277_s1 + $0x894] sm:$0xf0] }
  0x81   :  { %3403 = vmatpush.bf16.msrb.mxu1 %v5073_v4  ;;  %v6613_v4 = vld [vmem:[%s10277_s1 + $0x834] sm:$0xf0]  ;;  %v5489_v6 = vor.u32 %v6663_v63, %v5488_v62  ;;  %v6659_v34 = vld [vmem:[%s10277_s1 + $0x9a4] sm:$0xf0]  ;;  %v5400_v48 = vld [vmem:[%s10277_s1 + $0x910] sm:$0xf]  ;;  %v5337_v57 = vor.u32 %v6625_v47, %v5336_v45 }
  0x82   :  { %3416 = vmatpush.bf16.msrb.mxu2 %v5137_v5  ;;  %v5352_v5 = vld [vmem:[%s10277_s1 + $0x8b0] sm:$0xf]  ;;  %v5289_v12 = vor.u32 %v6613_v4, %v5288_v3  ;;  %v6641_v49 = vld [vmem:[%s10277_s1 + $0x914] sm:$0xf0]  ;;  %v5328_v55 = vld [vmem:[%s10277_s1 + $0x880] sm:$0xf] }
  0x83   :  { %3429 = vmatpush.bf16.msrb.mxu3 %v5201_v10  ;;  %3391 = vmatmul.bf16.vlgmr.msrb.gmra.mxu0 %v7799_v23  ;;  %v5480_v10 = vld [vmem:[%s10277_s1 + $0x9b0] sm:$0xf]  ;;  %v6657_v51 = vld [vmem:[%s10277_s1 + $0x994] sm:$0xf0]  ;;  %v6623_v56 = vld [vmem:[%s10277_s1 + $0x884] sm:$0xf0] }
  0x84   :  { %3435 = vmatpush.bf16.msra.mxu0 %v5321_v11  ;;  %3404 = vmatmul.bf16.vlgmr.msrb.gmra.mxu1 %v7812_v31  ;;  %v6661_v11 = vld [vmem:[%s10277_s1 + $0x9b4] sm:$0xf0]  ;;  %v5464_v50 = vld [vmem:[%s10277_s1 + $0x990] sm:$0xf]  ;;  %v5392_v59 = vld [vmem:[%s10277_s1 + $0x900] sm:$0xf] }
  0x85   :  { %3448 = vmatpush.bf16.msra.mxu1 %v5385_v13  ;;  %3417 = vmatmul.bf16.vlgmr.msrb.gmra.mxu2 %v7810_v28  ;;  %v5353_v13 = vor.u32 %v6629_v7, %v5352_v5  ;;  %v6639_v60 = vld [vmem:[%s10277_s1 + $0x904] sm:$0xf0]  ;;  %v29_v61 = vld [vmem:[%s10276_s0 + $0x40] sm:$0xff]  ;;  %v5465_v62 = vor.u32 %v6657_v51, %v5464_v50  ;;  %v6685_v3 = vld [vmem:[%s10277_s1 + $0xa74] sm:$0xf0] }
  0x86   :  { %3461 = vmatpush.bf16.msra.mxu2 %v5449_v14  ;;  %3430 = vmatmul.bf16.vlgmr.msrb.gmra.mxu3 %v7820_v35  ;;  %v5417_v14 = vor.u32 %v6645_v9, %v5416_v8  ;;  %v5456_v63 = vld [vmem:[%s10277_s1 + $0x980] sm:$0xf]  ;;  %v5640_v4 = vld [vmem:[%s10277_s1 + $0xaf0] sm:$0xf]  ;;  %v6717_v8 = vld [vmem:[%s10277_s1 + $0xb74] sm:$0xf0]  ;;  %v587_v9 = vunpack.c.l.b16 %v29_v61 }
  0x87   :  { %3474 = vmatpush.bf16.msra.mxu3 %v5513_v21  ;;  %v5481_v21 = vor.u32 %v6661_v11, %v5480_v10  ;;  %v5704_v7 = vld [vmem:[%s10277_s1 + $0xb70] sm:$0xf]  ;;  %v5329_v10 = vor.u32 %v6623_v56, %v5328_v55  ;;  %v5393_v11 = vor.u32 %v6639_v60, %v5392_v59  ;;  %v5760_v47 = vld [vmem:[%s10277_s1 + $0xbe0] sm:$0xf]  ;;  %v6713_v59 = vld [vmem:[%s10277_s1 + $0xb54] sm:$0xf0] }
  0x88   :  { %3436 = vmatpush.bf16.msra.mxu0 %v5313_v36  ;;  %v5281_v36 = vor.u32 %v6611_v16, %v5280_v15  ;;  %v588_v15 = vunpack.c.h.b16 %v29_v61  ;;  %v5624_v55 = vld [vmem:[%s10277_s1 + $0xad0] sm:$0xf]  ;;  %v6729_v61 = vld [vmem:[%s10277_s1 + $0xbd4] sm:$0xf0] }
  0x89   :  { %3449 = vmatpush.bf16.msra.mxu1 %v5377_v37  ;;  %v5345_v37 = vor.u32 %v6627_v24, %v5344_v17  ;;  %v5752_v60 = vld [vmem:[%s10277_s1 + $0xbd0] sm:$0xf] }
  0x8a   :  { %3462 = vmatpush.bf16.msra.mxu2 %v5441_v39  ;;  %v5409_v39 = vor.u32 %v6643_v27, %v5408_v26  ;;  %v5705_v26 = vor.u32 %v6717_v8, %v5704_v7  ;;  %v5568_v27 = vld [vmem:[%s10277_s1 + $0xa60] sm:$0xf]  ;;  %v6711_v7 = vld [vmem:[%s10277_s1 + $0xb44] sm:$0xf0] }
  0x8b   :  { %3475 = vmatpush.bf16.msra.mxu3 %v5505_v46  ;;  %v5473_v46 = vor.u32 %v6659_v34, %v5472_v32  ;;  %v6683_v32 = vld [vmem:[%s10277_s1 + $0xa64] sm:$0xf0]  ;;  %v5632_v34 = vld [vmem:[%s10277_s1 + $0xae0] sm:$0xf] }
  0x8c   :  { %3437 = vmatpush.bf16.msra.mxu0 %v5305_v52  ;;  %v5264_v52 = vld [vmem:[%s10277_s1 + $0x800] sm:$0xf]  ;;  %v5569_v50 = vor.u32 %v6683_v32, %v5568_v27  ;;  %v5736_v27 = vld [vmem:[%s10277_s1 + $0xbb0] sm:$0xf]  ;;  %v6725_v32 = vld [vmem:[%s10277_s1 + $0xbb4] sm:$0xf0] }
  0x8d   :  { %3450 = vmatpush.bf16.msra.mxu1 %v5369_v53  ;;  %v5273_v53 = vor.u32 %v6609_v43, %v5272_v40  ;;  %v5696_v40 = vld [vmem:[%s10277_s1 + $0xb60] sm:$0xf]  ;;  %v6715_v43 = vld [vmem:[%s10277_s1 + $0xb64] sm:$0xf0] }
  0x8e   :  { %3463 = vmatpush.bf16.msra.mxu2 %v5433_v54  ;;  %v6607_v54 = vld [vmem:[%s10277_s1 + $0x804] sm:$0xf0]  ;;  %v5744_v8 = vld [vmem:[%s10277_s1 + $0xbc0] sm:$0xf] }
  0x8f   :  { %3476 = vmatpush.bf16.msra.mxu3 %v5497_v58  ;;  %v5401_v58 = vor.u32 %v6641_v49, %v5400_v48  ;;  %v5265_v5 = vor.u32 %v6607_v54, %v5264_v52  ;;  %v6731_v48 = vld [vmem:[%s10277_s1 + $0xbe4] sm:$0xf0]  ;;  %v5697_v52 = vor.u32 %v6715_v43, %v5696_v40  ;;  %v6681_v54 = vld [vmem:[%s10277_s1 + $0xa54] sm:$0xf0] }
  0x90   :  { %3438 = vmatpush.bf16.msra.mxu0 %v5297_v0  ;;  %v6655_v0 = vld [vmem:[%s10277_s1 + $0x984] sm:$0xf0]  ;;  %v5761_v56 = vor.u32 %v6731_v48, %v5760_v47  ;;  %v5600_v47 = vld [vmem:[%s10277_s1 + $0xaa0] sm:$0xf] }
  0x91   :  { %3451 = vmatpush.bf16.msra.mxu1 %v5361_v1  ;;  %v30_v1 = vld [vmem:[%s10276_s0 + $0x48] sm:$0xff]  ;;  %v5457_v16 = vor.u32 %v6655_v0, %v5456_v63 }
  0x92   :  { %3464 = vmatpush.bf16.msra.mxu2 %v5425_v2  ;;  %v5576_v2 = vld [vmem:[%s10277_s1 + $0xa70] sm:$0xf]  ;;  %v6675_v43 = vld [vmem:[%s10277_s1 + $0xa24] sm:$0xf0] }
  0x93   :  { %3477 = vmatpush.bf16.msra.mxu3 %v5489_v6  ;;  %v6701_v6 = vld [vmem:[%s10277_s1 + $0xaf4] sm:$0xf0]  ;;  %v5577_v17 = vor.u32 %v6685_v3, %v5576_v2  ;;  %v6679_v2 = vld [vmem:[%s10277_s1 + $0xa44] sm:$0xf0]  ;;  %v5616_v3 = vld [vmem:[%s10277_s1 + $0xac0] sm:$0xf] }
  0x94   :  { %3439 = vmatpush.bf16.msra.mxu0 %v5289_v12  ;;  %v5768_v12 = vld [vmem:[%s10277_s1 + $0xbf0] sm:$0xf]  ;;  %v5641_v24 = vor.u32 %v6701_v6, %v5640_v4  ;;  %v5753_v4 = vor.u32 %v6729_v61, %v5752_v60  ;;  %v5680_v6 = vld [vmem:[%s10277_s1 + $0xb40] sm:$0xf]  ;;  %v6673_v61 = vld [vmem:[%s10277_s1 + $0xa14] sm:$0xf0] }
  0x95   :  { %3452 = vmatpush.bf16.msra.mxu1 %v5353_v13  ;;  %v6733_v13 = vld [vmem:[%s10277_s1 + $0xbf4] sm:$0xf0]  ;;  %v5528_v60 = vld [vmem:[%s10277_s1 + $0xa10] sm:$0xf] }
  0x96   :  { %3465 = vmatpush.bf16.msra.mxu2 %v5417_v14  ;;  %v589_v14 = vunpack.c.l.b16 %v30_v1 }
  0x97   :  { %3478 = vmatpush.bf16.msra.mxu3 %v5481_v21  ;;  %v590_v21 = vunpack.c.h.b16 %v30_v1  ;;  %v5552_v1 = vld [vmem:[%s10277_s1 + $0xa40] sm:$0xf] }
  0x98   :  { %3440 = vmatpush.bf16.msra.mxu0 %v5281_v36  ;;  %v5769_v36 = vor.u32 %v6733_v13, %v5768_v12  ;;  %v8020_v45 = vpack.c.b16 %v589_v14, %v589_v14  ;;  %v5681_v13 = vor.u32 %v6711_v7, %v5680_v6  ;;  %v6677_v14 = vld [vmem:[%s10277_s1 + $0xa34] sm:$0xf0]  ;;  %v5520_v7 = vld [vmem:[%s10277_s1 + $0xa00] sm:$0xf] }
  0x99   :  { %3453 = vmatpush.bf16.msra.mxu1 %v5345_v37  ;;  %v8009_v37 = vpack.c.b16 %v587_v9, %v587_v9  ;;  %v8030_v49 = vpack.c.b16 %v590_v21, %v590_v21  ;;  %v6727_v9 = vld [vmem:[%s10277_s1 + $0xbc4] sm:$0xf0]  ;;  %v5672_v21 = vld [vmem:[%s10277_s1 + $0xb30] sm:$0xf]  ;;  %v6721_v6 = vld [vmem:[%s10277_s1 + $0xb94] sm:$0xf0] }
  0x9a   :  { %3466 = vmatpush.bf16.msra.mxu2 %v5409_v39  ;;  %v6699_v39 = vld [vmem:[%s10277_s1 + $0xae4] sm:$0xf0] }
  0x9b   :  { %3479 = vmatpush.bf16.msra.mxu3 %v5473_v46  ;;  %v8022_v46 = vpack.c.b16 %v588_v15, %v588_v15  ;;  %v5633_v51 = vor.u32 %v6699_v39, %v5632_v34  ;;  %v5608_v15 = vld [vmem:[%s10277_s1 + $0xab0] sm:$0xf] }
  0x9c   :  { %3441 = vmatpush.bf16.msra.mxu0 %v5273_v53  ;;  %v5560_v53 = vld [vmem:[%s10277_s1 + $0xa50] sm:$0xf] }
  0x9d   :  { %3454 = vmatpush.bf16.msra.mxu1 %v5337_v57  ;;  %v6697_v57 = vld [vmem:[%s10277_s1 + $0xad4] sm:$0xf0] }
  0x9e   :  { %3467 = vmatpush.bf16.msra.mxu2 %v5401_v58  ;;  %v5688_v58 = vld [vmem:[%s10277_s1 + $0xb50] sm:$0xf]  ;;  %v5625_v63 = vor.u32 %v6697_v57, %v5624_v55  ;;  %v6723_v55 = vld [vmem:[%s10277_s1 + $0xba4] sm:$0xf0] }
  0x9f   :  { %3480 = vmatpush.bf16.msra.mxu3 %v5465_v62  ;;  %v5561_v62 = vor.u32 %v6681_v54, %v5560_v53  ;;  %v5689_v0 = vor.u32 %v6713_v59, %v5688_v58  ;;  %v6707_v53 = vld [vmem:[%s10277_s1 + $0xb24] sm:$0xf0]  ;;  %v5728_v54 = vld [vmem:[%s10277_s1 + $0xba0] sm:$0xf] }
  0xa0   :  { %3442 = vmatpush.bf16.msra.mxu0 %v5265_v5  ;;  %v6695_v5 = vld [vmem:[%s10277_s1 + $0xac4] sm:$0xf0]  ;;  %v3236_v57 = vpop.f32.mrf.mxu0 }
  0xa1   :  { %3455 = vmatpush.bf16.msra.mxu1 %v5329_v10  ;;  %v5553_v10 = vor.u32 %v6679_v2, %v5552_v1  ;;  %v5617_v12 = vor.u32 %v6695_v5, %v5616_v3  ;;  %v5729_v1 = vor.u32 %v6723_v55, %v5728_v54  ;;  %v6689_v2 = vld [vmem:[%s10277_s1 + $0xa94] sm:$0xf0]  ;;  %v5656_v3 = vld [vmem:[%s10277_s1 + $0xb10] sm:$0xf] }
  0xa2   :  { %3468 = vmatpush.bf16.msra.mxu2 %v5393_v11  ;;  %v5544_v11 = vld [vmem:[%s10277_s1 + $0xa30] sm:$0xf] }
  0xa3   :  { %3481 = vmatpush.bf16.msra.mxu3 %v5457_v16  ;;  %3443 = vmatmul.bf16.vlgmr.msra.gmra.mxu0 %v8009_v37  ;;  %v6693_v16 = vld [vmem:[%s10277_s1 + $0xab4] sm:$0xf0]  ;;  %v5545_v34 = vor.u32 %v6677_v14, %v5544_v11  ;;  %v5720_v5 = vld [vmem:[%s10277_s1 + $0xb90] sm:$0xf]  ;;  %v5584_v11 = vld [vmem:[%s10277_s1 + $0xa80] sm:$0xf] }
  0xa4   :  { %3487 = vmatpush.bf16.msrb.mxu0 %v5577_v17  ;;  %3456 = vmatmul.bf16.vlgmr.msra.gmra.mxu1 %v8022_v46  ;;  %v5745_v17 = vor.u32 %v6727_v9, %v5744_v8  ;;  %v5609_v39 = vor.u32 %v6693_v16, %v5608_v15  ;;  %v5529_v9 = vor.u32 %v6673_v61, %v5528_v60  ;;  %v5648_v15 = vld [vmem:[%s10277_s1 + $0xb00] sm:$0xf]  ;;  %v6703_v16 = vld [vmem:[%s10277_s1 + $0xb04] sm:$0xf0] }
  0xa5   :  { %3500 = vmatpush.bf16.msrb.mxu1 %v5641_v24  ;;  %3469 = vmatmul.bf16.vlgmr.msra.gmra.mxu2 %v8020_v45  ;;  %v6709_v24 = vld [vmem:[%s10277_s1 + $0xb34] sm:$0xf0] }
  0xa6   :  { %3513 = vmatpush.bf16.msrb.mxu2 %v5705_v26  ;;  %3482 = vmatmul.bf16.vlgmr.msra.gmra.mxu3 %v8030_v49  ;;  %v549_v26 = vld [vmem:[%s10278_s2] sm:$0x3]  ;;  %v5673_v40 = vor.u32 %v6709_v24, %v5672_v21  ;;  %v5721_v24 = vor.u32 %v6721_v6, %v5720_v5 }
  0xa7   :  { %3526 = vmatpush.bf16.msrb.mxu3 %v5769_v36  ;;  %v5536_v36 = vld [vmem:[%s10277_s1 + $0xa20] sm:$0xf]  ;;  %v551_v48 = vperm.slane %v549_v26, 0 }
  0xa8   :  { %3488 = vmatpush.bf16.msrb.mxu0 %v5569_v50  ;;  %v5737_v50 = vor.u32 %v6725_v32, %v5736_v27  ;;  %v3262_v21 = vpop.f32.mrf.mxu2  ;;  %v5712_v26 = vld [vmem:[%s10277_s1 + $0xb80] sm:$0xf]  ;;  %v6719_v27 = vld [vmem:[%s10277_s1 + $0xb84] sm:$0xf0]  ;;  %v32_v32 = vld [vmem:[%s10276_s0 + $0x58] sm:$0xff]  ;;  %v3238_v54 = vpop.f32.mrf.mxu0 }
  0xa9   :  { %3501 = vmatpush.bf16.msrb.mxu1 %v5633_v51  ;;  %v6691_v51 = vld [vmem:[%s10277_s1 + $0xaa4] sm:$0xf0]  ;;  %v5888_v5 = vld [vmem:[%s10277_s1 + $0xce0] sm:$0xf] }
  0xaa   :  { %3514 = vmatpush.bf16.msrb.mxu2 %v5697_v52  ;;  %v5664_v52 = vld [vmem:[%s10277_s1 + $0xb20] sm:$0xf]  ;;  %v5601_v58 = vor.u32 %v6691_v51, %v5600_v47  ;;  %v6781_v51 = vld [vmem:[%s10277_s1 + $0xd74] sm:$0xf0] }
  0xab   :  { %3527 = vmatpush.bf16.msrb.mxu3 %v5761_v56  ;;  %v5537_v56 = vor.u32 %v6675_v43, %v5536_v36  ;;  %v5665_v59 = vor.u32 %v6707_v53, %v5664_v52  ;;  %v3275_v36 = vpop.f32.mrf.mxu3  ;;  %v5896_v43 = vld [vmem:[%s10277_s1 + $0xcf0] sm:$0xf]  ;;  %v5808_v54 = vld [vmem:[%s10277_s1 + $0xc40] sm:$0xf] }
  0xac   :  { %3489 = vmatpush.bf16.msrb.mxu0 %v5561_v62  ;;  %v5592_v62 = vld [vmem:[%s10277_s1 + $0xa90] sm:$0xf] }
  0xad   :  { %3502 = vmatpush.bf16.msrb.mxu1 %v5625_v63  ;;  %v3237_v63 = vadd.f32 %v3236_v57, %v551_v48  ;;  %v6765_v48 = vld [vmem:[%s10277_s1 + $0xcf4] sm:$0xf0]  ;;  %v6024_v57 = vld [vmem:[%s10277_s1 + $0xdf0] sm:$0xf] }
  0xae   :  { %3515 = vmatpush.bf16.msrb.mxu2 %v5689_v0  ;;  %v3249_v0 = vpop.f32.mrf.mxu1 }
  0xaf   :  { %3528 = vmatpush.bf16.msrb.mxu3 %v5753_v4  ;;  %v6705_v4 = vld [vmem:[%s10277_s1 + $0xb14] sm:$0xf0]  ;;  %v3250_v8 = vadd.f32 %v3249_v0, %v3237_v63  ;;  %v594_v0 = vunpack.c.h.b16 %v32_v32 }
  0xb0   :  { %3490 = vmatpush.bf16.msrb.mxu0 %v5553_v10  ;;  %v6671_v10 = vld [vmem:[%s10277_s1 + $0xa04] sm:$0xf0]  ;;  %v5657_v14 = vor.u32 %v6705_v4, %v5656_v3  ;;  %v5824_v3 = vld [vmem:[%s10277_s1 + $0xc60] sm:$0xf] }
  0xb1   :  { %3503 = vmatpush.bf16.msrb.mxu1 %v5617_v12  ;;  %v6687_v12 = vld [vmem:[%s10277_s1 + $0xa84] sm:$0xf0]  ;;  %v5521_v47 = vor.u32 %v6671_v10, %v5520_v7 }
  0xb2   :  { %3516 = vmatpush.bf16.msrb.mxu2 %v5681_v13  ;;  %v5593_v13 = vor.u32 %v6689_v2, %v5592_v62  ;;  %v5585_v55 = vor.u32 %v6687_v12, %v5584_v11  ;;  %v5713_v62 = vor.u32 %v6719_v27, %v5712_v26  ;;  %v6747_v4 = vld [vmem:[%s10277_s1 + $0xc64] sm:$0xf0]  ;;  %v5816_v27 = vld [vmem:[%s10277_s1 + $0xc50] sm:$0xf] }
  0xb3   :  { %3529 = vmatpush.bf16.msrb.mxu3 %v5745_v17  ;;  %v31_v17 = vld [vmem:[%s10276_s0 + $0x50] sm:$0xff]  ;;  %v6779_v10 = vld [vmem:[%s10277_s1 + $0xd64] sm:$0xf0] }
  0xb4   :  { %3491 = vmatpush.bf16.msrb.mxu0 %v5545_v34  ;;  %v3263_v34 = vadd.f32 %v3262_v21, %v3250_v8  ;;  %v591_v52 = vunpack.c.l.b16 %v31_v17  ;;  %v592_v60 = vunpack.c.h.b16 %v31_v17  ;;  %v6763_v8 = vld [vmem:[%s10277_s1 + $0xce4] sm:$0xf0]  ;;  %v5825_v17 = vor.u32 %v6747_v4, %v5824_v3  ;;  %v3277_v21 = vpop.f32.mrf.mxu3  ;;  %v5800_v3 = vld [vmem:[%s10277_s1 + $0xc30] sm:$0xf]  ;;  %v6741_v4 = vld [vmem:[%s10277_s1 + $0xc34] sm:$0xf0] }
  0xb5   :  { %3504 = vmatpush.bf16.msrb.mxu1 %v5609_v39  ;;  %v5832_v39 = vld [vmem:[%s10277_s1 + $0xc70] sm:$0xf]  ;;  %v5801_v21 = vor.u32 %v6741_v4, %v5800_v3  ;;  %v6785_v4 = vld [vmem:[%s10277_s1 + $0xd94] sm:$0xf0] }
  0xb6   :  { %3517 = vmatpush.bf16.msrb.mxu2 %v5673_v40  ;;  %v6749_v40 = vld [vmem:[%s10277_s1 + $0xc74] sm:$0xf0]  ;;  %v8207_v53 = vadd.f32 %v3275_v36, %v3263_v34  ;;  %v3251_v61 = vpop.f32.mrf.mxu1  ;;  %v8224_v7 = vpack.c.b16 %v591_v52, %v591_v52  ;;  %v8237_v12 = vpack.c.b16 %v592_v60, %v592_v60  ;;  %v5880_v34 = vld [vmem:[%s10277_s1 + $0xcd0] sm:$0xf]  ;;  %v6775_v60 = vld [vmem:[%s10277_s1 + $0xd44] sm:$0xf0] }
  0xb7   :  { %3530 = vmatpush.bf16.msrb.mxu3 %v5737_v50  ;;  %v5960_v50 = vld [vmem:[%s10277_s1 + $0xd70] sm:$0xf]  ;;  %v5833_v63 = vor.u32 %v6749_v40, %v5832_v39  ;;  %v6761_v39 = vld [vmem:[%s10277_s1 + $0xcd4] sm:$0xf0]  ;;  %v6000_v61 = vld [vmem:[%s10277_s1 + $0xdc0] sm:$0xf] }
  0xb8   :  { %3492 = vmatpush.bf16.msrb.mxu0 %v5537_v56  ;;  %v5649_v56 = vor.u32 %v6703_v16, %v5648_v15  ;;  %v5961_v2 = vor.u32 %v6781_v51, %v5960_v50  ;;  %v3264_v15 = vpop.f32.mrf.mxu2  ;;  %v8245_v16 = vpack.c.b16 %v594_v0, %v594_v0  ;;  %v5944_v40 = vld [vmem:[%s10277_s1 + $0xd50] sm:$0xf]  ;;  %v5881_v51 = vor.u32 %v6761_v39, %v5880_v34  ;;  %v5856_v34 = vld [vmem:[%s10277_s1 + $0xca0] sm:$0xf] }
  0xb9   :  { %3505 = vmatpush.bf16.msrb.mxu1 %v5601_v58  ;;  %v6797_v58 = vld [vmem:[%s10277_s1 + $0xdf4] sm:$0xf0]  ;;  %v5992_v15 = vld [vmem:[%s10277_s1 + $0xdb0] sm:$0xf] }
  0xba   :  { %3518 = vmatpush.bf16.msrb.mxu2 %v5665_v59  ;;  %v593_v59 = vunpack.c.l.b16 %v32_v32  ;;  %v6025_v6 = vor.u32 %v6797_v58, %v6024_v57  ;;  %v6745_v32 = vld [vmem:[%s10277_s1 + $0xc54] sm:$0xf0]  ;;  %v6759_v58 = vld [vmem:[%s10277_s1 + $0xcc4] sm:$0xf0]  ;;  %v5976_v3 = vld [vmem:[%s10277_s1 + $0xd90] sm:$0xf] }
  0xbb   :  { %3531 = vmatpush.bf16.msrb.mxu3 %v5729_v1  ;;  %v5897_v1 = vor.u32 %v6765_v48, %v5896_v43  ;;  %v6777_v43 = vld [vmem:[%s10277_s1 + $0xd54] sm:$0xf0]  ;;  %v5817_v50 = vor.u32 %v6745_v32, %v5816_v27  ;;  %v5792_v27 = vld [vmem:[%s10277_s1 + $0xc20] sm:$0xf]  ;;  %v6739_v32 = vld [vmem:[%s10277_s1 + $0xc24] sm:$0xf0] }
  0xbc   :  { %3493 = vmatpush.bf16.msrb.mxu0 %v5529_v9  ;;  %v5952_v9 = vld [vmem:[%s10277_s1 + $0xd60] sm:$0xf]  ;;  %v8235_v11 = vpack.c.b16 %v593_v59, %v593_v59  ;;  %v6793_v48 = vld [vmem:[%s10277_s1 + $0xdd4] sm:$0xf0]  ;;  %v5945_v52 = vor.u32 %v6777_v43, %v5944_v40  ;;  %v6755_v40 = vld [vmem:[%s10277_s1 + $0xca4] sm:$0xf0] }
  0xbd   :  { %3506 = vmatpush.bf16.msrb.mxu1 %v5593_v13  ;;  %v6016_v13 = vld [vmem:[%s10277_s1 + $0xde0] sm:$0xf]  ;;  %v5953_v26 = vor.u32 %v6779_v10, %v5952_v9  ;;  %v6757_v10 = vld [vmem:[%s10277_s1 + $0xcb4] sm:$0xf0] }
  0xbe   :  { %3519 = vmatpush.bf16.msrb.mxu2 %v5657_v14  ;;  %v6795_v14 = vld [vmem:[%s10277_s1 + $0xde4] sm:$0xf0]  ;;  %v5936_v59 = vld [vmem:[%s10277_s1 + $0xd40] sm:$0xf] }
  0xbf   :  { %3532 = vmatpush.bf16.msrb.mxu3 %v5721_v24  ;;  %v5889_v24 = vor.u32 %v6763_v8, %v5888_v5  ;;  %v6017_v36 = vor.u32 %v6795_v14, %v6016_v13  ;;  %v5864_v5 = vld [vmem:[%s10277_s1 + $0xcb0] sm:$0xf]  ;;  %v6773_v14 = vld [vmem:[%s10277_s1 + $0xd34] sm:$0xf0]  ;;  %v5920_v43 = vld [vmem:[%s10277_s1 + $0xd20] sm:$0xf] }
  0xc0   :  { %3494 = vmatpush.bf16.msrb.mxu0 %v5521_v47  ;;  %v6008_v47 = vld [vmem:[%s10277_s1 + $0xdd0] sm:$0xf]  ;;  %v3288_v0 = vpop.f32.mrf.mxu0 }
  0xc1   :  { %3507 = vmatpush.bf16.msrb.mxu1 %v5585_v55  ;;  %v6743_v55 = vld [vmem:[%s10277_s1 + $0xc44] sm:$0xf0]  ;;  %v6009_v57 = vor.u32 %v6793_v48, %v6008_v47  ;;  %v3301_v8 = vpop.f32.mrf.mxu1  ;;  %v5928_v13 = vld [vmem:[%s10277_s1 + $0xd30] sm:$0xf] }
  0xc2   :  { %3520 = vmatpush.bf16.msrb.mxu2 %v5649_v56  ;;  %v5872_v56 = vld [vmem:[%s10277_s1 + $0xcc0] sm:$0xf]  ;;  %v6771_v47 = vld [vmem:[%s10277_s1 + $0xd24] sm:$0xf0] }
  0xc3   :  { %3533 = vmatpush.bf16.msrb.mxu3 %v5713_v62  ;;  %3495 = vmatmul.bf16.vlgmr.msrb.gmra.mxu0 %v8224_v7  ;;  %v6791_v62 = vld [vmem:[%s10277_s1 + $0xdc4] sm:$0xf0] }
  0xc4   :  { %3539 = vmatpush.bf16.msra.mxu0 %v5833_v63  ;;  %3508 = vmatmul.bf16.vlgmr.msrb.gmra.mxu1 %v8237_v12  ;;  %v5809_v63 = vor.u32 %v6743_v55, %v5808_v54  ;;  %v6001_v9 = vor.u32 %v6791_v62, %v6000_v61  ;;  %v5793_v54 = vor.u32 %v6739_v32, %v5792_v27  ;;  %v5848_v61 = vld [vmem:[%s10277_s1 + $0xc90] sm:$0xf]  ;;  %v6783_v27 = vld [vmem:[%s10277_s1 + $0xd84] sm:$0xf0] }
  0xc5   :  { %3552 = vmatpush.bf16.msra.mxu1 %v5897_v1  ;;  %3521 = vmatmul.bf16.vlgmr.msrb.gmra.mxu2 %v8235_v11  ;;  %v5873_v1 = vor.u32 %v6759_v58, %v5872_v56  ;;  %v5921_v58 = vor.u32 %v6771_v47, %v5920_v43  ;;  %v34_v32 = vld [vmem:[%s10276_s0 + $0x68] sm:$0xff]  ;;  %v6829_v47 = vld [vmem:[%s10277_s1 + $0xef4] sm:$0xf0] }
  0xc6   :  { %3565 = vmatpush.bf16.msra.mxu2 %v5961_v2  ;;  %3534 = vmatmul.bf16.vlgmr.msrb.gmra.mxu3 %v8245_v16  ;;  %v5937_v2 = vor.u32 %v6775_v60, %v5936_v59  ;;  %v5784_v59 = vld [vmem:[%s10277_s1 + $0xc10] sm:$0xf]  ;;  %v6737_v60 = vld [vmem:[%s10277_s1 + $0xc14] sm:$0xf0] }
  0xc7   :  { %3578 = vmatpush.bf16.msra.mxu3 %v6025_v6  ;;  %v3289_v6 = vadd.f32 %v3288_v0, %v8207_v53  ;;  %v6789_v53 = vld [vmem:[%s10277_s1 + $0xdb4] sm:$0xf0] }
  0xc8   :  { %3540 = vmatpush.bf16.msra.mxu0 %v5825_v17  ;;  %v5993_v39 = vor.u32 %v6789_v53, %v5992_v15  ;;  %v3290_v56 = vpop.f32.mrf.mxu0  ;;  %v6753_v0 = vld [vmem:[%s10277_s1 + $0xc94] sm:$0xf0]  ;;  %v5904_v15 = vld [vmem:[%s10277_s1 + $0xd00] sm:$0xf]  ;;  %v6767_v53 = vld [vmem:[%s10277_s1 + $0xd04] sm:$0xf0] }
  0xc9   :  { %3553 = vmatpush.bf16.msra.mxu1 %v5889_v24  ;;  %v3302_v17 = vadd.f32 %v3301_v8, %v3289_v6  ;;  %v5865_v24 = vor.u32 %v6757_v10, %v5864_v5  ;;  %v3303_v62 = vpop.f32.mrf.mxu1  ;;  %v5776_v5 = vld [vmem:[%s10277_s1 + $0xc00] sm:$0xf]  ;;  %v5785_v6 = vor.u32 %v6737_v60, %v5784_v59  ;;  %v6735_v8 = vld [vmem:[%s10277_s1 + $0xc04] sm:$0xf0]  ;;  %v6280_v56 = vld [vmem:[%s10277_s1 + $0xff0] sm:$0xf] }
  0xca   :  { %3566 = vmatpush.bf16.msra.mxu2 %v5953_v26  ;;  %v5929_v26 = vor.u32 %v6773_v14, %v5928_v13  ;;  %v6751_v10 = vld [vmem:[%s10277_s1 + $0xc84] sm:$0xf0]  ;;  %v5849_v13 = vor.u32 %v6753_v0, %v5848_v61  ;;  %v5777_v43 = vor.u32 %v6735_v8, %v5776_v5  ;;  %v598_v62 = vunpack.c.h.b16 %v34_v32  ;;  %v6208_v8 = vld [vmem:[%s10277_s1 + $0xf60] sm:$0xf] }
  0xcb   :  { %3579 = vmatpush.bf16.msra.mxu3 %v6017_v36  ;;  %v3314_v36 = vpop.f32.mrf.mxu2 }
  0xcc   :  { %3541 = vmatpush.bf16.msra.mxu0 %v5817_v50  ;;  %v3315_v48 = vadd.f32 %v3314_v36, %v3302_v17  ;;  %v3327_v50 = vpop.f32.mrf.mxu3  ;;  %v33_v17 = vld [vmem:[%s10276_s0 + $0x60] sm:$0xff]  ;;  %v6088_v36 = vld [vmem:[%s10277_s1 + $0xe70] sm:$0xf] }
  0xcd   :  { %3554 = vmatpush.bf16.msra.mxu1 %v5881_v51  ;;  %v5984_v51 = vld [vmem:[%s10277_s1 + $0xda0] sm:$0xf]  ;;  %v596_v59 = vunpack.c.h.b16 %v33_v17 }
  0xce   :  { %3567 = vmatpush.bf16.msra.mxu2 %v5945_v52  ;;  %v6787_v52 = vld [vmem:[%s10277_s1 + $0xda4] sm:$0xf0]  ;;  %v8348_v55 = vadd.f32 %v3327_v50, %v3315_v48  ;;  %v6216_v48 = vld [vmem:[%s10277_s1 + $0xf70] sm:$0xf]  ;;  %v6845_v50 = vld [vmem:[%s10277_s1 + $0xf74] sm:$0xf0] }
  0xcf   :  { %3580 = vmatpush.bf16.msra.mxu3 %v6009_v57  ;;  %v5857_v57 = vor.u32 %v6755_v40, %v5856_v34  ;;  %v6152_v40 = vld [vmem:[%s10277_s1 + $0xef0] sm:$0xf]  ;;  %v6217_v0 = vor.u32 %v6845_v50, %v6216_v48 }
  0xd0   :  { %3542 = vmatpush.bf16.msra.mxu0 %v5809_v63  ;;  %v5985_v63 = vor.u32 %v6787_v52, %v5984_v51  ;;  %v595_v51 = vunpack.c.l.b16 %v33_v17 }
  0xd1   :  { %3555 = vmatpush.bf16.msra.mxu1 %v5873_v1  ;;  %v5912_v1 = vld [vmem:[%s10277_s1 + $0xd10] sm:$0xf] }
  0xd2   :  { %3568 = vmatpush.bf16.msra.mxu2 %v5937_v2  ;;  %v6769_v2 = vld [vmem:[%s10277_s1 + $0xd14] sm:$0xf0]  ;;  %v8437_v5 = vpack.c.b16 %v595_v51, %v595_v51 }
  0xd3   :  { %3581 = vmatpush.bf16.msra.mxu3 %v6001_v9  ;;  %v5840_v9 = vld [vmem:[%s10277_s1 + $0xc80] sm:$0xf]  ;;  %v5913_v14 = vor.u32 %v6769_v2, %v5912_v1  ;;  %v6811_v2 = vld [vmem:[%s10277_s1 + $0xe64] sm:$0xf0] }
  0xd4   :  { %3543 = vmatpush.bf16.msra.mxu0 %v5801_v21  ;;  %v3316_v21 = vpop.f32.mrf.mxu2  ;;  %v3329_v34 = vpop.f32.mrf.mxu3  ;;  %v5841_v52 = vor.u32 %v6751_v10, %v5840_v9  ;;  %v6080_v1 = vld [vmem:[%s10277_s1 + $0xe60] sm:$0xf]  ;;  %v6843_v9 = vld [vmem:[%s10277_s1 + $0xf64] sm:$0xf0] }
  0xd5   :  { %3556 = vmatpush.bf16.msra.mxu1 %v5865_v24  ;;  %v5977_v24 = vor.u32 %v6785_v4, %v5976_v3  ;;  %v6144_v3 = vld [vmem:[%s10277_s1 + $0xee0] sm:$0xf]  ;;  %v6081_v17 = vor.u32 %v6811_v2, %v6080_v1 }
  0xd6   :  { %3569 = vmatpush.bf16.msra.mxu2 %v5929_v26  ;;  %v5968_v26 = vld [vmem:[%s10277_s1 + $0xd80] sm:$0xf] }
  0xd7   :  { %3582 = vmatpush.bf16.msra.mxu3 %v5993_v39  ;;  %v6813_v39 = vld [vmem:[%s10277_s1 + $0xe74] sm:$0xf0]  ;;  %v5969_v60 = vor.u32 %v6783_v27, %v5968_v26  ;;  %v6072_v26 = vld [vmem:[%s10277_s1 + $0xe50] sm:$0xf] }
  0xd8   :  { %3544 = vmatpush.bf16.msra.mxu0 %v5793_v54  ;;  %v5905_v54 = vor.u32 %v6767_v53, %v5904_v15  ;;  %v6089_v61 = vor.u32 %v6813_v39, %v6088_v36  ;;  %v6859_v15 = vld [vmem:[%s10277_s1 + $0xfe4] sm:$0xf0]  ;;  %v8458_v53 = vpack.c.b16 %v598_v62, %v598_v62  ;;  %v6809_v27 = vld [vmem:[%s10277_s1 + $0xe54] sm:$0xf0]  ;;  %v6200_v39 = vld [vmem:[%s10277_s1 + $0xf50] sm:$0xf] }
  0xd9   :  { %3557 = vmatpush.bf16.msra.mxu1 %v5857_v57  ;;  %v6861_v57 = vld [vmem:[%s10277_s1 + $0xff4] sm:$0xf0]  ;;  %v6073_v48 = vor.u32 %v6809_v27, %v6072_v26  ;;  %v6256_v62 = vld [vmem:[%s10277_s1 + $0xfc0] sm:$0xf] }
  0xda   :  { %3570 = vmatpush.bf16.msra.mxu2 %v5921_v58  ;;  %v597_v58 = vunpack.c.l.b16 %v34_v32  ;;  %v6281_v4 = vor.u32 %v6861_v57, %v6280_v56  ;;  %v6136_v32 = vld [vmem:[%s10277_s1 + $0xed0] sm:$0xf]  ;;  %v6825_v36 = vld [vmem:[%s10277_s1 + $0xed4] sm:$0xf0]  ;;  %v6128_v56 = vld [vmem:[%s10277_s1 + $0xec0] sm:$0xf] }
  0xdb   :  { %3583 = vmatpush.bf16.msra.mxu3 %v5985_v63  ;;  %v6153_v63 = vor.u32 %v6829_v47, %v6152_v40  ;;  %v6841_v40 = vld [vmem:[%s10277_s1 + $0xf54] sm:$0xf0]  ;;  %v6137_v50 = vor.u32 %v6825_v36, %v6136_v32  ;;  %v6048_v36 = vld [vmem:[%s10277_s1 + $0xe20] sm:$0xf] }
  0xdc   :  { %3545 = vmatpush.bf16.msra.mxu0 %v5785_v6  ;;  %v6827_v6 = vld [vmem:[%s10277_s1 + $0xee4] sm:$0xf0]  ;;  %v8448_v10 = vpack.c.b16 %v597_v58, %v597_v58  ;;  %v6857_v47 = vld [vmem:[%s10277_s1 + $0xfd4] sm:$0xf0]  ;;  %v6201_v51 = vor.u32 %v6841_v40, %v6200_v39  ;;  %v6112_v40 = vld [vmem:[%s10277_s1 + $0xea0] sm:$0xf] }
  0xdd   :  { %3558 = vmatpush.bf16.msra.mxu1 %v5849_v13  ;;  %v8450_v13 = vpack.c.b16 %v596_v59, %v596_v59  ;;  %v6145_v21 = vor.u32 %v6827_v6, %v6144_v3  ;;  %v6823_v58 = vld [vmem:[%s10277_s1 + $0xec4] sm:$0xf0]  ;;  %v6192_v59 = vld [vmem:[%s10277_s1 + $0xf40] sm:$0xf]  ;;  %v6056_v6 = vld [vmem:[%s10277_s1 + $0xe30] sm:$0xf] }
  0xde   :  { %3571 = vmatpush.bf16.msra.mxu2 %v5913_v14  ;;  %v6272_v14 = vld [vmem:[%s10277_s1 + $0xfe0] sm:$0xf]  ;;  %v6129_v3 = vor.u32 %v6823_v58, %v6128_v56  ;;  %v6853_v26 = vld [vmem:[%s10277_s1 + $0xfb4] sm:$0xf0]  ;;  %v6803_v39 = vld [vmem:[%s10277_s1 + $0xe24] sm:$0xf0] }
  0xdf   :  { %3584 = vmatpush.bf16.msra.mxu3 %v5977_v24  ;;  %v6209_v24 = vor.u32 %v6843_v9, %v6208_v8  ;;  %v6273_v34 = vor.u32 %v6859_v15, %v6272_v14  ;;  %v6805_v8 = vld [vmem:[%s10277_s1 + $0xe34] sm:$0xf0]  ;;  %v6120_v9 = vld [vmem:[%s10277_s1 + $0xeb0] sm:$0xf]  ;;  %v6240_v56 = vld [vmem:[%s10277_s1 + $0xfa0] sm:$0xf] }
  0xe0   :  { %3546 = vmatpush.bf16.msra.mxu0 %v5777_v43  ;;  %v6264_v43 = vld [vmem:[%s10277_s1 + $0xfd0] sm:$0xf]  ;;  %v6821_v15 = vld [vmem:[%s10277_s1 + $0xeb4] sm:$0xf0]  ;;  %v6057_v27 = vor.u32 %v6805_v8, %v6056_v6 }
  0xe1   :  { %3559 = vmatpush.bf16.msra.mxu1 %v5841_v52  ;;  %v6064_v52 = vld [vmem:[%s10277_s1 + $0xe40] sm:$0xf]  ;;  %v6265_v57 = vor.u32 %v6857_v47, %v6264_v43  ;;  %v3353_v2 = vpop.f32.mrf.mxu1  ;;  %v6121_v32 = vor.u32 %v6821_v15, %v6120_v9  ;;  %v6168_v6 = vld [vmem:[%s10277_s1 + $0xf10] sm:$0xf]  ;;  %v6833_v8 = vld [vmem:[%s10277_s1 + $0xf14] sm:$0xf0] }
  0xe2   :  { %3572 = vmatpush.bf16.msra.mxu2 %v5905_v54  ;;  %v6807_v54 = vld [vmem:[%s10277_s1 + $0xe44] sm:$0xf0]  ;;  %v6232_v9 = vld [vmem:[%s10277_s1 + $0xf90] sm:$0xf] }
  0xe3   :  { %3585 = vmatpush.bf16.msra.mxu3 %v5969_v60  ;;  %3547 = vmatmul.bf16.vlgmr.msra.gmra.mxu0 %v8437_v5  ;;  %v6839_v60 = vld [vmem:[%s10277_s1 + $0xf44] sm:$0xf0]  ;;  %v6065_v1 = vor.u32 %v6807_v54, %v6064_v52 }
  0xe4   :  { %3591 = vmatpush.bf16.msrb.mxu0 %v6089_v61  ;;  %3560 = vmatmul.bf16.vlgmr.msra.gmra.mxu1 %v8450_v13  ;;  %v3340_v61 = vpop.f32.mrf.mxu0 }
  0xe5   :  { %3604 = vmatpush.bf16.msrb.mxu1 %v6153_v63  ;;  %3573 = vmatmul.bf16.vlgmr.msra.gmra.mxu2 %v8448_v10  ;;  %v6855_v63 = vld [vmem:[%s10277_s1 + $0xfc4] sm:$0xf0] }
  0xe6   :  { %3617 = vmatpush.bf16.msrb.mxu2 %v6217_v0  ;;  %3586 = vmatmul.bf16.vlgmr.msra.gmra.mxu3 %v8458_v53  ;;  %v3341_v0 = vadd.f32 %v3340_v61, %v8348_v55  ;;  %v6257_v55 = vor.u32 %v6855_v63, %v6256_v62 }
  0xe7   :  { %3630 = vmatpush.bf16.msrb.mxu3 %v6281_v4  ;;  %v6193_v4 = vor.u32 %v6839_v60, %v6192_v59  ;;  %v6049_v59 = vor.u32 %v6803_v39, %v6048_v36  ;;  %v35_v36 = vld [vmem:[%s10276_s0 + $0x70] sm:$0xff] }
  0xe8   :  { %3592 = vmatpush.bf16.msrb.mxu0 %v6081_v17  ;;  %v3354_v14 = vadd.f32 %v3353_v2, %v3341_v0  ;;  %v6184_v17 = vld [vmem:[%s10277_s1 + $0xf30] sm:$0xf]  ;;  %v3366_v47 = vpop.f32.mrf.mxu2 }
  0xe9   :  { %3605 = vmatpush.bf16.msrb.mxu1 %v6145_v21  ;;  %v6837_v21 = vld [vmem:[%s10277_s1 + $0xf34] sm:$0xf0]  ;;  %v3379_v54 = vpop.f32.mrf.mxu3  ;;  %v3355_v60 = vpop.f32.mrf.mxu1  ;;  %v6040_v0 = vld [vmem:[%s10277_s1 + $0xe10] sm:$0xf] }
  0xea   :  { %3618 = vmatpush.bf16.msrb.mxu2 %v6209_v24  ;;  %v6248_v24 = vld [vmem:[%s10277_s1 + $0xfb0] sm:$0xf]  ;;  %v3367_v52 = vadd.f32 %v3366_v47, %v3354_v14  ;;  %v6032_v14 = vld [vmem:[%s10277_s1 + $0xe00] sm:$0xf]  ;;  %v36_v47 = vld [vmem:[%s10276_s0 + $0x78] sm:$0xff]  ;;  %v599_v60 = vunpack.c.l.b16 %v35_v36 }
  0xeb   :  { %3631 = vmatpush.bf16.msrb.mxu3 %v6273_v34  ;;  %v6185_v34 = vor.u32 %v6837_v21, %v6184_v17  ;;  %v6249_v43 = vor.u32 %v6853_v26, %v6248_v24  ;;  %v6104_v2 = vld [vmem:[%s10277_s1 + $0xe90] sm:$0xf]  ;;  %v6799_v17 = vld [vmem:[%s10277_s1 + $0xe04] sm:$0xf0]  ;;  %v6096_v21 = vld [vmem:[%s10277_s1 + $0xe80] sm:$0xf] }
  0xec   :  { %3593 = vmatpush.bf16.msrb.mxu0 %v6073_v48  ;;  %v6819_v48 = vld [vmem:[%s10277_s1 + $0xea4] sm:$0xf0]  ;;  %v3342_v58 = vpop.f32.mrf.mxu0  ;;  %v8561_v61 = vadd.f32 %v3379_v54, %v3367_v52  ;;  %v6380_v52 = vld [vmem:[%s10277_s1 + $0xf4] sm:$0xf] }
  0xed   :  { %3606 = vmatpush.bf16.msrb.mxu1 %v6137_v50  ;;  %v6176_v50 = vld [vmem:[%s10277_s1 + $0xf20] sm:$0xf]  ;;  %v6113_v62 = vor.u32 %v6819_v48, %v6112_v40  ;;  %v6815_v24 = vld [vmem:[%s10277_s1 + $0xe84] sm:$0xf0]  ;;  %v6396_v58 = vld [vmem:[%s10277_s1 + $0x174] sm:$0xf] }
  0xee   :  { %3619 = vmatpush.bf16.msrb.mxu2 %v6201_v51  ;;  %v6835_v51 = vld [vmem:[%s10277_s1 + $0xf24] sm:$0xf0]  ;;  %v6224_v40 = vld [vmem:[%s10277_s1 + $0xf80] sm:$0xf] }
  0xef   :  { %3632 = vmatpush.bf16.msrb.mxu3 %v6265_v57  ;;  %v6851_v57 = vld [vmem:[%s10277_s1 + $0xfa4] sm:$0xf0]  ;;  %v6177_v63 = vor.u32 %v6835_v51, %v6176_v50  ;;  %v6364_v50 = vld [vmem:[%s10277_s1 + $0x74] sm:$0xf]  ;;  %v4298_v51 = vld [vmem:[%s10277_s1 + $0x78] sm:$0xf0] }
  0xf0   :  { %3594 = vmatpush.bf16.msrb.mxu0 %v6065_v1  ;;  %v6801_v1 = vld [vmem:[%s10277_s1 + $0xe14] sm:$0xf0]  ;;  %v3368_v48 = vpop.f32.mrf.mxu2 }
  0xf1   :  { %3607 = vmatpush.bf16.msrb.mxu1 %v6129_v3  ;;  %v6241_v3 = vor.u32 %v6851_v57, %v6240_v56  ;;  %v6041_v15 = vor.u32 %v6801_v1, %v6040_v0  ;;  %v3381_v54 = vpop.f32.mrf.mxu3  ;;  %v6033_v56 = vor.u32 %v6799_v17, %v6032_v14  ;;  %v4362_v57 = vld [vmem:[%s10277_s1 + $0xf8] sm:$0xf0]  ;;  %v6412_v0 = vld [vmem:[%s10277_s1 + $0x1f4] sm:$0xf]  ;;  %v6362_v14 = vld [vmem:[%s10277_s1 + $0x64] sm:$0xf] }
  0xf2   :  { %3620 = vmatpush.bf16.msrb.mxu2 %v6193_v4  ;;  %v6817_v4 = vld [vmem:[%s10277_s1 + $0xe94] sm:$0xf0]  ;;  %v4490_v1 = vld [vmem:[%s10277_s1 + $0x1f8] sm:$0xf0]  ;;  %v6378_v17 = vld [vmem:[%s10277_s1 + $0xe4] sm:$0xf] }
  0xf3   :  { %3633 = vmatpush.bf16.msrb.mxu3 %v6257_v55  ;;  %v6849_v55 = vld [vmem:[%s10277_s1 + $0xf94] sm:$0xf0]  ;;  %v6105_v26 = vor.u32 %v6817_v4, %v6104_v2  ;;  %v601_v2 = vunpack.c.l.b16 %v36_v47  ;;  %v6376_v54 = vld [vmem:[%s10277_s1 + $0xd4] sm:$0xf] }
  0xf4   :  { %3595 = vmatpush.bf16.msrb.mxu0 %v6057_v27  ;;  %v6169_v27 = vor.u32 %v6833_v8, %v6168_v6  ;;  %v6233_v39 = vor.u32 %v6849_v55, %v6232_v9  ;;  %v4301_v6 = vor.u32 %v6364_v50, %v4298_v51  ;;  %v602_v8 = vunpack.c.h.b16 %v36_v47  ;;  %v6360_v51 = vld [vmem:[%s10277_s1 + $0x54] sm:$0xf] }
  0xf5   :  { %3608 = vmatpush.bf16.msrb.mxu1 %v6121_v32  ;;  %v6160_v32 = vld [vmem:[%s10277_s1 + $0xf00] sm:$0xf]  ;;  %v4365_v9 = vor.u32 %v6380_v52, %v4362_v57  ;;  %v4282_v52 = vld [vmem:[%s10277_s1 + $0x58] sm:$0xf0] }
  0xf6   :  { %3621 = vmatpush.bf16.msrb.mxu2 %v6185_v34  ;;  %v6831_v34 = vld [vmem:[%s10277_s1 + $0xf04] sm:$0xf0]  ;;  %v4346_v57 = vld [vmem:[%s10277_s1 + $0xd8] sm:$0xf0] }
  0xf7   :  { %3634 = vmatpush.bf16.msrb.mxu3 %v6249_v43  ;;  %v6847_v43 = vld [vmem:[%s10277_s1 + $0xf84] sm:$0xf0] }
  0xf8   :  { %3596 = vmatpush.bf16.msrb.mxu0 %v6049_v59  ;;  %v4426_v59 = vld [vmem:[%s10277_s1 + $0x178] sm:$0xf0]  ;;  %v6225_v4 = vor.u32 %v6847_v43, %v6224_v40  ;;  %v4482_v40 = vld [vmem:[%s10277_s1 + $0x1e8] sm:$0xf0]  ;;  %v8671_v43 = vpack.c.b16 %v602_v8, %v602_v8 }
  0xf9   :  { %3609 = vmatpush.bf16.msrb.mxu1 %v6113_v62  ;;  %v6097_v62 = vor.u32 %v6815_v24, %v6096_v21  ;;  %v4429_v55 = vor.u32 %v6396_v58, %v4426_v59  ;;  %v4493_v21 = vor.u32 %v6412_v0, %v4490_v1  ;;  %v8650_v24 = vpack.c.b16 %v599_v60, %v599_v60  ;;  %v6392_v58 = vld [vmem:[%s10277_s1 + $0x154] sm:$0xf]  ;;  %v4410_v59 = vld [vmem:[%s10277_s1 + $0x158] sm:$0xf0]  ;;  %v4338_v8 = vld [vmem:[%s10277_s1 + $0xc8] sm:$0xf0] }
  0xfa   :  { %3622 = vmatpush.bf16.msrb.mxu2 %v6177_v63  ;;  %v6161_v63 = vor.u32 %v6831_v34, %v6160_v32  ;;  %v4418_v32 = vld [vmem:[%s10277_s1 + $0x168] sm:$0xf0]  ;;  %v8661_v34 = vpack.c.b16 %v601_v2, %v601_v2  ;;  %v6408_v60 = vld [vmem:[%s10277_s1 + $0x1d4] sm:$0xf]  ;;  %v4349_v0 = vor.u32 %v6376_v54, %v4346_v57  ;;  %v4413_v1 = vor.u32 %v6392_v58, %v4410_v59  ;;  %v6358_v2 = vld [vmem:[%s10277_s1 + $0x44] sm:$0xf] }
  0xfb   :  { %3635 = vmatpush.bf16.msrb.mxu3 %v6241_v3  ;;  %v600_v3 = vunpack.c.h.b16 %v35_v36  ;;  %v4394_v54 = vld [vmem:[%s10277_s1 + $0x138] sm:$0xf0] }
  0xfc   :  { %3597 = vmatpush.bf16.msrb.mxu0 %v6041_v15  ;;  %v4290_v15 = vld [vmem:[%s10277_s1 + $0x68] sm:$0xf0]  ;;  %v4458_v57 = vld [vmem:[%s10277_s1 + $0x1b8] sm:$0xf0] }
  0xfd   :  { %3610 = vmatpush.bf16.msrb.mxu1 %v6105_v26  ;;  %v4354_v26 = vld [vmem:[%s10277_s1 + $0xe8] sm:$0xf0]  ;;  %v8663_v36 = vpack.c.b16 %v600_v3, %v600_v3  ;;  %v4293_v47 = vor.u32 %v6362_v14, %v4290_v15  ;;  %v6406_v15 = vld [vmem:[%s10277_s1 + $0x1c4] sm:$0xf] }
  0xfe   :  { %3623 = vmatpush.bf16.msrb.mxu2 %v6169_v27  ;;  %v6394_v27 = vld [vmem:[%s10277_s1 + $0x164] sm:$0xf]  ;;  %v4357_v48 = vor.u32 %v6378_v17, %v4354_v26  ;;  %v4274_v3 = vld [vmem:[%s10277_s1 + $0x48] sm:$0xf0] }
  0xff   :  { %3636 = vmatpush.bf16.msrb.mxu3 %v6233_v39  ;;  %v6410_v39 = vld [vmem:[%s10277_s1 + $0x1e4] sm:$0xf]  ;;  %v4421_v50 = vor.u32 %v6394_v27, %v4418_v32  ;;  %v4466_v17 = vld [vmem:[%s10277_s1 + $0x1c8] sm:$0xf0]  ;;  %v4277_v26 = vor.u32 %v6358_v2, %v4274_v3 }
 0x100   :  { %3598 = vmatpush.bf16.msrb.mxu0 %v6033_v56  ;;  %v4485_v56 = vor.u32 %v6410_v39, %v4482_v40  ;;  %v3392_v14 = vpop.f32.mrf.mxu0  ;;  %v6356_v40 = vld [vmem:[%s10277_s1 + $0x34] sm:$0xf]  ;;  %v4322_v3 = vld [vmem:[%s10277_s1 + $0xa8] sm:$0xf0] }
 0x101   :  { %3611 = vmatpush.bf16.msrb.mxu1 %v6097_v62  ;;  %v4474_v62 = vld [vmem:[%s10277_s1 + $0x1d8] sm:$0xf0]  ;;  %v3405_v27 = vpop.f32.mrf.mxu1 }
 0x102   :  { %3624 = vmatpush.bf16.msrb.mxu2 %v6161_v63  ;;  %v4285_v63 = vor.u32 %v6360_v51, %v4282_v52  ;;  %v4330_v51 = vld [vmem:[%s10277_s1 + $0xb8] sm:$0xf0]  ;;  %v6388_v52 = vld [vmem:[%s10277_s1 + $0x134] sm:$0xf] }
 0x103   :  { %3637 = vmatpush.bf16.msrb.mxu3 %v6225_v4  ;;  %3599 = vmatmul.bf16.vlgmr.msrb.gmra.mxu0 %v8650_v24  ;;  %v6374_v4 = vld [vmem:[%s10277_s1 + $0xc4] sm:$0xf] }
 0x104   :  { %3643 = vmatpush.bf16.msra.mxu0 %v4301_v6  ;;  %3612 = vmatmul.bf16.vlgmr.msrb.gmra.mxu1 %v8663_v36  ;;  %v4477_v6 = vor.u32 %v6408_v60, %v4474_v62  ;;  %v4341_v32 = vor.u32 %v6374_v4, %v4338_v8  ;;  %v4397_v60 = vor.u32 %v6388_v52, %v4394_v54  ;;  %v6354_v62 = vld [vmem:[%s10277_s1 + $0x24] sm:$0xf]  ;;  %v6400_v52 = vld [vmem:[%s10277_s1 + $0x194] sm:$0xf]  ;;  %v4442_v54 = vld [vmem:[%s10277_s1 + $0x198] sm:$0xf0] }
 0x105   :  { %3656 = vmatpush.bf16.msra.mxu1 %v4365_v9  ;;  %3625 = vmatmul.bf16.vlgmr.msrb.gmra.mxu2 %v8661_v34  ;;  %v6390_v9 = vld [vmem:[%s10277_s1 + $0x144] sm:$0xf] }
 0x106   :  { %3669 = vmatpush.bf16.msra.mxu2 %v4429_v55  ;;  %3638 = vmatmul.bf16.vlgmr.msrb.gmra.mxu3 %v8671_v43  ;;  %v4402_v55 = vld [vmem:[%s10277_s1 + $0x148] sm:$0xf0]  ;;  %v6386_v4 = vld [vmem:[%s10277_s1 + $0x124] sm:$0xf] }
 0x107   :  { %3682 = vmatpush.bf16.msra.mxu3 %v4493_v21  ;;  %v3393_v21 = vadd.f32 %v3392_v14, %v8561_v61  ;;  %v4405_v39 = vor.u32 %v6390_v9, %v4402_v55  ;;  %v4469_v61 = vor.u32 %v6406_v15, %v4466_v17  ;;  %v6402_v55 = vld [vmem:[%s10277_s1 + $0x1a4] sm:$0xf]  ;;  %v4450_v14 = vld [vmem:[%s10277_s1 + $0x1a8] sm:$0xf0] }
 0x108   :  { %3644 = vmatpush.bf16.msra.mxu0 %v4293_v47  ;;  %v4266_v47 = vld [vmem:[%s10277_s1 + $0x38] sm:$0xf0]  ;;  %v3418_v2 = vpop.f32.mrf.mxu2  ;;  %v3394_v15 = vpop.f32.mrf.mxu0 }
 0x109   :  { %3657 = vmatpush.bf16.msra.mxu1 %v4357_v48  ;;  %v6372_v48 = vld [vmem:[%s10277_s1 + $0xb4] sm:$0xf]  ;;  %v4269_v58 = vor.u32 %v6356_v40, %v4266_v47  ;;  %v3431_v9 = vpop.f32.mrf.mxu3  ;;  %v4250_v40 = vld [vmem:[%s10277_s1 + $0x18] sm:$0xf0] }
 0x10a   :  { %3670 = vmatpush.bf16.msra.mxu2 %v4421_v50  ;;  %v3406_v50 = vadd.f32 %v3405_v27, %v3393_v21  ;;  %v4333_v59 = vor.u32 %v6372_v48, %v4330_v51  ;;  %v3407_v21 = vpop.f32.mrf.mxu1  ;;  %v6368_v47 = vld [vmem:[%s10277_s1 + $0x94] sm:$0xf]  ;;  %v4453_v48 = vor.u32 %v6402_v55, %v4450_v14  ;;  %v4378_v51 = vld [vmem:[%s10277_s1 + $0x118] sm:$0xf0] }
 0x10b   :  { %3683 = vmatpush.bf16.msra.mxu3 %v4485_v56  ;;  %v6404_v56 = vld [vmem:[%s10277_s1 + $0x1b4] sm:$0xf] }
 0x10c   :  { %3645 = vmatpush.bf16.msra.mxu0 %v4285_v63  ;;  %v4258_v63 = vld [vmem:[%s10277_s1 + $0x28] sm:$0xf0]  ;;  %v3419_v8 = vadd.f32 %v3418_v2, %v3406_v50  ;;  %v6384_v50 = vld [vmem:[%s10277_s1 + $0x114] sm:$0xf] }
 0x10d   :  { %3658 = vmatpush.bf16.msra.mxu1 %v4349_v0  ;;  %v6370_v0 = vld [vmem:[%s10277_s1 + $0xa4] sm:$0xf]  ;;  %v4261_v17 = vor.u32 %v6354_v62, %v4258_v63  ;;  %v4306_v63 = vld [vmem:[%s10277_s1 + $0x88] sm:$0xf0]  ;;  %v6444_v55 = vld [vmem:[%s10277_s1 + $0x2f4] sm:$0xf] }
 0x10e   :  { %3671 = vmatpush.bf16.msra.mxu2 %v4413_v1  ;;  %v4461_v1 = vor.u32 %v6404_v56, %v4458_v57  ;;  %v4325_v27 = vor.u32 %v6370_v0, %v4322_v3  ;;  %v6350_v57 = vld [vmem:[%s10277_s1 + $0x4] sm:$0xf]  ;;  %v4370_v2 = vld [vmem:[%s10277_s1 + $0x108] sm:$0xf0]  ;;  %v6460_v21 = vld [vmem:[%s10277_s1 + $0x374] sm:$0xf] }
 0x10f   :  { %3684 = vmatpush.bf16.msra.mxu3 %v4477_v6  ;;  %v4386_v6 = vld [vmem:[%s10277_s1 + $0x128] sm:$0xf0]  ;;  %v6366_v62 = vld [vmem:[%s10277_s1 + $0x84] sm:$0xf] }
 0x110   :  { %3646 = vmatpush.bf16.msra.mxu0 %v4277_v26  ;;  %v8774_v26 = vadd.f32 %v3431_v9, %v3419_v8  ;;  %v6382_v0 = vld [vmem:[%s10277_s1 + $0x104] sm:$0xf]  ;;  %v6428_v8 = vld [vmem:[%s10277_s1 + $0x274] sm:$0xf]  ;;  %v4554_v9 = vld [vmem:[%s10277_s1 + $0x278] sm:$0xf0] }
 0x111   :  { %3659 = vmatpush.bf16.msra.mxu1 %v4341_v32  ;;  %v4389_v32 = vor.u32 %v6386_v4, %v4386_v6  ;;  %v6398_v3 = vld [vmem:[%s10277_s1 + $0x184] sm:$0xf]  ;;  %v4434_v4 = vld [vmem:[%s10277_s1 + $0x188] sm:$0xf0]  ;;  %v3420_v6 = vpop.f32.mrf.mxu2  ;;  %v3433_v14 = vpop.f32.mrf.mxu3 }
 0x112   :  { %3672 = vmatpush.bf16.msra.mxu2 %v4405_v39  ;;  %v6352_v39 = vld [vmem:[%s10277_s1 + $0x14] sm:$0xf]  ;;  %v4666_v14 = vld [vmem:[%s10277_s1 + $0x358] sm:$0xf0] }
 0x113   :  { %3685 = vmatpush.bf16.msra.mxu3 %v4469_v61  ;;  %v4314_v61 = vld [vmem:[%s10277_s1 + $0x98] sm:$0xf0]  ;;  %v4253_v56 = vor.u32 %v6352_v39, %v4250_v40  ;;  %v4373_v39 = vor.u32 %v6382_v0, %v4370_v2  ;;  %v6476_v40 = vld [vmem:[%s10277_s1 + $0x3f4] sm:$0xf] }
 0x114   :  { %3647 = vmatpush.bf16.msra.mxu0 %v4269_v58  ;;  %v4242_v58 = vld [vmem:[%s10277_s1 + $0x8] sm:$0xf0]  ;;  %v6440_v6 = vld [vmem:[%s10277_s1 + $0x2d4] sm:$0xf] }
 0x115   :  { %3660 = vmatpush.bf16.msra.mxu1 %v4333_v59  ;;  %v4317_v59 = vor.u32 %v6368_v47, %v4314_v61  ;;  %v4245_v15 = vor.u32 %v6350_v57, %v4242_v58  ;;  %v4746_v47 = vld [vmem:[%s10277_s1 + $0x3f8] sm:$0xf0]  ;;  %v4557_v61 = vor.u32 %v6428_v8, %v4554_v9  ;;  %v4610_v58 = vld [vmem:[%s10277_s1 + $0x2e8] sm:$0xf0] }
 0x116   :  { %3673 = vmatpush.bf16.msra.mxu2 %v4397_v60  ;;  %v4381_v60 = vor.u32 %v6384_v50, %v4378_v51  ;;  %v4749_v57 = vor.u32 %v6476_v40, %v4746_v47  ;;  %v4602_v9 = vld [vmem:[%s10277_s1 + $0x2d8] sm:$0xf0]  ;;  %v6454_v40 = vld [vmem:[%s10277_s1 + $0x344] sm:$0xf]  ;;  %v4658_v47 = vld [vmem:[%s10277_s1 + $0x348] sm:$0xf0] }
 0x117   :  { %3686 = vmatpush.bf16.msra.mxu3 %v4461_v1  ;;  %v4445_v1 = vor.u32 %v6400_v52, %v4442_v54  ;;  %v6426_v52 = vld [vmem:[%s10277_s1 + $0x264] sm:$0xf]  ;;  %v4546_v54 = vld [vmem:[%s10277_s1 + $0x268] sm:$0xf0] }
 0x118   :  { %3648 = vmatpush.bf16.msra.mxu0 %v4261_v17  ;;  %v4618_v17 = vld [vmem:[%s10277_s1 + $0x2f8] sm:$0xf0]  ;;  %v4549_v0 = vor.u32 %v6426_v52, %v4546_v54 }
 0x119   :  { %3661 = vmatpush.bf16.msra.mxu1 %v4325_v27  ;;  %v4682_v27 = vld [vmem:[%s10277_s1 + $0x378] sm:$0xf0]  ;;  %v4621_v50 = vor.u32 %v6444_v55, %v4618_v17  ;;  %v6456_v55 = vld [vmem:[%s10277_s1 + $0x354] sm:$0xf] }
 0x11a   :  { %3674 = vmatpush.bf16.msra.mxu2 %v4389_v32  ;;  %v4309_v32 = vor.u32 %v6366_v62, %v4306_v63  ;;  %v4685_v51 = vor.u32 %v6460_v21, %v4682_v27  ;;  %v6474_v62 = vld [vmem:[%s10277_s1 + $0x3e4] sm:$0xf]  ;;  %v4738_v63 = vld [vmem:[%s10277_s1 + $0x3e8] sm:$0xf0]  ;;  %v4730_v17 = vld [vmem:[%s10277_s1 + $0x3d8] sm:$0xf0]  ;;  %v4605_v27 = vor.u32 %v6440_v6, %v4602_v9 }
 0x11b   :  { %3687 = vmatpush.bf16.msra.mxu3 %v4453_v48  ;;  %v4437_v48 = vor.u32 %v6398_v3, %v4434_v4  ;;  %v6424_v3 = vld [vmem:[%s10277_s1 + $0x254] sm:$0xf]  ;;  %v4538_v4 = vld [vmem:[%s10277_s1 + $0x258] sm:$0xf0]  ;;  %v4741_v8 = vor.u32 %v6474_v62, %v4738_v63  ;;  %v6418_v9 = vld [vmem:[%s10277_s1 + $0x224] sm:$0xf] }
 0x11c   :  { %3649 = vmatpush.bf16.msra.mxu0 %v4253_v56  ;;  %v6442_v56 = vld [vmem:[%s10277_s1 + $0x2e4] sm:$0xf]  ;;  %v4541_v21 = vor.u32 %v6424_v3, %v4538_v4  ;;  %v4586_v63 = vld [vmem:[%s10277_s1 + $0x2b8] sm:$0xf0] }
 0x11d   :  { %3662 = vmatpush.bf16.msra.mxu1 %v4317_v59  ;;  %v6458_v59 = vld [vmem:[%s10277_s1 + $0x364] sm:$0xf]  ;;  %v4714_v3 = vld [vmem:[%s10277_s1 + $0x3b8] sm:$0xf0] }
 0x11e   :  { %3675 = vmatpush.bf16.msra.mxu2 %v4381_v60  ;;  %v4674_v60 = vld [vmem:[%s10277_s1 + $0x368] sm:$0xf0] }
 0x11f   :  { %3688 = vmatpush.bf16.msra.mxu3 %v4445_v1  ;;  %v4613_v1 = vor.u32 %v6442_v56, %v4610_v58  ;;  %v4677_v2 = vor.u32 %v6458_v59, %v4674_v60  ;;  %v6420_v58 = vld [vmem:[%s10277_s1 + $0x234] sm:$0xf]  ;;  %v4522_v59 = vld [vmem:[%s10277_s1 + $0x238] sm:$0xf0] }
 0x120   :  { %3650 = vmatpush.bf16.msra.mxu0 %v4245_v15  ;;  %v6472_v15 = vld [vmem:[%s10277_s1 + $0x3d4] sm:$0xf]  ;;  %v4525_v4 = vor.u32 %v6420_v58, %v4522_v59  ;;  %v4634_v59 = vld [vmem:[%s10277_s1 + $0x318] sm:$0xf0] }
 0x121   :  { %3663 = vmatpush.bf16.msra.mxu1 %v4309_v32  ;;  %v6422_v32 = vld [vmem:[%s10277_s1 + $0x244] sm:$0xf]  ;;  %v3457_v54 = vpop.f32.mrf.mxu1  ;;  %v6436_v60 = vld [vmem:[%s10277_s1 + $0x2b4] sm:$0xf] }
 0x122   :  { %3676 = vmatpush.bf16.msra.mxu2 %v4373_v39  ;;  %v4530_v39 = vld [vmem:[%s10277_s1 + $0x248] sm:$0xf0]  ;;  %v4589_v6 = vor.u32 %v6436_v60, %v4586_v63  ;;  %v6448_v58 = vld [vmem:[%s10277_s1 + $0x314] sm:$0xf]  ;;  %v6414_v63 = vld [vmem:[%s10277_s1 + $0x204] sm:$0xf] }
 0x123   :  { %3689 = vmatpush.bf16.msra.mxu3 %v4437_v48  ;;  %3651 = vmatmul.bf16.vlgmr.msra.gmra.mxu0 %v7234_v19  ;;  %v6438_v19 = vld [vmem:[%s10277_s1 + $0x2c4] sm:$0xf]  ;;  %v3444_v48 = vpop.f32.mrf.mxu0  ;;  %v4533_v52 = vor.u32 %v6422_v32, %v4530_v39  ;;  %v6464_v60 = vld [vmem:[%s10277_s1 + $0x394] sm:$0xf] }
 0x124   :  { %3695 = vmatpush.bf16.msrb.mxu0 %v4557_v61  ;;  %3664 = vmatmul.bf16.vlgmr.msra.gmra.mxu1 %v7238_v22  ;;  %v4594_v22 = vld [vmem:[%s10277_s1 + $0x2c8] sm:$0xf0]  ;;  %v6470_v61 = vld [vmem:[%s10277_s1 + $0x3c4] sm:$0xf] }
 0x125   :  { %3708 = vmatpush.bf16.msrb.mxu1 %v4621_v50  ;;  %3677 = vmatmul.bf16.vlgmr.msra.gmra.mxu2 %v7232_v18  ;;  %v4669_v18 = vor.u32 %v6456_v55, %v4666_v14  ;;  %v4722_v50 = vld [vmem:[%s10277_s1 + $0x3c8] sm:$0xf0]  ;;  %v4597_v56 = vor.u32 %v6438_v19, %v4594_v22  ;;  %v6434_v14 = vld [vmem:[%s10277_s1 + $0x2a4] sm:$0xf] }
 0x126   :  { %3721 = vmatpush.bf16.msrb.mxu2 %v4685_v51  ;;  %3690 = vmatmul.bf16.vlgmr.msra.gmra.mxu3 %v7236_v20  ;;  %v4733_v20 = vor.u32 %v6472_v15, %v4730_v17  ;;  %v3445_v51 = vadd.f32 %v3444_v48, %v8774_v26  ;;  %v4725_v26 = vor.u32 %v6470_v61, %v4722_v50  ;;  %v4514_v55 = vld [vmem:[%s10277_s1 + $0x228] sm:$0xf0]  ;;  %v6466_v19 = vld [vmem:[%s10277_s1 + $0x3a4] sm:$0xf] }
 0x127   :  { %3734 = vmatpush.bf16.msrb.mxu3 %v4749_v57  ;;  %v4661_v57 = vor.u32 %v6454_v40, %v4658_v47  ;;  %v4517_v40 = vor.u32 %v6418_v9, %v4514_v55  ;;  %v4626_v9 = vld [vmem:[%s10277_s1 + $0x308] sm:$0xf0]  ;;  %v6462_v55 = vld [vmem:[%s10277_s1 + $0x384] sm:$0xf] }
 0x128   :  { %3696 = vmatpush.bf16.msrb.mxu0 %v4549_v0  ;;  %v3458_v62 = vadd.f32 %v3457_v54, %v3445_v51  ;;  %v6452_v0 = vld [vmem:[%s10277_s1 + $0x334] sm:$0xf]  ;;  %v3470_v17 = vpop.f32.mrf.mxu2 }
 0x129   :  { %3709 = vmatpush.bf16.msrb.mxu1 %v4613_v1  ;;  %v4650_v1 = vld [vmem:[%s10277_s1 + $0x338] sm:$0xf0]  ;;  %v3483_v39 = vpop.f32.mrf.mxu3  ;;  %v3459_v47 = vpop.f32.mrf.mxu1  ;;  %v6416_v51 = vld [vmem:[%s10277_s1 + $0x214] sm:$0xf] }
 0x12a   :  { %3722 = vmatpush.bf16.msrb.mxu2 %v4677_v2  ;;  %v6468_v2 = vld [vmem:[%s10277_s1 + $0x3b4] sm:$0xf]  ;;  %v3471_v32 = vadd.f32 %v3470_v17, %v3458_v62 }
 0x12b   :  { %3735 = vmatpush.bf16.msrb.mxu3 %v4741_v8  ;;  %v4653_v8 = vor.u32 %v6452_v0, %v4650_v1  ;;  %v4717_v15 = vor.u32 %v6468_v2, %v4714_v3  ;;  %v3446_v22 = vpop.f32.mrf.mxu0  ;;  %v6432_v54 = vld [vmem:[%s10277_s1 + $0x294] sm:$0xf]  ;;  %v4498_v0 = vld [vmem:[%s10277_s1 + $0x208] sm:$0xf0]  ;;  %v4637_v2 = vor.u32 %v6448_v58, %v4634_v59  ;;  %v6430_v3 = vld [vmem:[%s10277_s1 + $0x284] sm:$0xf] }
 0x12c   :  { %3697 = vmatpush.bf16.msrb.mxu0 %v4541_v21  ;;  %v4578_v21 = vld [vmem:[%s10277_s1 + $0x2a8] sm:$0xf0]  ;;  %v8973_v48 = vadd.f32 %v3483_v39, %v3471_v32  ;;  %v6492_v17 = vld [vmem:[%s10277_s1 + $0x474] sm:$0xf]  ;;  %v4501_v32 = vor.u32 %v6414_v63, %v4498_v0  ;;  %v4874_v39 = vld [vmem:[%s10277_s1 + $0x4f8] sm:$0xf0] }
 0x12d   :  { %3710 = vmatpush.bf16.msrb.mxu1 %v4605_v27  ;;  %v6450_v27 = vld [vmem:[%s10277_s1 + $0x324] sm:$0xf]  ;;  %v4581_v61 = vor.u32 %v6434_v14, %v4578_v21  ;;  %v4690_v14 = vld [vmem:[%s10277_s1 + $0x388] sm:$0xf0]  ;;  %v4810_v21 = vld [vmem:[%s10277_s1 + $0x478] sm:$0xf0] }
 0x12e   :  { %3723 = vmatpush.bf16.msrb.mxu2 %v4669_v18  ;;  %v4642_v18 = vld [vmem:[%s10277_s1 + $0x328] sm:$0xf0]  ;;  %v6540_v47 = vld [vmem:[%s10277_s1 + $0x5f4] sm:$0xf]  ;;  %v6506_v58 = vld [vmem:[%s10277_s1 + $0x4e4] sm:$0xf] }
 0x12f   :  { %3736 = vmatpush.bf16.msrb.mxu3 %v4733_v20  ;;  %v4706_v20 = vld [vmem:[%s10277_s1 + $0x3a8] sm:$0xf0]  ;;  %v4645_v50 = vor.u32 %v6450_v27, %v4642_v18  ;;  %v6508_v27 = vld [vmem:[%s10277_s1 + $0x4f4] sm:$0xf]  ;;  %v6538_v63 = vld [vmem:[%s10277_s1 + $0x5e4] sm:$0xf] }
 0x130   :  { %3698 = vmatpush.bf16.msrb.mxu0 %v4533_v52  ;;  %v4506_v52 = vld [vmem:[%s10277_s1 + $0x218] sm:$0xf0]  ;;  %v4994_v0 = vld [vmem:[%s10277_s1 + $0x5e8] sm:$0xf0] }
 0x131   :  { %3711 = vmatpush.bf16.msrb.mxu1 %v4597_v56  ;;  %v4709_v56 = vor.u32 %v6466_v19, %v4706_v20  ;;  %v4509_v62 = vor.u32 %v6416_v51, %v4506_v52  ;;  %v3485_v18 = vpop.f32.mrf.mxu3  ;;  %v6524_v19 = vld [vmem:[%s10277_s1 + $0x574] sm:$0xf]  ;;  %v4938_v20 = vld [vmem:[%s10277_s1 + $0x578] sm:$0xf0]  ;;  %v4813_v51 = vor.u32 %v6492_v17, %v4810_v21  ;;  %v4877_v52 = vor.u32 %v6508_v27, %v4874_v39  ;;  %v4786_v39 = vld [vmem:[%s10277_s1 + $0x448] sm:$0xf0] }
 0x132   :  { %3724 = vmatpush.bf16.msrb.mxu2 %v4661_v57  ;;  %v4570_v57 = vld [vmem:[%s10277_s1 + $0x298] sm:$0xf0]  ;;  %v6536_v17 = vld [vmem:[%s10277_s1 + $0x5d4] sm:$0xf] }
 0x133   :  { %3737 = vmatpush.bf16.msrb.mxu3 %v4725_v26  ;;  %v4698_v26 = vld [vmem:[%s10277_s1 + $0x398] sm:$0xf0]  ;;  %v4573_v1 = vor.u32 %v6432_v54, %v4570_v57  ;;  %v4941_v54 = vor.u32 %v6524_v19, %v4938_v20  ;;  %v4802_v57 = vld [vmem:[%s10277_s1 + $0x468] sm:$0xf0]  ;;  %v6518_v19 = vld [vmem:[%s10277_s1 + $0x544] sm:$0xf] }
 0x134   :  { %3699 = vmatpush.bf16.msrb.mxu0 %v4525_v4  ;;  %v4562_v4 = vld [vmem:[%s10277_s1 + $0x288] sm:$0xf0] }
 0x135   :  { %3712 = vmatpush.bf16.msrb.mxu1 %v4589_v6  ;;  %v6446_v6 = vld [vmem:[%s10277_s1 + $0x304] sm:$0xf]  ;;  %v4565_v22 = vor.u32 %v6430_v3, %v4562_v4  ;;  %v6488_v4 = vld [vmem:[%s10277_s1 + $0x454] sm:$0xf]  ;;  %v4914_v20 = vld [vmem:[%s10277_s1 + $0x548] sm:$0xf0] }
 0x136   :  { %3725 = vmatpush.bf16.msrb.mxu2 %v4653_v8  ;;  %v4701_v8 = vor.u32 %v6464_v60, %v4698_v26  ;;  %v4866_v60 = vld [vmem:[%s10277_s1 + $0x4e8] sm:$0xf0]  ;;  %v6522_v26 = vld [vmem:[%s10277_s1 + $0x564] sm:$0xf] }
 0x137   :  { %3738 = vmatpush.bf16.msrb.mxu3 %v4717_v15  ;;  %v3472_v15 = vpop.f32.mrf.mxu2 }
 0x138   :  { %3700 = vmatpush.bf16.msrb.mxu0 %v4517_v40  ;;  %v4629_v40 = vor.u32 %v6446_v6, %v4626_v9  ;;  %v4794_v6 = vld [vmem:[%s10277_s1 + $0x458] sm:$0xf0]  ;;  %v4997_v9 = vor.u32 %v6538_v63, %v4994_v0  ;;  %v6532_v63 = vld [vmem:[%s10277_s1 + $0x5b4] sm:$0xf] }
 0x139   :  { %3713 = vmatpush.bf16.msrb.mxu1 %v4581_v61  ;;  %v5002_v61 = vld [vmem:[%s10277_s1 + $0x5f8] sm:$0xf0]  ;;  %v4797_v21 = vor.u32 %v6488_v4, %v4794_v6  ;;  %v6482_v4 = vld [vmem:[%s10277_s1 + $0x424] sm:$0xf]  ;;  %v4770_v6 = vld [vmem:[%s10277_s1 + $0x428] sm:$0xf0] }
 0x13a   :  { %3726 = vmatpush.bf16.msrb.mxu2 %v4645_v50  ;;  %v4693_v50 = vor.u32 %v6462_v55, %v4690_v14  ;;  %v5005_v59 = vor.u32 %v6540_v47, %v5002_v61  ;;  %v4858_v55 = vld [vmem:[%s10277_s1 + $0x4d8] sm:$0xf0]  ;;  %v6520_v14 = vld [vmem:[%s10277_s1 + $0x554] sm:$0xf]  ;;  %v4978_v47 = vld [vmem:[%s10277_s1 + $0x5c8] sm:$0xf0] }
 0x13b   :  { %3739 = vmatpush.bf16.msrb.mxu3 %v4709_v56  ;;  %v6490_v56 = vld [vmem:[%s10277_s1 + $0x464] sm:$0xf]  ;;  %v4922_v15 = vld [vmem:[%s10277_s1 + $0x558] sm:$0xf0] }
 0x13c   :  { %3701 = vmatpush.bf16.msrb.mxu0 %v4509_v62  ;;  %v4930_v62 = vld [vmem:[%s10277_s1 + $0x568] sm:$0xf0]  ;;  %v4925_v18 = vor.u32 %v6520_v14, %v4922_v15  ;;  %v4970_v0 = vld [vmem:[%s10277_s1 + $0x5b8] sm:$0xf0]  ;;  %v6514_v15 = vld [vmem:[%s10277_s1 + $0x524] sm:$0xf] }
 0x13d   :  { %3714 = vmatpush.bf16.msrb.mxu1 %v4573_v1  ;;  %v4805_v1 = vor.u32 %v6490_v56, %v4802_v57  ;;  %v4933_v3 = vor.u32 %v6522_v26, %v4930_v62  ;;  %v6484_v56 = vld [vmem:[%s10277_s1 + $0x434] sm:$0xf]  ;;  %v4778_v57 = vld [vmem:[%s10277_s1 + $0x438] sm:$0xf0]  ;;  %v4834_v14 = vld [vmem:[%s10277_s1 + $0x4a8] sm:$0xf0] }
 0x13e   :  { %3727 = vmatpush.bf16.msrb.mxu2 %v4637_v2  ;;  %v4869_v2 = vor.u32 %v6506_v58, %v4866_v60  ;;  %v6500_v58 = vld [vmem:[%s10277_s1 + $0x4b4] sm:$0xf]  ;;  %v4842_v60 = vld [vmem:[%s10277_s1 + $0x4b8] sm:$0xf0] }
 0x13f   :  { %3740 = vmatpush.bf16.msrb.mxu3 %v4701_v8  ;;  %v6504_v8 = vld [vmem:[%s10277_s1 + $0x4d4] sm:$0xf]  ;;  %v4906_v62 = vld [vmem:[%s10277_s1 + $0x538] sm:$0xf0] }
 0x140   :  { %3702 = vmatpush.bf16.msrb.mxu0 %v4501_v32  ;;  %v4861_v27 = vor.u32 %v6504_v8, %v4858_v55  ;;  %v6486_v32 = vld [vmem:[%s10277_s1 + $0x444] sm:$0xf]  ;;  %v6516_v26 = vld [vmem:[%s10277_s1 + $0x534] sm:$0xf] }
 0x141   :  { %3715 = vmatpush.bf16.msrb.mxu1 %v4565_v22  ;;  %v3496_v22 = vpop.f32.mrf.mxu0  ;;  %v6498_v8 = vld [vmem:[%s10277_s1 + $0x4a4] sm:$0xf] }
 0x142   :  { %3728 = vmatpush.bf16.msrb.mxu2 %v4629_v40  ;;  %v6534_v40 = vld [vmem:[%s10277_s1 + $0x5c4] sm:$0xf]  ;;  %v3497_v61 = vadd.f32 %v3496_v22, %v8973_v48  ;;  %v4762_v22 = vld [vmem:[%s10277_s1 + $0x418] sm:$0xf0] }
 0x143   :  { %3741 = vmatpush.bf16.msrb.mxu3 %v4693_v50  ;;  %3703 = vmatmul.bf16.vlgmr.msrb.gmra.mxu0 %v7396_v41  ;;  %v6502_v41 = vld [vmem:[%s10277_s1 + $0x4c4] sm:$0xf]  ;;  %v4789_v50 = vor.u32 %v6486_v32, %v4786_v39  ;;  %v4981_v48 = vor.u32 %v6534_v40, %v4978_v47  ;;  %v4773_v39 = vor.u32 %v6482_v4, %v4770_v6  ;;  %v6496_v40 = vld [vmem:[%s10277_s1 + $0x494] sm:$0xf]  ;;  %v5066_v6 = vld [vmem:[%s10277_s1 + $0x678] sm:$0xf0] }
 0x144   :  { %3747 = vmatpush.bf16.msra.mxu0 %v4813_v51  ;;  %3716 = vmatmul.bf16.vlgmr.msrb.gmra.mxu1 %v7400_v44  ;;  %v4850_v44 = vld [vmem:[%s10277_s1 + $0x4c8] sm:$0xf0]  ;;  %v3509_v51 = vpop.f32.mrf.mxu1  ;;  %v6556_v4 = vld [vmem:[%s10277_s1 + $0x674] sm:$0xf] }
 0x145   :  { %3760 = vmatpush.bf16.msra.mxu1 %v4877_v52  ;;  %3729 = vmatmul.bf16.vlgmr.msrb.gmra.mxu2 %v7388_v38  ;;  %v4986_v38 = vld [vmem:[%s10277_s1 + $0x5d8] sm:$0xf0]  ;;  %v4853_v52 = vor.u32 %v6502_v41, %v4850_v44  ;;  %v4837_v44 = vor.u32 %v6498_v8, %v4834_v14  ;;  %v6572_v8 = vld [vmem:[%s10277_s1 + $0x6f4] sm:$0xf] }
 0x146   :  { %3773 = vmatpush.bf16.msra.mxu2 %v4941_v54  ;;  %3742 = vmatmul.bf16.vlgmr.msrb.gmra.mxu3 %v7398_v42  ;;  %v4989_v42 = vor.u32 %v6536_v17, %v4986_v38  ;;  %v4917_v54 = vor.u32 %v6518_v19, %v4914_v20  ;;  %v4898_v17 = vld [vmem:[%s10277_s1 + $0x528] sm:$0xf0]  ;;  %v6480_v20 = vld [vmem:[%s10277_s1 + $0x414] sm:$0xf]  ;;  %v5130_v14 = vld [vmem:[%s10277_s1 + $0x6f8] sm:$0xf0] }
 0x147   :  { %3786 = vmatpush.bf16.msra.mxu3 %v5005_v59  ;;  %v3510_v59 = vadd.f32 %v3509_v51, %v3497_v61  ;;  %v4901_v19 = vor.u32 %v6514_v15, %v4898_v17  ;;  %v4826_v61 = vld [vmem:[%s10277_s1 + $0x498] sm:$0xf0]  ;;  %v6588_v15 = vld [vmem:[%s10277_s1 + $0x774] sm:$0xf] }
 0x148   :  { %3748 = vmatpush.bf16.msra.mxu0 %v4805_v1  ;;  %v4781_v1 = vor.u32 %v6484_v56, %v4778_v57  ;;  %v3522_v55 = vpop.f32.mrf.mxu2  ;;  %v4890_v51 = vld [vmem:[%s10277_s1 + $0x518] sm:$0xf0]  ;;  %v4765_v56 = vor.u32 %v6480_v20, %v4762_v22  ;;  %v6478_v57 = vld [vmem:[%s10277_s1 + $0x404] sm:$0xf]  ;;  %v5058_v20 = vld [vmem:[%s10277_s1 + $0x668] sm:$0xf0] }
 0x149   :  { %3761 = vmatpush.bf16.msra.mxu1 %v4869_v2  ;;  %v4845_v2 = vor.u32 %v6500_v58, %v4842_v60  ;;  %v3523_v38 = vadd.f32 %v3522_v55, %v3510_v59  ;;  %v3498_v32 = vpop.f32.mrf.mxu0  ;;  %v4754_v58 = vld [vmem:[%s10277_s1 + $0x408] sm:$0xf0]  ;;  %v6494_v60 = vld [vmem:[%s10277_s1 + $0x484] sm:$0xf]  ;;  %v5194_v17 = vld [vmem:[%s10277_s1 + $0x778] sm:$0xf0] }
 0x14a   :  { %3774 = vmatpush.bf16.msra.mxu2 %v4933_v3  ;;  %v4909_v3 = vor.u32 %v6516_v26, %v4906_v62  ;;  %v4818_v26 = vld [vmem:[%s10277_s1 + $0x488] sm:$0xf0]  ;;  %v6510_v62 = vld [vmem:[%s10277_s1 + $0x504] sm:$0xf]  ;;  %v4757_v55 = vor.u32 %v6478_v57, %v4754_v58  ;;  %v6552_v58 = vld [vmem:[%s10277_s1 + $0x654] sm:$0xf] }
 0x14b   :  { %3787 = vmatpush.bf16.msra.mxu3 %v4997_v9  ;;  %v4973_v9 = vor.u32 %v6532_v63, %v4970_v0  ;;  %v4882_v0 = vld [vmem:[%s10277_s1 + $0x508] sm:$0xf0]  ;;  %v6570_v22 = vld [vmem:[%s10277_s1 + $0x6e4] sm:$0xf] }
 0x14c   :  { %3749 = vmatpush.bf16.msra.mxu0 %v4797_v21  ;;  %v3535_v21 = vpop.f32.mrf.mxu3  ;;  %v3511_v41 = vpop.f32.mrf.mxu1 }
 0x14d   :  { %3762 = vmatpush.bf16.msra.mxu1 %v4861_v27  ;;  %v6530_v27 = vld [vmem:[%s10277_s1 + $0x5a4] sm:$0xf]  ;;  %v5133_v41 = vor.u32 %v6572_v8, %v5130_v14 }
 0x14e   :  { %3775 = vmatpush.bf16.msra.mxu2 %v4925_v18  ;;  %v4962_v18 = vld [vmem:[%s10277_s1 + $0x5a8] sm:$0xf0]  ;;  %v6582_v8 = vld [vmem:[%s10277_s1 + $0x744] sm:$0xf] }
 0x14f   :  { %3788 = vmatpush.bf16.msra.mxu3 %v4989_v42  ;;  %v9172_v42 = vadd.f32 %v3535_v21, %v3523_v38  ;;  %v4965_v47 = vor.u32 %v6530_v27, %v4962_v18  ;;  %v4821_v38 = vor.u32 %v6494_v60, %v4818_v26  ;;  %v4885_v21 = vor.u32 %v6510_v62, %v4882_v0  ;;  %v6604_v27 = vld [vmem:[%s10277_s1 + $0x7f4] sm:$0xf]  ;;  %v5258_v18 = vld [vmem:[%s10277_s1 + $0x7f8] sm:$0xf0]  ;;  %v6598_v14 = vld [vmem:[%s10277_s1 + $0x7c4] sm:$0xf] }
 0x150   :  { %3750 = vmatpush.bf16.msra.mxu0 %v4789_v50  ;;  %v6512_v50 = vld [vmem:[%s10277_s1 + $0x514] sm:$0xf]  ;;  %v5114_v26 = vld [vmem:[%s10277_s1 + $0x6d8] sm:$0xf0] }
 0x151   :  { %3763 = vmatpush.bf16.msra.mxu1 %v4853_v52  ;;  %v6528_v52 = vld [vmem:[%s10277_s1 + $0x594] sm:$0xf]  ;;  %v4893_v59 = vor.u32 %v6512_v50, %v4890_v51  ;;  %v5186_v50 = vld [vmem:[%s10277_s1 + $0x768] sm:$0xf0]  ;;  %v6602_v51 = vld [vmem:[%s10277_s1 + $0x7e4] sm:$0xf] }
 0x152   :  { %3776 = vmatpush.bf16.msra.mxu2 %v4917_v54  ;;  %v4954_v54 = vld [vmem:[%s10277_s1 + $0x598] sm:$0xf0]  ;;  %v6584_v62 = vld [vmem:[%s10277_s1 + $0x754] sm:$0xf] }
 0x153   :  { %3789 = vmatpush.bf16.msra.mxu3 %v4981_v48  ;;  %v4829_v48 = vor.u32 %v6496_v40, %v4826_v61  ;;  %v4957_v63 = vor.u32 %v6528_v52, %v4954_v54  ;;  %v5261_v40 = vor.u32 %v6604_v27, %v5258_v18  ;;  %v6586_v61 = vld [vmem:[%s10277_s1 + $0x764] sm:$0xf]  ;;  %v5250_v52 = vld [vmem:[%s10277_s1 + $0x7e8] sm:$0xf0]  ;;  %v5242_v0 = vld [vmem:[%s10277_s1 + $0x7d8] sm:$0xf0] }
 0x154   :  { %3751 = vmatpush.bf16.msra.mxu0 %v4781_v1  ;;  %v6526_v1 = vld [vmem:[%s10277_s1 + $0x584] sm:$0xf]  ;;  %v5189_v57 = vor.u32 %v6586_v61, %v5186_v50  ;;  %v5253_v60 = vor.u32 %v6602_v51, %v5250_v52 }
 0x155   :  { %3764 = vmatpush.bf16.msra.mxu1 %v4845_v2  ;;  %v4946_v2 = vld [vmem:[%s10277_s1 + $0x588] sm:$0xf0]  ;;  %v6546_v52 = vld [vmem:[%s10277_s1 + $0x624] sm:$0xf] }
 0x156   :  { %3777 = vmatpush.bf16.msra.mxu2 %v4909_v3  ;;  %v3524_v3 = vpop.f32.mrf.mxu2  ;;  %v4949_v32 = vor.u32 %v6526_v1, %v4946_v2 }
 0x157   :  { %3790 = vmatpush.bf16.msra.mxu3 %v4973_v9  ;;  %v3537_v9 = vpop.f32.mrf.mxu3 }
 0x158   :  { %3752 = vmatpush.bf16.msra.mxu0 %v4773_v39  ;;  %v5069_v39 = vor.u32 %v6556_v4, %v5066_v6  ;;  %v6566_v4 = vld [vmem:[%s10277_s1 + $0x6c4] sm:$0xf]  ;;  %v5106_v6 = vld [vmem:[%s10277_s1 + $0x6c8] sm:$0xf0] }
 0x159   :  { %3765 = vmatpush.bf16.msra.mxu1 %v4837_v44  ;;  %v5197_v44 = vor.u32 %v6588_v15, %v5194_v17  ;;  %v5170_v9 = vld [vmem:[%s10277_s1 + $0x748] sm:$0xf0]  ;;  %v5109_v27 = vor.u32 %v6566_v4, %v5106_v6  ;;  %v6544_v4 = vld [vmem:[%s10277_s1 + $0x614] sm:$0xf] }
 0x15a   :  { %3778 = vmatpush.bf16.msra.mxu2 %v4901_v19  ;;  %v6554_v19 = vld [vmem:[%s10277_s1 + $0x664] sm:$0xf]  ;;  %v5234_v15 = vld [vmem:[%s10277_s1 + $0x7c8] sm:$0xf0]  ;;  %v5173_v18 = vor.u32 %v6582_v8, %v5170_v9  ;;  %v6560_v6 = vld [vmem:[%s10277_s1 + $0x694] sm:$0xf] }
 0x15b   :  { %3791 = vmatpush.bf16.msra.mxu3 %v4965_v47  ;;  %v5122_v47 = vld [vmem:[%s10277_s1 + $0x6e8] sm:$0xf0]  ;;  %v5061_v54 = vor.u32 %v6554_v19, %v5058_v20  ;;  %v5098_v19 = vld [vmem:[%s10277_s1 + $0x6b8] sm:$0xf0]  ;;  %v6580_v20 = vld [vmem:[%s10277_s1 + $0x734] sm:$0xf] }
 0x15c   :  { %3753 = vmatpush.bf16.msra.mxu0 %v4765_v56  ;;  %v5125_v56 = vor.u32 %v6570_v22, %v5122_v47  ;;  %v5162_v22 = vld [vmem:[%s10277_s1 + $0x738] sm:$0xf0] }
 0x15d   :  { %3766 = vmatpush.bf16.msra.mxu1 %v4829_v48  ;;  %v5050_v48 = vld [vmem:[%s10277_s1 + $0x658] sm:$0xf0]  ;;  %v5165_v51 = vor.u32 %v6580_v20, %v5162_v22  ;;  %v6590_v20 = vld [vmem:[%s10277_s1 + $0x784] sm:$0xf]  ;;  %v5202_v22 = vld [vmem:[%s10277_s1 + $0x788] sm:$0xf0] }
 0x15e   :  { %3779 = vmatpush.bf16.msra.mxu2 %v4893_v59  ;;  %v6568_v59 = vld [vmem:[%s10277_s1 + $0x6d4] sm:$0xf]  ;;  %v5053_v1 = vor.u32 %v6552_v58, %v5050_v48  ;;  %v5226_v47 = vld [vmem:[%s10277_s1 + $0x7b8] sm:$0xf0]  ;;  %v5090_v48 = vld [vmem:[%s10277_s1 + $0x6a8] sm:$0xf0] }
 0x15f   :  { %3792 = vmatpush.bf16.msra.mxu3 %v4957_v63  ;;  %v5178_v63 = vld [vmem:[%s10277_s1 + $0x758] sm:$0xf0]  ;;  %v5117_v2 = vor.u32 %v6568_v59, %v5114_v26  ;;  %v6578_v59 = vld [vmem:[%s10277_s1 + $0x724] sm:$0xf] }
 0x160   :  { %3754 = vmatpush.bf16.msra.mxu0 %v4757_v55  ;;  %v5181_v3 = vor.u32 %v6584_v62, %v5178_v63  ;;  %v3548_v55 = vpop.f32.mrf.mxu0  ;;  %v6594_v63 = vld [vmem:[%s10277_s1 + $0x7a4] sm:$0xf]  ;;  %v5082_v9 = vld [vmem:[%s10277_s1 + $0x698] sm:$0xf0] }
 0x161   :  { %3767 = vmatpush.bf16.msra.mxu1 %v4821_v38  ;;  %v3549_v17 = vadd.f32 %v3548_v55, %v9172_v42  ;;  %v5237_v42 = vor.u32 %v6598_v14, %v5234_v15  ;;  %v6576_v55 = vld [vmem:[%s10277_s1 + $0x714] sm:$0xf]  ;;  %v5146_v14 = vld [vmem:[%s10277_s1 + $0x718] sm:$0xf0] }
 0x162   :  { %3780 = vmatpush.bf16.msra.mxu2 %v4885_v21  ;;  %v3561_v21 = vpop.f32.mrf.mxu1  ;;  %v6592_v15 = vld [vmem:[%s10277_s1 + $0x794] sm:$0xf] }
 0x163   :  { %3793 = vmatpush.bf16.msra.mxu3 %v4949_v32  ;;  %3755 = vmatmul.bf16.vlgmr.msra.gmra.mxu0 %v7589_v25  ;;  %v6600_v25 = vld [vmem:[%s10277_s1 + $0x7d4] sm:$0xf] }
 0x164   :  { %3799 = vmatpush.bf16.msrb.mxu0 %v5069_v39  ;;  %3768 = vmatmul.bf16.vlgmr.msra.gmra.mxu1 %v7602_v30  ;;  %v5042_v30 = vld [vmem:[%s10277_s1 + $0x648] sm:$0xf0]  ;;  %v6548_v32 = vld [vmem:[%s10277_s1 + $0x634] sm:$0xf]  ;;  %v5034_v39 = vld [vmem:[%s10277_s1 + $0x638] sm:$0xf0] }
 0x165   :  { %3812 = vmatpush.bf16.msrb.mxu1 %v5133_v41  ;;  %3781 = vmatmul.bf16.vlgmr.msra.gmra.mxu2 %v7600_v29  ;;  %v6550_v29 = vld [vmem:[%s10277_s1 + $0x644] sm:$0xf]  ;;  %v6564_v41 = vld [vmem:[%s10277_s1 + $0x6b4] sm:$0xf]  ;;  %v5037_v61 = vor.u32 %v6548_v32, %v5034_v39  ;;  %v5149_v32 = vor.u32 %v6576_v55, %v5146_v14 }
 0x166   :  { %3825 = vmatpush.bf16.msrb.mxu2 %v5197_v44  ;;  %3794 = vmatmul.bf16.vlgmr.msra.gmra.mxu3 %v7610_v33  ;;  %v5245_v33 = vor.u32 %v6600_v25, %v5242_v0  ;;  %v5045_v38 = vor.u32 %v6550_v29, %v5042_v30  ;;  %v3562_v44 = vadd.f32 %v3561_v21, %v3549_v17  ;;  %v5218_v25 = vld [vmem:[%s10277_s1 + $0x7a8] sm:$0xf0]  ;;  %v5210_v17 = vld [vmem:[%s10277_s1 + $0x798] sm:$0xf0]  ;;  %v6542_v21 = vld [vmem:[%s10277_s1 + $0x604] sm:$0xf] }
 0x167   :  { %3838 = vmatpush.bf16.msrb.mxu3 %v5261_v40  ;;  %v6596_v40 = vld [vmem:[%s10277_s1 + $0x7b4] sm:$0xf]  ;;  %v5101_v50 = vor.u32 %v6564_v41, %v5098_v19  ;;  %v5221_v8 = vor.u32 %v6594_v63, %v5218_v25  ;;  %v6558_v39 = vld [vmem:[%s10277_s1 + $0x684] sm:$0xf]  ;;  %v5074_v41 = vld [vmem:[%s10277_s1 + $0x688] sm:$0xf0] }
 0x168   :  { %3800 = vmatpush.bf16.msrb.mxu0 %v5061_v54  ;;  %v5026_v54 = vld [vmem:[%s10277_s1 + $0x628] sm:$0xf0]  ;;  %v3574_v58 = vpop.f32.mrf.mxu2  ;;  %v3550_v0 = vpop.f32.mrf.mxu0 }
 0x169   :  { %3813 = vmatpush.bf16.msrb.mxu1 %v5125_v56  ;;  %v6562_v56 = vld [vmem:[%s10277_s1 + $0x6a4] sm:$0xf]  ;;  %v3575_v26 = vadd.f32 %v3574_v58, %v3562_v44  ;;  %v3587_v62 = vpop.f32.mrf.mxu3  ;;  %v5213_v44 = vor.u32 %v6592_v15, %v5210_v17  ;;  %v5138_v19 = vld [vmem:[%s10277_s1 + $0x708] sm:$0xf0]  ;;  %v5077_v58 = vor.u32 %v6558_v39, %v5074_v41  ;;  %v6616_v15 = vld [vmem:[%s10277_s1 + $0x854] sm:$0xf] }
 0x16a   :  { %3826 = vmatpush.bf16.msrb.mxu2 %v5189_v57  ;;  %v5229_v57 = vor.u32 %v6596_v40, %v5226_v47  ;;  %v5093_v29 = vor.u32 %v6562_v56, %v5090_v48  ;;  %v6620_v47 = vld [vmem:[%s10277_s1 + $0x874] sm:$0xf]  ;;  %v6618_v0 = vld [vmem:[%s10277_s1 + $0x864] sm:$0xf]  ;;  %v5306_v17 = vld [vmem:[%s10277_s1 + $0x858] sm:$0xf0] }
 0x16b   :  { %3839 = vmatpush.bf16.msrb.mxu3 %v5253_v60  ;;  %v5154_v60 = vld [vmem:[%s10277_s1 + $0x728] sm:$0xf0]  ;;  %v6652_v56 = vld [vmem:[%s10277_s1 + $0x974] sm:$0xf]  ;;  %v5498_v39 = vld [vmem:[%s10277_s1 + $0x9d8] sm:$0xf0]  ;;  %v5309_v41 = vor.u32 %v6616_v15, %v5306_v17 }
 0x16c   :  { %3801 = vmatpush.bf16.msrb.mxu0 %v5053_v1  ;;  %v5029_v1 = vor.u32 %v6546_v52, %v5026_v54  ;;  %v5157_v30 = vor.u32 %v6578_v59, %v5154_v60  ;;  %v5386_v54 = vld [vmem:[%s10277_s1 + $0x8f8] sm:$0xf0]  ;;  %v6668_v59 = vld [vmem:[%s10277_s1 + $0x9f4] sm:$0xf] }
 0x16d   :  { %3814 = vmatpush.bf16.msrb.mxu1 %v5117_v2  ;;  %v3563_v2 = vpop.f32.mrf.mxu1  ;;  %v5514_v60 = vld [vmem:[%s10277_s1 + $0x9f8] sm:$0xf0] }
 0x16e   :  { %3827 = vmatpush.bf16.msrb.mxu2 %v5181_v3  ;;  %v9371_v3 = vadd.f32 %v3587_v62, %v3575_v26  ;;  %v5205_v26 = vor.u32 %v6590_v20, %v5202_v22  ;;  %v6634_v2 = vld [vmem:[%s10277_s1 + $0x8e4] sm:$0xf]  ;;  %v5362_v20 = vld [vmem:[%s10277_s1 + $0x8c8] sm:$0xf0] }
 0x16f   :  { %3840 = vmatpush.bf16.msrb.mxu3 %v5245_v33  ;;  %v5018_v33 = vld [vmem:[%s10277_s1 + $0x618] sm:$0xf0]  ;;  %v6646_v22 = vld [vmem:[%s10277_s1 + $0x944] sm:$0xf] }
 0x170   :  { %3802 = vmatpush.bf16.msrb.mxu0 %v5045_v38  ;;  %v5021_v38 = vor.u32 %v6544_v4, %v5018_v33  ;;  %v3576_v40 = vpop.f32.mrf.mxu2  ;;  %v6650_v4 = vld [vmem:[%s10277_s1 + $0x964] sm:$0xf]  ;;  %v5442_v33 = vld [vmem:[%s10277_s1 + $0x968] sm:$0xf0] }
 0x171   :  { %3815 = vmatpush.bf16.msrb.mxu1 %v5109_v27  ;;  %v5010_v27 = vld [vmem:[%s10277_s1 + $0x608] sm:$0xf0]  ;;  %v5445_v14 = vor.u32 %v6650_v4, %v5442_v33  ;;  %v6626_v33 = vld [vmem:[%s10277_s1 + $0x8a4] sm:$0xf] }
 0x172   :  { %3828 = vmatpush.bf16.msrb.mxu2 %v5173_v18  ;;  %v5085_v18 = vor.u32 %v6560_v6, %v5082_v9  ;;  %v5013_v52 = vor.u32 %v6542_v21, %v5010_v27  ;;  %v6666_v6 = vld [vmem:[%s10277_s1 + $0x9e4] sm:$0xf]  ;;  %v5370_v27 = vld [vmem:[%s10277_s1 + $0x8d8] sm:$0xf0]  ;;  %v5426_v40 = vld [vmem:[%s10277_s1 + $0x948] sm:$0xf0] }
 0x173   :  { %3841 = vmatpush.bf16.msrb.mxu3 %v5237_v42  ;;  %v6574_v42 = vld [vmem:[%s10277_s1 + $0x704] sm:$0xf]  ;;  %v5282_v4 = vld [vmem:[%s10277_s1 + $0x828] sm:$0xf0] }
 0x174   :  { %3803 = vmatpush.bf16.msrb.mxu0 %v5037_v61  ;;  %v5322_v61 = vld [vmem:[%s10277_s1 + $0x878] sm:$0xf0]  ;;  %v5141_v48 = vor.u32 %v6574_v42, %v5138_v19  ;;  %v6630_v19 = vld [vmem:[%s10277_s1 + $0x8c4] sm:$0xf] }
 0x175   :  { %3816 = vmatpush.bf16.msrb.mxu1 %v5101_v50  ;;  %v6636_v50 = vld [vmem:[%s10277_s1 + $0x8f4] sm:$0xf]  ;;  %v5325_v62 = vor.u32 %v6620_v47, %v5322_v61  ;;  %v6662_v61 = vld [vmem:[%s10277_s1 + $0x9c4] sm:$0xf] }
 0x176   :  { %3829 = vmatpush.bf16.msrb.mxu2 %v5165_v51  ;;  %v3589_v51 = vpop.f32.mrf.mxu3  ;;  %v5389_v63 = vor.u32 %v6636_v50, %v5386_v54  ;;  %v5490_v50 = vld [vmem:[%s10277_s1 + $0x9c8] sm:$0xf0] }
 0x177   :  { %3842 = vmatpush.bf16.msrb.mxu3 %v5229_v57  ;;  %v5450_v57 = vld [vmem:[%s10277_s1 + $0x978] sm:$0xf0] }
 0x178   :  { %3804 = vmatpush.bf16.msrb.mxu0 %v5029_v1  ;;  %v5453_v25 = vor.u32 %v6652_v56, %v5450_v57  ;;  %v5314_v1 = vld [vmem:[%s10277_s1 + $0x868] sm:$0xf0]  ;;  %v5365_v56 = vor.u32 %v6630_v19, %v5362_v20  ;;  %v5429_v57 = vor.u32 %v6646_v22, %v5426_v40  ;;  %v5338_v19 = vld [vmem:[%s10277_s1 + $0x898] sm:$0xf0]  ;;  %v6656_v22 = vld [vmem:[%s10277_s1 + $0x994] sm:$0xf] }
 0x179   :  { %3817 = vmatpush.bf16.msrb.mxu1 %v5093_v29  ;;  %v5517_v29 = vor.u32 %v6668_v59, %v5514_v60  ;;  %v5317_v9 = vor.u32 %v6618_v0, %v5314_v1  ;;  %v6628_v59 = vld [vmem:[%s10277_s1 + $0x8b4] sm:$0xf]  ;;  %v5482_v0 = vld [vmem:[%s10277_s1 + $0x9b8] sm:$0xf0] }
 0x17a   :  { %3830 = vmatpush.bf16.msrb.mxu2 %v5157_v30  ;;  %v5378_v30 = vld [vmem:[%s10277_s1 + $0x8e8] sm:$0xf0]  ;;  %v5402_v20 = vld [vmem:[%s10277_s1 + $0x918] sm:$0xf0] }
 0x17b   :  { %3843 = vmatpush.bf16.msrb.mxu3 %v5221_v8  ;;  %v5506_v8 = vld [vmem:[%s10277_s1 + $0x9e8] sm:$0xf0]  ;;  %v5381_v55 = vor.u32 %v6634_v2, %v5378_v30  ;;  %v6610_v30 = vld [vmem:[%s10277_s1 + $0x824] sm:$0xf]  ;;  %v5466_v40 = vld [vmem:[%s10277_s1 + $0x998] sm:$0xf0] }
 0x17c   :  { %3805 = vmatpush.bf16.msrb.mxu0 %v5021_v38  ;;  %v6632_v38 = vld [vmem:[%s10277_s1 + $0x8d4] sm:$0xf]  ;;  %v5509_v21 = vor.u32 %v6666_v6, %v5506_v8 }
 0x17d   :  { %3818 = vmatpush.bf16.msrb.mxu1 %v5085_v18  ;;  %v6648_v18 = vld [vmem:[%s10277_s1 + $0x954] sm:$0xf]  ;;  %v5373_v42 = vor.u32 %v6632_v38, %v5370_v27  ;;  %v6658_v38 = vld [vmem:[%s10277_s1 + $0x9a4] sm:$0xf] }
 0x17e   :  { %3831 = vmatpush.bf16.msrb.mxu2 %v5149_v32  ;;  %v5434_v32 = vld [vmem:[%s10277_s1 + $0x958] sm:$0xf0] }
 0x17f   :  { %3844 = vmatpush.bf16.msrb.mxu3 %v5213_v44  ;;  %v5437_v44 = vor.u32 %v6648_v18, %v5434_v32  ;;  %v5285_v18 = vor.u32 %v6610_v30, %v5282_v4 }
 0x180   :  { %3806 = vmatpush.bf16.msrb.mxu0 %v5013_v52  ;;  %v3600_v47 = vpop.f32.mrf.mxu0 }
 0x181   :  { %3819 = vmatpush.bf16.msrb.mxu1 %v5077_v58  ;;  %v3601_v51 = vadd.f32 %v3600_v47, %v9371_v3  ;;  %v3613_v54 = vpop.f32.mrf.mxu1  ;;  %v6612_v58 = vld [vmem:[%s10277_s1 + $0x834] sm:$0xf]  ;;  %v5493_v3 = vor.u32 %v6662_v61, %v5490_v50  ;;  %v6606_v61 = vld [vmem:[%s10277_s1 + $0x804] sm:$0xf]  ;;  %v5266_v50 = vld [vmem:[%s10277_s1 + $0x808] sm:$0xf0] }
 0x182   :  { %3832 = vmatpush.bf16.msrb.mxu2 %v5141_v48  ;;  %v5290_v48 = vld [vmem:[%s10277_s1 + $0x838] sm:$0xf0] }
 0x183   :  { %3845 = vmatpush.bf16.msrb.mxu3 %v5205_v26  ;;  %3807 = vmatmul.bf16.vlgmr.msrb.gmra.mxu0 %v7799_v23  ;;  %v6664_v23 = vld [vmem:[%s10277_s1 + $0x9d4] sm:$0xf]  ;;  %v3614_v60 = vadd.f32 %v3613_v54, %v3601_v51  ;;  %v5354_v26 = vld [vmem:[%s10277_s1 + $0x8b8] sm:$0xf0]  ;;  %v5293_v1 = vor.u32 %v6612_v58, %v5290_v48  ;;  %v6622_v54 = vld [vmem:[%s10277_s1 + $0x884] sm:$0xf]  ;;  %v5469_v58 = vor.u32 %v6656_v22, %v5466_v40 }
 0x184   :  { %3851 = vmatpush.bf16.msra.mxu0 %v5325_v62  ;;  %3820 = vmatmul.bf16.vlgmr.msrb.gmra.mxu1 %v7812_v31  ;;  %v5298_v31 = vld [vmem:[%s10277_s1 + $0x848] sm:$0xf0]  ;;  %v6644_v62 = vld [vmem:[%s10277_s1 + $0x934] sm:$0xf]  ;;  %v5357_v2 = vor.u32 %v6628_v59, %v5354_v26  ;;  %v6654_v59 = vld [vmem:[%s10277_s1 + $0x984] sm:$0xf] }
 0x185   :  { %3864 = vmatpush.bf16.msra.mxu1 %v5389_v63  ;;  %3833 = vmatmul.bf16.vlgmr.msrb.gmra.mxu2 %v7810_v28  ;;  %v6614_v28 = vld [vmem:[%s10277_s1 + $0x844] sm:$0xf]  ;;  %v5418_v63 = vld [vmem:[%s10277_s1 + $0x938] sm:$0xf0]  ;;  %v5394_v48 = vld [vmem:[%s10277_s1 + $0x908] sm:$0xf0] }
 0x186   :  { %3877 = vmatpush.bf16.msra.mxu2 %v5453_v25  ;;  %3846 = vmatmul.bf16.vlgmr.msrb.gmra.mxu3 %v7820_v35  ;;  %v5501_v35 = vor.u32 %v6664_v23, %v5498_v39  ;;  %v5301_v52 = vor.u32 %v6614_v28, %v5298_v31  ;;  %v6660_v25 = vld [vmem:[%s10277_s1 + $0x9b4] sm:$0xf]  ;;  %v5626_v22 = vld [vmem:[%s10277_s1 + $0xad8] sm:$0xf0] }
 0x187   :  { %3890 = vmatpush.bf16.msra.mxu3 %v5517_v29  ;;  %v5421_v29 = vor.u32 %v6644_v62, %v5418_v63  ;;  %v5485_v6 = vor.u32 %v6660_v25, %v5482_v0  ;;  %v6624_v28 = vld [vmem:[%s10277_s1 + $0x894] sm:$0xf]  ;;  %v5578_v62 = vld [vmem:[%s10277_s1 + $0xa78] sm:$0xf0]  ;;  %v5269_v0 = vor.u32 %v6606_v61, %v5266_v50 }
 0x188   :  { %3852 = vmatpush.bf16.msra.mxu0 %v5317_v9  ;;  %v3626_v8 = vpop.f32.mrf.mxu2  ;;  %v5346_v9 = vld [vmem:[%s10277_s1 + $0x8a8] sm:$0xf0]  ;;  %v3602_v27 = vpop.f32.mrf.mxu0  ;;  %v5341_v51 = vor.u32 %v6624_v28, %v5338_v19  ;;  %v6684_v26 = vld [vmem:[%s10277_s1 + $0xa74] sm:$0xf]  ;;  %v5562_v19 = vld [vmem:[%s10277_s1 + $0xa58] sm:$0xf0] }
 0x189   :  { %3865 = vmatpush.bf16.msra.mxu1 %v5381_v55  ;;  %v6642_v55 = vld [vmem:[%s10277_s1 + $0x924] sm:$0xf]  ;;  %v3627_v15 = vadd.f32 %v3626_v8, %v3614_v60  ;;  %v3639_v17 = vpop.f32.mrf.mxu3  ;;  %v3615_v32 = vpop.f32.mrf.mxu1  ;;  %v5349_v39 = vor.u32 %v6626_v33, %v5346_v9  ;;  %v6700_v63 = vld [vmem:[%s10277_s1 + $0xaf4] sm:$0xf]  ;;  %v5581_v9 = vor.u32 %v6684_v26, %v5578_v62  ;;  %v5634_v27 = vld [vmem:[%s10277_s1 + $0xae8] sm:$0xf0] }
 0x18a   :  { %3878 = vmatpush.bf16.msra.mxu2 %v5445_v14  ;;  %v5410_v14 = vld [vmem:[%s10277_s1 + $0x928] sm:$0xf0]  ;;  %v6732_v33 = vld [vmem:[%s10277_s1 + $0xbf4] sm:$0xf]  ;;  %v5754_v61 = vld [vmem:[%s10277_s1 + $0xbd8] sm:$0xf0] }
 0x18b   :  { %3891 = vmatpush.bf16.msra.mxu3 %v5509_v21  ;;  %v5474_v21 = vld [vmem:[%s10277_s1 + $0x9a8] sm:$0xf0]  ;;  %v9570_v23 = vadd.f32 %v3639_v17, %v3627_v15  ;;  %v6682_v15 = vld [vmem:[%s10277_s1 + $0xa64] sm:$0xf]  ;;  %v6712_v40 = vld [vmem:[%s10277_s1 + $0xb54] sm:$0xf] }
 0x18c   :  { %3853 = vmatpush.bf16.msra.mxu0 %v5309_v41  ;;  %v5413_v41 = vor.u32 %v6642_v55, %v5410_v14  ;;  %v5477_v31 = vor.u32 %v6658_v38, %v5474_v21  ;;  %v5570_v17 = vld [vmem:[%s10277_s1 + $0xa68] sm:$0xf0]  ;;  %v6698_v38 = vld [vmem:[%s10277_s1 + $0xae4] sm:$0xf] }
 0x18d   :  { %3866 = vmatpush.bf16.msra.mxu1 %v5373_v42  ;;  %v6608_v42 = vld [vmem:[%s10277_s1 + $0x814] sm:$0xf]  ;;  %v5698_v32 = vld [vmem:[%s10277_s1 + $0xb68] sm:$0xf0] }
 0x18e   :  { %3879 = vmatpush.bf16.msra.mxu2 %v5437_v44  ;;  %v5274_v44 = vld [vmem:[%s10277_s1 + $0x818] sm:$0xf0] }
 0x18f   :  { %3892 = vmatpush.bf16.msra.mxu3 %v5501_v35  ;;  %v6640_v35 = vld [vmem:[%s10277_s1 + $0x914] sm:$0xf]  ;;  %v5277_v47 = vor.u32 %v6608_v42, %v5274_v44  ;;  %v5573_v42 = vor.u32 %v6682_v15, %v5570_v17  ;;  %v5637_v44 = vor.u32 %v6698_v38, %v5634_v27  ;;  %v5538_v27 = vld [vmem:[%s10277_s1 + $0xa28] sm:$0xf0] }
 0x190   :  { %3854 = vmatpush.bf16.msra.mxu0 %v5301_v52  ;;  %v5405_v52 = vor.u32 %v6640_v35, %v5402_v20  ;;  %v3628_v60 = vpop.f32.mrf.mxu2  ;;  %v6696_v35 = vld [vmem:[%s10277_s1 + $0xad4] sm:$0xf] }
 0x191   :  { %3867 = vmatpush.bf16.msra.mxu1 %v5365_v56  ;;  %v5330_v56 = vld [vmem:[%s10277_s1 + $0x888] sm:$0xf0]  ;;  %v3641_v25 = vpop.f32.mrf.mxu3 }
 0x192   :  { %3880 = vmatpush.bf16.msra.mxu2 %v5429_v57  ;;  %v6638_v57 = vld [vmem:[%s10277_s1 + $0x904] sm:$0xf]  ;;  %v5333_v30 = vor.u32 %v6622_v54, %v5330_v56  ;;  %v5746_v60 = vld [vmem:[%s10277_s1 + $0xbc8] sm:$0xf0] }
 0x193   :  { %3893 = vmatpush.bf16.msra.mxu3 %v5493_v3  ;;  %v5458_v3 = vld [vmem:[%s10277_s1 + $0x988] sm:$0xf0]  ;;  %v5397_v4 = vor.u32 %v6638_v57, %v5394_v48  ;;  %v6694_v54 = vld [vmem:[%s10277_s1 + $0xac4] sm:$0xf] }
 0x194   :  { %3855 = vmatpush.bf16.msra.mxu0 %v5293_v1  ;;  %v5642_v1 = vld [vmem:[%s10277_s1 + $0xaf8] sm:$0xf0]  ;;  %v5461_v8 = vor.u32 %v6654_v59, %v5458_v3  ;;  %v6710_v48 = vld [vmem:[%s10277_s1 + $0xb44] sm:$0xf]  ;;  %v5682_v59 = vld [vmem:[%s10277_s1 + $0xb48] sm:$0xf0] }
 0x195   :  { %3868 = vmatpush.bf16.msra.mxu1 %v5357_v2  ;;  %v6716_v2 = vld [vmem:[%s10277_s1 + $0xb74] sm:$0xf]  ;;  %v5645_v55 = vor.u32 %v6700_v63, %v5642_v1  ;;  %v6726_v3 = vld [vmem:[%s10277_s1 + $0xbc4] sm:$0xf]  ;;  %v5685_v25 = vor.u32 %v6710_v48, %v5682_v59  ;;  %v5546_v1 = vld [vmem:[%s10277_s1 + $0xa38] sm:$0xf0] }
 0x196   :  { %3881 = vmatpush.bf16.msra.mxu2 %v5421_v29  ;;  %v5706_v29 = vld [vmem:[%s10277_s1 + $0xb78] sm:$0xf0]  ;;  %v6670_v48 = vld [vmem:[%s10277_s1 + $0xa04] sm:$0xf]  ;;  %v5522_v59 = vld [vmem:[%s10277_s1 + $0xa08] sm:$0xf0] }
 0x197   :  { %3894 = vmatpush.bf16.msra.mxu3 %v5485_v6  ;;  %v5770_v6 = vld [vmem:[%s10277_s1 + $0xbf8] sm:$0xf0]  ;;  %v5709_v14 = vor.u32 %v6716_v2, %v5706_v29  ;;  %v6692_v2 = vld [vmem:[%s10277_s1 + $0xab4] sm:$0xf] }
 0x198   :  { %3856 = vmatpush.bf16.msra.mxu0 %v5285_v18  ;;  %v5773_v21 = vor.u32 %v6732_v33, %v5770_v6  ;;  %v6714_v18 = vld [vmem:[%s10277_s1 + $0xb64] sm:$0xf]  ;;  %v5610_v33 = vld [vmem:[%s10277_s1 + $0xab8] sm:$0xf0]  ;;  %v6708_v6 = vld [vmem:[%s10277_s1 + $0xb34] sm:$0xf] }
 0x199   :  { %3869 = vmatpush.bf16.msra.mxu1 %v5349_v39  ;;  %v6730_v39 = vld [vmem:[%s10277_s1 + $0xbe4] sm:$0xf]  ;;  %v5701_v28 = vor.u32 %v6714_v18, %v5698_v32  ;;  %v5613_v17 = vor.u32 %v6692_v2, %v5610_v33  ;;  %v5834_v33 = vld [vmem:[%s10277_s1 + $0xc78] sm:$0xf0] }
 0x19a   :  { %3882 = vmatpush.bf16.msra.mxu2 %v5413_v41  ;;  %v5762_v41 = vld [vmem:[%s10277_s1 + $0xbe8] sm:$0xf0]  ;;  %v6690_v18 = vld [vmem:[%s10277_s1 + $0xaa4] sm:$0xf] }
 0x19b   :  { %3895 = vmatpush.bf16.msra.mxu3 %v5477_v31  ;;  %v6680_v31 = vld [vmem:[%s10277_s1 + $0xa54] sm:$0xf]  ;;  %v5765_v20 = vor.u32 %v6730_v39, %v5762_v41  ;;  %v5602_v41 = vld [vmem:[%s10277_s1 + $0xaa8] sm:$0xf0]  ;;  %v6718_v2 = vld [vmem:[%s10277_s1 + $0xb84] sm:$0xf] }
 0x19c   :  { %3857 = vmatpush.bf16.msra.mxu0 %v5277_v47  ;;  %v5690_v47 = vld [vmem:[%s10277_s1 + $0xb58] sm:$0xf0]  ;;  %v5565_v50 = vor.u32 %v6680_v31, %v5562_v19  ;;  %v6722_v19 = vld [vmem:[%s10277_s1 + $0xba4] sm:$0xf] }
 0x19d   :  { %3870 = vmatpush.bf16.msra.mxu1 %v5341_v51  ;;  %v6678_v51 = vld [vmem:[%s10277_s1 + $0xa44] sm:$0xf] }
 0x19e   :  { %3883 = vmatpush.bf16.msra.mxu2 %v5405_v52  ;;  %v5554_v52 = vld [vmem:[%s10277_s1 + $0xa48] sm:$0xf0] }
 0x19f   :  { %3896 = vmatpush.bf16.msra.mxu3 %v5469_v58  ;;  %v5618_v58 = vld [vmem:[%s10277_s1 + $0xac8] sm:$0xf0]  ;;  %v5557_v26 = vor.u32 %v6678_v51, %v5554_v52  ;;  %v6688_v51 = vld [vmem:[%s10277_s1 + $0xa94] sm:$0xf]  ;;  %v5594_v52 = vld [vmem:[%s10277_s1 + $0xa98] sm:$0xf0] }
 0x1a0   :  { %3858 = vmatpush.bf16.msra.mxu0 %v5269_v0  ;;  %v3652_v62 = vpop.f32.mrf.mxu0  ;;  %v5621_v63 = vor.u32 %v6694_v54, %v5618_v58  ;;  %v6676_v0 = vld [vmem:[%s10277_s1 + $0xa34] sm:$0xf] }
 0x1a1   :  { %3871 = vmatpush.bf16.msra.mxu1 %v5333_v30  ;;  %v3665_v30 = vpop.f32.mrf.mxu1  ;;  %v5549_v15 = vor.u32 %v6676_v0, %v5546_v1  ;;  %v6704_v54 = vld [vmem:[%s10277_s1 + $0xb14] sm:$0xf]  ;;  %v5650_v1 = vld [vmem:[%s10277_s1 + $0xb08] sm:$0xf0] }
 0x1a2   :  { %3884 = vmatpush.bf16.msra.mxu2 %v5397_v4  ;;  %v5749_v4 = vor.u32 %v6726_v3, %v5746_v60  ;;  %v5597_v3 = vor.u32 %v6688_v51, %v5594_v52  ;;  %v5818_v51 = vld [vmem:[%s10277_s1 + $0xc58] sm:$0xf0] }
 0x1a3   :  { %3897 = vmatpush.bf16.msra.mxu3 %v5461_v8  ;;  %3859 = vmatmul.bf16.vlgmr.msra.gmra.mxu0 %v8009_v37  ;;  %v6728_v37 = vld [vmem:[%s10277_s1 + $0xbd4] sm:$0xf]  ;;  %v5674_v8 = vld [vmem:[%s10277_s1 + $0xb38] sm:$0xf0] }
 0x1a4   :  { %3903 = vmatpush.bf16.msrb.mxu0 %v5581_v9  ;;  %3872 = vmatmul.bf16.vlgmr.msra.gmra.mxu1 %v8022_v46  ;;  %v5693_v46 = vor.u32 %v6712_v40, %v5690_v47  ;;  %v5757_v57 = vor.u32 %v6728_v37, %v5754_v61  ;;  %v6724_v9 = vld [vmem:[%s10277_s1 + $0xbb4] sm:$0xf]  ;;  %v5677_v38 = vor.u32 %v6708_v6, %v5674_v8  ;;  %v5882_v52 = vld [vmem:[%s10277_s1 + $0xcd8] sm:$0xf0] }
 0x1a5   :  { %3916 = vmatpush.bf16.msrb.mxu1 %v5645_v55  ;;  %3885 = vmatmul.bf16.vlgmr.msra.gmra.mxu2 %v8020_v45  ;;  %v5629_v45 = vor.u32 %v6696_v35, %v5626_v22  ;;  %v5738_v55 = vld [vmem:[%s10277_s1 + $0xbb8] sm:$0xf0]  ;;  %v5730_v35 = vld [vmem:[%s10277_s1 + $0xba8] sm:$0xf0]  ;;  %v5605_v47 = vor.u32 %v6690_v18, %v5602_v41  ;;  %v6672_v61 = vld [vmem:[%s10277_s1 + $0xa14] sm:$0xf]  ;;  %v5525_v8 = vor.u32 %v6670_v48, %v5522_v59 }
 0x1a6   :  { %3929 = vmatpush.bf16.msrb.mxu2 %v5709_v14  ;;  %3898 = vmatmul.bf16.vlgmr.msra.gmra.mxu3 %v8030_v49  ;;  %v6880_v49 = vld [vmem:[%s10278_s2] sm:$0x3]  ;;  %v5741_v39 = vor.u32 %v6724_v9, %v5738_v55  ;;  %v6764_v6 = vld [vmem:[%s10277_s1 + $0xcf4] sm:$0xf]  ;;  %v5898_v9 = vld [vmem:[%s10277_s1 + $0xcf8] sm:$0xf0] }
 0x1a7   :  { %3942 = vmatpush.bf16.msrb.mxu3 %v5773_v21  ;;  %v552_v56 = vperm.slane %v6880_v49, 1  ;;  %v6674_v21 = vld [vmem:[%s10277_s1 + $0xa24] sm:$0xf]  ;;  %v5658_v49 = vld [vmem:[%s10277_s1 + $0xb18] sm:$0xf0] }
 0x1a8   :  { %3904 = vmatpush.bf16.msrb.mxu0 %v5573_v42  ;;  %v3678_v32 = vpop.f32.mrf.mxu2  ;;  %v6706_v42 = vld [vmem:[%s10277_s1 + $0xb24] sm:$0xf]  ;;  %v3654_v40 = vpop.f32.mrf.mxu0  ;;  %v5661_v60 = vor.u32 %v6704_v54, %v5658_v49  ;;  %v6780_v55 = vld [vmem:[%s10277_s1 + $0xd74] sm:$0xf]  ;;  %v5946_v49 = vld [vmem:[%s10277_s1 + $0xd58] sm:$0xf0] }
 0x1a9   :  { %3917 = vmatpush.bf16.msrb.mxu1 %v5637_v44  ;;  %v3653_v29 = vadd.f32 %v3652_v62, %v552_v56  ;;  %v5666_v44 = vld [vmem:[%s10277_s1 + $0xb28] sm:$0xf0]  ;;  %v3691_v31 = vpop.f32.mrf.mxu3  ;;  %v6720_v56 = vld [vmem:[%s10277_s1 + $0xb94] sm:$0xf]  ;;  %v6746_v41 = vld [vmem:[%s10277_s1 + $0xc64] sm:$0xf] }
 0x1aa   :  { %3930 = vmatpush.bf16.msrb.mxu2 %v5701_v28  ;;  %v5669_v37 = vor.u32 %v6706_v42, %v5666_v44  ;;  %v5586_v62 = vld [vmem:[%s10277_s1 + $0xa88] sm:$0xf0]  ;;  %v6762_v44 = vld [vmem:[%s10277_s1 + $0xce4] sm:$0xf]  ;;  %v6776_v54 = vld [vmem:[%s10277_s1 + $0xd54] sm:$0xf] }
 0x1ab   :  { %3943 = vmatpush.bf16.msrb.mxu3 %v5765_v20  ;;  %v3666_v14 = vadd.f32 %v3665_v30, %v3653_v29  ;;  %v5541_v20 = vor.u32 %v6674_v21, %v5538_v27  ;;  %v5714_v29 = vld [vmem:[%s10277_s1 + $0xb88] sm:$0xf0]  ;;  %v6026_v21 = vld [vmem:[%s10277_s1 + $0xdf8] sm:$0xf0]  ;;  %v5949_v48 = vor.u32 %v6776_v54, %v5946_v49  ;;  %v6758_v59 = vld [vmem:[%s10277_s1 + $0xcc4] sm:$0xf] }
 0x1ac   :  { %3905 = vmatpush.bf16.msrb.mxu0 %v5565_v50  ;;  %v5530_v50 = vld [vmem:[%s10277_s1 + $0xa18] sm:$0xf0]  ;;  %v5717_v27 = vor.u32 %v6718_v2, %v5714_v29  ;;  %v5826_v42 = vld [vmem:[%s10277_s1 + $0xc68] sm:$0xf0]  ;;  %v6740_v29 = vld [vmem:[%s10277_s1 + $0xc34] sm:$0xf] }
 0x1ad   :  { %3918 = vmatpush.bf16.msrb.mxu1 %v5629_v45  ;;  %v3679_v28 = vadd.f32 %v3678_v32, %v3666_v14  ;;  %v3667_v45 = vpop.f32.mrf.mxu1  ;;  %v5533_v58 = vor.u32 %v6672_v61, %v5530_v50  ;;  %v5962_v14 = vld [vmem:[%s10277_s1 + $0xd78] sm:$0xf0]  ;;  %v5901_v32 = vor.u32 %v6764_v6, %v5898_v9  ;;  %v6018_v40 = vld [vmem:[%s10277_s1 + $0xde8] sm:$0xf0]  ;;  %v6744_v50 = vld [vmem:[%s10277_s1 + $0xc54] sm:$0xf] }
 0x1ae   :  { %3931 = vmatpush.bf16.msrb.mxu2 %v5693_v46  ;;  %v5733_v46 = vor.u32 %v6722_v19, %v5730_v35  ;;  %v6778_v19 = vld [vmem:[%s10277_s1 + $0xd64] sm:$0xf]  ;;  %v5954_v35 = vld [vmem:[%s10277_s1 + $0xd68] sm:$0xf0]  ;;  %v6760_v45 = vld [vmem:[%s10277_s1 + $0xcd4] sm:$0xf] }
 0x1af   :  { %3944 = vmatpush.bf16.msrb.mxu3 %v5757_v57  ;;  %v9771_v22 = vadd.f32 %v3691_v31, %v3679_v28  ;;  %v5722_v57 = vld [vmem:[%s10277_s1 + $0xb98] sm:$0xf0]  ;;  %v5890_v31 = vld [vmem:[%s10277_s1 + $0xce8] sm:$0xf0]  ;;  %v5957_v61 = vor.u32 %v6778_v19, %v5954_v35 }
 0x1b0   :  { %3906 = vmatpush.bf16.msrb.mxu0 %v5557_v26  ;;  %v6686_v26 = vld [vmem:[%s10277_s1 + $0xa84] sm:$0xf]  ;;  %v5725_v0 = vor.u32 %v6720_v56, %v5722_v57  ;;  %v6010_v56 = vld [vmem:[%s10277_s1 + $0xdd8] sm:$0xf0]  ;;  %v5821_v57 = vor.u32 %v6744_v50, %v5818_v51 }
 0x1b1   :  { %3919 = vmatpush.bf16.msrb.mxu1 %v5621_v63  ;;  %v6702_v63 = vld [vmem:[%s10277_s1 + $0xb04] sm:$0xf]  ;;  %v3693_v30 = vpop.f32.mrf.mxu3  ;;  %v5866_v9 = vld [vmem:[%s10277_s1 + $0xcb8] sm:$0xf0] }
 0x1b2   :  { %3932 = vmatpush.bf16.msrb.mxu2 %v5685_v25  ;;  %v3680_v25 = vpop.f32.mrf.mxu2  ;;  %v5802_v30 = vld [vmem:[%s10277_s1 + $0xc38] sm:$0xf0] }
 0x1b3   :  { %3945 = vmatpush.bf16.msrb.mxu3 %v5749_v4  ;;  %v6748_v4 = vld [vmem:[%s10277_s1 + $0xc74] sm:$0xf] }
 0x1b4   :  { %3907 = vmatpush.bf16.msrb.mxu0 %v5549_v15  ;;  %v5589_v15 = vor.u32 %v6686_v26, %v5586_v62  ;;  %v5837_v18 = vor.u32 %v6748_v4, %v5834_v33  ;;  %v5938_v26 = vld [vmem:[%s10277_s1 + $0xd48] sm:$0xf0]  ;;  %v6790_v62 = vld [vmem:[%s10277_s1 + $0xdc4] sm:$0xf]  ;;  %v6756_v4 = vld [vmem:[%s10277_s1 + $0xcb4] sm:$0xf] }
 0x1b5   :  { %3920 = vmatpush.bf16.msrb.mxu1 %v5613_v17  ;;  %v5653_v17 = vor.u32 %v6702_v63, %v5650_v1  ;;  %v6002_v63 = vld [vmem:[%s10277_s1 + $0xdc8] sm:$0xf0] }
 0x1b6   :  { %3933 = vmatpush.bf16.msrb.mxu2 %v5677_v38  ;;  %v6796_v38 = vld [vmem:[%s10277_s1 + $0xdf4] sm:$0xf] }
 0x1b7   :  { %3946 = vmatpush.bf16.msrb.mxu3 %v5741_v39  ;;  %v5965_v39 = vor.u32 %v6780_v55, %v5962_v14  ;;  %v6029_v28 = vor.u32 %v6796_v38, %v6026_v21  ;;  %v6772_v55 = vld [vmem:[%s10277_s1 + $0xd34] sm:$0xf]  ;;  %v5930_v14 = vld [vmem:[%s10277_s1 + $0xd38] sm:$0xf0]  ;;  %v5805_v38 = vor.u32 %v6740_v29, %v5802_v30  ;;  %v5869_v21 = vor.u32 %v6756_v4, %v5866_v9 }
 0x1b8   :  { %3908 = vmatpush.bf16.msrb.mxu0 %v5541_v20  ;;  %v6794_v20 = vld [vmem:[%s10277_s1 + $0xde4] sm:$0xf]  ;;  %v6812_v30 = vld [vmem:[%s10277_s1 + $0xe74] sm:$0xf]  ;;  %v6090_v4 = vld [vmem:[%s10277_s1 + $0xe78] sm:$0xf0] }
 0x1b9   :  { %3921 = vmatpush.bf16.msrb.mxu1 %v5605_v47  ;;  %v5829_v47 = vor.u32 %v6746_v41, %v5826_v42  ;;  %v6844_v9 = vld [vmem:[%s10277_s1 + $0xf74] sm:$0xf] }
 0x1ba   :  { %3934 = vmatpush.bf16.msrb.mxu2 %v5669_v37  ;;  %v5893_v37 = vor.u32 %v6762_v44, %v5890_v31  ;;  %v5858_v44 = vld [vmem:[%s10277_s1 + $0xca8] sm:$0xf0] }
 0x1bb   :  { %3947 = vmatpush.bf16.msrb.mxu3 %v5733_v46  ;;  %v6021_v46 = vor.u32 %v6794_v20, %v6018_v40  ;;  %v5922_v31 = vld [vmem:[%s10277_s1 + $0xd28] sm:$0xf0]  ;;  %v6786_v20 = vld [vmem:[%s10277_s1 + $0xda4] sm:$0xf] }
 0x1bc   :  { %3909 = vmatpush.bf16.msrb.mxu0 %v5533_v58  ;;  %v5885_v58 = vor.u32 %v6760_v45, %v5882_v52  ;;  %v5986_v40 = vld [vmem:[%s10277_s1 + $0xda8] sm:$0xf0]  ;;  %v6736_v45 = vld [vmem:[%s10277_s1 + $0xc14] sm:$0xf] }
 0x1bd   :  { %3922 = vmatpush.bf16.msrb.mxu1 %v5597_v3  ;;  %v5874_v3 = vld [vmem:[%s10277_s1 + $0xcc8] sm:$0xf0]  ;;  %v6752_v52 = vld [vmem:[%s10277_s1 + $0xc94] sm:$0xf]  ;;  %v5989_v49 = vor.u32 %v6786_v20, %v5986_v40 }
 0x1be   :  { %3935 = vmatpush.bf16.msrb.mxu2 %v5661_v60  ;;  %v6774_v60 = vld [vmem:[%s10277_s1 + $0xd44] sm:$0xf]  ;;  %v5877_v1 = vor.u32 %v6758_v59, %v5874_v3  ;;  %v5778_v59 = vld [vmem:[%s10277_s1 + $0xc08] sm:$0xf0] }
 0x1bf   :  { %3948 = vmatpush.bf16.msrb.mxu3 %v5725_v0  ;;  %v5941_v2 = vor.u32 %v6774_v60, %v5938_v26  ;;  %v6750_v60 = vld [vmem:[%s10277_s1 + $0xc84] sm:$0xf]  ;;  %v5842_v26 = vld [vmem:[%s10277_s1 + $0xc88] sm:$0xf0] }
 0x1c0   :  { %3910 = vmatpush.bf16.msrb.mxu0 %v5525_v8  ;;  %v3704_v0 = vpop.f32.mrf.mxu0  ;;  %v6005_v8 = vor.u32 %v6790_v62, %v6002_v63  ;;  %v6766_v62 = vld [vmem:[%s10277_s1 + $0xd04] sm:$0xf] }
 0x1c1   :  { %3923 = vmatpush.bf16.msrb.mxu1 %v5589_v15  ;;  %v3705_v33 = vadd.f32 %v3704_v0, %v9771_v22  ;;  %v3717_v6 = vpop.f32.mrf.mxu1  ;;  %v6788_v15 = vld [vmem:[%s10277_s1 + $0xdb4] sm:$0xf]  ;;  %v5994_v22 = vld [vmem:[%s10277_s1 + $0xdb8] sm:$0xf0]  ;;  %v5906_v0 = vld [vmem:[%s10277_s1 + $0xd08] sm:$0xf0] }
 0x1c2   :  { %3936 = vmatpush.bf16.msrb.mxu2 %v5653_v17  ;;  %v5997_v42 = vor.u32 %v6788_v15, %v5994_v22  ;;  %v5909_v15 = vor.u32 %v6766_v62, %v5906_v0  ;;  %v6860_v22 = vld [vmem:[%s10277_s1 + $0xff4] sm:$0xf] }
 0x1c3   :  { %3949 = vmatpush.bf16.msrb.mxu3 %v5717_v27  ;;  %3911 = vmatmul.bf16.vlgmr.msrb.gmra.mxu0 %v8224_v7  ;;  %v6792_v7 = vld [vmem:[%s10277_s1 + $0xdd4] sm:$0xf]  ;;  %v3718_v17 = vadd.f32 %v3717_v6, %v3705_v33  ;;  %v5933_v27 = vor.u32 %v6772_v55, %v5930_v14  ;;  %v6218_v55 = vld [vmem:[%s10277_s1 + $0xf78] sm:$0xf0]  ;;  %v5845_v14 = vor.u32 %v6750_v60, %v5842_v26 }
 0x1c4   :  { %3955 = vmatpush.bf16.msra.mxu0 %v5837_v18  ;;  %3924 = vmatmul.bf16.vlgmr.msrb.gmra.mxu1 %v8237_v12  ;;  %v5810_v12 = vld [vmem:[%s10277_s1 + $0xc48] sm:$0xf0]  ;;  %v6738_v18 = vld [vmem:[%s10277_s1 + $0xc24] sm:$0xf]  ;;  %v6828_v33 = vld [vmem:[%s10277_s1 + $0xef4] sm:$0xf] }
 0x1c5   :  { %3968 = vmatpush.bf16.msra.mxu1 %v5901_v32  ;;  %3937 = vmatmul.bf16.vlgmr.msrb.gmra.mxu2 %v8235_v11  ;;  %v6742_v11 = vld [vmem:[%s10277_s1 + $0xc44] sm:$0xf]  ;;  %v5794_v32 = vld [vmem:[%s10277_s1 + $0xc28] sm:$0xf0]  ;;  %v6804_v0 = vld [vmem:[%s10277_s1 + $0xe34] sm:$0xf] }
 0x1c6   :  { %3981 = vmatpush.bf16.msra.mxu2 %v5965_v39  ;;  %3950 = vmatmul.bf16.vlgmr.msrb.gmra.mxu3 %v8245_v16  ;;  %v6013_v16 = vor.u32 %v6792_v7, %v6010_v56  ;;  %v5813_v25 = vor.u32 %v6742_v11, %v5810_v12  ;;  %v6754_v39 = vld [vmem:[%s10277_s1 + $0xca4] sm:$0xf]  ;;  %v5850_v7 = vld [vmem:[%s10277_s1 + $0xc98] sm:$0xf0]  ;;  %v6768_v56 = vld [vmem:[%s10277_s1 + $0xd14] sm:$0xf] }
 0x1c7   :  { %3994 = vmatpush.bf16.msra.mxu3 %v6029_v28  ;;  %v6770_v28 = vld [vmem:[%s10277_s1 + $0xd24] sm:$0xf]  ;;  %v5861_v50 = vor.u32 %v6754_v39, %v5858_v44  ;;  %v6082_v39 = vld [vmem:[%s10277_s1 + $0xe68] sm:$0xf0] }
 0x1c8   :  { %3956 = vmatpush.bf16.msra.mxu0 %v5829_v47  ;;  %v3730_v41 = vpop.f32.mrf.mxu2  ;;  %v5797_v47 = vor.u32 %v6738_v18, %v5794_v32  ;;  %v5925_v51 = vor.u32 %v6770_v28, %v5922_v31  ;;  %v6734_v12 = vld [vmem:[%s10277_s1 + $0xc04] sm:$0xf]  ;;  %v6221_v18 = vor.u32 %v6844_v9, %v6218_v55  ;;  %v6146_v44 = vld [vmem:[%s10277_s1 + $0xee8] sm:$0xf0] }
 0x1c9   :  { %3969 = vmatpush.bf16.msra.mxu1 %v5893_v37  ;;  %v3731_v19 = vadd.f32 %v3730_v41, %v3718_v17  ;;  %v3743_v35 = vpop.f32.mrf.mxu3  ;;  %v3719_v54 = vpop.f32.mrf.mxu1  ;;  %v5781_v6 = vor.u32 %v6734_v12, %v5778_v59  ;;  %v6282_v17 = vld [vmem:[%s10277_s1 + $0xff8] sm:$0xf0]  ;;  %v6810_v32 = vld [vmem:[%s10277_s1 + $0xe64] sm:$0xf]  ;;  %v6210_v31 = vld [vmem:[%s10277_s1 + $0xf68] sm:$0xf0] }
 0x1ca   :  { %3982 = vmatpush.bf16.msra.mxu2 %v5957_v61  ;;  %v3706_v61 = vpop.f32.mrf.mxu0  ;;  %v6826_v41 = vld [vmem:[%s10277_s1 + $0xee4] sm:$0xf]  ;;  %v6085_v20 = vor.u32 %v6810_v32, %v6082_v39  ;;  %v6202_v54 = vld [vmem:[%s10277_s1 + $0xf58] sm:$0xf0]  ;;  %v6194_v12 = vld [vmem:[%s10277_s1 + $0xf48] sm:$0xf0] }
 0x1cb   :  { %3995 = vmatpush.bf16.msra.mxu3 %v6021_v46  ;;  %v9970_v37 = vadd.f32 %v3743_v35, %v3731_v19  ;;  %v5786_v46 = vld [vmem:[%s10277_s1 + $0xc18] sm:$0xf0]  ;;  %v6842_v28 = vld [vmem:[%s10277_s1 + $0xf64] sm:$0xf]  ;;  %v6274_v35 = vld [vmem:[%s10277_s1 + $0xfe8] sm:$0xf0]  ;;  %v6149_v40 = vor.u32 %v6826_v41, %v6146_v44 }
 0x1cc   :  { %3957 = vmatpush.bf16.msra.mxu0 %v5821_v57  ;;  %v5914_v57 = vld [vmem:[%s10277_s1 + $0xd18] sm:$0xf0]  ;;  %v5789_v11 = vor.u32 %v6736_v45, %v5786_v46  ;;  %v6858_v19 = vld [vmem:[%s10277_s1 + $0xfe4] sm:$0xf]  ;;  %v6808_v61 = vld [vmem:[%s10277_s1 + $0xe54] sm:$0xf] }
 0x1cd   :  { %3970 = vmatpush.bf16.msra.mxu1 %v5885_v58  ;;  %v6784_v58 = vld [vmem:[%s10277_s1 + $0xd94] sm:$0xf]  ;;  %v5917_v3 = vor.u32 %v6768_v56, %v5914_v57  ;;  %v6277_v45 = vor.u32 %v6858_v19, %v6274_v35  ;;  %v6138_v46 = vld [vmem:[%s10277_s1 + $0xed8] sm:$0xf0]  ;;  %v6178_v32 = vld [vmem:[%s10277_s1 + $0xf28] sm:$0xf0] }
 0x1ce   :  { %3983 = vmatpush.bf16.msra.mxu2 %v5949_v48  ;;  %v5978_v48 = vld [vmem:[%s10277_s1 + $0xd98] sm:$0xf0]  ;;  %v6242_v44 = vld [vmem:[%s10277_s1 + $0xfa8] sm:$0xf0] }
 0x1cf   :  { %3996 = vmatpush.bf16.msra.mxu3 %v6013_v16  ;;  %v5853_v16 = vor.u32 %v6752_v52, %v5850_v7  ;;  %v6840_v52 = vld [vmem:[%s10277_s1 + $0xf54] sm:$0xf] }
 0x1d0   :  { %3958 = vmatpush.bf16.msra.mxu0 %v5813_v25  ;;  %v3732_v63 = vpop.f32.mrf.mxu2  ;;  %v5981_v25 = vor.u32 %v6784_v58, %v5978_v48  ;;  %v6205_v57 = vor.u32 %v6840_v52, %v6202_v54  ;;  %v6822_v58 = vld [vmem:[%s10277_s1 + $0xec4] sm:$0xf]  ;;  %v6130_v48 = vld [vmem:[%s10277_s1 + $0xec8] sm:$0xf0]  ;;  %v6170_v52 = vld [vmem:[%s10277_s1 + $0xf18] sm:$0xf0] }
 0x1d1   :  { %3971 = vmatpush.bf16.msra.mxu1 %v5877_v1  ;;  %v6782_v1 = vld [vmem:[%s10277_s1 + $0xd84] sm:$0xf]  ;;  %v3745_v29 = vpop.f32.mrf.mxu3  ;;  %v6133_v63 = vor.u32 %v6822_v58, %v6130_v48  ;;  %v6848_v54 = vld [vmem:[%s10277_s1 + $0xf94] sm:$0xf] }
 0x1d2   :  { %3984 = vmatpush.bf16.msra.mxu2 %v5941_v2  ;;  %v5970_v2 = vld [vmem:[%s10277_s1 + $0xd88] sm:$0xf0]  ;;  %v6830_v48 = vld [vmem:[%s10277_s1 + $0xf04] sm:$0xf] }
 0x1d3   :  { %3997 = vmatpush.bf16.msra.mxu3 %v6005_v8  ;;  %v6154_v8 = vld [vmem:[%s10277_s1 + $0xef8] sm:$0xf0] }
 0x1d4   :  { %3959 = vmatpush.bf16.msra.mxu0 %v5805_v38  ;;  %v5973_v38 = vor.u32 %v6782_v1, %v5970_v2  ;;  %v6058_v1 = vld [vmem:[%s10277_s1 + $0xe38] sm:$0xf0]  ;;  %v6820_v2 = vld [vmem:[%s10277_s1 + $0xeb4] sm:$0xf] }
 0x1d5   :  { %3972 = vmatpush.bf16.msra.mxu1 %v5869_v21  ;;  %v6093_v21 = vor.u32 %v6812_v30, %v6090_v4  ;;  %v6122_v30 = vld [vmem:[%s10277_s1 + $0xeb8] sm:$0xf0]  ;;  %v6836_v4 = vld [vmem:[%s10277_s1 + $0xf34] sm:$0xf]  ;;  %v6061_v9 = vor.u32 %v6804_v0, %v6058_v1  ;;  %v6867_v1 = vld [vmem:[%s10279_s3 + $0x28] sm:$0xff] }
 0x1d6   :  { %3985 = vmatpush.bf16.msra.mxu2 %v5933_v27  ;;  %v6157_v27 = vor.u32 %v6828_v33, %v6154_v8  ;;  %v6186_v33 = vld [vmem:[%s10277_s1 + $0xf38] sm:$0xf0]  ;;  %v6125_v55 = vor.u32 %v6820_v2, %v6122_v30  ;;  %v6868_v0 = vld [vmem:[%s10279_s3 + $0x30] sm:$0xff] }
 0x1d7   :  { %3998 = vmatpush.bf16.msra.mxu3 %v5997_v42  ;;  %v6285_v42 = vor.u32 %v6860_v22, %v6282_v17  ;;  %v6250_v8 = vld [vmem:[%s10277_s1 + $0xfb8] sm:$0xf0]  ;;  %v6050_v22 = vld [vmem:[%s10277_s1 + $0xe28] sm:$0xf0]  ;;  %v6818_v17 = vld [vmem:[%s10277_s1 + $0xea4] sm:$0xf] }
 0x1d8   :  { %3960 = vmatpush.bf16.msra.mxu0 %v5797_v47  ;;  %v6213_v47 = vor.u32 %v6842_v28, %v6210_v31 }
 0x1d9   :  { %3973 = vmatpush.bf16.msra.mxu1 %v5861_v50  ;;  %v6074_v50 = vld [vmem:[%s10277_s1 + $0xe58] sm:$0xf0] }
 0x1da   :  { %3986 = vmatpush.bf16.msra.mxu2 %v5925_v51  ;;  %v6824_v51 = vld [vmem:[%s10277_s1 + $0xed4] sm:$0xf]  ;;  %v6077_v7 = vor.u32 %v6808_v61, %v6074_v50  ;;  %v6042_v61 = vld [vmem:[%s10277_s1 + $0xe18] sm:$0xf0] }
 0x1db   :  { %3999 = vmatpush.bf16.msra.mxu3 %v5989_v49  ;;  %v6266_v49 = vld [vmem:[%s10277_s1 + $0xfd8] sm:$0xf0]  ;;  %v6141_v56 = vor.u32 %v6824_v51, %v6138_v46  ;;  %v6816_v50 = vld [vmem:[%s10277_s1 + $0xe94] sm:$0xf] }
 0x1dc   :  { %3961 = vmatpush.bf16.msra.mxu0 %v5789_v11  ;;  %v6838_v11 = vld [vmem:[%s10277_s1 + $0xf44] sm:$0xf]  ;;  %v6832_v46 = vld [vmem:[%s10277_s1 + $0xf14] sm:$0xf] }
 0x1dd   :  { %3974 = vmatpush.bf16.msra.mxu1 %v5853_v16  ;;  %v6854_v16 = vld [vmem:[%s10277_s1 + $0xfc4] sm:$0xf] }
 0x1de   :  { %3987 = vmatpush.bf16.msra.mxu2 %v5917_v3  ;;  %v6258_v3 = vld [vmem:[%s10277_s1 + $0xfc8] sm:$0xf0] }
 0x1df   :  { %4000 = vmatpush.bf16.msra.mxu3 %v5981_v25  ;;  %v6197_v25 = vor.u32 %v6838_v11, %v6194_v12  ;;  %v6162_v11 = vld [vmem:[%s10277_s1 + $0xf08] sm:$0xf0] }
 0x1e0   :  { %3962 = vmatpush.bf16.msra.mxu0 %v5781_v6  ;;  %v3756_v59 = vpop.f32.mrf.mxu0  ;;  %v6852_v6 = vld [vmem:[%s10277_s1 + $0xfb4] sm:$0xf] }
 0x1e1   :  { %3975 = vmatpush.bf16.msra.mxu1 %v5845_v14  ;;  %v3757_v60 = vadd.f32 %v3756_v59, %v9970_v37  ;;  %v3769_v62 = vpop.f32.mrf.mxu1  ;;  %v6261_v37 = vor.u32 %v6854_v16, %v6258_v3  ;;  %v6189_v14 = vor.u32 %v6836_v4, %v6186_v33  ;;  %v6846_v59 = vld [vmem:[%s10277_s1 + $0xf84] sm:$0xf]  ;;  %v6226_v16 = vld [vmem:[%s10277_s1 + $0xf88] sm:$0xf0] }
 0x1e2   :  { %3988 = vmatpush.bf16.msra.mxu2 %v5909_v15  ;;  %v6802_v15 = vld [vmem:[%s10277_s1 + $0xe24] sm:$0xf] }
 0x1e3   :  { %4001 = vmatpush.bf16.msra.mxu3 %v5973_v38  ;;  %3963 = vmatmul.bf16.vlgmr.msra.gmra.mxu0 %v8437_v5  ;;  %v6856_v5 = vld [vmem:[%s10277_s1 + $0xfd4] sm:$0xf]  ;;  %v3770_v29 = vadd.f32 %v3769_v62, %v3757_v60  ;;  %v6253_v38 = vor.u32 %v6852_v6, %v6250_v8  ;;  %v6053_v31 = vor.u32 %v6802_v15, %v6050_v22  ;;  %v6862_v22 = vld [vmem:[%s10279_s3] sm:$0xff] }
 0x1e4   :  { %4007 = vmatpush.bf16.msrb.mxu0 %v6093_v21  ;;  %3976 = vmatmul.bf16.vlgmr.msra.gmra.mxu1 %v8450_v13  ;;  %v6066_v13 = vld [vmem:[%s10277_s1 + $0xe48] sm:$0xf0]  ;;  %v6165_v62 = vor.u32 %v6830_v48, %v6162_v11  ;;  %v6864_v6 = vld [vmem:[%s10279_s3 + $0x10] sm:$0xff] }
 0x1e5   :  { %4020 = vmatpush.bf16.msrb.mxu1 %v6157_v27  ;;  %3989 = vmatmul.bf16.vlgmr.msra.gmra.mxu2 %v8448_v10  ;;  %v6806_v10 = vld [vmem:[%s10277_s1 + $0xe44] sm:$0xf]  ;;  %v6114_v27 = vld [vmem:[%s10277_s1 + $0xea8] sm:$0xf0] }
 0x1e6   :  { %4033 = vmatpush.bf16.msrb.mxu2 %v6221_v18  ;;  %4002 = vmatmul.bf16.vlgmr.msra.gmra.mxu3 %v8458_v53  ;;  %v6269_v53 = vor.u32 %v6856_v5, %v6266_v49  ;;  %v6069_v26 = vor.u32 %v6806_v10, %v6066_v13  ;;  %v6834_v18 = vld [vmem:[%s10277_s1 + $0xf24] sm:$0xf]  ;;  %v6234_v5 = vld [vmem:[%s10277_s1 + $0xf98] sm:$0xf0]  ;;  %v6034_v10 = vld [vmem:[%s10277_s1 + $0xe08] sm:$0xf0] }
 0x1e7   :  { %4046 = vmatpush.bf16.msrb.mxu3 %v6285_v42  ;;  %v6850_v42 = vld [vmem:[%s10277_s1 + $0xfa4] sm:$0xf]  ;;  %v6237_v58 = vor.u32 %v6848_v54, %v6234_v5 }
 0x1e8   :  { %4008 = vmatpush.bf16.msrb.mxu0 %v6085_v20  ;;  %v3782_v21 = vpop.f32.mrf.mxu2  ;;  %v3758_v28 = vpop.f32.mrf.mxu0  ;;  %v6117_v20 = vor.u32 %v6818_v17, %v6114_v27  ;;  %v6245_v51 = vor.u32 %v6850_v42, %v6242_v44  ;;  %v6814_v13 = vld [vmem:[%s10277_s1 + $0xe84] sm:$0xf]  ;;  %v4059_v17 = vmax.f32 %v9570_v23, 0.0 }
 0x1e9   :  { %4021 = vmatpush.bf16.msrb.mxu1 %v6149_v40  ;;  %v3783_v39 = vadd.f32 %v3782_v21, %v3770_v29  ;;  %v3795_v41 = vpop.f32.mrf.mxu3  ;;  %v3771_v19 = vpop.f32.mrf.mxu1  ;;  %v6181_v40 = vor.u32 %v6834_v18, %v6178_v32  ;;  %v6866_v29 = vld [vmem:[%s10279_s3 + $0x20] sm:$0xff] }
 0x1ea   :  { %4034 = vmatpush.bf16.msrb.mxu2 %v6213_v47  ;;  %v6800_v47 = vld [vmem:[%s10277_s1 + $0xe14] sm:$0xf]  ;;  %v6874_v5 = vld [vmem:[%s10279_s3 + $0x60] sm:$0xff] }
 0x1eb   :  { %4047 = vmatpush.bf16.msrb.mxu3 %v6277_v45  ;;  %v3796_v35 = vadd.f32 %v3795_v41, %v3783_v39  ;;  %v6106_v45 = vld [vmem:[%s10277_s1 + $0xe98] sm:$0xf0]  ;;  %v6045_v49 = vor.u32 %v6800_v47, %v6042_v61 }
 0x1ec   :  { %4009 = vmatpush.bf16.msrb.mxu0 %v6077_v7  ;;  %v6109_v7 = vor.u32 %v6816_v50, %v6106_v45  ;;  %v6877_v50 = vld [vmem:[%s10279_s3 + $0x78] sm:$0xff]  ;;  %v6876_v45 = vld [vmem:[%s10279_s3 + $0x70] sm:$0xff] }
 0x1ed   :  { %4022 = vmatpush.bf16.msrb.mxu1 %v6141_v56  ;;  %v6173_v56 = vor.u32 %v6832_v46, %v6170_v52  ;;  %v6875_v46 = vld [vmem:[%s10279_s3 + $0x68] sm:$0xff] }
 0x1ee   :  { %4035 = vmatpush.bf16.msrb.mxu2 %v6205_v57  ;;  %v6798_v57 = vld [vmem:[%s10277_s1 + $0xe04] sm:$0xf] }
 0x1ef   :  { %4048 = vmatpush.bf16.msrb.mxu3 %v6269_v53  ;;  %v6098_v53 = vld [vmem:[%s10277_s1 + $0xe88] sm:$0xf0]  ;;  %v6037_v60 = vor.u32 %v6798_v57, %v6034_v10 }
 0x1f0   :  { %4010 = vmatpush.bf16.msrb.mxu0 %v6069_v26  ;;  %v3784_v12 = vpop.f32.mrf.mxu2  ;;  %v6101_v26 = vor.u32 %v6814_v13, %v6098_v53  ;;  %v6871_v10 = vld [vmem:[%s10279_s3 + $0x48] sm:$0xff] }
 0x1f1   :  { %4023 = vmatpush.bf16.msrb.mxu1 %v6133_v63  ;;  %v3797_v3 = vpop.f32.mrf.mxu3  ;;  %v6229_v63 = vor.u32 %v6846_v59, %v6226_v16  ;;  %v6870_v12 = vld [vmem:[%s10279_s3 + $0x40] sm:$0xff] }
 0x1f2   :  { %4036 = vmatpush.bf16.msrb.mxu2 %v6197_v25  ;;  %v6869_v25 = vld [vmem:[%s10279_s3 + $0x38] sm:$0xff] }
 0x1f3   :  { %4049 = vmatpush.bf16.msrb.mxu3 %v6261_v37 }
 0x1f4   :  { %4011 = vmatpush.bf16.msrb.mxu0 %v6061_v9 }
 0x1f5   :  { %4024 = vmatpush.bf16.msrb.mxu1 %v6125_v55  ;;  %v6863_v55 = vld [vmem:[%s10279_s3 + $0x8] sm:$0xff] }
 0x1f6   :  { %4037 = vmatpush.bf16.msrb.mxu2 %v6189_v14 }
 0x1f7   :  { %4050 = vmatpush.bf16.msrb.mxu3 %v6253_v38  ;;  %v4061_v38 = vpack.c.bf16 %v4059_v17, %v4059_v17 }
 0x1f8   :  { %4012 = vmatpush.bf16.msrb.mxu0 %v6053_v31 }
 0x1f9   :  { %4025 = vmatpush.bf16.msrb.mxu1 %v6117_v20 }
 0x1fa   :  { %4038 = vmatpush.bf16.msrb.mxu2 %v6181_v40 }
 0x1fb   :  { %4051 = vmatpush.bf16.msrb.mxu3 %v6245_v51 }
 0x1fc   :  { %4013 = vmatpush.bf16.msrb.mxu0 %v6045_v49  ;;  %v6873_v49 = vld [vmem:[%s10279_s3 + $0x58] sm:$0xff] }
 0x1fd   :  { %4026 = vmatpush.bf16.msrb.mxu1 %v6109_v7 }
 0x1fe   :  { %4039 = vmatpush.bf16.msrb.mxu2 %v6173_v56  ;;  %v6872_v56 = vld [vmem:[%s10279_s3 + $0x50] sm:$0xff] }
 0x1ff   :  { %4052 = vmatpush.bf16.msrb.mxu3 %v6237_v58 }
 0x200   :  { %4014 = vmatpush.bf16.msrb.mxu0 %v6037_v60  ;;  %v3808_v2 = vpop.f32.mrf.mxu0 }
 0x201   :  { %4027 = vmatpush.bf16.msrb.mxu1 %v6101_v26  ;;  %v3809_v37 = vadd.f32 %v3808_v2, %v3796_v35  ;;  %v3821_v30 = vpop.f32.mrf.mxu1 }
 0x202   :  { %4040 = vmatpush.bf16.msrb.mxu2 %v6165_v62 }
 0x203   :  { %4053 = vmatpush.bf16.msrb.mxu3 %v6229_v63  ;;  %4015 = vmatmul.bf16.vlgmr.msrb.gmra.mxu0 %v8650_v24  ;;  %v3822_v24 = vadd.f32 %v3821_v30, %v3809_v37 }
 0x204   :  { %4195 = vmatpush.bf16.msra.mxu0 %v6869_v25  ;;  %4028 = vmatmul.bf16.vlgmr.msrb.gmra.mxu1 %v8663_v36 }
 0x205   :  { %4041 = vmatmul.bf16.vlgmr.msrb.gmra.mxu2 %v8661_v34  ;;  %v6865_v34 = vld [vmem:[%s10279_s3 + $0x18] sm:$0xff]  ;;  %4208 = vmatpush.bf16.msra.mxu1 %v6877_v50 }
 0x206   :  { %4054 = vmatmul.bf16.vlgmr.msrb.gmra.mxu3 %v8671_v43 }
 0x208   :  { %4196 = vmatpush.bf16.msra.mxu0 %v6868_v0  ;;  %v3834_v36 = vpop.f32.mrf.mxu2  ;;  %v3810_v33 = vpop.f32.mrf.mxu0 }
 0x209   :  { %v3835_v43 = vadd.f32 %v3834_v36, %v3822_v24  ;;  %v3847_v4 = vpop.f32.mrf.mxu3  ;;  %v3823_v8 = vpop.f32.mrf.mxu1  ;;  %4209 = vmatpush.bf16.msra.mxu1 %v6876_v45 }
 0x20b   :  { %v3848_v9 = vadd.f32 %v3847_v4, %v3835_v43 }
 0x20c   :  { %4197 = vmatpush.bf16.msra.mxu0 %v6867_v1 }
 0x20d   :  { %4210 = vmatpush.bf16.msra.mxu1 %v6875_v46 }
 0x210   :  { %4198 = vmatpush.bf16.msra.mxu0 %v6866_v29  ;;  %v3836_v14 = vpop.f32.mrf.mxu2 }
 0x211   :  { %v3849_v15 = vpop.f32.mrf.mxu3  ;;  %4211 = vmatpush.bf16.msra.mxu1 %v6874_v5 }
 0x212   :  { %v6879_v15 = vld [vmem:[%s10280_s4] ss:$0 sm:$0xff] }
 0x214   :  { %4199 = vmatpush.bf16.msra.mxu0 %v6865_v34 }
 0x215   :  { %4212 = vmatpush.bf16.msra.mxu1 %v6873_v49 }
 0x218   :  { %4200 = vmatpush.bf16.msra.mxu0 %v6864_v6 }
 0x219   :  { %4213 = vmatpush.bf16.msra.mxu1 %v6872_v56 }
 0x21c   :  { %4201 = vmatpush.bf16.msra.mxu0 %v6863_v55 }
 0x21d   :  { %4214 = vmatpush.bf16.msra.mxu1 %v6871_v10 }
 0x220   :  { %4202 = vmatpush.bf16.msra.mxu0 %v6862_v22  ;;  %v3860_v21 = vpop.f32.mrf.mxu0 }
 0x221   :  { %v3861_v27 = vadd.f32 %v3860_v21, %v3848_v9  ;;  %v3873_v18 = vpop.f32.mrf.mxu1  ;;  %4215 = vmatpush.bf16.msra.mxu1 %v6870_v12 }
 0x223   :  { %4203 = vmatmul.bf16.vlgmr.msra.gmra.mxu0 %v4061_v38  ;;  %v3874_v32 = vadd.f32 %v3873_v18, %v3861_v27 }
 0x228   :  { %v3886_v39 = vpop.f32.mrf.mxu2  ;;  %v3862_v44 = vpop.f32.mrf.mxu0 }
 0x229   :  { %v3887_v41 = vadd.f32 %v3886_v39, %v3874_v32  ;;  %v3899_v42 = vpop.f32.mrf.mxu3  ;;  %v3875_v28 = vpop.f32.mrf.mxu1 }
 0x22b   :  { %v3900_v31 = vadd.f32 %v3899_v42, %v3887_v41 }
 0x230   :  { %v3888_v19 = vpop.f32.mrf.mxu2 }
 0x231   :  { %v3901_v35 = vpop.f32.mrf.mxu3 }
 0x240   :  { %v3912_v20 = vpop.f32.mrf.mxu0 }
 0x241   :  { %v3925_v40 = vpop.f32.mrf.mxu1  ;;  %v3913_v13 = vadd.f32 %v3912_v20, %v3900_v31 }
 0x243   :  { %v3926_v59 = vadd.f32 %v3925_v40, %v3913_v13 }
 0x248   :  { %v3938_v47 = vpop.f32.mrf.mxu2  ;;  %v3914_v23 = vpop.f32.mrf.mxu0 }
 0x249   :  { %v3951_v61 = vpop.f32.mrf.mxu3  ;;  %v3927_v51 = vpop.f32.mrf.mxu1  ;;  %v3939_v16 = vadd.f32 %v3938_v47, %v3926_v59 }
 0x24b   :  { %v3952_v26 = vadd.f32 %v3951_v61, %v3939_v16 }
 0x250   :  { %v3940_v52 = vpop.f32.mrf.mxu2 }
 0x251   :  { %v3953_v54 = vpop.f32.mrf.mxu3 }
 0x260   :  { %v3964_v7 = vpop.f32.mrf.mxu0 }
 0x261   :  { %v3977_v57 = vpop.f32.mrf.mxu1  ;;  %v3965_v62 = vadd.f32 %v3964_v7, %v3952_v26 }
 0x263   :  { %v3978_v63 = vadd.f32 %v3977_v57, %v3965_v62 }
 0x268   :  { %v3990_v58 = vpop.f32.mrf.mxu2  ;;  %v3966_v48 = vpop.f32.mrf.mxu0 }
 0x269   :  { %v4003_v53 = vpop.f32.mrf.mxu3  ;;  %v3979_v11 = vpop.f32.mrf.mxu1  ;;  %v3991_v25 = vadd.f32 %v3990_v58, %v3978_v63 }
 0x26b   :  { %v4004_v0 = vadd.f32 %v4003_v53, %v3991_v25 }
 0x270   :  { %v3992_v3 = vpop.f32.mrf.mxu2 }
 0x271   :  { %v4005_v60 = vpop.f32.mrf.mxu3 }
 0x280   :  { %v4016_v1 = vpop.f32.mrf.mxu0 }
 0x281   :  { %v4029_v2 = vpop.f32.mrf.mxu1  ;;  %v4017_v37 = vadd.f32 %v4016_v1, %v4004_v0 }
 0x283   :  { %v4030_v29 = vadd.f32 %v4029_v2, %v4017_v37 }
 0x288   :  { %v4042_v30 = vpop.f32.mrf.mxu2  ;;  %v4018_v36 = vpop.f32.mrf.mxu0 }
 0x289   :  { %v4043_v24 = vadd.f32 %v4042_v30, %v4030_v29  ;;  %v4055_v34 = vpop.f32.mrf.mxu3  ;;  %v4031_v43 = vpop.f32.mrf.mxu1 }
 0x28b   :  { %v4056_v4 = vadd.f32 %v4055_v34, %v4043_v24 }
 0x28d   :  { %v4060_v33 = vmax.f32 %v4056_v4, 0.0 }
 0x28f   :  { %v4062_v6 = vpack.c.bf16 %v4060_v33, %v4060_v33 }
 0x290   :  { %v4044_v8 = vpop.f32.mrf.mxu2 }
 0x291   :  { %v4057_v9 = vpop.f32.mrf.mxu3  ;;  %4216 = vmatmul.bf16.vlgmr.msra.gmra.mxu1 %v4062_v6 }
 0x2a0   :  { %v4204_v55 = vpop.f32.mrf.mxu0 }
 0x2a1   :  { %v4205_v22 = vadd.f32 %v6879_v15, %v4204_v55 }
 0x2a8   :  { %v4206_v14 = vpop.f32.mrf.mxu0 }
 0x30e   :  { %v4217_v17 = vpop.f32.mrf.mxu1 }
 0x30f   :  { %v4218_v38 = vadd.f32 %v4217_v17, %v4205_v22 }
 0x311   :  { %4221 = vst [vmem:[#allocation2] sm:$0xff] %v4218_v38 }
 0x312   :  { %4232 = dma.vmem_to_hbm [thread:$0]  %s4228_s30, 128, %s4230_s8, [#allocation3]  }
 0x316   :  { %v4219_v21 = vpop.f32.mrf.mxu1 }
 0x317   :  { %6905 = dma.done.wait [#allocation3], 128  }
 0x318   :  { %6906 = vsyncadd [#allocation3], 4294967168 }
 0x319   :  { %4237 = vsyncpa [#allocation3], 1 }

</bundles_post_ra>
